<compile_context>
chip_gen: v7x
topology: tpu7x:2x2x1
jax: 0.10.0
libtpu: 0.0.40
codegen_flags: <defaults>
</compile_context>

<pallas_src>
import jax
import jax.numpy as jnp
from jax.experimental import pallas as pl
from jax.experimental.pallas import tpu as pltpu

EPS = 1e-5  # nn.InstanceNorm2d default eps
LANE = 128


# ------------------------- in-kernel helpers -------------------------

def _conv3x3_taps(xp, w_ref, b_ref, H, W):
    """3x3 'VALID' conv on a pre-padded input via 9 per-tap MXU matmuls.

    xp:    (H+2, W+2, Cp) in the MXU compute dtype.
    w_ref: Ref of shape (9*Cp, Cp), rows ordered (kh, kw, ci).
    b_ref: Ref of shape (1, Cp) f32.
    Returns f32 (H, W, Cp).
    """
    Cp = xp.shape[-1]
    # Three width-shifted views (only dw=1,2 need a sublane relayout); the
    # dh slices below are leading-dim slices (cheap). No lane-axis concat.
    xw = [xp[:, dw:dw + W, :] for dw in range(3)]
    acc = None
    for dh in range(3):
        for dw in range(3):
            tap = dh * 3 + dw
            lhs = xw[dw][dh:dh + H].reshape(H * W, Cp)
            w_tap = w_ref[tap * Cp:(tap + 1) * Cp, :]          # (Cp, Cp)
            part = jnp.dot(lhs, w_tap, preferred_element_type=jnp.float32)
            # Chain of dots: on v7x the MRB can accumulate in place.
            acc = part if acc is None else acc + part
    return (acc + b_ref[...]).reshape(H, W, Cp)


def _instance_norm(y, inv_hw):
    """Per-channel, per-sample normalization over spatial dims (biased var).

    Single traversal: sum and sum-of-squares accumulated together
    (E[x^2] - m^2 in f32, clamped at 0; eps=1e-5 as in InstanceNorm2d).
    """
    s = jnp.sum(y, axis=(0, 1), keepdims=True)
    s2 = jnp.sum(y * y, axis=(0, 1), keepdims=True)
    mean = s * inv_hw
    var = jnp.maximum(s2 * inv_hw - mean * mean, 0.0)
    return (y - mean) * jax.lax.rsqrt(var + EPS)


# ------------------------------ kernel ------------------------------

def resnet_block_kernel(xp_ref, w1_ref, b1_ref, w2_ref, b2_ref, o_ref, pad_ref):
    Hp, Wp, Cp = xp_ref.shape
    H, W = Hp - 2, Wp - 2
    inv_hw = 1.0 / float(H * W)
    cdt = w1_ref.dtype                     # MXU compute dtype (bf16 default / f32)

    # ---- block 1: conv3x3 (input already reflect-padded) -> IN -> ReLU ----
    xp = xp_ref[...].astype(cdt)
    y = _conv3x3_taps(xp, w1_ref, b1_ref, H, W)        # f32 (H, W, Cp)
    y = _instance_norm(y, inv_hw)
    y = jnp.maximum(y, 0.0)
    # (use_dropout=False -> no dropout layer here)

    # ---- reflect-pad y into the f32 VMEM scratch ----
    # Every write is sourced from y (no pad_ref read-back): interior, top/bottom
    # rows, left/right columns, and the four corners explicitly.
    pad_ref[1:H + 1, 1:W + 1, :] = y                           # interior
    pad_ref[0:1, 1:W + 1, :] = y[1:2]                          # top    = row 1
    pad_ref[H + 1:Hp, 1:W + 1, :] = y[H - 2:H - 1]             # bottom = row H-2
    pad_ref[1:H + 1, 0:1, :] = y[:, 1:2, :]                    # left   = col 1
    pad_ref[1:H + 1, W + 1:Wp, :] = y[:, W - 2:W - 1, :]       # right  = col W-2
    pad_ref[0:1, 0:1, :] = y[1:2, 1:2, :]                      # corners
    pad_ref[0:1, W + 1:Wp, :] = y[1:2, W - 2:W - 1, :]
    pad_ref[H + 1:Hp, 0:1, :] = y[H - 2:H - 1, 1:2, :]
    pad_ref[H + 1:Hp, W + 1:Wp, :] = y[H - 2:H - 1, W - 2:W - 1, :]

    # ---- block 2: conv3x3 -> IN ----
    y2 = _conv3x3_taps(pad_ref[...].astype(cdt), w2_ref, b2_ref, H, W)
    y2 = _instance_norm(y2, inv_hw)

    # ---- skip connection (f32, unpadded interior straight from the f32 input) ----
    x_skip = xp_ref[1:H + 1, 1:W + 1, :].astype(jnp.float32)
    o_ref[...] = (x_skip + y2).astype(o_ref.dtype)


# ----------------------------- wrapper ------------------------------

def resnet_block(x_nchw, w1_oihw, b1, w2_oihw, b2, *, compute_dtype=jnp.bfloat16):
    """x_nchw: (N, C, H, W); weights in PyTorch OIHW (C, C, 3, 3); biases (C,).

    compute_dtype controls the dtype fed to the MXU (weights + conv activations).
    Statistics / bias adds / residual add are always f32. Default bf16 targets
    v6e/v7x MXU throughput and halves the conv-input VMEM traffic; pass
    jnp.float32 for bit-accurate checking (and on v5e elementwise-heavy use).
    """
    N, C, H, W = x_nchw.shape
    assert H >= 2 and W >= 2, "ReflectionPad2d(1) requires H, W >= 2"
    Cp = ((C + LANE - 1) // LANE) * LANE             # lane-dense channel padding
    Hp, Wp = H + 2, W + 2
    # NOTE: tiny C (e.g. 4) is padded to 128 lanes -> ~(Cp/C)x extra MXU flops
    # and output HBM bytes. Fine for the production CycleGAN dim=256 (Cp==C*1);
    # if tiny C were a real workload, repack W (or H*W tiles) onto the lane axis.

    # NCHW -> NHWC, reflect-pad spatially ONCE (XLA side), zero-pad channels.
    x = jnp.transpose(x_nchw, (0, 2, 3, 1))
    xp = jnp.pad(x, ((0, 0), (1, 1), (1, 1), (0, 0)), mode='reflect')
    if Cp != C:
        xp = jnp.pad(xp, ((0, 0), (0, 0), (0, 0), (0, Cp - C)))

    def prep(w_oihw, b):
        w = jnp.transpose(w_oihw, (2, 3, 1, 0))      # OIHW -> HWIO
        if Cp != C:
            w = jnp.pad(w, ((0, 0), (0, 0), (0, Cp - C), (0, Cp - C)))
        w_flat = w.reshape(9 * Cp, Cp).astype(compute_dtype)   # rows = (kh, kw, ci)
        bp = b if Cp == C else jnp.pad(b, (0, Cp - C))
        return w_flat, bp.reshape(1, Cp).astype(jnp.float32)

    w1f, b1p = prep(w1_oihw, b1)
    w2f, b2p = prep(w2_oihw, b2)

    cbytes = jnp.dtype(compute_dtype).itemsize
    x_item = jnp.dtype(x_nchw.dtype).itemsize
    cost = pl.CostEstimate(
        flops=int(N * 2 * (2 * H * W * (9 * Cp) * Cp)),          # two 3x3 convs
        transcendentals=int(N * 2 * Cp),                          # rsqrt per channel/norm
        bytes_accessed=int(xp.size * x_item + N * H * W * Cp * x_item
                           + (w1f.size + w2f.size) * cbytes
                           + (b1p.size + b2p.size) * 4),
    )
    # VMEM budget (per-tap conv, no patches buffer):
    #   bf16 default -> 48 MiB, fits v7x's 64 MiB/TC at dim=256, H=W=64 with headroom.
    #   f32 debug    -> 64 MiB, targets v5e/v6e 128 MiB parts.
    vmem_limit = (48 if cbytes <= 2 else 64) * 1024 * 1024

    def run(single_buffer_weights):
        def const_spec(shape):
            # Constant index_map: block is fetched once. Buffered(1) additionally
            # avoids allocating a second (never used) buffer for it.
            if single_buffer_weights:
                return pl.BlockSpec(shape, lambda n: (0, 0),
                                    pipeline_mode=pl.Buffered(1))
            return pl.BlockSpec(shape, lambda n: (0, 0))

        call = pl.pallas_call(
            resnet_block_kernel,
            out_shape=jax.ShapeDtypeStruct((N, H, W, Cp), x_nchw.dtype),
            grid_spec=pltpu.PrefetchScalarGridSpec(
                num_scalar_prefetch=0,
                grid=(N,),                                  # one image per grid step
                in_specs=[
                    pl.BlockSpec((pl.Squeezed(), Hp, Wp, Cp), lambda n: (n, 0, 0, 0)),
                    const_spec((9 * Cp, Cp)),
                    const_spec((1, Cp)),
                    const_spec((9 * Cp, Cp)),
                    const_spec((1, Cp)),
                ],
                out_specs=pl.BlockSpec((pl.Squeezed(), H, W, Cp),
                                       lambda n: (n, 0, 0, 0)),
                scratch_shapes=[pltpu.VMEM((Hp, Wp, Cp), jnp.float32)],  # padded y
            ),
            compiler_params=pltpu.CompilerParams(
                # Megacore / v7x 2-TC split over N (only helps for N >= 2; an
                # N=1 inference split over cores would need a second grid axis).
                dimension_semantics=("parallel",),
                vmem_limit_bytes=vmem_limit,
            ),
            cost_estimate=cost,
        )
        return call(xp, w1f, b1p, w2f, b2p)

    try:
        out = run(True)
    except Exception:
        # pipeline_mode=pl.Buffered(1) not supported by this JAX/Mosaic version;
        # fall back to default buffering (still correct, ~2 MiB extra VMEM).
        out = run(False)

    if Cp != C:
        out = out[..., :C]
    return jnp.transpose(out, (0, 3, 1, 2))             # NHWC -> NCHW


# --------------------------- pure-JAX ref ---------------------------

def _ref_forward(x, w1, b1, w2, b2):
    def conv(h, w, b):
        hp = jnp.pad(h, ((0, 0), (0, 0), (1, 1), (1, 1)), mode='reflect')
        y = jax.lax.conv_general_dilated(
            hp, w, (1, 1), 'VALID',
            dimension_numbers=('NCHW', 'OIHW', 'NCHW'))
        return y + b[None, :, None, None]

    def inorm(y):
        m = jnp.mean(y, axis=(2, 3), keepdims=True)
        v = jnp.mean((y - m) ** 2, axis=(2, 3), keepdims=True)
        return (y - m) * jax.lax.rsqrt(v + EPS)

    h = jnp.maximum(inorm(conv(x, w1, b1)), 0.0)
    h = inorm(conv(h, w2, b2))
    return x + h


# ------------------------------- main -------------------------------

if __name__ == "__main__":
    key = jax.random.PRNGKey(0)
    kx, kw1, kb1, kw2, kb2 = jax.random.split(key, 5)

    N, C, H, W = 2, 4, 16, 16   # dim = 4 (small test shape)
    x = jax.random.normal(kx, (N, C, H, W), jnp.float32)
    w1 = jax.random.normal(kw1, (C, C, 3, 3), jnp.float32) * 0.1
    b1 = jax.random.normal(kb1, (C,), jnp.float32) * 0.1
    w2 = jax.random.normal(kw2, (C, C, 3, 3), jnp.float32) * 0.1
    b2 = jax.random.normal(kb2, (C,), jnp.float32) * 0.1

    ref = _ref_forward(x, w1, b1, w2, b2)

    # f32 MXU path: must match the PyTorch-equivalent reference tightly.
    out_f32 = resnet_block(x, w1, b1, w2, b2, compute_dtype=jnp.float32)
    jax.block_until_ready(out_f32)
    assert out_f32.shape == (N, C, H, W)
    err = float(jnp.max(jnp.abs(out_f32 - ref)))
    assert jnp.allclose(out_f32, ref, atol=1e-4, rtol=1e-4), f"max abs err {err}"

    # default bf16 MXU path (production v6e/v7x): loose sanity check only.
    out_bf16 = resnet_block(x, w1, b1, w2, b2)
    jax.block_until_ready(out_bf16)
    assert out_bf16.shape == (N, C, H, W)
    assert bool(jnp.all(jnp.isfinite(out_bf16)))
    assert jnp.allclose(out_bf16, ref, atol=1e-1, rtol=1e-1), \
        f"bf16 max abs err {float(jnp.max(jnp.abs(out_bf16 - ref)))}"

    print("KERNEL_OK")
</pallas_src>

<mosaic_0001>
module attributes {stable_mosaic.version = 11 : i64} {
  func.func @resnet_block_kernel(%arg0: i32, %arg1: memref<1x18x18x128xf32, #tpu.memory_space<vmem>>, %arg2: memref<1152x128xf32, #tpu.memory_space<vmem>>, %arg3: memref<1x128xf32, #tpu.memory_space<vmem>>, %arg4: memref<1152x128xf32, #tpu.memory_space<vmem>>, %arg5: memref<1x128xf32, #tpu.memory_space<vmem>>, %arg6: memref<1x16x16x128xf32, #tpu.memory_space<vmem>>, %arg7: memref<18x18x128xf32, #tpu.memory_space<vmem>>) attributes {dimension_semantics = [#tpu.dimension_semantics<parallel>], iteration_bounds = array<i64: 2>, scalar_prefetch = 0 : i64, scratch_operands = 1 : i64, tpu.core_type = #tpu.core_type<tc>, window_params = [{transform_indices = @transform_0, window_bounds = array<i64: 1, 18, 18, 128>}, {pipeline_mode = #tpu.pipeline_mode<synchronous>, transform_indices = @transform_1, window_bounds = array<i64: 1152, 128>}, {pipeline_mode = #tpu.pipeline_mode<synchronous>, transform_indices = @transform_2, window_bounds = array<i64: 1, 128>}, {pipeline_mode = #tpu.pipeline_mode<synchronous>, transform_indices = @transform_3, window_bounds = array<i64: 1152, 128>}, {pipeline_mode = #tpu.pipeline_mode<synchronous>, transform_indices = @transform_4, window_bounds = array<i64: 1, 128>}, {transform_indices = @transform_5, window_bounds = array<i64: 1, 16, 16, 128>}]} {
    %c0 = arith.constant 0 : index
    %c0_0 = arith.constant 0 : index
    %c0_1 = arith.constant 0 : index
    %c0_2 = arith.constant 0 : index
    %0 = vector.load %arg1[%c0, %c0_0, %c0_1, %c0_2] : memref<1x18x18x128xf32, #tpu.memory_space<vmem>>, vector<1x18x18x128xf32>
    %1 = vector.shape_cast %0 : vector<1x18x18x128xf32> to vector<18x18x128xf32>
    %2 = vector.extract_strided_slice %1 {offsets = [0, 0, 0], sizes = [18, 16, 128], strides = [1, 1, 1]} : vector<18x18x128xf32> to vector<18x16x128xf32>
    %3 = vector.extract_strided_slice %1 {offsets = [0, 1, 0], sizes = [18, 16, 128], strides = [1, 1, 1]} : vector<18x18x128xf32> to vector<18x16x128xf32>
    %4 = vector.extract_strided_slice %1 {offsets = [0, 2, 0], sizes = [18, 16, 128], strides = [1, 1, 1]} : vector<18x18x128xf32> to vector<18x16x128xf32>
    %5 = vector.extract_strided_slice %2 {offsets = [0, 0, 0], sizes = [16, 16, 128], strides = [1, 1, 1]} : vector<18x16x128xf32> to vector<16x16x128xf32>
    %6 = vector.shape_cast %5 : vector<16x16x128xf32> to vector<256x128xf32>
    %c0_3 = arith.constant 0 : index
    %c0_4 = arith.constant 0 : index
    %7 = vector.load %arg2[%c0_3, %c0_4] : memref<1152x128xf32, #tpu.memory_space<vmem>>, vector<128x128xf32>
    %cst = arith.constant dense<0.000000e+00> : vector<256x128xf32>
    %8 = tpu.matmul %6, %7, %cst {dimension_numbers = #tpu.dot_dimension_numbers<[1], [0], [0], [1], [0, 0, 1, 1], [], []>} : vector<256x128xf32>, vector<128x128xf32>, vector<256x128xf32> -> vector<256x128xf32>
    %9 = vector.extract_strided_slice %3 {offsets = [0, 0, 0], sizes = [16, 16, 128], strides = [1, 1, 1]} : vector<18x16x128xf32> to vector<16x16x128xf32>
    %10 = vector.shape_cast %9 : vector<16x16x128xf32> to vector<256x128xf32>
    %c128 = arith.constant 128 : index
    %c0_5 = arith.constant 0 : index
    %11 = vector.load %arg2[%c128, %c0_5] : memref<1152x128xf32, #tpu.memory_space<vmem>>, vector<128x128xf32>
    %cst_6 = arith.constant dense<0.000000e+00> : vector<256x128xf32>
    %12 = tpu.matmul %10, %11, %cst_6 {dimension_numbers = #tpu.dot_dimension_numbers<[1], [0], [0], [1], [0, 0, 1, 1], [], []>} : vector<256x128xf32>, vector<128x128xf32>, vector<256x128xf32> -> vector<256x128xf32>
    %13 = arith.addf %8, %12 : vector<256x128xf32>
    %14 = vector.extract_strided_slice %4 {offsets = [0, 0, 0], sizes = [16, 16, 128], strides = [1, 1, 1]} : vector<18x16x128xf32> to vector<16x16x128xf32>
    %15 = vector.shape_cast %14 : vector<16x16x128xf32> to vector<256x128xf32>
    %c256 = arith.constant 256 : index
    %c0_7 = arith.constant 0 : index
    %16 = vector.load %arg2[%c256, %c0_7] : memref<1152x128xf32, #tpu.memory_space<vmem>>, vector<128x128xf32>
    %cst_8 = arith.constant dense<0.000000e+00> : vector<256x128xf32>
    %17 = tpu.matmul %15, %16, %cst_8 {dimension_numbers = #tpu.dot_dimension_numbers<[1], [0], [0], [1], [0, 0, 1, 1], [], []>} : vector<256x128xf32>, vector<128x128xf32>, vector<256x128xf32> -> vector<256x128xf32>
    %18 = arith.addf %13, %17 : vector<256x128xf32>
    %19 = vector.extract_strided_slice %2 {offsets = [1, 0, 0], sizes = [16, 16, 128], strides = [1, 1, 1]} : vector<18x16x128xf32> to vector<16x16x128xf32>
    %20 = vector.shape_cast %19 : vector<16x16x128xf32> to vector<256x128xf32>
    %c384 = arith.constant 384 : index
    %c0_9 = arith.constant 0 : index
    %21 = vector.load %arg2[%c384, %c0_9] : memref<1152x128xf32, #tpu.memory_space<vmem>>, vector<128x128xf32>
    %cst_10 = arith.constant dense<0.000000e+00> : vector<256x128xf32>
    %22 = tpu.matmul %20, %21, %cst_10 {dimension_numbers = #tpu.dot_dimension_numbers<[1], [0], [0], [1], [0, 0, 1, 1], [], []>} : vector<256x128xf32>, vector<128x128xf32>, vector<256x128xf32> -> vector<256x128xf32>
    %23 = arith.addf %18, %22 : vector<256x128xf32>
    %24 = vector.extract_strided_slice %3 {offsets = [1, 0, 0], sizes = [16, 16, 128], strides = [1, 1, 1]} : vector<18x16x128xf32> to vector<16x16x128xf32>
    %25 = vector.shape_cast %24 : vector<16x16x128xf32> to vector<256x128xf32>
    %c512 = arith.constant 512 : index
    %c0_11 = arith.constant 0 : index
    %26 = vector.load %arg2[%c512, %c0_11] : memref<1152x128xf32, #tpu.memory_space<vmem>>, vector<128x128xf32>
    %cst_12 = arith.constant dense<0.000000e+00> : vector<256x128xf32>
    %27 = tpu.matmul %25, %26, %cst_12 {dimension_numbers = #tpu.dot_dimension_numbers<[1], [0], [0], [1], [0, 0, 1, 1], [], []>} : vector<256x128xf32>, vector<128x128xf32>, vector<256x128xf32> -> vector<256x128xf32>
    %28 = arith.addf %23, %27 : vector<256x128xf32>
    %29 = vector.extract_strided_slice %4 {offsets = [1, 0, 0], sizes = [16, 16, 128], strides = [1, 1, 1]} : vector<18x16x128xf32> to vector<16x16x128xf32>
    %30 = vector.shape_cast %29 : vector<16x16x128xf32> to vector<256x128xf32>
    %c640 = arith.constant 640 : index
    %c0_13 = arith.constant 0 : index
    %31 = vector.load %arg2[%c640, %c0_13] : memref<1152x128xf32, #tpu.memory_space<vmem>>, vector<128x128xf32>
    %cst_14 = arith.constant dense<0.000000e+00> : vector<256x128xf32>
    %32 = tpu.matmul %30, %31, %cst_14 {dimension_numbers = #tpu.dot_dimension_numbers<[1], [0], [0], [1], [0, 0, 1, 1], [], []>} : vector<256x128xf32>, vector<128x128xf32>, vector<256x128xf32> -> vector<256x128xf32>
    %33 = arith.addf %28, %32 : vector<256x128xf32>
    %34 = vector.extract_strided_slice %2 {offsets = [2, 0, 0], sizes = [16, 16, 128], strides = [1, 1, 1]} : vector<18x16x128xf32> to vector<16x16x128xf32>
    %35 = vector.shape_cast %34 : vector<16x16x128xf32> to vector<256x128xf32>
    %c768 = arith.constant 768 : index
    %c0_15 = arith.constant 0 : index
    %36 = vector.load %arg2[%c768, %c0_15] : memref<1152x128xf32, #tpu.memory_space<vmem>>, vector<128x128xf32>
    %cst_16 = arith.constant dense<0.000000e+00> : vector<256x128xf32>
    %37 = tpu.matmul %35, %36, %cst_16 {dimension_numbers = #tpu.dot_dimension_numbers<[1], [0], [0], [1], [0, 0, 1, 1], [], []>} : vector<256x128xf32>, vector<128x128xf32>, vector<256x128xf32> -> vector<256x128xf32>
    %38 = arith.addf %33, %37 : vector<256x128xf32>
    %39 = vector.extract_strided_slice %3 {offsets = [2, 0, 0], sizes = [16, 16, 128], strides = [1, 1, 1]} : vector<18x16x128xf32> to vector<16x16x128xf32>
    %40 = vector.shape_cast %39 : vector<16x16x128xf32> to vector<256x128xf32>
    %c896 = arith.constant 896 : index
    %c0_17 = arith.constant 0 : index
    %41 = vector.load %arg2[%c896, %c0_17] : memref<1152x128xf32, #tpu.memory_space<vmem>>, vector<128x128xf32>
    %cst_18 = arith.constant dense<0.000000e+00> : vector<256x128xf32>
    %42 = tpu.matmul %40, %41, %cst_18 {dimension_numbers = #tpu.dot_dimension_numbers<[1], [0], [0], [1], [0, 0, 1, 1], [], []>} : vector<256x128xf32>, vector<128x128xf32>, vector<256x128xf32> -> vector<256x128xf32>
    %43 = arith.addf %38, %42 : vector<256x128xf32>
    %44 = vector.extract_strided_slice %4 {offsets = [2, 0, 0], sizes = [16, 16, 128], strides = [1, 1, 1]} : vector<18x16x128xf32> to vector<16x16x128xf32>
    %45 = vector.shape_cast %44 : vector<16x16x128xf32> to vector<256x128xf32>
    %c1024 = arith.constant 1024 : index
    %c0_19 = arith.constant 0 : index
    %46 = vector.load %arg2[%c1024, %c0_19] : memref<1152x128xf32, #tpu.memory_space<vmem>>, vector<128x128xf32>
    %cst_20 = arith.constant dense<0.000000e+00> : vector<256x128xf32>
    %47 = tpu.matmul %45, %46, %cst_20 {dimension_numbers = #tpu.dot_dimension_numbers<[1], [0], [0], [1], [0, 0, 1, 1], [], []>} : vector<256x128xf32>, vector<128x128xf32>, vector<256x128xf32> -> vector<256x128xf32>
    %48 = arith.addf %43, %47 : vector<256x128xf32>
    %c0_21 = arith.constant 0 : index
    %c0_22 = arith.constant 0 : index
    %49 = vector.load %arg3[%c0_21, %c0_22] : memref<1x128xf32, #tpu.memory_space<vmem>>, vector<1x128xf32>
    %50 = vector.broadcast %49 : vector<1x128xf32> to vector<256x128xf32>
    %51 = arith.addf %48, %50 : vector<256x128xf32>
    %52 = vector.shape_cast %51 : vector<256x128xf32> to vector<16x16x128xf32>
    %cst_23 = arith.constant dense<0.000000e+00> : vector<128xf32>
    %53 = vector.multi_reduction <add>, %52, %cst_23 [0, 1] : vector<16x16x128xf32> to vector<128xf32>
    %54 = vector.shape_cast %53 : vector<128xf32> to vector<1x1x128xf32>
    %55 = arith.mulf %52, %52 : vector<16x16x128xf32>
    %cst_24 = arith.constant dense<0.000000e+00> : vector<128xf32>
    %56 = vector.multi_reduction <add>, %55, %cst_24 [0, 1] : vector<16x16x128xf32> to vector<128xf32>
    %57 = vector.shape_cast %56 : vector<128xf32> to vector<1x1x128xf32>
    %cst_25 = arith.constant 3.906250e-03 : f32
    %58 = vector.broadcast %cst_25 : f32 to vector<1x1x128xf32>
    %59 = arith.mulf %54, %58 : vector<1x1x128xf32>
    %cst_26 = arith.constant 3.906250e-03 : f32
    %60 = vector.broadcast %cst_26 : f32 to vector<1x1x128xf32>
    %61 = arith.mulf %57, %60 : vector<1x1x128xf32>
    %62 = arith.mulf %59, %59 : vector<1x1x128xf32>
    %63 = arith.subf %61, %62 : vector<1x1x128xf32>
    %cst_27 = arith.constant 0.000000e+00 : f32
    %64 = vector.broadcast %cst_27 : f32 to vector<1x1x128xf32>
    %65 = arith.maximumf %63, %64 : vector<1x1x128xf32>
    %66 = vector.broadcast %59 : vector<1x1x128xf32> to vector<16x16x128xf32>
    %67 = arith.subf %52, %66 : vector<16x16x128xf32>
    %cst_28 = arith.constant 9.99999974E-6 : f32
    %68 = vector.broadcast %cst_28 : f32 to vector<1x1x128xf32>
    %69 = arith.addf %65, %68 : vector<1x1x128xf32>
    %70 = math.rsqrt %69 : vector<1x1x128xf32>
    %71 = vector.broadcast %70 : vector<1x1x128xf32> to vector<16x16x128xf32>
    %72 = arith.mulf %67, %71 : vector<16x16x128xf32>
    %cst_29 = arith.constant 0.000000e+00 : f32
    %73 = vector.broadcast %cst_29 : f32 to vector<16x16x128xf32>
    %74 = arith.maximumf %72, %73 : vector<16x16x128xf32>
    %c1 = arith.constant 1 : index
    %c1_30 = arith.constant 1 : index
    %c0_31 = arith.constant 0 : index
    %75 = vector.load %arg7[%c1, %c1_30, %c0_31] : memref<18x18x128xf32, #tpu.memory_space<vmem>>, vector<16x16x128xf32>
    tpu.vector_store %arg7[%c1, %c1_30, %c0_31], %74 {strides = array<i32>} : memref<18x18x128xf32, #tpu.memory_space<vmem>>, vector<16x16x128xf32>,
    %76 = vector.extract_strided_slice %74 {offsets = [1, 0, 0], sizes = [1, 16, 128], strides = [1, 1, 1]} : vector<16x16x128xf32> to vector<1x16x128xf32>
    %c0_32 = arith.constant 0 : index
    %c1_33 = arith.constant 1 : index
    %c0_34 = arith.constant 0 : index
    %77 = vector.load %arg7[%c0_32, %c1_33, %c0_34] : memref<18x18x128xf32, #tpu.memory_space<vmem>>, vector<1x16x128xf32>
    tpu.vector_store %arg7[%c0_32, %c1_33, %c0_34], %76 {strides = array<i32>} : memref<18x18x128xf32, #tpu.memory_space<vmem>>, vector<1x16x128xf32>,
    %78 = vector.extract_strided_slice %74 {offsets = [14, 0, 0], sizes = [1, 16, 128], strides = [1, 1, 1]} : vector<16x16x128xf32> to vector<1x16x128xf32>
    %c17 = arith.constant 17 : index
    %c1_35 = arith.constant 1 : index
    %c0_36 = arith.constant 0 : index
    %79 = vector.load %arg7[%c17, %c1_35, %c0_36] : memref<18x18x128xf32, #tpu.memory_space<vmem>>, vector<1x16x128xf32>
    tpu.vector_store %arg7[%c17, %c1_35, %c0_36], %78 {strides = array<i32>} : memref<18x18x128xf32, #tpu.memory_space<vmem>>, vector<1x16x128xf32>,
    %80 = vector.extract_strided_slice %74 {offsets = [0, 1, 0], sizes = [16, 1, 128], strides = [1, 1, 1]} : vector<16x16x128xf32> to vector<16x1x128xf32>
    %c1_37 = arith.constant 1 : index
    %c0_38 = arith.constant 0 : index
    %c0_39 = arith.constant 0 : index
    %81 = vector.load %arg7[%c1_37, %c0_38, %c0_39] : memref<18x18x128xf32, #tpu.memory_space<vmem>>, vector<16x1x128xf32>
    tpu.vector_store %arg7[%c1_37, %c0_38, %c0_39], %80 {strides = array<i32>} : memref<18x18x128xf32, #tpu.memory_space<vmem>>, vector<16x1x128xf32>,
    %82 = vector.extract_strided_slice %74 {offsets = [0, 14, 0], sizes = [16, 1, 128], strides = [1, 1, 1]} : vector<16x16x128xf32> to vector<16x1x128xf32>
    %c1_40 = arith.constant 1 : index
    %c17_41 = arith.constant 17 : index
    %c0_42 = arith.constant 0 : index
    %83 = vector.load %arg7[%c1_40, %c17_41, %c0_42] : memref<18x18x128xf32, #tpu.memory_space<vmem>>, vector<16x1x128xf32>
    tpu.vector_store %arg7[%c1_40, %c17_41, %c0_42], %82 {strides = array<i32>} : memref<18x18x128xf32, #tpu.memory_space<vmem>>, vector<16x1x128xf32>,
    %84 = vector.extract_strided_slice %74 {offsets = [1, 1, 0], sizes = [1, 1, 128], strides = [1, 1, 1]} : vector<16x16x128xf32> to vector<1x1x128xf32>
    %c0_43 = arith.constant 0 : index
    %c0_44 = arith.constant 0 : index
    %c0_45 = arith.constant 0 : index
    %85 = vector.load %arg7[%c0_43, %c0_44, %c0_45] : memref<18x18x128xf32, #tpu.memory_space<vmem>>, vector<1x1x128xf32>
    tpu.vector_store %arg7[%c0_43, %c0_44, %c0_45], %84 {strides = array<i32>} : memref<18x18x128xf32, #tpu.memory_space<vmem>>, vector<1x1x128xf32>,
    %86 = vector.extract_strided_slice %74 {offsets = [1, 14, 0], sizes = [1, 1, 128], strides = [1, 1, 1]} : vector<16x16x128xf32> to vector<1x1x128xf32>
    %c0_46 = arith.constant 0 : index
    %c17_47 = arith.constant 17 : index
    %c0_48 = arith.constant 0 : index
    %87 = vector.load %arg7[%c0_46, %c17_47, %c0_48] : memref<18x18x128xf32, #tpu.memory_space<vmem>>, vector<1x1x128xf32>
    tpu.vector_store %arg7[%c0_46, %c17_47, %c0_48], %86 {strides = array<i32>} : memref<18x18x128xf32, #tpu.memory_space<vmem>>, vector<1x1x128xf32>,
    %88 = vector.extract_strided_slice %74 {offsets = [14, 1, 0], sizes = [1, 1, 128], strides = [1, 1, 1]} : vector<16x16x128xf32> to vector<1x1x128xf32>
    %c17_49 = arith.constant 17 : index
    %c0_50 = arith.constant 0 : index
    %c0_51 = arith.constant 0 : index
    %89 = vector.load %arg7[%c17_49, %c0_50, %c0_51] : memref<18x18x128xf32, #tpu.memory_space<vmem>>, vector<1x1x128xf32>
    tpu.vector_store %arg7[%c17_49, %c0_50, %c0_51], %88 {strides = array<i32>} : memref<18x18x128xf32, #tpu.memory_space<vmem>>, vector<1x1x128xf32>,
    %90 = vector.extract_strided_slice %74 {offsets = [14, 14, 0], sizes = [1, 1, 128], strides = [1, 1, 1]} : vector<16x16x128xf32> to vector<1x1x128xf32>
    %c17_52 = arith.constant 17 : index
    %c17_53 = arith.constant 17 : index
    %c0_54 = arith.constant 0 : index
    %91 = vector.load %arg7[%c17_52, %c17_53, %c0_54] : memref<18x18x128xf32, #tpu.memory_space<vmem>>, vector<1x1x128xf32>
    tpu.vector_store %arg7[%c17_52, %c17_53, %c0_54], %90 {strides = array<i32>} : memref<18x18x128xf32, #tpu.memory_space<vmem>>, vector<1x1x128xf32>,
    %c0_55 = arith.constant 0 : index
    %c0_56 = arith.constant 0 : index
    %c0_57 = arith.constant 0 : index
    %92 = vector.load %arg7[%c0_55, %c0_56, %c0_57] : memref<18x18x128xf32, #tpu.memory_space<vmem>>, vector<18x18x128xf32>
    %93 = vector.extract_strided_slice %92 {offsets = [0, 0, 0], sizes = [18, 16, 128], strides = [1, 1, 1]} : vector<18x18x128xf32> to vector<18x16x128xf32>
    %94 = vector.extract_strided_slice %92 {offsets = [0, 1, 0], sizes = [18, 16, 128], strides = [1, 1, 1]} : vector<18x18x128xf32> to vector<18x16x128xf32>
    %95 = vector.extract_strided_slice %92 {offsets = [0, 2, 0], sizes = [18, 16, 128], strides = [1, 1, 1]} : vector<18x18x128xf32> to vector<18x16x128xf32>
    %96 = vector.extract_strided_slice %93 {offsets = [0, 0, 0], sizes = [16, 16, 128], strides = [1, 1, 1]} : vector<18x16x128xf32> to vector<16x16x128xf32>
    %97 = vector.shape_cast %96 : vector<16x16x128xf32> to vector<256x128xf32>
    %c0_58 = arith.constant 0 : index
    %c0_59 = arith.constant 0 : index
    %98 = vector.load %arg4[%c0_58, %c0_59] : memref<1152x128xf32, #tpu.memory_space<vmem>>, vector<128x128xf32>
    %cst_60 = arith.constant dense<0.000000e+00> : vector<256x128xf32>
    %99 = tpu.matmul %97, %98, %cst_60 {dimension_numbers = #tpu.dot_dimension_numbers<[1], [0], [0], [1], [0, 0, 1, 1], [], []>} : vector<256x128xf32>, vector<128x128xf32>, vector<256x128xf32> -> vector<256x128xf32>
    %100 = vector.extract_strided_slice %94 {offsets = [0, 0, 0], sizes = [16, 16, 128], strides = [1, 1, 1]} : vector<18x16x128xf32> to vector<16x16x128xf32>
    %101 = vector.shape_cast %100 : vector<16x16x128xf32> to vector<256x128xf32>
    %c128_61 = arith.constant 128 : index
    %c0_62 = arith.constant 0 : index
    %102 = vector.load %arg4[%c128_61, %c0_62] : memref<1152x128xf32, #tpu.memory_space<vmem>>, vector<128x128xf32>
    %cst_63 = arith.constant dense<0.000000e+00> : vector<256x128xf32>
    %103 = tpu.matmul %101, %102, %cst_63 {dimension_numbers = #tpu.dot_dimension_numbers<[1], [0], [0], [1], [0, 0, 1, 1], [], []>} : vector<256x128xf32>, vector<128x128xf32>, vector<256x128xf32> -> vector<256x128xf32>
    %104 = arith.addf %99, %103 : vector<256x128xf32>
    %105 = vector.extract_strided_slice %95 {offsets = [0, 0, 0], sizes = [16, 16, 128], strides = [1, 1, 1]} : vector<18x16x128xf32> to vector<16x16x128xf32>
    %106 = vector.shape_cast %105 : vector<16x16x128xf32> to vector<256x128xf32>
    %c256_64 = arith.constant 256 : index
    %c0_65 = arith.constant 0 : index
    %107 = vector.load %arg4[%c256_64, %c0_65] : memref<1152x128xf32, #tpu.memory_space<vmem>>, vector<128x128xf32>
    %cst_66 = arith.constant dense<0.000000e+00> : vector<256x128xf32>
    %108 = tpu.matmul %106, %107, %cst_66 {dimension_numbers = #tpu.dot_dimension_numbers<[1], [0], [0], [1], [0, 0, 1, 1], [], []>} : vector<256x128xf32>, vector<128x128xf32>, vector<256x128xf32> -> vector<256x128xf32>
    %109 = arith.addf %104, %108 : vector<256x128xf32>
    %110 = vector.extract_strided_slice %93 {offsets = [1, 0, 0], sizes = [16, 16, 128], strides = [1, 1, 1]} : vector<18x16x128xf32> to vector<16x16x128xf32>
    %111 = vector.shape_cast %110 : vector<16x16x128xf32> to vector<256x128xf32>
    %c384_67 = arith.constant 384 : index
    %c0_68 = arith.constant 0 : index
    %112 = vector.load %arg4[%c384_67, %c0_68] : memref<1152x128xf32, #tpu.memory_space<vmem>>, vector<128x128xf32>
    %cst_69 = arith.constant dense<0.000000e+00> : vector<256x128xf32>
    %113 = tpu.matmul %111, %112, %cst_69 {dimension_numbers = #tpu.dot_dimension_numbers<[1], [0], [0], [1], [0, 0, 1, 1], [], []>} : vector<256x128xf32>, vector<128x128xf32>, vector<256x128xf32> -> vector<256x128xf32>
    %114 = arith.addf %109, %113 : vector<256x128xf32>
    %115 = vector.extract_strided_slice %94 {offsets = [1, 0, 0], sizes = [16, 16, 128], strides = [1, 1, 1]} : vector<18x16x128xf32> to vector<16x16x128xf32>
    %116 = vector.shape_cast %115 : vector<16x16x128xf32> to vector<256x128xf32>
    %c512_70 = arith.constant 512 : index
    %c0_71 = arith.constant 0 : index
    %117 = vector.load %arg4[%c512_70, %c0_71] : memref<1152x128xf32, #tpu.memory_space<vmem>>, vector<128x128xf32>
    %cst_72 = arith.constant dense<0.000000e+00> : vector<256x128xf32>
    %118 = tpu.matmul %116, %117, %cst_72 {dimension_numbers = #tpu.dot_dimension_numbers<[1], [0], [0], [1], [0, 0, 1, 1], [], []>} : vector<256x128xf32>, vector<128x128xf32>, vector<256x128xf32> -> vector<256x128xf32>
    %119 = arith.addf %114, %118 : vector<256x128xf32>
    %120 = vector.extract_strided_slice %95 {offsets = [1, 0, 0], sizes = [16, 16, 128], strides = [1, 1, 1]} : vector<18x16x128xf32> to vector<16x16x128xf32>
    %121 = vector.shape_cast %120 : vector<16x16x128xf32> to vector<256x128xf32>
    %c640_73 = arith.constant 640 : index
    %c0_74 = arith.constant 0 : index
    %122 = vector.load %arg4[%c640_73, %c0_74] : memref<1152x128xf32, #tpu.memory_space<vmem>>, vector<128x128xf32>
    %cst_75 = arith.constant dense<0.000000e+00> : vector<256x128xf32>
    %123 = tpu.matmul %121, %122, %cst_75 {dimension_numbers = #tpu.dot_dimension_numbers<[1], [0], [0], [1], [0, 0, 1, 1], [], []>} : vector<256x128xf32>, vector<128x128xf32>, vector<256x128xf32> -> vector<256x128xf32>
    %124 = arith.addf %119, %123 : vector<256x128xf32>
    %125 = vector.extract_strided_slice %93 {offsets = [2, 0, 0], sizes = [16, 16, 128], strides = [1, 1, 1]} : vector<18x16x128xf32> to vector<16x16x128xf32>
    %126 = vector.shape_cast %125 : vector<16x16x128xf32> to vector<256x128xf32>
    %c768_76 = arith.constant 768 : index
    %c0_77 = arith.constant 0 : index
    %127 = vector.load %arg4[%c768_76, %c0_77] : memref<1152x128xf32, #tpu.memory_space<vmem>>, vector<128x128xf32>
    %cst_78 = arith.constant dense<0.000000e+00> : vector<256x128xf32>
    %128 = tpu.matmul %126, %127, %cst_78 {dimension_numbers = #tpu.dot_dimension_numbers<[1], [0], [0], [1], [0, 0, 1, 1], [], []>} : vector<256x128xf32>, vector<128x128xf32>, vector<256x128xf32> -> vector<256x128xf32>
    %129 = arith.addf %124, %128 : vector<256x128xf32>
    %130 = vector.extract_strided_slice %94 {offsets = [2, 0, 0], sizes = [16, 16, 128], strides = [1, 1, 1]} : vector<18x16x128xf32> to vector<16x16x128xf32>
    %131 = vector.shape_cast %130 : vector<16x16x128xf32> to vector<256x128xf32>
    %c896_79 = arith.constant 896 : index
    %c0_80 = arith.constant 0 : index
    %132 = vector.load %arg4[%c896_79, %c0_80] : memref<1152x128xf32, #tpu.memory_space<vmem>>, vector<128x128xf32>
    %cst_81 = arith.constant dense<0.000000e+00> : vector<256x128xf32>
    %133 = tpu.matmul %131, %132, %cst_81 {dimension_numbers = #tpu.dot_dimension_numbers<[1], [0], [0], [1], [0, 0, 1, 1], [], []>} : vector<256x128xf32>, vector<128x128xf32>, vector<256x128xf32> -> vector<256x128xf32>
    %134 = arith.addf %129, %133 : vector<256x128xf32>
    %135 = vector.extract_strided_slice %95 {offsets = [2, 0, 0], sizes = [16, 16, 128], strides = [1, 1, 1]} : vector<18x16x128xf32> to vector<16x16x128xf32>
    %136 = vector.shape_cast %135 : vector<16x16x128xf32> to vector<256x128xf32>
    %c1024_82 = arith.constant 1024 : index
    %c0_83 = arith.constant 0 : index
    %137 = vector.load %arg4[%c1024_82, %c0_83] : memref<1152x128xf32, #tpu.memory_space<vmem>>, vector<128x128xf32>
    %cst_84 = arith.constant dense<0.000000e+00> : vector<256x128xf32>
    %138 = tpu.matmul %136, %137, %cst_84 {dimension_numbers = #tpu.dot_dimension_numbers<[1], [0], [0], [1], [0, 0, 1, 1], [], []>} : vector<256x128xf32>, vector<128x128xf32>, vector<256x128xf32> -> vector<256x128xf32>
    %139 = arith.addf %134, %138 : vector<256x128xf32>
    %c0_85 = arith.constant 0 : index
    %c0_86 = arith.constant 0 : index
    %140 = vector.load %arg5[%c0_85, %c0_86] : memref<1x128xf32, #tpu.memory_space<vmem>>, vector<1x128xf32>
    %141 = vector.broadcast %140 : vector<1x128xf32> to vector<256x128xf32>
    %142 = arith.addf %139, %141 : vector<256x128xf32>
    %143 = vector.shape_cast %142 : vector<256x128xf32> to vector<16x16x128xf32>
    %cst_87 = arith.constant dense<0.000000e+00> : vector<128xf32>
    %144 = vector.multi_reduction <add>, %143, %cst_87 [0, 1] : vector<16x16x128xf32> to vector<128xf32>
    %145 = vector.shape_cast %144 : vector<128xf32> to vector<1x1x128xf32>
    %146 = arith.mulf %143, %143 : vector<16x16x128xf32>
    %cst_88 = arith.constant dense<0.000000e+00> : vector<128xf32>
    %147 = vector.multi_reduction <add>, %146, %cst_88 [0, 1] : vector<16x16x128xf32> to vector<128xf32>
    %148 = vector.shape_cast %147 : vector<128xf32> to vector<1x1x128xf32>
    %cst_89 = arith.constant 3.906250e-03 : f32
    %149 = vector.broadcast %cst_89 : f32 to vector<1x1x128xf32>
    %150 = arith.mulf %145, %149 : vector<1x1x128xf32>
    %cst_90 = arith.constant 3.906250e-03 : f32
    %151 = vector.broadcast %cst_90 : f32 to vector<1x1x128xf32>
    %152 = arith.mulf %148, %151 : vector<1x1x128xf32>
    %153 = arith.mulf %150, %150 : vector<1x1x128xf32>
    %154 = arith.subf %152, %153 : vector<1x1x128xf32>
    %cst_91 = arith.constant 0.000000e+00 : f32
    %155 = vector.broadcast %cst_91 : f32 to vector<1x1x128xf32>
    %156 = arith.maximumf %154, %155 : vector<1x1x128xf32>
    %157 = vector.broadcast %150 : vector<1x1x128xf32> to vector<16x16x128xf32>
    %158 = arith.subf %143, %157 : vector<16x16x128xf32>
    %cst_92 = arith.constant 9.99999974E-6 : f32
    %159 = vector.broadcast %cst_92 : f32 to vector<1x1x128xf32>
    %160 = arith.addf %156, %159 : vector<1x1x128xf32>
    %161 = math.rsqrt %160 : vector<1x1x128xf32>
    %162 = vector.broadcast %161 : vector<1x1x128xf32> to vector<16x16x128xf32>
    %163 = arith.mulf %158, %162 : vector<16x16x128xf32>
    %c0_93 = arith.constant 0 : index
    %c1_94 = arith.constant 1 : index
    %c1_95 = arith.constant 1 : index
    %c0_96 = arith.constant 0 : index
    %164 = vector.load %arg1[%c0_93, %c1_94, %c1_95, %c0_96] : memref<1x18x18x128xf32, #tpu.memory_space<vmem>>, vector<1x16x16x128xf32>
    %165 = vector.shape_cast %164 : vector<1x16x16x128xf32> to vector<16x16x128xf32>
    %166 = arith.addf %165, %163 : vector<16x16x128xf32>
    %c0_97 = arith.constant 0 : index
    %c0_98 = arith.constant 0 : index
    %c0_99 = arith.constant 0 : index
    %c0_100 = arith.constant 0 : index
    %167 = vector.load %arg6[%c0_97, %c0_98, %c0_99, %c0_100] : memref<1x16x16x128xf32, #tpu.memory_space<vmem>>, vector<1x16x16x128xf32>
    %168 = vector.shape_cast %167 : vector<1x16x16x128xf32> to vector<16x16x128xf32>
    %169 = vector.shape_cast %166 : vector<16x16x128xf32> to vector<1x16x16x128xf32>
    tpu.vector_store %arg6[%c0_97, %c0_98, %c0_99, %c0_100], %169 {strides = array<i32>} : memref<1x16x16x128xf32, #tpu.memory_space<vmem>>, vector<1x16x16x128xf32>,
    return
  }
  func.func @transform_0(%arg0: i32) -> (i32, i32, i32, i32) {
    %c0_i32 = arith.constant 0 : i32
    %c0_i32_0 = arith.constant 0 : i32
    %c0_i32_1 = arith.constant 0 : i32
    %c0_i32_2 = arith.constant 0 : i32
    return %arg0, %c0_i32, %c0_i32_0, %c0_i32_1 : i32, i32, i32, i32
  }
  func.func @transform_1(%arg0: i32) -> (i32, i32) {
    %c0_i32 = arith.constant 0 : i32
    %c0_i32_0 = arith.constant 0 : i32
    %c0_i32_1 = arith.constant 0 : i32
    return %c0_i32, %c0_i32_0 : i32, i32
  }
  func.func @transform_2(%arg0: i32) -> (i32, i32) {
    %c0_i32 = arith.constant 0 : i32
    %c0_i32_0 = arith.constant 0 : i32
    %c0_i32_1 = arith.constant 0 : i32
    return %c0_i32, %c0_i32_0 : i32, i32
  }
  func.func @transform_3(%arg0: i32) -> (i32, i32) {
    %c0_i32 = arith.constant 0 : i32
    %c0_i32_0 = arith.constant 0 : i32
    %c0_i32_1 = arith.constant 0 : i32
    return %c0_i32, %c0_i32_0 : i32, i32
  }
  func.func @transform_4(%arg0: i32) -> (i32, i32) {
    %c0_i32 = arith.constant 0 : i32
    %c0_i32_0 = arith.constant 0 : i32
    %c0_i32_1 = arith.constant 0 : i32
    return %c0_i32, %c0_i32_0 : i32, i32
  }
  func.func @transform_5(%arg0: i32) -> (i32, i32, i32, i32) {
    %c0_i32 = arith.constant 0 : i32
    %c0_i32_0 = arith.constant 0 : i32
    %c0_i32_1 = arith.constant 0 : i32
    %c0_i32_2 = arith.constant 0 : i32
    return %arg0, %c0_i32, %c0_i32_0, %c0_i32_1 : i32, i32, i32, i32
  }
}

module attributes {stable_mosaic.version = 11 : i64} {
  func.func @resnet_block_kernel(%arg0: i32, %arg1: memref<1x18x18x128xf32, #tpu.memory_space<vmem>>, %arg2: memref<1152x128xf32, #tpu.memory_space<vmem>>, %arg3: memref<1x128xf32, #tpu.memory_space<vmem>>, %arg4: memref<1152x128xf32, #tpu.memory_space<vmem>>, %arg5: memref<1x128xf32, #tpu.memory_space<vmem>>, %arg6: memref<1x16x16x128xf32, #tpu.memory_space<vmem>>, %arg7: memref<18x18x128xf32, #tpu.memory_space<vmem>>) attributes {dimension_semantics = [#tpu.dimension_semantics<parallel>], iteration_bounds = array<i64: 2>, scalar_prefetch = 0 : i64, scratch_operands = 1 : i64, tpu.core_type = #tpu.core_type<tc>, window_params = [{transform_indices = @transform_0, window_bounds = array<i64: 1, 18, 18, 128>}, {pipeline_mode = #tpu.pipeline_mode<synchronous>, transform_indices = @transform_1, window_bounds = array<i64: 1152, 128>}, {pipeline_mode = #tpu.pipeline_mode<synchronous>, transform_indices = @transform_2, window_bounds = array<i64: 1, 128>}, {pipeline_mode = #tpu.pipeline_mode<synchronous>, transform_indices = @transform_3, window_bounds = array<i64: 1152, 128>}, {pipeline_mode = #tpu.pipeline_mode<synchronous>, transform_indices = @transform_4, window_bounds = array<i64: 1, 128>}, {transform_indices = @transform_5, window_bounds = array<i64: 1, 16, 16, 128>}]} {
    %c0 = arith.constant 0 : index
    %c0_0 = arith.constant 0 : index
    %c0_1 = arith.constant 0 : index
    %c0_2 = arith.constant 0 : index
    %0 = vector.load %arg1[%c0, %c0_0, %c0_1, %c0_2] : memref<1x18x18x128xf32, #tpu.memory_space<vmem>>, vector<1x18x18x128xf32>
    %1 = vector.shape_cast %0 : vector<1x18x18x128xf32> to vector<18x18x128xf32>
    %2 = vector.extract_strided_slice %1 {offsets = [0, 0, 0], sizes = [18, 16, 128], strides = [1, 1, 1]} : vector<18x18x128xf32> to vector<18x16x128xf32>
    %3 = vector.extract_strided_slice %1 {offsets = [0, 1, 0], sizes = [18, 16, 128], strides = [1, 1, 1]} : vector<18x18x128xf32> to vector<18x16x128xf32>
    %4 = vector.extract_strided_slice %1 {offsets = [0, 2, 0], sizes = [18, 16, 128], strides = [1, 1, 1]} : vector<18x18x128xf32> to vector<18x16x128xf32>
    %5 = vector.extract_strided_slice %2 {offsets = [0, 0, 0], sizes = [16, 16, 128], strides = [1, 1, 1]} : vector<18x16x128xf32> to vector<16x16x128xf32>
    %6 = vector.shape_cast %5 : vector<16x16x128xf32> to vector<256x128xf32>
    %c0_3 = arith.constant 0 : index
    %c0_4 = arith.constant 0 : index
    %7 = vector.load %arg2[%c0_3, %c0_4] : memref<1152x128xf32, #tpu.memory_space<vmem>>, vector<128x128xf32>
    %cst = arith.constant dense<0.000000e+00> : vector<256x128xf32>
    %8 = tpu.matmul %6, %7, %cst {dimension_numbers = #tpu.dot_dimension_numbers<[1], [0], [0], [1], [0, 0, 1, 1], [], []>} : vector<256x128xf32>, vector<128x128xf32>, vector<256x128xf32> -> vector<256x128xf32>
    %9 = vector.extract_strided_slice %3 {offsets = [0, 0, 0], sizes = [16, 16, 128], strides = [1, 1, 1]} : vector<18x16x128xf32> to vector<16x16x128xf32>
    %10 = vector.shape_cast %9 : vector<16x16x128xf32> to vector<256x128xf32>
    %c128 = arith.constant 128 : index
    %c0_5 = arith.constant 0 : index
    %11 = vector.load %arg2[%c128, %c0_5] : memref<1152x128xf32, #tpu.memory_space<vmem>>, vector<128x128xf32>
    %cst_6 = arith.constant dense<0.000000e+00> : vector<256x128xf32>
    %12 = tpu.matmul %10, %11, %cst_6 {dimension_numbers = #tpu.dot_dimension_numbers<[1], [0], [0], [1], [0, 0, 1, 1], [], []>} : vector<256x128xf32>, vector<128x128xf32>, vector<256x128xf32> -> vector<256x128xf32>
    %13 = arith.addf %8, %12 : vector<256x128xf32>
    %14 = vector.extract_strided_slice %4 {offsets = [0, 0, 0], sizes = [16, 16, 128], strides = [1, 1, 1]} : vector<18x16x128xf32> to vector<16x16x128xf32>
    %15 = vector.shape_cast %14 : vector<16x16x128xf32> to vector<256x128xf32>
    %c256 = arith.constant 256 : index
    %c0_7 = arith.constant 0 : index
    %16 = vector.load %arg2[%c256, %c0_7] : memref<1152x128xf32, #tpu.memory_space<vmem>>, vector<128x128xf32>
    %cst_8 = arith.constant dense<0.000000e+00> : vector<256x128xf32>
    %17 = tpu.matmul %15, %16, %cst_8 {dimension_numbers = #tpu.dot_dimension_numbers<[1], [0], [0], [1], [0, 0, 1, 1], [], []>} : vector<256x128xf32>, vector<128x128xf32>, vector<256x128xf32> -> vector<256x128xf32>
    %18 = arith.addf %13, %17 : vector<256x128xf32>
    %19 = vector.extract_strided_slice %2 {offsets = [1, 0, 0], sizes = [16, 16, 128], strides = [1, 1, 1]} : vector<18x16x128xf32> to vector<16x16x128xf32>
    %20 = vector.shape_cast %19 : vector<16x16x128xf32> to vector<256x128xf32>
    %c384 = arith.constant 384 : index
    %c0_9 = arith.constant 0 : index
    %21 = vector.load %arg2[%c384, %c0_9] : memref<1152x128xf32, #tpu.memory_space<vmem>>, vector<128x128xf32>
    %cst_10 = arith.constant dense<0.000000e+00> : vector<256x128xf32>
    %22 = tpu.matmul %20, %21, %cst_10 {dimension_numbers = #tpu.dot_dimension_numbers<[1], [0], [0], [1], [0, 0, 1, 1], [], []>} : vector<256x128xf32>, vector<128x128xf32>, vector<256x128xf32> -> vector<256x128xf32>
    %23 = arith.addf %18, %22 : vector<256x128xf32>
    %24 = vector.extract_strided_slice %3 {offsets = [1, 0, 0], sizes = [16, 16, 128], strides = [1, 1, 1]} : vector<18x16x128xf32> to vector<16x16x128xf32>
    %25 = vector.shape_cast %24 : vector<16x16x128xf32> to vector<256x128xf32>
    %c512 = arith.constant 512 : index
    %c0_11 = arith.constant 0 : index
    %26 = vector.load %arg2[%c512, %c0_11] : memref<1152x128xf32, #tpu.memory_space<vmem>>, vector<128x128xf32>
    %cst_12 = arith.constant dense<0.000000e+00> : vector<256x128xf32>
    %27 = tpu.matmul %25, %26, %cst_12 {dimension_numbers = #tpu.dot_dimension_numbers<[1], [0], [0], [1], [0, 0, 1, 1], [], []>} : vector<256x128xf32>, vector<128x128xf32>, vector<256x128xf32> -> vector<256x128xf32>
    %28 = arith.addf %23, %27 : vector<256x128xf32>
    %29 = vector.extract_strided_slice %4 {offsets = [1, 0, 0], sizes = [16, 16, 128], strides = [1, 1, 1]} : vector<18x16x128xf32> to vector<16x16x128xf32>
    %30 = vector.shape_cast %29 : vector<16x16x128xf32> to vector<256x128xf32>
    %c640 = arith.constant 640 : index
    %c0_13 = arith.constant 0 : index
    %31 = vector.load %arg2[%c640, %c0_13] : memref<1152x128xf32, #tpu.memory_space<vmem>>, vector<128x128xf32>
    %cst_14 = arith.constant dense<0.000000e+00> : vector<256x128xf32>
    %32 = tpu.matmul %30, %31, %cst_14 {dimension_numbers = #tpu.dot_dimension_numbers<[1], [0], [0], [1], [0, 0, 1, 1], [], []>} : vector<256x128xf32>, vector<128x128xf32>, vector<256x128xf32> -> vector<256x128xf32>
    %33 = arith.addf %28, %32 : vector<256x128xf32>
    %34 = vector.extract_strided_slice %2 {offsets = [2, 0, 0], sizes = [16, 16, 128], strides = [1, 1, 1]} : vector<18x16x128xf32> to vector<16x16x128xf32>
    %35 = vector.shape_cast %34 : vector<16x16x128xf32> to vector<256x128xf32>
    %c768 = arith.constant 768 : index
    %c0_15 = arith.constant 0 : index
    %36 = vector.load %arg2[%c768, %c0_15] : memref<1152x128xf32, #tpu.memory_space<vmem>>, vector<128x128xf32>
    %cst_16 = arith.constant dense<0.000000e+00> : vector<256x128xf32>
    %37 = tpu.matmul %35, %36, %cst_16 {dimension_numbers = #tpu.dot_dimension_numbers<[1], [0], [0], [1], [0, 0, 1, 1], [], []>} : vector<256x128xf32>, vector<128x128xf32>, vector<256x128xf32> -> vector<256x128xf32>
    %38 = arith.addf %33, %37 : vector<256x128xf32>
    %39 = vector.extract_strided_slice %3 {offsets = [2, 0, 0], sizes = [16, 16, 128], strides = [1, 1, 1]} : vector<18x16x128xf32> to vector<16x16x128xf32>
    %40 = vector.shape_cast %39 : vector<16x16x128xf32> to vector<256x128xf32>
    %c896 = arith.constant 896 : index
    %c0_17 = arith.constant 0 : index
    %41 = vector.load %arg2[%c896, %c0_17] : memref<1152x128xf32, #tpu.memory_space<vmem>>, vector<128x128xf32>
    %cst_18 = arith.constant dense<0.000000e+00> : vector<256x128xf32>
    %42 = tpu.matmul %40, %41, %cst_18 {dimension_numbers = #tpu.dot_dimension_numbers<[1], [0], [0], [1], [0, 0, 1, 1], [], []>} : vector<256x128xf32>, vector<128x128xf32>, vector<256x128xf32> -> vector<256x128xf32>
    %43 = arith.addf %38, %42 : vector<256x128xf32>
    %44 = vector.extract_strided_slice %4 {offsets = [2, 0, 0], sizes = [16, 16, 128], strides = [1, 1, 1]} : vector<18x16x128xf32> to vector<16x16x128xf32>
    %45 = vector.shape_cast %44 : vector<16x16x128xf32> to vector<256x128xf32>
    %c1024 = arith.constant 1024 : index
    %c0_19 = arith.constant 0 : index
    %46 = vector.load %arg2[%c1024, %c0_19] : memref<1152x128xf32, #tpu.memory_space<vmem>>, vector<128x128xf32>
    %cst_20 = arith.constant dense<0.000000e+00> : vector<256x128xf32>
    %47 = tpu.matmul %45, %46, %cst_20 {dimension_numbers = #tpu.dot_dimension_numbers<[1], [0], [0], [1], [0, 0, 1, 1], [], []>} : vector<256x128xf32>, vector<128x128xf32>, vector<256x128xf32> -> vector<256x128xf32>
    %48 = arith.addf %43, %47 : vector<256x128xf32>
    %c0_21 = arith.constant 0 : index
    %c0_22 = arith.constant 0 : index
    %49 = vector.load %arg3[%c0_21, %c0_22] : memref<1x128xf32, #tpu.memory_space<vmem>>, vector<1x128xf32>
    %50 = vector.broadcast %49 : vector<1x128xf32> to vector<256x128xf32>
    %51 = arith.addf %48, %50 : vector<256x128xf32>
    %52 = vector.shape_cast %51 : vector<256x128xf32> to vector<16x16x128xf32>
    %cst_23 = arith.constant dense<0.000000e+00> : vector<128xf32>
    %53 = vector.multi_reduction <add>, %52, %cst_23 [0, 1] : vector<16x16x128xf32> to vector<128xf32>
    %54 = vector.shape_cast %53 : vector<128xf32> to vector<1x1x128xf32>
    %55 = arith.mulf %52, %52 : vector<16x16x128xf32>
    %cst_24 = arith.constant dense<0.000000e+00> : vector<128xf32>
    %56 = vector.multi_reduction <add>, %55, %cst_24 [0, 1] : vector<16x16x128xf32> to vector<128xf32>
    %57 = vector.shape_cast %56 : vector<128xf32> to vector<1x1x128xf32>
    %cst_25 = arith.constant 3.906250e-03 : f32
    %58 = vector.broadcast %cst_25 : f32 to vector<1x1x128xf32>
    %59 = arith.mulf %54, %58 : vector<1x1x128xf32>
    %cst_26 = arith.constant 3.906250e-03 : f32
    %60 = vector.broadcast %cst_26 : f32 to vector<1x1x128xf32>
    %61 = arith.mulf %57, %60 : vector<1x1x128xf32>
    %62 = arith.mulf %59, %59 : vector<1x1x128xf32>
    %63 = arith.subf %61, %62 : vector<1x1x128xf32>
    %cst_27 = arith.constant 0.000000e+00 : f32
    %64 = vector.broadcast %cst_27 : f32 to vector<1x1x128xf32>
    %65 = arith.maximumf %63, %64 : vector<1x1x128xf32>
    %66 = vector.broadcast %59 : vector<1x1x128xf32> to vector<16x16x128xf32>
    %67 = arith.subf %52, %66 : vector<16x16x128xf32>
    %cst_28 = arith.constant 9.99999974E-6 : f32
    %68 = vector.broadcast %cst_28 : f32 to vector<1x1x128xf32>
    %69 = arith.addf %65, %68 : vector<1x1x128xf32>
    %70 = math.rsqrt %69 : vector<1x1x128xf32>
    %71 = vector.broadcast %70 : vector<1x1x128xf32> to vector<16x16x128xf32>
    %72 = arith.mulf %67, %71 : vector<16x16x128xf32>
    %cst_29 = arith.constant 0.000000e+00 : f32
    %73 = vector.broadcast %cst_29 : f32 to vector<16x16x128xf32>
    %74 = arith.maximumf %72, %73 : vector<16x16x128xf32>
    %c1 = arith.constant 1 : index
    %c1_30 = arith.constant 1 : index
    %c0_31 = arith.constant 0 : index
    %75 = vector.load %arg7[%c1, %c1_30, %c0_31] : memref<18x18x128xf32, #tpu.memory_space<vmem>>, vector<16x16x128xf32>
    tpu.vector_store %arg7[%c1, %c1_30, %c0_31], %74 {strides = array<i32>} : memref<18x18x128xf32, #tpu.memory_space<vmem>>, vector<16x16x128xf32>,
    %76 = vector.extract_strided_slice %74 {offsets = [1, 0, 0], sizes = [1, 16, 128], strides = [1, 1, 1]} : vector<16x16x128xf32> to vector<1x16x128xf32>
    %c0_32 = arith.constant 0 : index
    %c1_33 = arith.constant 1 : index
    %c0_34 = arith.constant 0 : index
    %77 = vector.load %arg7[%c0_32, %c1_33, %c0_34] : memref<18x18x128xf32, #tpu.memory_space<vmem>>, vector<1x16x128xf32>
    tpu.vector_store %arg7[%c0_32, %c1_33, %c0_34], %76 {strides = array<i32>} : memref<18x18x128xf32, #tpu.memory_space<vmem>>, vector<1x16x128xf32>,
    %78 = vector.extract_strided_slice %74 {offsets = [14, 0, 0], sizes = [1, 16, 128], strides = [1, 1, 1]} : vector<16x16x128xf32> to vector<1x16x128xf32>
    %c17 = arith.constant 17 : index
    %c1_35 = arith.constant 1 : index
    %c0_36 = arith.constant 0 : index
    %79 = vector.load %arg7[%c17, %c1_35, %c0_36] : memref<18x18x128xf32, #tpu.memory_space<vmem>>, vector<1x16x128xf32>
    tpu.vector_store %arg7[%c17, %c1_35, %c0_36], %78 {strides = array<i32>} : memref<18x18x128xf32, #tpu.memory_space<vmem>>, vector<1x16x128xf32>,
    %80 = vector.extract_strided_slice %74 {offsets = [0, 1, 0], sizes = [16, 1, 128], strides = [1, 1, 1]} : vector<16x16x128xf32> to vector<16x1x128xf32>
    %c1_37 = arith.constant 1 : index
    %c0_38 = arith.constant 0 : index
    %c0_39 = arith.constant 0 : index
    %81 = vector.load %arg7[%c1_37, %c0_38, %c0_39] : memref<18x18x128xf32, #tpu.memory_space<vmem>>, vector<16x1x128xf32>
    tpu.vector_store %arg7[%c1_37, %c0_38, %c0_39], %80 {strides = array<i32>} : memref<18x18x128xf32, #tpu.memory_space<vmem>>, vector<16x1x128xf32>,
    %82 = vector.extract_strided_slice %74 {offsets = [0, 14, 0], sizes = [16, 1, 128], strides = [1, 1, 1]} : vector<16x16x128xf32> to vector<16x1x128xf32>
    %c1_40 = arith.constant 1 : index
    %c17_41 = arith.constant 17 : index
    %c0_42 = arith.constant 0 : index
    %83 = vector.load %arg7[%c1_40, %c17_41, %c0_42] : memref<18x18x128xf32, #tpu.memory_space<vmem>>, vector<16x1x128xf32>
    tpu.vector_store %arg7[%c1_40, %c17_41, %c0_42], %82 {strides = array<i32>} : memref<18x18x128xf32, #tpu.memory_space<vmem>>, vector<16x1x128xf32>,
    %84 = vector.extract_strided_slice %74 {offsets = [1, 1, 0], sizes = [1, 1, 128], strides = [1, 1, 1]} : vector<16x16x128xf32> to vector<1x1x128xf32>
    %c0_43 = arith.constant 0 : index
    %c0_44 = arith.constant 0 : index
    %c0_45 = arith.constant 0 : index
    %85 = vector.load %arg7[%c0_43, %c0_44, %c0_45] : memref<18x18x128xf32, #tpu.memory_space<vmem>>, vector<1x1x128xf32>
    tpu.vector_store %arg7[%c0_43, %c0_44, %c0_45], %84 {strides = array<i32>} : memref<18x18x128xf32, #tpu.memory_space<vmem>>, vector<1x1x128xf32>,
    %86 = vector.extract_strided_slice %74 {offsets = [1, 14, 0], sizes = [1, 1, 128], strides = [1, 1, 1]} : vector<16x16x128xf32> to vector<1x1x128xf32>
    %c0_46 = arith.constant 0 : index
    %c17_47 = arith.constant 17 : index
    %c0_48 = arith.constant 0 : index
    %87 = vector.load %arg7[%c0_46, %c17_47, %c0_48] : memref<18x18x128xf32, #tpu.memory_space<vmem>>, vector<1x1x128xf32>
    tpu.vector_store %arg7[%c0_46, %c17_47, %c0_48], %86 {strides = array<i32>} : memref<18x18x128xf32, #tpu.memory_space<vmem>>, vector<1x1x128xf32>,
    %88 = vector.extract_strided_slice %74 {offsets = [14, 1, 0], sizes = [1, 1, 128], strides = [1, 1, 1]} : vector<16x16x128xf32> to vector<1x1x128xf32>
    %c17_49 = arith.constant 17 : index
    %c0_50 = arith.constant 0 : index
    %c0_51 = arith.constant 0 : index
    %89 = vector.load %arg7[%c17_49, %c0_50, %c0_51] : memref<18x18x128xf32, #tpu.memory_space<vmem>>, vector<1x1x128xf32>
    tpu.vector_store %arg7[%c17_49, %c0_50, %c0_51], %88 {strides = array<i32>} : memref<18x18x128xf32, #tpu.memory_space<vmem>>, vector<1x1x128xf32>,
    %90 = vector.extract_strided_slice %74 {offsets = [14, 14, 0], sizes = [1, 1, 128], strides = [1, 1, 1]} : vector<16x16x128xf32> to vector<1x1x128xf32>
    %c17_52 = arith.constant 17 : index
    %c17_53 = arith.constant 17 : index
    %c0_54 = arith.constant 0 : index
    %91 = vector.load %arg7[%c17_52, %c17_53, %c0_54] : memref<18x18x128xf32, #tpu.memory_space<vmem>>, vector<1x1x128xf32>
    tpu.vector_store %arg7[%c17_52, %c17_53, %c0_54], %90 {strides = array<i32>} : memref<18x18x128xf32, #tpu.memory_space<vmem>>, vector<1x1x128xf32>,
    %c0_55 = arith.constant 0 : index
    %c0_56 = arith.constant 0 : index
    %c0_57 = arith.constant 0 : index
    %92 = vector.load %arg7[%c0_55, %c0_56, %c0_57] : memref<18x18x128xf32, #tpu.memory_space<vmem>>, vector<18x18x128xf32>
    %93 = vector.extract_strided_slice %92 {offsets = [0, 0, 0], sizes = [18, 16, 128], strides = [1, 1, 1]} : vector<18x18x128xf32> to vector<18x16x128xf32>
    %94 = vector.extract_strided_slice %92 {offsets = [0, 1, 0], sizes = [18, 16, 128], strides = [1, 1, 1]} : vector<18x18x128xf32> to vector<18x16x128xf32>
    %95 = vector.extract_strided_slice %92 {offsets = [0, 2, 0], sizes = [18, 16, 128], strides = [1, 1, 1]} : vector<18x18x128xf32> to vector<18x16x128xf32>
    %96 = vector.extract_strided_slice %93 {offsets = [0, 0, 0], sizes = [16, 16, 128], strides = [1, 1, 1]} : vector<18x16x128xf32> to vector<16x16x128xf32>
    %97 = vector.shape_cast %96 : vector<16x16x128xf32> to vector<256x128xf32>
    %c0_58 = arith.constant 0 : index
    %c0_59 = arith.constant 0 : index
    %98 = vector.load %arg4[%c0_58, %c0_59] : memref<1152x128xf32, #tpu.memory_space<vmem>>, vector<128x128xf32>
    %cst_60 = arith.constant dense<0.000000e+00> : vector<256x128xf32>
    %99 = tpu.matmul %97, %98, %cst_60 {dimension_numbers = #tpu.dot_dimension_numbers<[1], [0], [0], [1], [0, 0, 1, 1], [], []>} : vector<256x128xf32>, vector<128x128xf32>, vector<256x128xf32> -> vector<256x128xf32>
    %100 = vector.extract_strided_slice %94 {offsets = [0, 0, 0], sizes = [16, 16, 128], strides = [1, 1, 1]} : vector<18x16x128xf32> to vector<16x16x128xf32>
    %101 = vector.shape_cast %100 : vector<16x16x128xf32> to vector<256x128xf32>
    %c128_61 = arith.constant 128 : index
    %c0_62 = arith.constant 0 : index
    %102 = vector.load %arg4[%c128_61, %c0_62] : memref<1152x128xf32, #tpu.memory_space<vmem>>, vector<128x128xf32>
    %cst_63 = arith.constant dense<0.000000e+00> : vector<256x128xf32>
    %103 = tpu.matmul %101, %102, %cst_63 {dimension_numbers = #tpu.dot_dimension_numbers<[1], [0], [0], [1], [0, 0, 1, 1], [], []>} : vector<256x128xf32>, vector<128x128xf32>, vector<256x128xf32> -> vector<256x128xf32>
    %104 = arith.addf %99, %103 : vector<256x128xf32>
    %105 = vector.extract_strided_slice %95 {offsets = [0, 0, 0], sizes = [16, 16, 128], strides = [1, 1, 1]} : vector<18x16x128xf32> to vector<16x16x128xf32>
    %106 = vector.shape_cast %105 : vector<16x16x128xf32> to vector<256x128xf32>
    %c256_64 = arith.constant 256 : index
    %c0_65 = arith.constant 0 : index
    %107 = vector.load %arg4[%c256_64, %c0_65] : memref<1152x128xf32, #tpu.memory_space<vmem>>, vector<128x128xf32>
    %cst_66 = arith.constant dense<0.000000e+00> : vector<256x128xf32>
    %108 = tpu.matmul %106, %107, %cst_66 {dimension_numbers = #tpu.dot_dimension_numbers<[1], [0], [0], [1], [0, 0, 1, 1], [], []>} : vector<256x128xf32>, vector<128x128xf32>, vector<256x128xf32> -> vector<256x128xf32>
    %109 = arith.addf %104, %108 : vector<256x128xf32>
    %110 = vector.extract_strided_slice %93 {offsets = [1, 0, 0], sizes = [16, 16, 128], strides = [1, 1, 1]} : vector<18x16x128xf32> to vector<16x16x128xf32>
    %111 = vector.shape_cast %110 : vector<16x16x128xf32> to vector<256x128xf32>
    %c384_67 = arith.constant 384 : index
    %c0_68 = arith.constant 0 : index
    %112 = vector.load %arg4[%c384_67, %c0_68] : memref<1152x128xf32, #tpu.memory_space<vmem>>, vector<128x128xf32>
    %cst_69 = arith.constant dense<0.000000e+00> : vector<256x128xf32>
    %113 = tpu.matmul %111, %112, %cst_69 {dimension_numbers = #tpu.dot_dimension_numbers<[1], [0], [0], [1], [0, 0, 1, 1], [], []>} : vector<256x128xf32>, vector<128x128xf32>, vector<256x128xf32> -> vector<256x128xf32>
    %114 = arith.addf %109, %113 : vector<256x128xf32>
    %115 = vector.extract_strided_slice %94 {offsets = [1, 0, 0], sizes = [16, 16, 128], strides = [1, 1, 1]} : vector<18x16x128xf32> to vector<16x16x128xf32>
    %116 = vector.shape_cast %115 : vector<16x16x128xf32> to vector<256x128xf32>
    %c512_70 = arith.constant 512 : index
    %c0_71 = arith.constant 0 : index
    %117 = vector.load %arg4[%c512_70, %c0_71] : memref<1152x128xf32, #tpu.memory_space<vmem>>, vector<128x128xf32>
    %cst_72 = arith.constant dense<0.000000e+00> : vector<256x128xf32>
    %118 = tpu.matmul %116, %117, %cst_72 {dimension_numbers = #tpu.dot_dimension_numbers<[1], [0], [0], [1], [0, 0, 1, 1], [], []>} : vector<256x128xf32>, vector<128x128xf32>, vector<256x128xf32> -> vector<256x128xf32>
    %119 = arith.addf %114, %118 : vector<256x128xf32>
    %120 = vector.extract_strided_slice %95 {offsets = [1, 0, 0], sizes = [16, 16, 128], strides = [1, 1, 1]} : vector<18x16x128xf32> to vector<16x16x128xf32>
    %121 = vector.shape_cast %120 : vector<16x16x128xf32> to vector<256x128xf32>
    %c640_73 = arith.constant 640 : index
    %c0_74 = arith.constant 0 : index
    %122 = vector.load %arg4[%c640_73, %c0_74] : memref<1152x128xf32, #tpu.memory_space<vmem>>, vector<128x128xf32>
    %cst_75 = arith.constant dense<0.000000e+00> : vector<256x128xf32>
    %123 = tpu.matmul %121, %122, %cst_75 {dimension_numbers = #tpu.dot_dimension_numbers<[1], [0], [0], [1], [0, 0, 1, 1], [], []>} : vector<256x128xf32>, vector<128x128xf32>, vector<256x128xf32> -> vector<256x128xf32>
    %124 = arith.addf %119, %123 : vector<256x128xf32>
    %125 = vector.extract_strided_slice %93 {offsets = [2, 0, 0], sizes = [16, 16, 128], strides = [1, 1, 1]} : vector<18x16x128xf32> to vector<16x16x128xf32>
    %126 = vector.shape_cast %125 : vector<16x16x128xf32> to vector<256x128xf32>
    %c768_76 = arith.constant 768 : index
    %c0_77 = arith.constant 0 : index
    %127 = vector.load %arg4[%c768_76, %c0_77] : memref<1152x128xf32, #tpu.memory_space<vmem>>, vector<128x128xf32>
    %cst_78 = arith.constant dense<0.000000e+00> : vector<256x128xf32>
    %128 = tpu.matmul %126, %127, %cst_78 {dimension_numbers = #tpu.dot_dimension_numbers<[1], [0], [0], [1], [0, 0, 1, 1], [], []>} : vector<256x128xf32>, vector<128x128xf32>, vector<256x128xf32> -> vector<256x128xf32>
    %129 = arith.addf %124, %128 : vector<256x128xf32>
    %130 = vector.extract_strided_slice %94 {offsets = [2, 0, 0], sizes = [16, 16, 128], strides = [1, 1, 1]} : vector<18x16x128xf32> to vector<16x16x128xf32>
    %131 = vector.shape_cast %130 : vector<16x16x128xf32> to vector<256x128xf32>
    %c896_79 = arith.constant 896 : index
    %c0_80 = arith.constant 0 : index
    %132 = vector.load %arg4[%c896_79, %c0_80] : memref<1152x128xf32, #tpu.memory_space<vmem>>, vector<128x128xf32>
    %cst_81 = arith.constant dense<0.000000e+00> : vector<256x128xf32>
    %133 = tpu.matmul %131, %132, %cst_81 {dimension_numbers = #tpu.dot_dimension_numbers<[1], [0], [0], [1], [0, 0, 1, 1], [], []>} : vector<256x128xf32>, vector<128x128xf32>, vector<256x128xf32> -> vector<256x128xf32>
    %134 = arith.addf %129, %133 : vector<256x128xf32>
    %135 = vector.extract_strided_slice %95 {offsets = [2, 0, 0], sizes = [16, 16, 128], strides = [1, 1, 1]} : vector<18x16x128xf32> to vector<16x16x128xf32>
    %136 = vector.shape_cast %135 : vector<16x16x128xf32> to vector<256x128xf32>
    %c1024_82 = arith.constant 1024 : index
    %c0_83 = arith.constant 0 : index
    %137 = vector.load %arg4[%c1024_82, %c0_83] : memref<1152x128xf32, #tpu.memory_space<vmem>>, vector<128x128xf32>
    %cst_84 = arith.constant dense<0.000000e+00> : vector<256x128xf32>
    %138 = tpu.matmul %136, %137, %cst_84 {dimension_numbers = #tpu.dot_dimension_numbers<[1], [0], [0], [1], [0, 0, 1, 1], [], []>} : vector<256x128xf32>, vector<128x128xf32>, vector<256x128xf32> -> vector<256x128xf32>
    %139 = arith.addf %134, %138 : vector<256x128xf32>
    %c0_85 = arith.constant 0 : index
    %c0_86 = arith.constant 0 : index
    %140 = vector.load %arg5[%c0_85, %c0_86] : memref<1x128xf32, #tpu.memory_space<vmem>>, vector<1x128xf32>
    %141 = vector.broadcast %140 : vector<1x128xf32> to vector<256x128xf32>
    %142 = arith.addf %139, %141 : vector<256x128xf32>
    %143 = vector.shape_cast %142 : vector<256x128xf32> to vector<16x16x128xf32>
    %cst_87 = arith.constant dense<0.000000e+00> : vector<128xf32>
    %144 = vector.multi_reduction <add>, %143, %cst_87 [0, 1] : vector<16x16x128xf32> to vector<128xf32>
    %145 = vector.shape_cast %144 : vector<128xf32> to vector<1x1x128xf32>
    %146 = arith.mulf %143, %143 : vector<16x16x128xf32>
    %cst_88 = arith.constant dense<0.000000e+00> : vector<128xf32>
    %147 = vector.multi_reduction <add>, %146, %cst_88 [0, 1] : vector<16x16x128xf32> to vector<128xf32>
    %148 = vector.shape_cast %147 : vector<128xf32> to vector<1x1x128xf32>
    %cst_89 = arith.constant 3.906250e-03 : f32
    %149 = vector.broadcast %cst_89 : f32 to vector<1x1x128xf32>
    %150 = arith.mulf %145, %149 : vector<1x1x128xf32>
    %cst_90 = arith.constant 3.906250e-03 : f32
    %151 = vector.broadcast %cst_90 : f32 to vector<1x1x128xf32>
    %152 = arith.mulf %148, %151 : vector<1x1x128xf32>
    %153 = arith.mulf %150, %150 : vector<1x1x128xf32>
    %154 = arith.subf %152, %153 : vector<1x1x128xf32>
    %cst_91 = arith.constant 0.000000e+00 : f32
    %155 = vector.broadcast %cst_91 : f32 to vector<1x1x128xf32>
    %156 = arith.maximumf %154, %155 : vector<1x1x128xf32>
    %157 = vector.broadcast %150 : vector<1x1x128xf32> to vector<16x16x128xf32>
    %158 = arith.subf %143, %157 : vector<16x16x128xf32>
    %cst_92 = arith.constant 9.99999974E-6 : f32
    %159 = vector.broadcast %cst_92 : f32 to vector<1x1x128xf32>
    %160 = arith.addf %156, %159 : vector<1x1x128xf32>
    %161 = math.rsqrt %160 : vector<1x1x128xf32>
    %162 = vector.broadcast %161 : vector<1x1x128xf32> to vector<16x16x128xf32>
    %163 = arith.mulf %158, %162 : vector<16x16x128xf32>
    %c0_93 = arith.constant 0 : index
    %c1_94 = arith.constant 1 : index
    %c1_95 = arith.constant 1 : index
    %c0_96 = arith.constant 0 : index
    %164 = vector.load %arg1[%c0_93, %c1_94, %c1_95, %c0_96] : memref<1x18x18x128xf32, #tpu.memory_space<vmem>>, vector<1x16x16x128xf32>
    %165 = vector.shape_cast %164 : vector<1x16x16x128xf32> to vector<16x16x128xf32>
    %166 = arith.addf %165, %163 : vector<16x16x128xf32>
    %c0_97 = arith.constant 0 : index
    %c0_98 = arith.constant 0 : index
    %c0_99 = arith.constant 0 : index
    %c0_100 = arith.constant 0 : index
    %167 = vector.load %arg6[%c0_97, %c0_98, %c0_99, %c0_100] : memref<1x16x16x128xf32, #tpu.memory_space<vmem>>, vector<1x16x16x128xf32>
    %168 = vector.shape_cast %167 : vector<1x16x16x128xf32> to vector<16x16x128xf32>
    %169 = vector.shape_cast %166 : vector<16x16x128xf32> to vector<1x16x16x128xf32>
    tpu.vector_store %arg6[%c0_97, %c0_98, %c0_99, %c0_100], %169 {strides = array<i32>} : memref<1x16x16x128xf32, #tpu.memory_space<vmem>>, vector<1x16x16x128xf32>,
    return
  }
  func.func @transform_0(%arg0: i32) -> (i32, i32, i32, i32) {
    %c0_i32 = arith.constant 0 : i32
    %c0_i32_0 = arith.constant 0 : i32
    %c0_i32_1 = arith.constant 0 : i32
    %c0_i32_2 = arith.constant 0 : i32
    return %arg0, %c0_i32, %c0_i32_0, %c0_i32_1 : i32, i32, i32, i32
  }
  func.func @transform_1(%arg0: i32) -> (i32, i32) {
    %c0_i32 = arith.constant 0 : i32
    %c0_i32_0 = arith.constant 0 : i32
    %c0_i32_1 = arith.constant 0 : i32
    return %c0_i32, %c0_i32_0 : i32, i32
  }
  func.func @transform_2(%arg0: i32) -> (i32, i32) {
    %c0_i32 = arith.constant 0 : i32
    %c0_i32_0 = arith.constant 0 : i32
    %c0_i32_1 = arith.constant 0 : i32
    return %c0_i32, %c0_i32_0 : i32, i32
  }
  func.func @transform_3(%arg0: i32) -> (i32, i32) {
    %c0_i32 = arith.constant 0 : i32
    %c0_i32_0 = arith.constant 0 : i32
    %c0_i32_1 = arith.constant 0 : i32
    return %c0_i32, %c0_i32_0 : i32, i32
  }
  func.func @transform_4(%arg0: i32) -> (i32, i32) {
    %c0_i32 = arith.constant 0 : i32
    %c0_i32_0 = arith.constant 0 : i32
    %c0_i32_1 = arith.constant 0 : i32
    return %c0_i32, %c0_i32_0 : i32, i32
  }
  func.func @transform_5(%arg0: i32) -> (i32, i32, i32, i32) {
    %c0_i32 = arith.constant 0 : i32
    %c0_i32_0 = arith.constant 0 : i32
    %c0_i32_1 = arith.constant 0 : i32
    %c0_i32_2 = arith.constant 0 : i32
    return %arg0, %c0_i32, %c0_i32_0, %c0_i32_1 : i32, i32, i32, i32
  }
}

</mosaic_0001>

<bundles_post_ra>
// kernel: tpu_custom_call.1
= control target key start
LH: loop header
LB: loop body
LE: loop exit
PB: predicated region body
PF: predicated region fallthrough
CT: control target
= control target key end

     0   :  { %10 = vsyncpa [#allocation4], 0  ;;  %s12858_s0 = inlined_call_operand.hbm [shape: f32[2,18,18,128], index: 0, kind: input, shape index: {}]   ;;  %s12859_s1 = inlined_call_operand.hbm [shape: f32[1152,128], index: 1, kind: input, shape index: {}]   ;;  %s12860_s2 = inlined_call_operand.hbm [shape: f32[1,128], index: 2, kind: input, shape index: {}]   ;;  %s12861_s3 = inlined_call_operand.hbm [shape: f32[1152,128], index: 3, kind: input, shape index: {}]   ;;  %s12862_s4 = inlined_call_operand.hbm [shape: f32[1,128], index: 4, kind: input, shape index: {}]   ;;  %s12863_s5 = inlined_call_operand.hbm [shape: f32[2,16,16,128], index: 5, kind: output, shape index: {}]  }
   0x1   :  { %12 = vsyncpa [#allocation4 + $0x1], 0 }
   0x2   :  { %13 = vsyncpa [#allocation7], 0 }
   0x3   :  { %14 = vsyncpa [#allocation10], 0 }
   0x4   :  { %15 = vsyncpa [#allocation5], 0 }
   0x5   :  { %17 = vsyncpa [#allocation5 + $0x1], 0  ;;  %s10423_s18 = smov 0   ;;  %s10425_s19 = smov 0  }
   0x6   :  { %s10427_s20 = smov 0   ;;  %s10429_s21 = smov 0  }
   0x7 LB: > { %s10444_s22 = sadd.s32 4294967295, %s10381_s21   ;;  %s6565_s23 = sadd.s32 4294967294, %s10381_s21   ;;  %s10381_s21 = sphi %s10429_s21, %s13241_s21   ;;  %s10377_s20 = sphi %s10427_s20, %s13240_s20   ;;  %s10373_s19 = sphi %s10425_s19, %s13239_s19   ;;  %s10369_s18 = sphi %s10423_s18, %s13238_s18  }
   0x8   : > { %p43_p0 = scmp.ne.s32.totalorder %s10373_s19, %s10369_s18  ;;  %p12864_p1 = scmp.eq.s32.totalorder %s10444_s22, 0 }
   0x9   : > { %p157_p3 = scmp.eq.s32.totalorder %s6565_s23, 1  ;;  %p6566_p5 = scmp.ge.s32.totalorder %s10381_s21, 1 }
   0xa   : > { %p10453_p4 = por %p12864_p1, %p43_p0  ;;  %p164_p7 = scmp.lt.s32.totalorder %s10381_s21, 3 }
   0xb   : > { %p10458_p6 = por %p157_p3, %p43_p0  ;;  %s10383_s27 = smov [#allocation6]  }
   0xc   : > { %s13030_s24 = scalar_select %p10453_p4, 1, 0 }
   0xd   : > { %s13031_s25 = scalar_select %p10458_p6, 1, 0 }
   0xe   : > { %p10463_p8 = pnand %p6566_p5, %p164_p7  ;;  %s176_s28 = sshll.u32 %s10383_s27, 4  ;;  %s10467_s28 = int_to_ptr.vmem [resolvable:$true] %s176_s28 }
   0xf   : > { %s10384_s30 = smov [#allocation9]   ;;  %s10385_s7 = smov [#allocation8]  }
  0x10   : > { %s13032_s26 = scalar_select %p10463_p8, 1, 0 }
  0x11   : > { %p10034_p9 = pneg %p10463_p8  ;;  %s200_s6 = sshll.u32 %s10384_s30, 4  ;;  %s10478_s6 = int_to_ptr.vmem [resolvable:$true] %s200_s6 }
  0x12   : > { %s10480_s8 = sshll.u32 %s10385_s7, 4  ;;  %s10165_s11 = scalar_lea.hbm %s12859_s1, 18432  ;;  %s191_s8 = int_to_ptr.vmem [resolvable:$true] %s10480_s8 }
  0x13   : > { %p10474_p11 = pnand %p10034_p9, %p12864_p1  ;;  %p10166_p12 = scmp.ne.s32.totalorder %s12859_s1, %s10165_s11 }
  0x14   : > { %p10172_p5 = scmp.lt.u32.totalorder %s10165_s11, %s12859_s1 }
  0x15   : > { %p10490_p13 = pneg %p10474_p11 }
  0x17   : > { %p10168_p0 = pnand %p10490_p13, %p10166_p12 }
  0x19   : > { %p10169_p3 = pneg %p10168_p0 }
  0x1b   : > { %p10174_p7 = pnand %p10172_p5, %p10169_p3 }
  0x1d   : > { %10177 = shalt.err (!%p10174_p7)
}
  0x1e   : > { %s10178_s17 = scalar_lea.vmem %s10467_s28, 18432  ;;  %p10186_p2 = scmp.lt.s32.totalorder %s10467_s28, %s10467_s28 }
  0x1f   : > { %p10179_p9 = scmp.ne.s32.totalorder %s10467_s28, %s10178_s17  ;;  %p10187_p6 = scmp.lt.s32.totalorder %s10178_s17, %s10178_s17 }
  0x21   : > { %p10181_p10 = pnand %p10179_p9, %p10490_p13  ;;  %p10188_p12 = por %p10187_p6, %p10186_p2 }
  0x23   : > { %p10182_p1 = pneg %p10181_p10 }
  0x25   : > { %p10189_p0 = pnand %p10188_p12, %p10182_p1 }
  0x27   : > { %10192 = shalt.err (!%p10189_p0)
}
  0x28   : > { %s12867_s23 = smov 128   ;;  %s10387_s27 = smov 8  }
  0x29   : > { %10037 = dma.hbm_to_vmem [thread:$0]  (!%p10474_p11), %s12859_s1, 18432, %s10467_s28, [#allocation7], %s12867_s23, %s12867_s23, %s10387_s27  }
  0x2a   : > { %s10193_s11 = scalar_lea.hbm %s12861_s3, 18432 }
  0x2b   : > { %p10194_p1 = scmp.ne.s32.totalorder %s12861_s3, %s10193_s11  ;;  %p10200_p10 = scmp.lt.u32.totalorder %s10193_s11, %s12861_s3 }
  0x2d   : > { %p10196_p2 = pnand %p10194_p1, %p10490_p13 }
  0x2f   : > { %p10197_p6 = pneg %p10196_p2 }
  0x31   : > { %p10202_p3 = pnand %p10200_p10, %p10197_p6 }
  0x33   : > { %10205 = shalt.err (!%p10202_p3)
}
  0x34   : > { %s10206_s28 = scalar_lea.vmem %s10478_s6, 18432  ;;  %p10214_p12 = scmp.lt.s32.totalorder %s10478_s6, %s10478_s6 }
  0x35   : > { %p10207_p5 = scmp.ne.s32.totalorder %s10478_s6, %s10206_s28  ;;  %p10215_p0 = scmp.lt.s32.totalorder %s10206_s28, %s10206_s28 }
  0x37   : > { %p10209_p7 = pnand %p10207_p5, %p10490_p13  ;;  %p10216_p1 = por %p10215_p0, %p10214_p12 }
  0x39   : > { %p10210_p9 = pneg %p10209_p7 }
  0x3b   : > { %p10217_p2 = pnand %p10216_p1, %p10210_p9 }
  0x3d   : > { %10220 = shalt.err (!%p10217_p2)
}
  0x3e   : > { %10043 = dma.hbm_to_vmem [thread:$0]  (!%p10474_p11), %s12861_s3, 18432, %s10478_s6, [#allocation10], %s12867_s23, %s12867_s23, %s10387_s27  }
  0x3f   : > { %s10221_s10 = scalar_lea.hbm %s12860_s2, 16 }
  0x40   : > { %p10222_p6 = scmp.ne.s32.totalorder %s12860_s2, %s10221_s10  ;;  %p10228_p5 = scmp.lt.u32.totalorder %s10221_s10, %s12860_s2 }
  0x42   : > { %p10224_p10 = pnand %p10222_p6, %p10490_p13 }
  0x44   : > { %p10225_p3 = pneg %p10224_p10 }
  0x46   : > { %p10230_p7 = pnand %p10228_p5, %p10225_p3 }
  0x48   : > { %10233 = shalt.err (!%p10230_p7)
}
  0x49   : > { %s10234_s16 = scalar_lea.vmem %s191_s8, 16  ;;  %s10241_s6 = scalar_lea.vmem %s191_s8, 32 }
  0x4a   : > { %p10235_p9 = scmp.ne.s32.totalorder %s191_s8, %s10234_s16  ;;  %p10242_p1 = scmp.lt.s32.totalorder %s191_s8, %s191_s8 }
  0x4b   : > { %p10243_p2 = scmp.lt.s32.totalorder %s10241_s6, %s10234_s16 }
  0x4c   : > { %p10237_p12 = pnand %p10235_p9, %p10490_p13 }
  0x4d   : > { %p10244_p4 = por %p10243_p2, %p10242_p1 }
  0x4e   : > { %p10238_p0 = pneg %p10237_p12 }
  0x50   : > { %p10245_p8 = pnand %p10244_p4, %p10238_p0 }
  0x52   : > { %10248 = shalt.err (!%p10245_p8)
}
  0x53   : > { %10040 = dma.hbm_to_vmem [thread:$0]  (!%p10474_p11), %s12860_s2, 16, %s191_s8, [#allocation7]  }
  0x54   : > { %s10388_s30 = smov [#allocation11]   ;;  %s10249_s11 = scalar_lea.hbm %s12862_s4, 16 }
  0x55   : > { %s214_s7 = sshll.u32 %s10388_s30, 4  ;;  %p10250_p6 = scmp.ne.s32.totalorder %s12862_s4, %s10249_s11  ;;  %s215_s7 = int_to_ptr.vmem [resolvable:$true] %s214_s7 }
  0x56   : > { %p10256_p10 = scmp.lt.u32.totalorder %s10249_s11, %s12862_s4 }
  0x57   : > { %p10252_p4 = pnand %p10250_p6, %p10490_p13 }
  0x59   : > { %p10253_p8 = pneg %p10252_p4 }
  0x5b   : > { %p10258_p3 = pnand %p10256_p10, %p10253_p8 }
  0x5d   : > { %10261 = shalt.err (!%p10258_p3)
}
  0x5e   : > { %s10262_s8 = scalar_lea.vmem %s215_s7, 16  ;;  %s10269_s6 = scalar_lea.vmem %s215_s7, 32 }
  0x5f   : > { %p10263_p5 = scmp.ne.s32.totalorder %s215_s7, %s10262_s8  ;;  %p10270_p12 = scmp.lt.s32.totalorder %s215_s7, %s215_s7 }
  0x60   : > { %p10271_p0 = scmp.lt.s32.totalorder %s10269_s6, %s10262_s8 }
  0x61   : > { %p10265_p7 = pnand %p10263_p5, %p10490_p13 }
  0x62   : > { %p10272_p1 = por %p10271_p0, %p10270_p12 }
  0x63   : > { %p10266_p9 = pneg %p10265_p7 }
  0x65   : > { %p10273_p2 = pnand %p10272_p1, %p10266_p9 }
  0x67   : > { %10276 = shalt.err (!%p10273_p2)
}
  0x68   : > { %10046 = dma.hbm_to_vmem [thread:$0]  (!%p10474_p11), %s12862_s4, 16, %s215_s7, [#allocation10]  }
  0x69   : > { %s10578_s14 = sadd.s32 1, %s10381_s21   ;;  %s30_s30 = sadd.s32 1, %s10377_s20 }
  0x6a   : > { %s27_s29 = ssub.s32 %s10381_s21, %s10578_s14  ;;  %p37_p13 = scmp.ne.s32.totalorder %s10377_s20, %s10373_s19 }
  0x6b   : > { %p28_p6 = scmp.eq.s32.totalorder %s27_s29, 0  ;;  %p38_p4 = scmp.eq.s32.totalorder %s10381_s21, 0 }
  0x6c   : > { %p13035_p8 = scmp.eq.s32.totalorder %s10444_s22, 1  ;;  %p10059_p3 = scmp.lt.s32.totalorder %s10381_s21, 2 }
  0x6d   : > { %s10594_s10 = scalar_select %p28_p6, %s10377_s20, %s30_s30  }
  0x6e   : > { %p10588_p10 = por %p13035_p8, %p37_p13  ;;  %p39_p5 = por %p38_p4, %p37_p13 }
  0x6f   : > { %s225_s11 = sand.u32 1, %s10377_s20   ;;  %s10012_s7 = smul.u32 6912, %s10381_s21 }
  0x70   : > { %s10011_s12 = smul.u32 432, %s225_s11  ;;  %p10598_p11 = pnand %p10059_p3, %p39_p5 }
  0x71   : > { %s10605_s8 = scalar_lea.hbm %s12858_s0, %s10012_s7  ;;  %s10609_s17 = scalar_lea.sflag [#allocation4], %s225_s11 }
  0x72   : > { %s229_s6 = scalar_lea.vmem [#allocation3], %s10011_s12  ;;  %s10277_s30 = scalar_lea.hbm %s10605_s8, 6912 }
  0x73   : > { %s236_s28 = sshll.u32 %s229_s6, 4  ;;  %p10278_p7 = scmp.ne.s32.totalorder %s10605_s8, %s10277_s30  ;;  %s10607_s28 = int_to_ptr.vmem [resolvable:$true] %s236_s28 }
  0x74   : > { %p10279_p9 = pneg %p10598_p11  ;;  %s10282_s15 = scalar_lea.hbm %s12858_s0, 13824 }
  0x75   : > { %p10283_p1 = scmp.lt.u32.totalorder %s10605_s8, %s12858_s0  ;;  %p10284_p2 = scmp.lt.u32.totalorder %s10282_s15, %s10277_s30 }
  0x76   : > { %p10280_p12 = pnand %p10279_p9, %p10278_p7  ;;  %p10286_p6 = scmp.lt.u32.totalorder %s10277_s30, %s10605_s8 }
  0x77   : > { %p10285_p13 = por %p10284_p2, %p10283_p1 }
  0x78   : > { %p10281_p0 = pneg %p10280_p12 }
  0x79   : > { %p10287_p4 = por %p10286_p6, %p10285_p13 }
  0x7b   : > { %p10288_p8 = pnand %p10287_p4, %p10281_p0 }
  0x7d   : > { %10291 = shalt.err (!%p10288_p8)
}
  0x7e   : > { %s10292_s11 = scalar_lea.vmem %s10607_s28, 6912  ;;  %s10389_s12 = smov [#allocation3]  }
  0x7f   : > { %p10293_p3 = scmp.ne.s32.totalorder %s10607_s28, %s10292_s11  ;;  %s10297_s6 = sshll.u32 %s10389_s12, 4  ;;  %s10298_s6 = int_to_ptr.vmem [resolvable:$false] %s10297_s6 }
  0x80   : > { %s10299_s23 = scalar_lea.vmem %s10298_s6, 13824  ;;  %p10300_p12 = scmp.lt.s32.totalorder %s10607_s28, %s10298_s6 }
  0x81   : > { %p10295_p5 = pnand %p10293_p3, %p10279_p9  ;;  %p10301_p1 = scmp.lt.s32.totalorder %s10299_s23, %s10292_s11 }
  0x83   : > { %p10296_p7 = pneg %p10295_p5  ;;  %p10302_p2 = por %p10301_p1, %p10300_p12 }
  0x85   : > { %p10303_p13 = pnand %p10302_p2, %p10296_p7 }
  0x87   : > { %10306 = shalt.err (!%p10303_p13)
}
  0x88   : > { %s13038_s30 = smov 128   ;;  %p13039_p9 = scmp.ne.s32.totalorder %s13032_s26, 0 }
  0x89   : > { %10050 = dma.hbm_to_vmem [thread:$0]  (!%p10598_p11), %s10605_s8, 6912, %s10607_s28, %s10609_s17, %s13038_s30, %s13038_s30, %s10387_s27  }
  0x8a   : > { %248 = sbr.rel (%p13039_p9) target bundleno = 1908 (0x774), region = 40 }
  0x91   : > { %s10643_s29 = sand.u32 1, %s10373_s19   ;;  %p13040_p0 = scmp.ne.s32.totalorder %s13030_s24, 0 }
  0x92   : > { %s10013_s7 = smul.u32 432, %s10643_s29  ;;  %s251_s15 = scalar_lea.sflag [#allocation4], %s10643_s29 }
  0x94   : > { %s10647_s16 = scalar_lea.vmem [#allocation3], %s10013_s7 }
  0x95   : > { %10352 = dma.done.wait (%p13040_p0), %s251_s15, 6912  }
  0x96   : > { %10354 = vsyncadd (%p13040_p0), %s251_s15, 4294960384  ;;  %p13041_p11 = scmp.eq.s32.totalorder %s10444_s22, 0 }
  0x98   : > { %10356 = dma.done.wait (%p13041_p11), [#allocation7], 18448   ;;  %p13042_p6 = pmov %p13041_p11 }
  0x9a   : > { %10358 = vsyncadd (%p13042_p6), [#allocation7], 4294948848  ;;  %p13043_p4 = pmov %p13042_p6 }
  0x9c   : > { %10360 = dma.done.wait (%p13043_p4), [#allocation10], 18448   ;;  %p13044_p8 = pmov %p13043_p4 }
  0x9d   : > { %v528_v0 = vld [vmem:[#allocation6 + $0x80] sm:$0xff]  ;;  %v529_v1 = vld [vmem:[#allocation6 + $0x88] sm:$0xff]  ;;  %v530_v2 = vld [vmem:[#allocation6 + $0x90] sm:$0xff]  ;;  %vm415_vm0 = vcmask 1046528   ;;  %vm994_vm1 = vcmask 1045504   ;;  %s6578_s24 = sshll.u32 %s10643_s29, 8 }
  0x9e   : > { %10362 = vsyncadd (%p13044_p8), [#allocation10], 4294948848  ;;  %v8923_v3 = vpack.c.bf16 %v529_v1, %v528_v0  ;;  %v531_v4 = vld [vmem:[#allocation6 + $0x98] sm:$0xff]  ;;  %v532_v6 = vld [vmem:[#allocation6 + $0xa0] sm:$0xff]  ;;  %s12687_s26 = scalar_lea.vmem [#allocation12], %s6578_s24  ;;  %s6618_s27 = sshll.u32 %s10444_s22, 12 }
  0x9f   : > { %v8927_v5 = vpack.c.bf16 %v531_v4, %v530_v2  ;;  %v533_v7 = vld [vmem:[#allocation6 + $0xa8] sm:$0xff]  ;;  %v10662_v9 = vld [vmem:[%s10647_s16] sm:$0xff]  ;;  %v535_v12 = vld [vmem:[#allocation6 + $0xb8] sm:$0xff]  ;;  %s6454_s13 = sshll.u32 %s12687_s26, 4  ;;  %s12794_s17 = scalar_lea.hbm %s12863_s5, %s6618_s27  ;;  %s12798_s13 = int_to_ptr.vmem [resolvable:$true] %s6454_s13 }
  0xa0   : > { %8924 = vmatprep.subr.bf16.mxu0 %v8923_v3  ;;  %v8931_v8 = vpack.c.bf16 %v533_v7, %v532_v6  ;;  %v10665_v10 = vld [vmem:[%s10647_s16 + $0x8] sm:$0xff]  ;;  %v534_v11 = vld [vmem:[#allocation6 + $0xb0] sm:$0xff]  ;;  %v416_v13 = vrot.slane %v10662_v9, 1  ;;  %v536_v17 = vld [vmem:[#allocation6 + $0xc0] sm:$0xff]  ;;  %s6441_s22 = scalar_lea.sflag [#allocation5], %s10643_s29  ;;  %s10307_s11 = scalar_lea.vmem %s12798_s13, 4096 }
  0xa1   : > { %8926 = vmatpush3.bf16.msra.mxu0 %v8923_v3  ;;  %v417_v14 = vrot.slane %v10665_v10, 1  ;;  %v8935_v16 = vpack.c.bf16 %v535_v12, %v534_v11  ;;  %v537_v18 = vld [vmem:[#allocation6 + $0xc8] sm:$0xff]  ;;  %v538_v20 = vld [vmem:[#allocation6 + $0xd0] sm:$0xff]  ;;  %v539_v21 = vld [vmem:[#allocation6 + $0xd8] sm:$0xff]  ;;  %p10308_p3 = scmp.ne.s32.totalorder %s12798_s13, %s10307_s11  ;;  %s10390_s12 = smov [#allocation12]  }
  0xa2   : > { %8928 = vmatprep.subr.bf16.mxu0 %v8927_v5  ;;  %v8939_v19 = vpack.c.bf16 %v537_v18, %v536_v17  ;;  %v8943_v22 = vpack.c.bf16 %v539_v21, %v538_v20  ;;  %v540_v23 = vld [vmem:[#allocation6 + $0xe0] sm:$0xff]  ;;  %v541_v24 = vld [vmem:[#allocation6 + $0xe8] sm:$0xff]  ;;  %v542_v26 = vld [vmem:[#allocation6 + $0xf0] sm:$0xff]  ;;  %s10311_s6 = sshll.u32 %s10390_s12, 4  ;;  %s10312_s6 = int_to_ptr.vmem [resolvable:$false] %s10311_s6 }
  0xa3   : > { %v418_v15 = vsel %vm415_vm0, %v416_v13, %v417_v14  ;;  %v8947_v25 = vpack.c.bf16 %v541_v24, %v540_v23  ;;  %v543_v27 = vld [vmem:[#allocation6 + $0xf8] sm:$0xff]  ;;  %v10671_v29 = vld [vmem:[%s10647_s16 + $0x10] sm:$0x3]  ;;  %v352_v31 = vld [vmem:[#allocation6 + $0x8] sm:$0xff]  ;;  %p10309_p5 = pnand %p10308_p3, %p10588_p10  ;;  %s10313_s23 = scalar_lea.vmem %s10312_s6, 8192 }
  0xa4   : > { %7515 = vmatprep.mubr.f32.mxu0 %v418_v15  ;;  %v8951_v28 = vpack.c.bf16 %v543_v27, %v542_v26  ;;  %v351_v30 = vld [vmem:[#allocation6] sm:$0xff]  ;;  %v10674_v32 = vld [vmem:[%s10647_s16 + $0x18] sm:$0xff]  ;;  %v419_v34 = vrot.slane %v10671_v29, 1  ;;  %v10683_v38 = vld [vmem:[%s10647_s16 + $0x28] sm:$0x3]  ;;  %p10314_p12 = scmp.lt.s32.totalorder %s12798_s13, %s10312_s6  ;;  %p10315_p1 = scmp.lt.s32.totalorder %s10313_s23, %s10307_s11 }
  0xa5   : > { %8930 = vmatpush3.bf16.msra.mxu0 %v8927_v5  ;;  %v10677_v33 = vld [vmem:[%s10647_s16 + $0x20] sm:$0xff]  ;;  %v8955_v35 = vpack.c.bf16 %v352_v31, %v351_v30  ;;  %v421_v36 = vrot.slane %v10674_v32, 1  ;;  %v10686_v39 = vld [vmem:[%s10647_s16 + $0x30] sm:$0xff]  ;;  %v10689_v40 = vld [vmem:[%s10647_s16 + $0x38] sm:$0xff]  ;;  %v424_v44 = vrot.slane %v10683_v38, 1  ;;  %p10310_p7 = pneg %p10309_p5 }
  0xa6   : > { %8932 = vmatprep.subr.bf16.mxu0 %v8931_v8  ;;  %v422_v37 = vrot.slane %v10677_v33, 1  ;;  %v353_v41 = vld [vmem:[#allocation6 + $0x10] sm:$0xff]  ;;  %v354_v42 = vld [vmem:[#allocation6 + $0x18] sm:$0xff]  ;;  %v420_v43 = vsel %vm415_vm0, %v417_v14, %v419_v34  ;;  %v426_v46 = vrot.slane %v10686_v39, 1  ;;  %v427_v47 = vrot.slane %v10689_v40, 1  ;;  %v355_v52 = vld [vmem:[#allocation6 + $0x20] sm:$0xff]  ;;  %p10316_p2 = por %p10315_p1, %p10314_p12 }
  0xa7   : > { %v10699_v48 = vld [vmem:[%s10647_s16 + $0x40] sm:$0x3]  ;;  %v8959_v49 = vpack.c.bf16 %v354_v42, %v353_v41  ;;  %v10702_v50 = vld [vmem:[%s10647_s16 + $0x48] sm:$0xff]  ;;  %v10705_v51 = vld [vmem:[%s10647_s16 + $0x50] sm:$0xff] }
  0xa8   : > { %v10694_v45 = vsel %vm415_vm0, %v421_v36, %v422_v37  ;;  %v356_v53 = vld [vmem:[#allocation6 + $0x28] sm:$0xff]  ;;  %v10709_v54 = vsel %vm415_vm0, %v422_v37, %v424_v44  ;;  %v429_v55 = vrot.slane %v10699_v48, 1  ;;  %v10713_v56 = vsel %vm415_vm0, %v426_v46, %v427_v47  ;;  %v10721_v60 = vld [vmem:[%s10647_s16 + $0x60] sm:$0xff]  ;;  %v358_v0 = vld [vmem:[#allocation6 + $0x38] sm:$0xff]  ;;  %p10317_p13 = pnand %p10316_p2, %p10310_p7 }
  0xa9   : > { %8934 = vmatpush3.bf16.msra.mxu0 %v8931_v8  ;;  %13045 = vst [vmem:[#allocation17_spill] sm:$0xff] %v10713_v56  ;;  %v431_v57 = vrot.slane %v10702_v50, 1  ;;  %v432_v58 = vrot.slane %v10705_v51, 1  ;;  %v10718_v59 = vld [vmem:[%s10647_s16 + $0x58] sm:$0x3]  ;;  %v8963_v61 = vpack.c.bf16 %v356_v53, %v355_v52  ;;  %v10724_v62 = vld [vmem:[%s10647_s16 + $0x68] sm:$0xff] }
  0xaa   : > { %8936 = vmatprep.subr.bf16.mxu0 %v8935_v16  ;;  %v357_v63 = vld [vmem:[#allocation6 + $0x30] sm:$0xff]  ;;  %v10729_v1 = vsel %vm415_vm0, %v427_v47, %v429_v55  ;;  %v434_v2 = vrot.slane %v10718_v59, 1  ;;  %v436_v4 = vrot.slane %v10721_v60, 1  ;;  %v437_v5 = vrot.slane %v10724_v62, 1  ;;  %v10741_v7 = vld [vmem:[%s10647_s16 + $0x78] sm:$0xff]  ;;  %v359_v12 = vld [vmem:[#allocation6 + $0x40] sm:$0xff] }
  0xab   : > { %13046 = vst [vmem:[#allocation18_spill] sm:$0xff] %v10729_v1  ;;  %v10733_v3 = vsel %vm415_vm0, %v431_v57, %v432_v58  ;;  %v10738_v6 = vld [vmem:[%s10647_s16 + $0x70] sm:$0x3]  ;;  %v8967_v8 = vpack.c.bf16 %v358_v0, %v357_v63  ;;  %v10744_v11 = vld [vmem:[%s10647_s16 + $0x80] sm:$0xff]  ;;  %v360_v13 = vld [vmem:[#allocation6 + $0x48] sm:$0xff]  ;;  %v441_v17 = vrot.slane %v10741_v7, 1 }
  0xac   : > { %13047 = vst [vmem:[#allocation19_spill] sm:$0xff] %v10733_v3  ;;  %v10749_v14 = vsel %vm415_vm0, %v432_v58, %v434_v2  ;;  %v439_v15 = vrot.slane %v10738_v6, 1  ;;  %v442_v18 = vrot.slane %v10744_v11, 1  ;;  %v10761_v20 = vld [vmem:[%s10647_s16 + $0x90] sm:$0xff]  ;;  %v8971_v21 = vpack.c.bf16 %v360_v13, %v359_v12  ;;  %v362_v24 = vld [vmem:[#allocation6 + $0x58] sm:$0xff]  ;;  %v364_v41 = vld [vmem:[#allocation6 + $0x68] sm:$0xff] }
  0xad   : > { %8938 = vmatpush3.bf16.msra.mxu0 %v8935_v16  ;;  %13048 = vst [vmem:[#allocation20_spill] sm:$0xff] %v10749_v14  ;;  %v10753_v16 = vsel %vm415_vm0, %v436_v4, %v437_v5  ;;  %v361_v23 = vld [vmem:[#allocation6 + $0x50] sm:$0xff]  ;;  %v10781_v34 = vld [vmem:[%s10647_s16 + $0xa8] sm:$0xff]  ;;  %v363_v37 = vld [vmem:[#allocation6 + $0x60] sm:$0xff] }
  0xae   : > { %8940 = vmatprep.subr.bf16.mxu0 %v8939_v19  ;;  %13049 = vst [vmem:[#allocation21_spill] sm:$0xff] %v10753_v16  ;;  %v10773_v27 = vsel %vm415_vm0, %v441_v17, %v442_v18  ;;  %v10778_v31 = vld [vmem:[%s10647_s16 + $0xa0] sm:$0x3]  ;;  %v10784_v36 = vld [vmem:[%s10647_s16 + $0xb0] sm:$0xff]  ;;  %v451_v46 = vrot.slane %v10781_v34, 1  ;;  %v8979_v53 = vpack.c.bf16 %v364_v41, %v363_v37  ;;  %v10804_v55 = vld [vmem:[%s10647_s16 + $0xc8] sm:$0xff] }
  0xaf   : > { %13051 = vst [vmem:[#allocation23_spill] sm:$0xff] %v10773_v27  ;;  %v452_v47 = vrot.slane %v10784_v36, 1  ;;  %v10801_v52 = vld [vmem:[%s10647_s16 + $0xc0] sm:$0xff]  ;;  %v366_v58 = vld [vmem:[#allocation6 + $0x78] sm:$0xff]  ;;  %v457_v4 = vrot.slane %v10804_v55, 1  ;;  %v1108_v17 = vld [vmem:[#allocation6 + $0x108] sm:$0xff] }
  0xb0   : > { %v365_v57 = vld [vmem:[#allocation6 + $0x70] sm:$0xff]  ;;  %v456_v2 = vrot.slane %v10801_v52, 1  ;;  %v10846_v37 = vld [vmem:[%s10647_s16 + $0xf8] sm:$0xff] }
  0xb1   : > { %8942 = vmatpush3.bf16.msra.mxu0 %v8939_v19  ;;  %v10758_v19 = vld [vmem:[%s10647_s16 + $0x88] sm:$0x3]  ;;  %v10813_v0 = vsel %vm415_vm0, %v451_v46, %v452_v47  ;;  %v8983_v12 = vpack.c.bf16 %v366_v58, %v365_v57  ;;  %v10824_v13 = vld [vmem:[%s10647_s16 + $0xe0] sm:$0xff] }
  0xb2   : > { %8944 = vmatprep.subr.bf16.mxu0 %v8943_v22  ;;  %v444_v26 = vrot.slane %v10758_v19, 1  ;;  %13055 = vst [vmem:[#allocation27_spill] sm:$0xff] %v10813_v0  ;;  %v10860_v57 = vld [vmem:[%s10647_s16 + $0x100] sm:$0x3]  ;;  %v10864_v58 = vld [vmem:[%s10647_s16 + $0x108] sm:$0xff] }
  0xb4   : > { %v10789_v42 = vsel %vm415_vm0, %v442_v18, %v444_v26  ;;  %v462_v26 = vrot.slane %v10824_v13, 1 }
  0xb5   : > { %8946 = vmatpush3.bf16.msra.mxu0 %v8943_v22  ;;  %v10764_v22 = vld [vmem:[%s10647_s16 + $0x98] sm:$0xff]  ;;  %13052 = vst [vmem:[#allocation24_spill] sm:$0xff] %v10789_v42 }
  0xb6   : > { %8948 = vmatprep.subr.bf16.mxu0 %v8947_v25  ;;  %v447_v30 = vrot.slane %v10764_v22, 1 }
  0xb9   : > { %8950 = vmatpush3.bf16.msra.mxu0 %v8947_v25  ;;  %v10769_v25 = vsel %vm415_vm0, %v437_v5, %v439_v15  ;;  %v10818_v5 = vld [vmem:[%s10647_s16 + $0xd0] sm:$0x3] }
  0xba   : > { %8952 = vmatprep.subr.bf16.mxu0 %v8951_v28  ;;  %13050 = vst [vmem:[#allocation22_spill] sm:$0xff] %v10769_v25  ;;  %v1107_v15 = vld [vmem:[#allocation6 + $0x100] sm:$0xff] }
  0xbd   : > { %8954 = vmatpush3.bf16.msra.mxu0 %v8951_v28  ;;  %v446_v28 = vrot.slane %v10761_v20, 1 }
  0xbe   : > { %8956 = vmatprep.subr.bf16.mxu0 %v8955_v35 }
  0xbf   : > { %v10793_v44 = vsel %vm415_vm0, %v446_v28, %v447_v30  ;;  %v10838_v28 = vld [vmem:[%s10647_s16 + $0xe8] sm:$0x3] }
  0xc0   : > { %7516 = vmatmul.mubr.f32.vlgmr.msra.gmra.mrb[0].mxu0 %v420_v43  ;;  %v449_v43 = vrot.slane %v10778_v31, 1  ;;  %13053 = vst [vmem:[#allocation25_spill] sm:$0xff] %v10793_v44 }
  0xc1   : > { %8958 = vmatpush3.bf16.msra.mxu0 %v8955_v35  ;;  %7518 = vmatprep.mubr.f32.mxu0 %v10694_v45  ;;  %v8975_v35 = vpack.c.bf16 %v362_v24, %v361_v23  ;;  %v10833_v23 = vsel %vm415_vm0, %v456_v2, %v457_v4 }
  0xc2   : > { %8960 = vmatprep.subr.bf16.mxu0 %v8959_v49  ;;  %13057 = vst [vmem:[#allocation29_spill] sm:$0xff] %v10833_v23 }
  0xc4   : > { %7519 = vmatmul.mubr.f32.gmra.mrb[2].mxu0 %v10709_v54 }
  0xc5   : > { %7521 = vmatprep.mubr.f32.mxu0 %v10713_v56  ;;  %8962 = vmatpush3.bf16.msra.mxu0 %v8959_v49  ;;  %v10798_v49 = vld [vmem:[%s10647_s16 + $0xb8] sm:$0x3] }
  0xc6   : > { %8964 = vmatprep.subr.bf16.mxu0 %v8963_v61  ;;  %v454_v63 = vrot.slane %v10798_v49, 1  ;;  %v1387_v56 = vld [vmem:[#allocation6 + $0x1b8] sm:$0xff] }
  0xc8   : > { %7522 = vmatmul.mubr.f32.gmra.mrb[4].mxu0 %v10729_v1  ;;  %v10829_v18 = vsel %vm415_vm0, %v452_v47, %v454_v63  ;;  %v10867_v63 = vld [vmem:[%s10647_s16 + $0x110] sm:$0xff]  ;;  %v1110_v1 = vld [vmem:[#allocation6 + $0x118] sm:$0xff] }
  0xc9   : > { %7524 = vmatprep.mubr.f32.mxu0 %v10733_v3  ;;  %8966 = vmatpush3.bf16.msra.mxu0 %v8963_v61  ;;  %v10809_v61 = vsel %vm415_vm0, %v447_v30, %v449_v43  ;;  %13056 = vst [vmem:[#allocation28_spill] sm:$0xff] %v10829_v18  ;;  %v10840_v30 = vpack.c.bf16 %v1108_v17, %v1107_v15  ;;  %v464_v43 = vrot.slane %v10838_v28, 1  ;;  %v471_v15 = vrot.slane %v10864_v58, 1  ;;  %v10961_v3 = vld [vmem:[%s10647_s16 + $0x178] sm:$0x3] }
  0xca   : > { %8968 = vmatprep.subr.bf16.mxu0 %v8967_v8  ;;  %13054 = vst [vmem:[#allocation26_spill] sm:$0xff] %v10809_v61  ;;  %v472_v17 = vrot.slane %v10867_v63, 1 }
  0xcb   : > { %v10872_v2 = vsel %vm415_vm0, %v462_v26, %v464_v43 }
  0xcc   : > { %7525 = vmatmul.mubr.f32.gmra.mrb[6].mxu0 %v10749_v14  ;;  %13060 = vst [vmem:[#allocation32_spill] sm:$0xff] %v10872_v2 }
  0xcd   : > { %7527 = vmatprep.mubr.f32.mxu0 %v10753_v16  ;;  %8970 = vmatpush3.bf16.msra.mxu0 %v8967_v8  ;;  %v10821_v8 = vld [vmem:[%s10647_s16 + $0xd8] sm:$0xff]  ;;  %v10944_v16 = vld [vmem:[%s10647_s16 + $0x168] sm:$0xff] }
  0xce   : > { %8972 = vmatprep.subr.bf16.mxu0 %v8971_v21  ;;  %v461_v24 = vrot.slane %v10821_v8, 1 }
  0xd0   : > { %7528 = vmatmul.mubr.f32.gmra.mrb[8].mxu0 %v10769_v25  ;;  %v10855_v46 = vsel %vm415_vm0, %v461_v24, %v462_v26  ;;  %v10884_v24 = vld [vmem:[%s10647_s16 + $0x120] sm:$0xff] }
  0xd1   : > { %7530 = vmatprep.mubr.f32.mxu0 %v10773_v27  ;;  %8974 = vmatpush3.bf16.msra.mxu0 %v8971_v21  ;;  %v459_v21 = vrot.slane %v10818_v5, 1  ;;  %13059 = vst [vmem:[#allocation31_spill] sm:$0xff] %v10855_v46  ;;  %v10941_v25 = vld [vmem:[%s10647_s16 + $0x160] sm:$0x3] }
  0xd2   : > { %8976 = vmatprep.subr.bf16.mxu0 %v8975_v35 }
  0xd3   : > { %v10851_v41 = vsel %vm415_vm0, %v457_v4, %v459_v21  ;;  %v469_v4 = vrot.slane %v10860_v57, 1  ;;  %v10881_v21 = vld [vmem:[%s10647_s16 + $0x118] sm:$0x3] }
  0xd4   : > { %7531 = vmatmul.mubr.f32.gmra.mrb[10].mxu0 %v10789_v42  ;;  %13058 = vst [vmem:[#allocation30_spill] sm:$0xff] %v10851_v41  ;;  %v474_v43 = vrot.slane %v10881_v21, 1 }
  0xd5   : > { %7533 = vmatprep.mubr.f32.mxu0 %v10793_v44  ;;  %8978 = vmatpush3.bf16.msra.mxu0 %v8975_v35  ;;  %v10843_v35 = vld [vmem:[%s10647_s16 + $0xf0] sm:$0xff]  ;;  %v10921_v44 = vld [vmem:[%s10647_s16 + $0x148] sm:$0x3] }
  0xd6   : > { %8980 = vmatprep.subr.bf16.mxu0 %v8979_v53  ;;  %v466_v47 = vrot.slane %v10843_v35, 1 }
  0xd8   : > { %7534 = vmatmul.mubr.f32.gmra.mrb[12].mxu0 %v10809_v61 }
  0xd9   : > { %7536 = vmatprep.mubr.f32.mxu0 %v10813_v0  ;;  %8982 = vmatpush3.bf16.msra.mxu0 %v8979_v53  ;;  %v467_v53 = vrot.slane %v10846_v37, 1 }
  0xda   : > { %8984 = vmatprep.subr.bf16.mxu0 %v8983_v12 }
  0xdb   : > { %v10892_v26 = vsel %vm415_vm0, %v467_v53, %v469_v4 }
  0xdc   : > { %7537 = vmatmul.mubr.f32.gmra.mrb[14].mxu0 %v10829_v18  ;;  %13062 = vst [vmem:[#allocation34_spill] sm:$0xff] %v10892_v26  ;;  %v10901_v18 = vld [vmem:[%s10647_s16 + $0x130] sm:$0x3] }
  0xdd   : > { %7539 = vmatprep.mubr.f32.mxu0 %v10833_v23  ;;  %8986 = vmatpush3.bf16.msra.mxu0 %v8983_v12  ;;  %v10876_v12 = vsel %vm415_vm0, %v466_v47, %v467_v53  ;;  %v10896_v47 = vsel %vm415_vm0, %v471_v15, %v472_v17  ;;  %v10912_v53 = vsel %vm415_vm0, %v472_v17, %v474_v43  ;;  %v479_v4 = vrot.slane %v10901_v18, 1 }
  0xde   : > { %8988 = vmatprep.subr.bf16.mxu0 %v10840_v30  ;;  %13061 = vst [vmem:[#allocation33_spill] sm:$0xff] %v10876_v12  ;;  %13063 = vst [vmem:[#allocation35_spill] sm:$0xff] %v10896_v47 }
  0xdf   : > { %13064 = vst [vmem:[#allocation36_spill] sm:$0xff] %v10912_v53 }
  0xe0   : > { %7540 = vmatmul.mubr.f32.gmra.mrb[16].mxu0 %v10851_v41  ;;  %v476_v41 = vrot.slane %v10884_v24, 1 }
  0xe1   : > { %7542 = vmatprep.mubr.f32.mxu0 %v10855_v46  ;;  %v10887_v46 = vld [vmem:[%s10647_s16 + $0x128] sm:$0xff] }
  0xe2   : > { %v477_v23 = vrot.slane %v10887_v46, 1 }
  0xe4   : > { %7543 = vmatmul.mubr.f32.gmra.mrb[18].mxu0 %v10872_v2  ;;  %v10904_v2 = vld [vmem:[%s10647_s16 + $0x138] sm:$0xff]  ;;  %v10916_v15 = vsel %vm415_vm0, %v476_v41, %v477_v23  ;;  %v10932_v17 = vsel %vm415_vm0, %v477_v23, %v479_v4  ;;  %v484_v41 = vrot.slane %v10921_v44, 1 }
  0xe5   : > { %7545 = vmatprep.mubr.f32.mxu0 %v10876_v12  ;;  %v10907_v12 = vld [vmem:[%s10647_s16 + $0x140] sm:$0xff]  ;;  %13065 = vst [vmem:[#allocation37_spill] sm:$0xff] %v10916_v15  ;;  %v481_v0 = vrot.slane %v10904_v2, 1  ;;  %13066 = vst [vmem:[#allocation38_spill] sm:$0xff] %v10932_v17 }
  0xe6   : > { %v482_v61 = vrot.slane %v10907_v12, 1 }
  0xe8   : > { %7546 = vmatmul.mubr.f32.gmra.mrb[20].mxu0 %v10892_v26  ;;  %v10924_v26 = vld [vmem:[%s10647_s16 + $0x150] sm:$0xff]  ;;  %v10936_v43 = vsel %vm415_vm0, %v481_v0, %v482_v61  ;;  %v10952_v23 = vsel %vm415_vm0, %v482_v61, %v484_v41  ;;  %v489_v0 = vrot.slane %v10941_v25, 1  ;;  %v494_v61 = vrot.slane %v10961_v3, 1 }
  0xe9   : > { %7548 = vmatprep.mubr.f32.mxu0 %v10896_v47  ;;  %v10927_v47 = vld [vmem:[%s10647_s16 + $0x158] sm:$0xff]  ;;  %13067 = vst [vmem:[#allocation39_spill] sm:$0xff] %v10936_v43  ;;  %v486_v42 = vrot.slane %v10924_v26, 1  ;;  %13068 = vst [vmem:[#allocation40_spill] sm:$0xff] %v10952_v23 }
  0xea   : > { %v487_v27 = vrot.slane %v10927_v47, 1 }
  0xec   : > { %7549 = vmatmul.mubr.f32.gmra.mrb[22].mxu0 %v10912_v53  ;;  %v10947_v53 = vld [vmem:[%s10647_s16 + $0x170] sm:$0xff]  ;;  %v10956_v4 = vsel %vm415_vm0, %v486_v42, %v487_v27 }
  0xed   : > { %7551 = vmatprep.mubr.f32.mxu0 %v10916_v15  ;;  %13069 = vst [vmem:[#allocation41_spill] sm:$0xff] %v10956_v4  ;;  %v491_v15 = vrot.slane %v10944_v16, 1  ;;  %v492_v14 = vrot.slane %v10947_v53, 1 }
  0xef   : > { %v10970_v41 = vsel %vm415_vm0, %v491_v15, %v492_v14  ;;  %v10975_v42 = vsel %vm415_vm0, %v492_v14, %v494_v61  ;;  %v1114_v14 = vld [vmem:[#allocation6 + $0x138] sm:$0xff] }
  0xf0   : > { %7552 = vmatmul.mubr.f32.gmra.mrb[24].mxu0 %v10932_v17  ;;  %13071 = vst [vmem:[#allocation43_spill] sm:$0xff] %v10970_v41  ;;  %13072 = vst [vmem:[#allocation44_spill] sm:$0xff] %v10975_v42  ;;  %v1109_v17 = vld [vmem:[#allocation6 + $0x110] sm:$0xff] }
  0xf1   : > { %7554 = vmatprep.mubr.f32.mxu0 %v10936_v43  ;;  %v10966_v43 = vsel %vm415_vm0, %v487_v27, %v489_v0  ;;  %v8991_v27 = vpack.c.bf16 %v1110_v1, %v1109_v17  ;;  %v1111_v0 = vld [vmem:[#allocation6 + $0x120] sm:$0xff]  ;;  %v1116_v17 = vld [vmem:[#allocation6 + $0x148] sm:$0xff] }
  0xf2   : > { %13070 = vst [vmem:[#allocation42_spill] sm:$0xff] %v10966_v43  ;;  %v1115_v1 = vld [vmem:[#allocation6 + $0x140] sm:$0xff] }
  0xf4   : > { %7555 = vmatmul.mubr.f32.gmra.mrb[26].mxu0 %v10952_v23  ;;  %v1385_v23 = vld [vmem:[#allocation6 + $0x1a8] sm:$0xff] }
  0xf5   : > { %7557 = vmatprep.mubr.f32.mxu0 %v10956_v4  ;;  %v1112_v4 = vld [vmem:[#allocation6 + $0x128] sm:$0xff] }
  0xf6   : > { %v8995_v15 = vpack.c.bf16 %v1112_v4, %v1111_v0  ;;  %v1118_v4 = vld [vmem:[#allocation6 + $0x158] sm:$0xff]  ;;  %v1119_v0 = vld [vmem:[#allocation6 + $0x160] sm:$0xff] }
  0xf8   : > { %7558 = vmatmul.mubr.f32.gmra.mrb[28].mxu0 %v10966_v43  ;;  %v1384_v43 = vld [vmem:[#allocation6 + $0x1a0] sm:$0xff] }
  0xf9   : > { %7560 = vmatprep.mubr.f32.mxu0 %v10970_v41  ;;  %v1113_v41 = vld [vmem:[#allocation6 + $0x130] sm:$0xff] }
  0xfa   : > { %v8999_v61 = vpack.c.bf16 %v1114_v14, %v1113_v41  ;;  %v1120_v41 = vld [vmem:[#allocation6 + $0x168] sm:$0xff]  ;;  %v1121_v14 = vld [vmem:[#allocation6 + $0x170] sm:$0xff] }
  0xfc   : > { %7561 = vmatmul.mubr.f32.gmra.mrb[30].mxu0 %v10975_v42  ;;  %v1117_v42 = vld [vmem:[#allocation6 + $0x150] sm:$0xff] }
  0xfd   : > { %7595 = vmatprep.mubr.f32.mxu0 %v10662_v9 }
 0x100   : > { %7596 = vmatmul.mubr.f32.vlgmr.msra.gmra.mrb[0].mxu0 %v10665_v10 }
 0x101   : > { %8990 = vmatpush3.bf16.msra.mxu0 %v10840_v30  ;;  %7598 = vmatprep.mubr.f32.mxu0 %v10674_v32  ;;  %v9003_v30 = vpack.c.bf16 %v1116_v17, %v1115_v1  ;;  %v1122_v1 = vld [vmem:[#allocation6 + $0x178] sm:$0xff]  ;;  %v1380_v17 = vld [vmem:[#allocation6 + $0x180] sm:$0xff] }
 0x102   : > { %8992 = vmatprep.subr.bf16.mxu0 %v8991_v27 }
 0x104   : > { %7599 = vmatmul.mubr.f32.gmra.mrb[2].mxu0 %v10677_v33 }
 0x105   : > { %7601 = vmatprep.mubr.f32.mxu0 %v10686_v39  ;;  %8994 = vmatpush3.bf16.msra.mxu0 %v8991_v27  ;;  %v9007_v27 = vpack.c.bf16 %v1118_v4, %v1117_v42  ;;  %v1381_v42 = vld [vmem:[#allocation6 + $0x188] sm:$0xff]  ;;  %v995_v4 = vrot.slane %v10662_v9, 2 }
 0x106   : > { %8996 = vmatprep.subr.bf16.mxu0 %v8995_v15 }
 0x108   : > { %7602 = vmatmul.mubr.f32.gmra.mrb[4].mxu0 %v10689_v40 }
 0x109   : > { %7604 = vmatprep.mubr.f32.mxu0 %v10702_v50  ;;  %8998 = vmatpush3.bf16.msra.mxu0 %v8995_v15  ;;  %v9011_v15 = vpack.c.bf16 %v1120_v41, %v1119_v0  ;;  %v998_v0 = vrot.slane %v10671_v29, 2  ;;  %v1005_v29 = vrot.slane %v10686_v39, 2 }
 0x10a   : > { %9000 = vmatprep.subr.bf16.mxu0 %v8999_v61 }
 0x10c   : > { %7605 = vmatmul.mubr.f32.gmra.mrb[6].mxu0 %v10705_v51 }
 0x10d   : > { %7607 = vmatprep.mubr.f32.mxu0 %v10721_v60  ;;  %9002 = vmatpush3.bf16.msra.mxu0 %v8999_v61  ;;  %v9015_v61 = vpack.c.bf16 %v1122_v1, %v1121_v14  ;;  %v1001_v14 = vrot.slane %v10677_v33, 2  ;;  %v1382_v1 = vld [vmem:[#allocation6 + $0x190] sm:$0xff] }
 0x10e   : > { %9004 = vmatprep.subr.bf16.mxu0 %v9003_v30 }
 0x110   : > { %7608 = vmatmul.mubr.f32.gmra.mrb[8].mxu0 %v10724_v62 }
 0x111   : > { %7610 = vmatprep.mubr.f32.mxu0 %v10741_v7  ;;  %9006 = vmatpush3.bf16.msra.mxu0 %v9003_v30  ;;  %v9019_v30 = vpack.c.bf16 %v1381_v42, %v1380_v17  ;;  %v1006_v42 = vrot.slane %v10689_v40, 2 }
 0x112   : > { %9008 = vmatprep.subr.bf16.mxu0 %v9007_v27 }
 0x114   : > { %7611 = vmatmul.mubr.f32.gmra.mrb[10].mxu0 %v10744_v11 }
 0x115   : > { %7613 = vmatprep.mubr.f32.mxu0 %v10761_v20  ;;  %9010 = vmatpush3.bf16.msra.mxu0 %v9007_v27  ;;  %v996_v27 = vrot.slane %v10665_v10, 2  ;;  %v1003_v10 = vrot.slane %v10683_v38, 2  ;;  %v11030_v38 = vsel %vm994_vm1, %v1005_v29, %v1006_v42  ;;  %v1389_v29 = vld [vmem:[#allocation6 + $0x1c8] sm:$0xff] }
 0x116   : > { %9012 = vmatprep.subr.bf16.mxu0 %v9011_v15  ;;  %13073 = vst [vmem:[#allocation45_spill] sm:$0xff] %v11030_v38 }
 0x117   : > { %v997_v41 = vsel %vm994_vm1, %v995_v4, %v996_v27  ;;  %v999_v9 = vsel %vm994_vm1, %v996_v27, %v998_v0  ;;  %v1008_v27 = vrot.slane %v10699_v48, 2  ;;  %v1010_v0 = vrot.slane %v10702_v50, 2 }
 0x118   : > { %7614 = vmatmul.mubr.f32.gmra.mrb[12].mxu0 %v10764_v22  ;;  %v1013_v48 = vrot.slane %v10718_v59, 2  ;;  %v1018_v59 = vrot.slane %v10738_v6, 2  ;;  %v1023_v6 = vrot.slane %v10758_v19, 2  ;;  %v1028_v19 = vrot.slane %v10778_v31, 2 }
 0x119   : > { %7616 = vmatprep.mubr.f32.mxu0 %v10781_v34  ;;  %9014 = vmatpush3.bf16.msra.mxu0 %v9011_v15  ;;  %v1000_v15 = vrot.slane %v10674_v32, 2  ;;  %v1033_v31 = vrot.slane %v10798_v49, 2  ;;  %v1038_v49 = vrot.slane %v10818_v5, 2 }
 0x11a   : > { %9016 = vmatprep.subr.bf16.mxu0 %v9015_v61 }
 0x11b   : > { %v11020_v17 = vsel %vm994_vm1, %v1000_v15, %v1001_v14  ;;  %v1011_v15 = vrot.slane %v10705_v51, 2 }
 0x11c   : > { %7617 = vmatmul.mubr.f32.gmra.mrb[14].mxu0 %v10784_v36 }
 0x11d   : > { %7619 = vmatprep.mubr.f32.mxu0 %v10801_v52  ;;  %9018 = vmatpush3.bf16.msra.mxu0 %v9015_v61  ;;  %v1383_v61 = vld [vmem:[#allocation6 + $0x198] sm:$0xff] }
 0x11e   : > { %9020 = vmatprep.subr.bf16.mxu0 %v9019_v30  ;;  %v9023_v4 = vpack.c.bf16 %v1383_v61, %v1382_v1  ;;  %v9027_v1 = vpack.c.bf16 %v1385_v23, %v1384_v43  ;;  %v1386_v61 = vld [vmem:[#allocation6 + $0x1b0] sm:$0xff]  ;;  %v1388_v23 = vld [vmem:[#allocation6 + $0x1c0] sm:$0xff] }
 0x11f   : > { %v9031_v43 = vpack.c.bf16 %v1387_v56, %v1386_v61  ;;  %v9035_v56 = vpack.c.bf16 %v1389_v29, %v1388_v23  ;;  %v1390_v61 = vld [vmem:[#allocation6 + $0x1d0] sm:$0xff]  ;;  %v1392_v29 = vld [vmem:[#allocation6 + $0x1e0] sm:$0xff] }
 0x120   : > { %7620 = vmatmul.mubr.f32.gmra.mrb[16].mxu0 %v10804_v55 }
 0x121   : > { %7622 = vmatprep.mubr.f32.mxu0 %v10821_v8 }
 0x124   : > { %7623 = vmatmul.mubr.f32.gmra.mrb[18].mxu0 %v10824_v13 }
 0x125   : > { %7625 = vmatprep.mubr.f32.mxu0 %v10843_v35 }
 0x128   : > { %7626 = vmatmul.mubr.f32.gmra.mrb[20].mxu0 %v10846_v37 }
 0x129   : > { %7628 = vmatprep.mubr.f32.mxu0 %v10864_v58 }
 0x12c   : > { %7629 = vmatmul.mubr.f32.gmra.mrb[22].mxu0 %v10867_v63 }
 0x12d   : > { %7631 = vmatprep.mubr.f32.mxu0 %v10884_v24 }
 0x130   : > { %7632 = vmatmul.mubr.f32.gmra.mrb[24].mxu0 %v10887_v46 }
 0x131   : > { %7634 = vmatprep.mubr.f32.mxu0 %v10904_v2 }
 0x134   : > { %7635 = vmatmul.mubr.f32.gmra.mrb[26].mxu0 %v10907_v12 }
 0x135   : > { %7637 = vmatprep.mubr.f32.mxu0 %v10924_v26 }
 0x138   : > { %7638 = vmatmul.mubr.f32.gmra.mrb[28].mxu0 %v10927_v47 }
 0x139   : > { %7640 = vmatprep.mubr.f32.mxu0 %v10944_v16 }
 0x13c   : > { %7641 = vmatmul.mubr.f32.gmra.mrb[30].mxu0 %v10947_v53 }
 0x13d   : > { %7675 = vmatprep.mubr.f32.mxu0 %v997_v41  ;;  %v11026_v41 = vsel %vm994_vm1, %v1001_v14, %v1003_v10  ;;  %v11041_v14 = vsel %vm994_vm1, %v1010_v0, %v1011_v15  ;;  %v1016_v10 = vrot.slane %v10724_v62, 2  ;;  %v1021_v0 = vrot.slane %v10744_v11, 2 }
 0x13e   : > { %13074 = vst [vmem:[#allocation46_spill] sm:$0xff] %v11041_v14 }
 0x140   : > { %7676 = vmatmul.mubr.f32.vlgmr.msra.gmra.mrb[0].mxu0 %v999_v9  ;;  %v1015_v9 = vrot.slane %v10721_v60, 2 }
 0x141   : > { %9022 = vmatpush3.bf16.msra.mxu0 %v9019_v30  ;;  %7678 = vmatprep.mubr.f32.mxu0 %v11020_v17  ;;  %v11037_v30 = vsel %vm994_vm1, %v1006_v42, %v1008_v27  ;;  %v11048_v42 = vsel %vm994_vm1, %v1011_v15, %v1013_v48  ;;  %v1020_v27 = vrot.slane %v10741_v7, 2  ;;  %v11059_v15 = vsel %vm994_vm1, %v1016_v10, %v1018_v59 }
 0x142   : > { %9024 = vmatprep.subr.bf16.mxu0 %v9023_v4  ;;  %v1025_v48 = vrot.slane %v10761_v20, 2  ;;  %v1030_v59 = vrot.slane %v10781_v34, 2 }
 0x144   : > { %7679 = vmatmul.mubr.f32.gmra.mrb[2].mxu0 %v11026_v41 }
 0x145   : > { %7681 = vmatprep.mubr.f32.mxu0 %v11030_v38  ;;  %9026 = vmatpush3.bf16.msra.mxu0 %v9023_v4  ;;  %v11052_v4 = vsel %vm994_vm1, %v1015_v9, %v1016_v10  ;;  %v1391_v38 = vld [vmem:[#allocation6 + $0x1d8] sm:$0xff]  ;;  %v1026_v9 = vrot.slane %v10764_v22, 2  ;;  %v11070_v10 = vsel %vm994_vm1, %v1021_v0, %v1023_v6  ;;  %v1035_v6 = vrot.slane %v10801_v52, 2 }
 0x146   : > { %9028 = vmatprep.subr.bf16.mxu0 %v9027_v1  ;;  %13075 = vst [vmem:[#allocation47_spill] sm:$0xff] %v11052_v4  ;;  %v9039_v23 = vpack.c.bf16 %v1391_v38, %v1390_v61  ;;  %v1394_v61 = vld [vmem:[#allocation6 + $0x1f0] sm:$0xff] }
 0x148   : > { %7682 = vmatmul.mubr.f32.gmra.mrb[4].mxu0 %v11037_v30 }
 0x149   : > { %7684 = vmatprep.mubr.f32.mxu0 %v11041_v14  ;;  %9030 = vmatpush3.bf16.msra.mxu0 %v9027_v1  ;;  %v11063_v1 = vsel %vm994_vm1, %v1020_v27, %v1021_v0  ;;  %v1393_v14 = vld [vmem:[#allocation6 + $0x1e8] sm:$0xff]  ;;  %v1031_v27 = vrot.slane %v10784_v36, 2  ;;  %v11081_v0 = vsel %vm994_vm1, %v1026_v9, %v1028_v19  ;;  %v1040_v19 = vrot.slane %v10821_v8, 2 }
 0x14a   : > { %9032 = vmatprep.subr.bf16.mxu0 %v9031_v43  ;;  %13076 = vst [vmem:[#allocation48_spill] sm:$0xff] %v11063_v1  ;;  %v9043_v38 = vpack.c.bf16 %v1393_v14, %v1392_v29  ;;  %v1663_v29 = vld [vmem:[#allocation6 + $0x200] sm:$0xff] }
 0x14c   : > { %7685 = vmatmul.mubr.f32.gmra.mrb[6].mxu0 %v11048_v42 }
 0x14d   : > { %7687 = vmatprep.mubr.f32.mxu0 %v11052_v4  ;;  %9034 = vmatpush3.bf16.msra.mxu0 %v9031_v43  ;;  %v11074_v43 = vsel %vm994_vm1, %v1025_v48, %v1026_v9  ;;  %v1395_v4 = vld [vmem:[#allocation6 + $0x1f8] sm:$0xff]  ;;  %v1036_v48 = vrot.slane %v10804_v55, 2  ;;  %v11092_v9 = vsel %vm994_vm1, %v1031_v27, %v1033_v31  ;;  %v1046_v31 = vrot.slane %v10846_v37, 2 }
 0x14e   : > { %9036 = vmatprep.subr.bf16.mxu0 %v9035_v56  ;;  %v9047_v14 = vpack.c.bf16 %v1395_v4, %v1394_v61 }
 0x14f   : > { %v11103_v61 = vsel %vm994_vm1, %v1036_v48, %v1038_v49  ;;  %v1053_v49 = vrot.slane %v10881_v21, 2  ;;  %v1060_v21 = vrot.slane %v10904_v2, 2 }
 0x150   : > { %7688 = vmatmul.mubr.f32.gmra.mrb[8].mxu0 %v11059_v15 }
 0x151   : > { %7690 = vmatprep.mubr.f32.mxu0 %v11063_v1  ;;  %9038 = vmatpush3.bf16.msra.mxu0 %v9035_v56  ;;  %v11085_v56 = vsel %vm994_vm1, %v1030_v59, %v1031_v27  ;;  %v1664_v1 = vld [vmem:[#allocation6 + $0x208] sm:$0xff]  ;;  %v1041_v59 = vrot.slane %v10824_v13, 2  ;;  %v1043_v27 = vrot.slane %v10838_v28, 2 }
 0x152   : > { %9040 = vmatprep.subr.bf16.mxu0 %v9039_v23  ;;  %v9051_v4 = vpack.c.bf16 %v1664_v1, %v1663_v29 }
 0x153   : > { %v11107_v5 = vsel %vm994_vm1, %v1040_v19, %v1041_v59  ;;  %v11114_v1 = vsel %vm994_vm1, %v1041_v59, %v1043_v27  ;;  %v1056_v59 = vrot.slane %v10887_v46, 2 }
 0x154   : > { %7691 = vmatmul.mubr.f32.gmra.mrb[10].mxu0 %v11070_v10 }
 0x155   : > { %7693 = vmatprep.mubr.f32.mxu0 %v11074_v43  ;;  %9042 = vmatpush3.bf16.msra.mxu0 %v9039_v23  ;;  %v11096_v23 = vsel %vm994_vm1, %v1035_v6, %v1036_v48  ;;  %v1048_v6 = vrot.slane %v10860_v57, 2  ;;  %v1050_v48 = vrot.slane %v10864_v58, 2  ;;  %v1055_v57 = vrot.slane %v10884_v24, 2 }
 0x156   : > { %9044 = vmatprep.subr.bf16.mxu0 %v9043_v38 }
 0x157   : > { %v11125_v29 = vsel %vm994_vm1, %v1046_v31, %v1048_v6  ;;  %v1061_v6 = vrot.slane %v10907_v12, 2 }
 0x158   : > { %7694 = vmatmul.mubr.f32.gmra.mrb[12].mxu0 %v11081_v0 }
 0x159   : > { %7696 = vmatprep.mubr.f32.mxu0 %v11085_v56  ;;  %9046 = vmatpush3.bf16.msra.mxu0 %v9043_v38  ;;  %v1045_v38 = vrot.slane %v10843_v35, 2 }
 0x15a   : > { %9048 = vmatprep.subr.bf16.mxu0 %v9047_v14 }
 0x15b   : > { %v11118_v28 = vsel %vm994_vm1, %v1045_v38, %v1046_v31  ;;  %v1058_v38 = vrot.slane %v10901_v18, 2  ;;  %v11140_v31 = vsel %vm994_vm1, %v1055_v57, %v1056_v59  ;;  %v1065_v18 = vrot.slane %v10924_v26, 2 }
 0x15c   : > { %7697 = vmatmul.mubr.f32.gmra.mrb[14].mxu0 %v11092_v9  ;;  %13078 = vst [vmem:[#allocation50_spill] sm:$0xff] %v11140_v31 }
 0x15d   : > { %7699 = vmatprep.mubr.f32.mxu0 %v11096_v23  ;;  %9050 = vmatpush3.bf16.msra.mxu0 %v9047_v14  ;;  %v1051_v14 = vrot.slane %v10867_v63, 2 }
 0x15e   : > { %9052 = vmatprep.subr.bf16.mxu0 %v9051_v4 }
 0x15f   : > { %v11129_v19 = vsel %vm994_vm1, %v1050_v48, %v1051_v14  ;;  %v11136_v27 = vsel %vm994_vm1, %v1051_v14, %v1053_v49  ;;  %v11147_v48 = vsel %vm994_vm1, %v1056_v59, %v1058_v38  ;;  %v11151_v14 = vsel %vm994_vm1, %v1060_v21, %v1061_v6 }
 0x160   : > { %7700 = vmatmul.mubr.f32.gmra.mrb[16].mxu0 %v11103_v61  ;;  %13077 = vst [vmem:[#allocation49_spill] sm:$0xff] %v11129_v19  ;;  %13079 = vst [vmem:[#allocation51_spill] sm:$0xff] %v11147_v48  ;;  %v1066_v49 = vrot.slane %v10927_v47, 2  ;;  %v1071_v38 = vrot.slane %v10947_v53, 2 }
 0x161   : > { %7702 = vmatprep.mubr.f32.mxu0 %v11107_v5  ;;  %13080 = vst [vmem:[#allocation52_spill] sm:$0xff] %v11151_v14 }
 0x162   : > { %v11162_v59 = vsel %vm994_vm1, %v1065_v18, %v1066_v49  ;;  %v1666_v18 = vld [vmem:[#allocation6 + $0x218] sm:$0xff] }
 0x163   : > { %13082 = vst [vmem:[#allocation54_spill] sm:$0xff] %v11162_v59 }
 0x164   : > { %7703 = vmatmul.mubr.f32.gmra.mrb[18].mxu0 %v11114_v1 }
 0x165   : > { %7705 = vmatprep.mubr.f32.mxu0 %v11118_v28 }
 0x168   : > { %7706 = vmatmul.mubr.f32.gmra.mrb[20].mxu0 %v11125_v29 }
 0x169   : > { %7708 = vmatprep.mubr.f32.mxu0 %v11129_v19  ;;  %v1063_v19 = vrot.slane %v10921_v44, 2  ;;  %v1070_v44 = vrot.slane %v10944_v16, 2 }
 0x16b   : > { %v11158_v57 = vsel %vm994_vm1, %v1061_v6, %v1063_v19  ;;  %v11173_v19 = vsel %vm994_vm1, %v1070_v44, %v1071_v38  ;;  %v1665_v6 = vld [vmem:[#allocation6 + $0x210] sm:$0xff] }
 0x16c   : > { %7709 = vmatmul.mubr.f32.gmra.mrb[22].mxu0 %v11136_v27  ;;  %13081 = vst [vmem:[#allocation53_spill] sm:$0xff] %v11158_v57  ;;  %13084 = vst [vmem:[#allocation56_spill] sm:$0xff] %v11173_v19  ;;  %v1669_v44 = vld [vmem:[#allocation6 + $0x230] sm:$0xff] }
 0x16d   : > { %7711 = vmatprep.mubr.f32.mxu0 %v11140_v31  ;;  %v1068_v31 = vrot.slane %v10941_v25, 2 }
 0x16f   : > { %v11169_v21 = vsel %vm994_vm1, %v1066_v49, %v1068_v31  ;;  %v9055_v31 = vpack.c.bf16 %v1666_v18, %v1665_v6  ;;  %v1667_v49 = vld [vmem:[#allocation6 + $0x220] sm:$0xff]  ;;  %v1944_v6 = vld [vmem:[#allocation6 + $0x288] sm:$0xff]  ;;  %v13092_v18 = vld [vmem:[#allocation23_spill] sm:$0xff] }
 0x170   : > { %7712 = vmatmul.mubr.f32.gmra.mrb[24].mxu0 %v11147_v48  ;;  %13083 = vst [vmem:[#allocation55_spill] sm:$0xff] %v11169_v21 }
 0x171   : > { %7714 = vmatprep.mubr.f32.mxu0 %v11151_v14  ;;  %v1073_v14 = vrot.slane %v10961_v3, 2 }
 0x173   : > { %v11178_v25 = vsel %vm994_vm1, %v1071_v38, %v1073_v14  ;;  %v1672_v38 = vld [vmem:[#allocation6 + $0x248] sm:$0xff] }
 0x174   : > { %7715 = vmatmul.mubr.f32.gmra.mrb[26].mxu0 %v11158_v57  ;;  %13085 = vst [vmem:[#allocation57_spill] sm:$0xff] %v11178_v25 }
 0x175   : > { %7717 = vmatprep.mubr.f32.mxu0 %v11162_v59  ;;  %v1668_v59 = vld [vmem:[#allocation6 + $0x228] sm:$0xff] }
 0x176   : > { %v9059_v3 = vpack.c.bf16 %v1668_v59, %v1667_v49  ;;  %v1676_v59 = vld [vmem:[#allocation6 + $0x268] sm:$0xff]  ;;  %v1955_v49 = vld [vmem:[#allocation6 + $0x2e0] sm:$0xff] }
 0x178   : > { %7718 = vmatmul.mubr.f32.gmra.mrb[28].mxu0 %v11169_v21 }
 0x179   : > { %7720 = vmatprep.mubr.f32.mxu0 %v11173_v19  ;;  %v1670_v19 = vld [vmem:[#allocation6 + $0x238] sm:$0xff] }
 0x17a   : > { %v9063_v14 = vpack.c.bf16 %v1670_v19, %v1669_v44  ;;  %v1678_v19 = vld [vmem:[#allocation6 + $0x278] sm:$0xff] }
 0x17b   : > { %v13093_v44 = vld [vmem:[#allocation24_spill] sm:$0xff] }
 0x17c   : > { %7721 = vmatmul.mubr.f32.gmra.mrb[30].mxu0 %v11178_v25 }
 0x17d   : > { %7755 = vmatprep.mubr.f32.mxu0 %v10674_v32  ;;  %v1671_v32 = vld [vmem:[#allocation6 + $0x240] sm:$0xff] }
 0x180   : > { %7756 = vmatmul.mubr.f32.vlgmr.msra.gmra.mrb[0].mxu0 %v10677_v33  ;;  %v9067_v33 = vpack.c.bf16 %v1672_v38, %v1671_v32  ;;  %v1957_v38 = vld [vmem:[#allocation6 + $0x2f0] sm:$0xff] }
 0x181   : > { %9054 = vmatpush3.bf16.msra.mxu0 %v9051_v4  ;;  %7758 = vmatprep.mubr.f32.mxu0 %v10686_v39  ;;  %v1673_v39 = vld [vmem:[#allocation6 + $0x250] sm:$0xff]  ;;  %v1674_v4 = vld [vmem:[#allocation6 + $0x258] sm:$0xff] }
 0x182   : > { %9056 = vmatprep.subr.bf16.mxu0 %v9055_v31 }
 0x184   : > { %7759 = vmatmul.mubr.f32.gmra.mrb[2].mxu0 %v10689_v40  ;;  %v9071_v40 = vpack.c.bf16 %v1674_v4, %v1673_v39  ;;  %v13095_v39 = vld [vmem:[#allocation26_spill] sm:$0xff]  ;;  %v13096_v4 = vld [vmem:[#allocation27_spill] sm:$0xff] }
 0x185   : > { %7761 = vmatprep.mubr.f32.mxu0 %v10702_v50  ;;  %9058 = vmatpush3.bf16.msra.mxu0 %v9055_v31  ;;  %v1675_v50 = vld [vmem:[#allocation6 + $0x260] sm:$0xff] }
 0x186   : > { %9060 = vmatprep.subr.bf16.mxu0 %v9059_v3 }
 0x188   : > { %7762 = vmatmul.mubr.f32.gmra.mrb[4].mxu0 %v10705_v51  ;;  %v9075_v51 = vpack.c.bf16 %v1676_v59, %v1675_v50  ;;  %v2216_v50 = vld [vmem:[#allocation6 + $0x300] sm:$0xff]  ;;  %v2217_v59 = vld [vmem:[#allocation6 + $0x308] sm:$0xff] }
 0x189   : > { %7764 = vmatprep.mubr.f32.mxu0 %v10721_v60  ;;  %9062 = vmatpush3.bf16.msra.mxu0 %v9059_v3  ;;  %v1677_v60 = vld [vmem:[#allocation6 + $0x270] sm:$0xff]  ;;  %v1956_v3 = vld [vmem:[#allocation6 + $0x2e8] sm:$0xff] }
 0x18a   : > { %9064 = vmatprep.subr.bf16.mxu0 %v9063_v14  ;;  %v9107_v32 = vpack.c.bf16 %v1956_v3, %v1955_v49  ;;  %v13114_v49 = vld [vmem:[#allocation44_spill] sm:$0xff] }
 0x18c   : > { %7765 = vmatmul.mubr.f32.gmra.mrb[6].mxu0 %v10724_v62  ;;  %v9079_v62 = vpack.c.bf16 %v1678_v19, %v1677_v60  ;;  %v13098_v60 = vld [vmem:[#allocation29_spill] sm:$0xff]  ;;  %v9115_v19 = vpack.c.bf16 %v2217_v59, %v2216_v50 }
 0x18d   : > { %7767 = vmatprep.mubr.f32.mxu0 %v10741_v7  ;;  %9066 = vmatpush3.bf16.msra.mxu0 %v9063_v14  ;;  %v1943_v7 = vld [vmem:[#allocation6 + $0x280] sm:$0xff]  ;;  %v2221_v50 = vld [vmem:[#allocation6 + $0x328] sm:$0xff] }
 0x18e   : > { %9068 = vmatprep.subr.bf16.mxu0 %v9067_v33  ;;  %v13094_v14 = vld [vmem:[#allocation25_spill] sm:$0xff] }
 0x18f   : > { %v13115_v59 = vld [vmem:[#allocation45_spill] sm:$0xff] }
 0x190   : > { %7768 = vmatmul.mubr.f32.gmra.mrb[8].mxu0 %v10744_v11  ;;  %v9083_v11 = vpack.c.bf16 %v1944_v6, %v1943_v7  ;;  %v13100_v7 = vld [vmem:[#allocation31_spill] sm:$0xff]  ;;  %v13101_v6 = vld [vmem:[#allocation32_spill] sm:$0xff] }
 0x191   : > { %7770 = vmatprep.mubr.f32.mxu0 %v10761_v20  ;;  %9070 = vmatpush3.bf16.msra.mxu0 %v9067_v33  ;;  %v11211_v20 = vld [vmem:[%s10647_s16 + $0x180] sm:$0xff]  ;;  %v1958_v33 = vld [vmem:[#allocation6 + $0x2f8] sm:$0xff] }
 0x192   : > { %9072 = vmatprep.subr.bf16.mxu0 %v9071_v40 }
 0x194   : > { %7771 = vmatmul.mubr.f32.gmra.mrb[10].mxu0 %v10764_v22  ;;  %v11216_v22 = vld [vmem:[%s10647_s16 + $0x188] sm:$0xff] }
 0x195   : > { %7773 = vmatprep.mubr.f32.mxu0 %v10781_v34  ;;  %9074 = vmatpush3.bf16.msra.mxu0 %v9071_v40  ;;  %v1945_v34 = vld [vmem:[#allocation6 + $0x290] sm:$0xff]  ;;  %v9111_v40 = vpack.c.bf16 %v1958_v33, %v1957_v38  ;;  %v2219_v38 = vld [vmem:[#allocation6 + $0x318] sm:$0xff] }
 0x196   : > { %9076 = vmatprep.subr.bf16.mxu0 %v9075_v51 }
 0x198   : > { %7774 = vmatmul.mubr.f32.gmra.mrb[12].mxu0 %v10784_v36  ;;  %v1946_v36 = vld [vmem:[#allocation6 + $0x298] sm:$0xff] }
 0x199   : > { %7776 = vmatprep.mubr.f32.mxu0 %v10801_v52  ;;  %9078 = vmatpush3.bf16.msra.mxu0 %v9075_v51  ;;  %v9087_v52 = vpack.c.bf16 %v1946_v36, %v1945_v34  ;;  %v13097_v51 = vld [vmem:[#allocation28_spill] sm:$0xff]  ;;  %v13103_v34 = vld [vmem:[#allocation34_spill] sm:$0xff]  ;;  %v13104_v36 = vld [vmem:[#allocation35_spill] sm:$0xff] }
 0x19a   : > { %9080 = vmatprep.subr.bf16.mxu0 %v9079_v62 }
 0x19c   : > { %7777 = vmatmul.mubr.f32.gmra.mrb[14].mxu0 %v10804_v55  ;;  %v1947_v55 = vld [vmem:[#allocation6 + $0x2a0] sm:$0xff] }
 0x19d   : > { %7779 = vmatprep.mubr.f32.mxu0 %v10821_v8  ;;  %9082 = vmatpush3.bf16.msra.mxu0 %v9079_v62  ;;  %v1948_v8 = vld [vmem:[#allocation6 + $0x2a8] sm:$0xff] }
 0x19e   : > { %9084 = vmatprep.subr.bf16.mxu0 %v9083_v11  ;;  %v13099_v62 = vld [vmem:[#allocation30_spill] sm:$0xff] }
 0x1a0   : > { %7780 = vmatmul.mubr.f32.gmra.mrb[16].mxu0 %v10824_v13  ;;  %v9091_v13 = vpack.c.bf16 %v1948_v8, %v1947_v55  ;;  %v13106_v55 = vld [vmem:[#allocation37_spill] sm:$0xff]  ;;  %v13107_v8 = vld [vmem:[#allocation38_spill] sm:$0xff] }
 0x1a1   : > { %7782 = vmatprep.mubr.f32.mxu0 %v10843_v35  ;;  %v1949_v35 = vld [vmem:[#allocation6 + $0x2b0] sm:$0xff] }
 0x1a4   : > { %7783 = vmatmul.mubr.f32.gmra.mrb[18].mxu0 %v10846_v37  ;;  %v1950_v37 = vld [vmem:[#allocation6 + $0x2b8] sm:$0xff] }
 0x1a5   : > { %7785 = vmatprep.mubr.f32.mxu0 %v10864_v58  ;;  %v13088_v58 = vld [vmem:[#allocation19_spill] sm:$0xff] }
 0x1a8   : > { %7786 = vmatmul.mubr.f32.gmra.mrb[20].mxu0 %v10867_v63  ;;  %v9095_v63 = vpack.c.bf16 %v1950_v37, %v1949_v35  ;;  %v13109_v35 = vld [vmem:[#allocation40_spill] sm:$0xff]  ;;  %v13110_v37 = vld [vmem:[#allocation41_spill] sm:$0xff] }
 0x1a9   : > { %7788 = vmatprep.mubr.f32.mxu0 %v10884_v24  ;;  %v13090_v24 = vld [vmem:[#allocation21_spill] sm:$0xff] }
 0x1ac   : > { %7789 = vmatmul.mubr.f32.gmra.mrb[22].mxu0 %v10887_v46  ;;  %v13087_v46 = vld [vmem:[#allocation18_spill] sm:$0xff] }
 0x1ad   : > { %7791 = vmatprep.mubr.f32.mxu0 %v10904_v2  ;;  %v1952_v2 = vld [vmem:[#allocation6 + $0x2c8] sm:$0xff] }
 0x1b0   : > { %7792 = vmatmul.mubr.f32.gmra.mrb[24].mxu0 %v10907_v12  ;;  %v13089_v12 = vld [vmem:[#allocation20_spill] sm:$0xff] }
 0x1b1   : > { %7794 = vmatprep.mubr.f32.mxu0 %v10924_v26  ;;  %v1953_v26 = vld [vmem:[#allocation6 + $0x2d0] sm:$0xff] }
 0x1b4   : > { %7795 = vmatmul.mubr.f32.gmra.mrb[26].mxu0 %v10927_v47  ;;  %v1954_v47 = vld [vmem:[#allocation6 + $0x2d8] sm:$0xff] }
 0x1b5   : > { %7797 = vmatprep.mubr.f32.mxu0 %v10944_v16  ;;  %v13086_v16 = vld [vmem:[#allocation17_spill] sm:$0xff]  ;;  %v9103_v31 = vpack.c.bf16 %v1954_v47, %v1953_v26  ;;  %v13112_v26 = vld [vmem:[#allocation43_spill] sm:$0xff] }
 0x1b8   : > { %7798 = vmatmul.mubr.f32.gmra.mrb[28].mxu0 %v10947_v53  ;;  %v13091_v53 = vld [vmem:[#allocation22_spill] sm:$0xff] }
 0x1b9   : > { %7800 = vmatprep.mubr.f32.mxu0 %v11211_v20 }
 0x1bc   : > { %7801 = vmatmul.mubr.f32.gmra.mrb[30].mxu0 %v11216_v22 }
 0x1bd   : > { %7835 = vmatprep.mubr.f32.mxu0 %v10694_v45  ;;  %v1951_v45 = vld [vmem:[#allocation6 + $0x2c0] sm:$0xff] }
 0x1c0   : > { %7836 = vmatmul.mubr.f32.vlgmr.msra.gmra.mrb[0].mxu0 %v10709_v54  ;;  %v9099_v54 = vpack.c.bf16 %v1952_v2, %v1951_v45  ;;  %v1657_v45 = vrot.slane %v11216_v22, 1  ;;  %v11249_v2 = vld [vmem:[%s10647_s16 + $0x190] sm:$0x3] }
 0x1c1   : > { %9086 = vmatpush3.bf16.msra.mxu0 %v9083_v11  ;;  %7838 = vmatprep.mubr.f32.mxu0 %v13086_v16  ;;  %v13102_v11 = vld [vmem:[#allocation33_spill] sm:$0xff]  ;;  %v1659_v47 = vrot.slane %v11249_v2, 1 }
 0x1c2   : > { %9088 = vmatprep.subr.bf16.mxu0 %v9087_v52 }
 0x1c3   : > { %v11260_v3 = vsel %vm415_vm0, %v1657_v45, %v1659_v47 }
 0x1c4   : > { %7839 = vmatmul.mubr.f32.gmra.mrb[2].mxu0 %v13087_v46 }
 0x1c5   : > { %7841 = vmatprep.mubr.f32.mxu0 %v13088_v58  ;;  %9090 = vmatpush3.bf16.msra.mxu0 %v9087_v52  ;;  %v13105_v52 = vld [vmem:[#allocation36_spill] sm:$0xff] }
 0x1c6   : > { %9092 = vmatprep.subr.bf16.mxu0 %v9091_v13 }
 0x1c8   : > { %7842 = vmatmul.mubr.f32.gmra.mrb[4].mxu0 %v13089_v12 }
 0x1c9   : > { %7844 = vmatprep.mubr.f32.mxu0 %v13090_v24  ;;  %9094 = vmatpush3.bf16.msra.mxu0 %v9091_v13  ;;  %v13108_v13 = vld [vmem:[#allocation39_spill] sm:$0xff] }
 0x1ca   : > { %9096 = vmatprep.subr.bf16.mxu0 %v9095_v63 }
 0x1cc   : > { %7845 = vmatmul.mubr.f32.gmra.mrb[6].mxu0 %v13091_v53 }
 0x1cd   : > { %7847 = vmatprep.mubr.f32.mxu0 %v13092_v18  ;;  %9098 = vmatpush3.bf16.msra.mxu0 %v9095_v63  ;;  %v1656_v63 = vrot.slane %v11211_v20, 1 }
 0x1ce   : > { %9100 = vmatprep.subr.bf16.mxu0 %v9099_v54 }
 0x1d0   : > { %7848 = vmatmul.mubr.f32.gmra.mrb[8].mxu0 %v13093_v44 }
 0x1d1   : > { %7850 = vmatprep.mubr.f32.mxu0 %v13094_v14  ;;  %9102 = vmatpush3.bf16.msra.mxu0 %v9099_v54  ;;  %v13111_v54 = vld [vmem:[#allocation42_spill] sm:$0xff] }
 0x1d2   : > { %9104 = vmatprep.subr.bf16.mxu0 %v9103_v31 }
 0x1d4   : > { %7851 = vmatmul.mubr.f32.gmra.mrb[10].mxu0 %v13095_v39 }
 0x1d5   : > { %7853 = vmatprep.mubr.f32.mxu0 %v13096_v4  ;;  %9106 = vmatpush3.bf16.msra.mxu0 %v9103_v31  ;;  %v11255_v31 = vsel %vm415_vm0, %v1656_v63, %v1657_v45  ;;  %v13116_v45 = vld [vmem:[#allocation46_spill] sm:$0xff] }
 0x1d6   : > { %9108 = vmatprep.subr.bf16.mxu0 %v9107_v32  ;;  %13113 = vst [vmem:[#allocation17_spill] sm:$0xff] %v11255_v31 }
 0x1d8   : > { %7854 = vmatmul.mubr.f32.gmra.mrb[12].mxu0 %v13097_v51 }
 0x1d9   : > { %7856 = vmatprep.mubr.f32.mxu0 %v13098_v60  ;;  %9110 = vmatpush3.bf16.msra.mxu0 %v9107_v32  ;;  %v2218_v32 = vld [vmem:[#allocation6 + $0x310] sm:$0xff] }
 0x1da   : > { %9112 = vmatprep.subr.bf16.mxu0 %v9111_v40  ;;  %v9119_v33 = vpack.c.bf16 %v2219_v38, %v2218_v32  ;;  %v2225_v32 = vld [vmem:[#allocation6 + $0x348] sm:$0xff]  ;;  %v13117_v38 = vld [vmem:[#allocation47_spill] sm:$0xff] }
 0x1dc   : > { %7857 = vmatmul.mubr.f32.gmra.mrb[14].mxu0 %v13099_v62 }
 0x1dd   : > { %7859 = vmatprep.mubr.f32.mxu0 %v13100_v7  ;;  %9114 = vmatpush3.bf16.msra.mxu0 %v9111_v40  ;;  %v2220_v40 = vld [vmem:[#allocation6 + $0x320] sm:$0xff] }
 0x1de   : > { %9116 = vmatprep.subr.bf16.mxu0 %v9115_v19  ;;  %v9123_v63 = vpack.c.bf16 %v2221_v50, %v2220_v40  ;;  %v2227_v40 = vld [vmem:[#allocation6 + $0x358] sm:$0xff] }
 0x1df   : > { %v13118_v50 = vld [vmem:[#allocation48_spill] sm:$0xff] }
 0x1e0   : > { %7860 = vmatmul.mubr.f32.gmra.mrb[16].mxu0 %v13101_v6 }
 0x1e1   : > { %7862 = vmatprep.mubr.f32.mxu0 %v13102_v11 }
 0x1e4   : > { %7863 = vmatmul.mubr.f32.gmra.mrb[18].mxu0 %v13103_v34 }
 0x1e5   : > { %7865 = vmatprep.mubr.f32.mxu0 %v13104_v36 }
 0x1e8   : > { %7866 = vmatmul.mubr.f32.gmra.mrb[20].mxu0 %v13105_v52 }
 0x1e9   : > { %7868 = vmatprep.mubr.f32.mxu0 %v13106_v55 }
 0x1ec   : > { %7869 = vmatmul.mubr.f32.gmra.mrb[22].mxu0 %v13107_v8 }
 0x1ed   : > { %7871 = vmatprep.mubr.f32.mxu0 %v13108_v13 }
 0x1f0   : > { %7872 = vmatmul.mubr.f32.gmra.mrb[24].mxu0 %v13109_v35 }
 0x1f1   : > { %7874 = vmatprep.mubr.f32.mxu0 %v13110_v37 }
 0x1f4   : > { %7875 = vmatmul.mubr.f32.gmra.mrb[26].mxu0 %v13111_v54 }
 0x1f5   : > { %7877 = vmatprep.mubr.f32.mxu0 %v13112_v26 }
 0x1f8   : > { %7878 = vmatmul.mubr.f32.gmra.mrb[28].mxu0 %v13114_v49  ;;  %v2223_v49 = vld [vmem:[#allocation6 + $0x338] sm:$0xff] }
 0x1f9   : > { %7880 = vmatprep.mubr.f32.mxu0 %v11255_v31  ;;  %v2222_v31 = vld [vmem:[#allocation6 + $0x330] sm:$0xff] }
 0x1fa   : > { %v9127_v47 = vpack.c.bf16 %v2223_v49, %v2222_v31  ;;  %v2229_v31 = vld [vmem:[#allocation6 + $0x368] sm:$0xff] }
 0x1fc   : > { %7881 = vmatmul.mubr.f32.gmra.mrb[30].mxu0 %v11260_v3 }
 0x1fd   : > { %7915 = vmatprep.mubr.f32.mxu0 %v11020_v17  ;;  %v2224_v17 = vld [vmem:[#allocation6 + $0x340] sm:$0xff] }
 0x200   : > { %7916 = vmatmul.mubr.f32.vlgmr.msra.gmra.mrb[0].mxu0 %v11026_v41  ;;  %v9131_v41 = vpack.c.bf16 %v2225_v32, %v2224_v17  ;;  %v2231_v17 = vld [vmem:[#allocation6 + $0x378] sm:$0xff]  ;;  %v2499_v32 = vld [vmem:[#allocation6 + $0x380] sm:$0xff] }
 0x201   : > { %9118 = vmatpush3.bf16.msra.mxu0 %v9115_v19  ;;  %7918 = vmatprep.mubr.f32.mxu0 %v13115_v59  ;;  %v2226_v19 = vld [vmem:[#allocation6 + $0x350] sm:$0xff] }
 0x202   : > { %9120 = vmatprep.subr.bf16.mxu0 %v9119_v33 }
 0x204   : > { %7919 = vmatmul.mubr.f32.gmra.mrb[2].mxu0 %v11037_v30 }
 0x205   : > { %7921 = vmatprep.mubr.f32.mxu0 %v13116_v45  ;;  %9122 = vmatpush3.bf16.msra.mxu0 %v9119_v33  ;;  %v9135_v33 = vpack.c.bf16 %v2227_v40, %v2226_v19  ;;  %v2228_v45 = vld [vmem:[#allocation6 + $0x360] sm:$0xff]  ;;  %v2500_v19 = vld [vmem:[#allocation6 + $0x388] sm:$0xff] }
 0x206   : > { %9124 = vmatprep.subr.bf16.mxu0 %v9123_v63  ;;  %v9139_v49 = vpack.c.bf16 %v2229_v31, %v2228_v45  ;;  %v13119_v45 = vld [vmem:[#allocation49_spill] sm:$0xff]  ;;  %v13120_v40 = vld [vmem:[#allocation50_spill] sm:$0xff] }
 0x207   : > { %v13122_v31 = vld [vmem:[#allocation54_spill] sm:$0xff] }
 0x208   : > { %7922 = vmatmul.mubr.f32.gmra.mrb[4].mxu0 %v11048_v42 }
 0x209   : > { %7924 = vmatprep.mubr.f32.mxu0 %v13117_v38  ;;  %9126 = vmatpush3.bf16.msra.mxu0 %v9123_v63  ;;  %v2230_v63 = vld [vmem:[#allocation6 + $0x370] sm:$0xff] }
 0x20a   : > { %9128 = vmatprep.subr.bf16.mxu0 %v9127_v47 }
 0x20c   : > { %7925 = vmatmul.mubr.f32.gmra.mrb[6].mxu0 %v11059_v15 }
 0x20d   : > { %7927 = vmatprep.mubr.f32.mxu0 %v13118_v50  ;;  %9130 = vmatpush3.bf16.msra.mxu0 %v9127_v47  ;;  %v9143_v47 = vpack.c.bf16 %v2231_v17, %v2230_v63  ;;  %v1937_v63 = vrot.slane %v11216_v22, 2  ;;  %v13123_v17 = vld [vmem:[#allocation56_spill] sm:$0xff] }
 0x20e   : > { %9132 = vmatprep.subr.bf16.mxu0 %v9131_v41 }
 0x210   : > { %7928 = vmatmul.mubr.f32.gmra.mrb[8].mxu0 %v11070_v10 }
 0x211   : > { %7930 = vmatprep.mubr.f32.mxu0 %v11074_v43  ;;  %9134 = vmatpush3.bf16.msra.mxu0 %v9131_v41  ;;  %v9147_v41 = vpack.c.bf16 %v2500_v19, %v2499_v32 }
 0x212   : > { %9136 = vmatprep.subr.bf16.mxu0 %v9135_v33 }
 0x214   : > { %7931 = vmatmul.mubr.f32.gmra.mrb[10].mxu0 %v11081_v0 }
 0x215   : > { %7933 = vmatprep.mubr.f32.mxu0 %v11085_v56  ;;  %9138 = vmatpush3.bf16.msra.mxu0 %v9135_v33  ;;  %v13121_v33 = vld [vmem:[#allocation52_spill] sm:$0xff] }
 0x216   : > { %9140 = vmatprep.subr.bf16.mxu0 %v9139_v49 }
 0x218   : > { %7934 = vmatmul.mubr.f32.gmra.mrb[12].mxu0 %v11092_v9 }
 0x219   : > { %7936 = vmatprep.mubr.f32.mxu0 %v11096_v23  ;;  %9142 = vmatpush3.bf16.msra.mxu0 %v9139_v49  ;;  %v1936_v49 = vrot.slane %v11211_v20, 2 }
 0x21a   : > { %9144 = vmatprep.subr.bf16.mxu0 %v9143_v47 }
 0x21b   : > { %v11296_v32 = vsel %vm994_vm1, %v1936_v49, %v1937_v63  ;;  %v10110_v49 = vld [vmem:[%s10647_s16 + $0x38] sm:$0xff] }
 0x21c   : > { %7937 = vmatmul.mubr.f32.gmra.mrb[14].mxu0 %v11103_v61  ;;  %13124 = vst [vmem:[#allocation18_spill] sm:$0xff] %v11296_v32 }
 0x21d   : > { %7939 = vmatprep.mubr.f32.mxu0 %v11107_v5  ;;  %9146 = vmatpush3.bf16.msra.mxu0 %v9143_v47  ;;  %v1939_v47 = vrot.slane %v11249_v2, 2 }
 0x21e   : > { %9148 = vmatprep.subr.bf16.mxu0 %v9147_v41 }
 0x21f   : > { %v11301_v19 = vsel %vm994_vm1, %v1937_v63, %v1939_v47  ;;  %v2505_v47 = vld [vmem:[#allocation6 + $0x3b0] sm:$0xff] }
 0x220   : > { %7940 = vmatmul.mubr.f32.gmra.mrb[16].mxu0 %v11114_v1  ;;  %13125 = vst [vmem:[#allocation19_spill] sm:$0xff] %v11301_v19 }
 0x221   : > { %7942 = vmatprep.mubr.f32.mxu0 %v11118_v28 }
 0x224   : > { %7943 = vmatmul.mubr.f32.gmra.mrb[18].mxu0 %v11125_v29 }
 0x225   : > { %7945 = vmatprep.mubr.f32.mxu0 %v13119_v45 }
 0x228   : > { %7946 = vmatmul.mubr.f32.gmra.mrb[20].mxu0 %v11136_v27 }
 0x229   : > { %7948 = vmatprep.mubr.f32.mxu0 %v13120_v40 }
 0x22c   : > { %7949 = vmatmul.mubr.f32.gmra.mrb[22].mxu0 %v11147_v48  ;;  %v10112_v48 = vld [vmem:[%s10647_s16 + $0x50] sm:$0xff] }
 0x22d   : > { %7951 = vmatprep.mubr.f32.mxu0 %v13121_v33  ;;  %v2504_v33 = vld [vmem:[#allocation6 + $0x3a8] sm:$0xff] }
 0x230   : > { %7952 = vmatmul.mubr.f32.gmra.mrb[24].mxu0 %v11158_v57  ;;  %v2502_v57 = vld [vmem:[#allocation6 + $0x398] sm:$0xff] }
 0x231   : > { %7954 = vmatprep.mubr.f32.mxu0 %v13122_v31  ;;  %v2501_v31 = vld [vmem:[#allocation6 + $0x390] sm:$0xff] }
 0x232   : > { %v9151_v2 = vpack.c.bf16 %v2502_v57, %v2501_v31  ;;  %v2508_v31 = vld [vmem:[#allocation6 + $0x3c8] sm:$0xff] }
 0x234   : > { %7955 = vmatmul.mubr.f32.gmra.mrb[26].mxu0 %v11169_v21  ;;  %v10109_v21 = vld [vmem:[%s10647_s16 + $0x30] sm:$0xff] }
 0x235   : > { %7957 = vmatprep.mubr.f32.mxu0 %v13123_v17  ;;  %v2503_v17 = vld [vmem:[#allocation6 + $0x3a0] sm:$0xff] }
 0x236   : > { %v9155_v63 = vpack.c.bf16 %v2504_v33, %v2503_v17  ;;  %v2509_v33 = vld [vmem:[#allocation6 + $0x3d0] sm:$0xff] }
 0x237   : > { %v10116_v17 = vld [vmem:[%s10647_s16 + $0x80] sm:$0xff] }
 0x238   : > { %7958 = vmatmul.mubr.f32.gmra.mrb[28].mxu0 %v11178_v25  ;;  %v10111_v25 = vld [vmem:[%s10647_s16 + $0x48] sm:$0xff] }
 0x239   : > { %7960 = vmatprep.mubr.f32.mxu0 %v11296_v32  ;;  %v2506_v32 = vld [vmem:[#allocation6 + $0x3b8] sm:$0xff] }
 0x23a   : > { %v9159_v57 = vpack.c.bf16 %v2506_v32, %v2505_v47  ;;  %v2512_v47 = vld [vmem:[#allocation6 + $0x3e8] sm:$0xff] }
 0x23c   : > { %7961 = vmatmul.mubr.f32.gmra.mrb[30].mxu0 %v11301_v19  ;;  %v10113_v19 = vld [vmem:[%s10647_s16 + $0x60] sm:$0xff] }
 0x23d   : > { %7995 = vmatprep.mubr.f32.mxu0 %v10109_v21  ;;  %v2507_v21 = vld [vmem:[#allocation6 + $0x3c0] sm:$0xff] }
 0x240   : > { %7996 = vmatmul.mubr.f32.vlgmr.msra.gmra.mrb[0].mxu0 %v10110_v49  ;;  %v10115_v49 = vld [vmem:[%s10647_s16 + $0x78] sm:$0xff] }
 0x241   : > { %9150 = vmatpush3.bf16.msra.mxu0 %v9147_v41  ;;  %7998 = vmatprep.mubr.f32.mxu0 %v10111_v25  ;;  %v10114_v41 = vld [vmem:[%s10647_s16 + $0x68] sm:$0xff]  ;;  %v9163_v25 = vpack.c.bf16 %v2508_v31, %v2507_v21  ;;  %v2513_v21 = vld [vmem:[#allocation6 + $0x3f0] sm:$0xff] }
 0x242   : > { %9152 = vmatprep.subr.bf16.mxu0 %v9151_v2  ;;  %v2514_v31 = vld [vmem:[#allocation6 + $0x3f8] sm:$0xff] }
 0x244   : > { %7999 = vmatmul.mubr.f32.gmra.mrb[2].mxu0 %v10112_v48  ;;  %v2510_v48 = vld [vmem:[#allocation6 + $0x3d8] sm:$0xff] }
 0x245   : > { %8001 = vmatprep.mubr.f32.mxu0 %v10113_v19  ;;  %9154 = vmatpush3.bf16.msra.mxu0 %v9151_v2  ;;  %v10117_v19 = vld [vmem:[%s10647_s16 + $0x90] sm:$0xff]  ;;  %v9167_v32 = vpack.c.bf16 %v2510_v48, %v2509_v33  ;;  %v9175_v33 = vpack.c.bf16 %v2514_v31, %v2513_v21  ;;  %v10127_v21 = vld [vmem:[%s10647_s16 + $0x108] sm:$0xff] }
 0x246   : > { %9156 = vmatprep.subr.bf16.mxu0 %v9155_v63  ;;  %v2511_v2 = vld [vmem:[#allocation6 + $0x3e0] sm:$0xff] }
 0x247   : > { %v2779_v48 = vld [vmem:[#allocation6 + $0x400] sm:$0xff] }
 0x248   : > { %8002 = vmatmul.mubr.f32.gmra.mrb[4].mxu0 %v10114_v41  ;;  %v10118_v41 = vld [vmem:[%s10647_s16 + $0x98] sm:$0xff]  ;;  %v10128_v31 = vld [vmem:[%s10647_s16 + $0x110] sm:$0xff] }
 0x249   : > { %8004 = vmatprep.mubr.f32.mxu0 %v10115_v49  ;;  %9158 = vmatpush3.bf16.msra.mxu0 %v9155_v63  ;;  %v10119_v49 = vld [vmem:[%s10647_s16 + $0xa8] sm:$0xff]  ;;  %v9171_v63 = vpack.c.bf16 %v2512_v47, %v2511_v2  ;;  %v10124_v47 = vld [vmem:[%s10647_s16 + $0xe0] sm:$0xff] }
 0x24a   : > { %9160 = vmatprep.subr.bf16.mxu0 %v9159_v57 }
 0x24c   : > { %8005 = vmatmul.mubr.f32.gmra.mrb[6].mxu0 %v10116_v17  ;;  %v10120_v17 = vld [vmem:[%s10647_s16 + $0xb0] sm:$0xff] }
 0x24d   : > { %8007 = vmatprep.mubr.f32.mxu0 %v10117_v19  ;;  %9162 = vmatpush3.bf16.msra.mxu0 %v9159_v57  ;;  %v10121_v57 = vld [vmem:[%s10647_s16 + $0xc0] sm:$0xff]  ;;  %v2780_v19 = vld [vmem:[#allocation6 + $0x408] sm:$0xff] }
 0x24e   : > { %9164 = vmatprep.subr.bf16.mxu0 %v9163_v25  ;;  %v9179_v2 = vpack.c.bf16 %v2780_v19, %v2779_v48  ;;  %v10133_v48 = vld [vmem:[%s10647_s16 + $0x150] sm:$0xff]  ;;  %v10134_v19 = vld [vmem:[%s10647_s16 + $0x158] sm:$0xff] }
 0x250   : > { %8008 = vmatmul.mubr.f32.gmra.mrb[8].mxu0 %v10118_v41  ;;  %v10122_v41 = vld [vmem:[%s10647_s16 + $0xc8] sm:$0xff] }
 0x251   : > { %8010 = vmatprep.mubr.f32.mxu0 %v10119_v49  ;;  %9166 = vmatpush3.bf16.msra.mxu0 %v9163_v25  ;;  %v10123_v25 = vld [vmem:[%s10647_s16 + $0xd8] sm:$0xff] }
 0x252   : > { %9168 = vmatprep.subr.bf16.mxu0 %v9167_v32  ;;  %v10126_v49 = vld [vmem:[%s10647_s16 + $0xf8] sm:$0xff] }
 0x254   : > { %8011 = vmatmul.mubr.f32.gmra.mrb[10].mxu0 %v10120_v17  ;;  %v10130_v17 = vld [vmem:[%s10647_s16 + $0x128] sm:$0xff] }
 0x255   : > { %8013 = vmatprep.mubr.f32.mxu0 %v10121_v57  ;;  %9170 = vmatpush3.bf16.msra.mxu0 %v9167_v32  ;;  %v10125_v32 = vld [vmem:[%s10647_s16 + $0xf0] sm:$0xff]  ;;  %v10131_v57 = vld [vmem:[%s10647_s16 + $0x138] sm:$0xff] }
 0x256   : > { %9172 = vmatprep.subr.bf16.mxu0 %v9171_v63 }
 0x258   : > { %8014 = vmatmul.mubr.f32.gmra.mrb[12].mxu0 %v10122_v41  ;;  %v10135_v41 = vld [vmem:[%s10647_s16 + $0x168] sm:$0xff] }
 0x259   : > { %8016 = vmatprep.mubr.f32.mxu0 %v10123_v25  ;;  %9174 = vmatpush3.bf16.msra.mxu0 %v9171_v63  ;;  %v10129_v63 = vld [vmem:[%s10647_s16 + $0x120] sm:$0xff]  ;;  %v10136_v25 = vld [vmem:[%s10647_s16 + $0x170] sm:$0xff] }
 0x25a   : > { %9176 = vmatprep.subr.bf16.mxu0 %v9175_v33 }
 0x25c   : > { %8017 = vmatmul.mubr.f32.gmra.mrb[14].mxu0 %v10124_v47  ;;  %v11334_v47 = vld [vmem:[%s10647_s16 + $0x198] sm:$0xff] }
 0x25d   : > { %8019 = vmatprep.mubr.f32.mxu0 %v10125_v32  ;;  %9178 = vmatpush3.bf16.msra.mxu0 %v9175_v33  ;;  %v10132_v33 = vld [vmem:[%s10647_s16 + $0x140] sm:$0xff] }
 0x25e   : > { %9180 = vmatprep.subr.bf16.mxu0 %v9179_v2  ;;  %v11339_v32 = vld [vmem:[%s10647_s16 + $0x1a0] sm:$0xff] }
 0x260   : > { %8020 = vmatmul.mubr.f32.gmra.mrb[16].mxu0 %v10126_v49  ;;  %v2781_v49 = vld [vmem:[#allocation6 + $0x410] sm:$0xff] }
 0x261   : > { %8022 = vmatprep.mubr.f32.mxu0 %v10127_v21  ;;  %v2782_v21 = vld [vmem:[#allocation6 + $0x418] sm:$0xff] }
 0x264   : > { %8023 = vmatmul.mubr.f32.gmra.mrb[18].mxu0 %v10128_v31  ;;  %v9183_v31 = vpack.c.bf16 %v2782_v21, %v2781_v49  ;;  %v3618_v49 = vld [vmem:[#allocation9 + $0xf0] sm:$0xff] }
 0x265   : > { %8025 = vmatprep.mubr.f32.mxu0 %v10129_v63  ;;  %v2783_v63 = vld [vmem:[#allocation6 + $0x420] sm:$0xff] }
 0x268   : > { %8026 = vmatmul.mubr.f32.gmra.mrb[20].mxu0 %v10130_v17  ;;  %v2784_v17 = vld [vmem:[#allocation6 + $0x428] sm:$0xff] }
 0x269   : > { %8028 = vmatprep.mubr.f32.mxu0 %v10131_v57  ;;  %v2786_v57 = vld [vmem:[#allocation6 + $0x438] sm:$0xff] }
 0x26c   : > { %8029 = vmatmul.mubr.f32.gmra.mrb[22].mxu0 %v10132_v33 }
 0x26d   : > { %8031 = vmatprep.mubr.f32.mxu0 %v10133_v48  ;;  %v2788_v48 = vld [vmem:[#allocation6 + $0x448] sm:$0xff] }
 0x270   : > { %8032 = vmatmul.mubr.f32.gmra.mrb[24].mxu0 %v10134_v19  ;;  %v2792_v19 = vld [vmem:[#allocation6 + $0x468] sm:$0xff] }
 0x271   : > { %8034 = vmatprep.mubr.f32.mxu0 %v10135_v41  ;;  %v2794_v41 = vld [vmem:[#allocation6 + $0x478] sm:$0xff] }
 0x274   : > { %8035 = vmatmul.mubr.f32.gmra.mrb[26].mxu0 %v10136_v25 }
 0x275   : > { %8037 = vmatprep.mubr.f32.mxu0 %v11211_v20  ;;  %v9187_v20 = vpack.c.bf16 %v2784_v17, %v2783_v63  ;;  %v3428_v17 = vld [vmem:[#allocation9] sm:$0xff] }
 0x278   : > { %8038 = vmatmul.mubr.f32.gmra.mrb[28].mxu0 %v11216_v22  ;;  %v2785_v22 = vld [vmem:[#allocation6 + $0x430] sm:$0xff] }
 0x279   : > { %8040 = vmatprep.mubr.f32.mxu0 %v11334_v47  ;;  %v9191_v33 = vpack.c.bf16 %v2786_v57, %v2785_v22  ;;  %v11413_v57 = vld [vmem:[#allocation8] ss:$0 sm:$0xff] }
 0x27c   : > { %8041 = vmatmul.mubr.f32.gmra.mrb[30].mxu0 %v11339_v32 }
 0x27d   : > { %8075 = vmatprep.mubr.f32.mxu0 %v13086_v16  ;;  %v2787_v16 = vld [vmem:[#allocation6 + $0x440] sm:$0xff] }
 0x280   : > { %8076 = vmatmul.mubr.f32.vlgmr.msra.gmra.mrb[0].mxu0 %v13087_v46  ;;  %v9195_v46 = vpack.c.bf16 %v2788_v48, %v2787_v16 }
 0x281   : > { %9182 = vmatpush3.bf16.msra.mxu0 %v9179_v2  ;;  %8078 = vmatprep.mubr.f32.mxu0 %v13088_v58  ;;  %v2789_v58 = vld [vmem:[#allocation6 + $0x450] sm:$0xff]  ;;  %v2790_v2 = vld [vmem:[#allocation6 + $0x458] sm:$0xff] }
 0x282   : > { %9184 = vmatprep.subr.bf16.mxu0 %v9183_v31 }
 0x284   : > { %8079 = vmatmul.mubr.f32.gmra.mrb[2].mxu0 %v13089_v12  ;;  %v9199_v12 = vpack.c.bf16 %v2790_v2, %v2789_v58 }
 0x285   : > { %8081 = vmatprep.mubr.f32.mxu0 %v13090_v24  ;;  %9186 = vmatpush3.bf16.msra.mxu0 %v9183_v31  ;;  %v2791_v24 = vld [vmem:[#allocation6 + $0x460] sm:$0xff] }
 0x286   : > { %9188 = vmatprep.subr.bf16.mxu0 %v9187_v20  ;;  %v3619_v31 = vld [vmem:[#allocation9 + $0xf8] sm:$0xff] }
 0x287   : > { %v9239_v63 = vpack.c.bf16 %v3619_v31, %v3618_v49 }
 0x288   : > { %8082 = vmatmul.mubr.f32.gmra.mrb[4].mxu0 %v13091_v53  ;;  %v9203_v53 = vpack.c.bf16 %v2792_v19, %v2791_v24 }
 0x289   : > { %8084 = vmatprep.mubr.f32.mxu0 %v13092_v18  ;;  %9190 = vmatpush3.bf16.msra.mxu0 %v9187_v20  ;;  %v2793_v18 = vld [vmem:[#allocation6 + $0x470] sm:$0xff] }
 0x28a   : > { %9192 = vmatprep.subr.bf16.mxu0 %v9191_v33  ;;  %v3429_v20 = vld [vmem:[#allocation9 + $0x8] sm:$0xff] }
 0x28b   : > { %v11411_v22 = vpack.c.bf16 %v3429_v20, %v3428_v17 }
 0x28c   : > { %8085 = vmatmul.mubr.f32.gmra.mrb[6].mxu0 %v13093_v44  ;;  %v9207_v44 = vpack.c.bf16 %v2794_v41, %v2793_v18 }
 0x28d   : > { %8087 = vmatprep.mubr.f32.mxu0 %v13094_v14  ;;  %9194 = vmatpush3.bf16.msra.mxu0 %v9191_v33  ;;  %v2492_v14 = vrot.slane %v11334_v47, 1 }
 0x28e   : > { %9196 = vmatprep.subr.bf16.mxu0 %v9195_v46 }
 0x290   : > { %8088 = vmatmul.mubr.f32.gmra.mrb[8].mxu0 %v13095_v39  ;;  %v2493_v39 = vrot.slane %v11339_v32, 1 }
 0x291   : > { %8090 = vmatprep.mubr.f32.mxu0 %v13096_v4  ;;  %9198 = vmatpush3.bf16.msra.mxu0 %v9195_v46  ;;  %v350_v4 = vld [vmem:[%s10647_s16 + $0x1a8] sm:$0x3] }
 0x292   : > { %9200 = vmatprep.subr.bf16.mxu0 %v9199_v12 }
 0x294   : > { %8091 = vmatmul.mubr.f32.gmra.mrb[10].mxu0 %v13097_v51  ;;  %v13126_v51 = vld [vmem:[#allocation44_spill] sm:$0xff] }
 0x295   : > { %8093 = vmatprep.mubr.f32.mxu0 %v13098_v60  ;;  %9202 = vmatpush3.bf16.msra.mxu0 %v9199_v12  ;;  %v13127_v60 = vld [vmem:[#allocation17_spill] sm:$0xff] }
 0x296   : > { %9204 = vmatprep.subr.bf16.mxu0 %v9203_v53 }
 0x298   : > { %8094 = vmatmul.mubr.f32.gmra.mrb[12].mxu0 %v13099_v62  ;;  %v2495_v62 = vrot.slane %v350_v4, 1 }
 0x299   : > { %8096 = vmatprep.mubr.f32.mxu0 %v13100_v7  ;;  %9206 = vmatpush3.bf16.msra.mxu0 %v9203_v53  ;;  %v2494_v7 = vsel %vm415_vm0, %v2492_v14, %v2493_v39 }
 0x29a   : > { %9208 = vmatprep.subr.bf16.mxu0 %v9207_v44 }
 0x29c   : > { %8097 = vmatmul.mubr.f32.gmra.mrb[14].mxu0 %v13101_v6  ;;  %v2496_v6 = vsel %vm415_vm0, %v2493_v39, %v2495_v62 }
 0x29d   : > { %8099 = vmatprep.mubr.f32.mxu0 %v13102_v11  ;;  %9210 = vmatpush3.bf16.msra.mxu0 %v9207_v44  ;;  %v13128_v11 = vld [vmem:[#allocation46_spill] sm:$0xff] }
 0x2a0   : > { %8100 = vmatmul.mubr.f32.gmra.mrb[16].mxu0 %v13103_v34  ;;  %v3605_v34 = vld [vmem:[#allocation9 + $0x88] sm:$0xff] }
 0x2a1   : > { %8102 = vmatprep.mubr.f32.mxu0 %v13104_v36 }
 0x2a4   : > { %8103 = vmatmul.mubr.f32.gmra.mrb[18].mxu0 %v13105_v52  ;;  %v3606_v52 = vld [vmem:[#allocation9 + $0x90] sm:$0xff] }
 0x2a5   : > { %8105 = vmatprep.mubr.f32.mxu0 %v13106_v55  ;;  %v3607_v55 = vld [vmem:[#allocation9 + $0x98] sm:$0xff] }
 0x2a8   : > { %8106 = vmatmul.mubr.f32.gmra.mrb[20].mxu0 %v13107_v8  ;;  %v9215_v8 = vpack.c.bf16 %v3607_v55, %v3606_v52 }
 0x2a9   : > { %8108 = vmatprep.mubr.f32.mxu0 %v13108_v13  ;;  %v3608_v13 = vld [vmem:[#allocation9 + $0xa0] sm:$0xff] }
 0x2ac   : > { %8109 = vmatmul.mubr.f32.gmra.mrb[22].mxu0 %v13109_v35  ;;  %v3609_v35 = vld [vmem:[#allocation9 + $0xa8] sm:$0xff] }
 0x2ad   : > { %8111 = vmatprep.mubr.f32.mxu0 %v13110_v37  ;;  %v9219_v37 = vpack.c.bf16 %v3609_v35, %v3608_v13 }
 0x2b0   : > { %8112 = vmatmul.mubr.f32.gmra.mrb[24].mxu0 %v13111_v54  ;;  %v3610_v54 = vld [vmem:[#allocation9 + $0xb0] sm:$0xff] }
 0x2b1   : > { %8114 = vmatprep.mubr.f32.mxu0 %v13112_v26  ;;  %v3611_v26 = vld [vmem:[#allocation9 + $0xb8] sm:$0xff] }
 0x2b4   : > { %8115 = vmatmul.mubr.f32.gmra.mrb[26].mxu0 %v13126_v51 }
 0x2b5   : > { %8117 = vmatprep.mubr.f32.mxu0 %v13127_v60 }
 0x2b8   : > { %8118 = vmatmul.mubr.f32.gmra.mrb[28].mxu0 %v11260_v3  ;;  %v9223_v3 = vpack.c.bf16 %v3611_v26, %v3610_v54 }
 0x2b9   : > { %8120 = vmatprep.mubr.f32.mxu0 %v2494_v7 }
 0x2bc   : > { %8121 = vmatmul.mubr.f32.gmra.mrb[30].mxu0 %v2496_v6 }
 0x2bd   : > { %8155 = vmatprep.mubr.f32.mxu0 %v13115_v59  ;;  %v3612_v59 = vld [vmem:[#allocation9 + $0xc0] sm:$0xff] }
 0x2c0   : > { %8156 = vmatmul.mubr.f32.vlgmr.msra.gmra.mrb[0].mxu0 %v11037_v30  ;;  %v13129_v30 = vld [vmem:[#allocation51_spill] sm:$0xff] }
 0x2c1   : > { %8158 = vmatprep.mubr.f32.mxu0 %v13128_v11 }
 0x2c4   : > { %8159 = vmatmul.mubr.f32.gmra.mrb[2].mxu0 %v11048_v42  ;;  %v13130_v42 = vld [vmem:[#allocation52_spill] sm:$0xff] }
 0x2c5   : > { %8161 = vmatprep.mubr.f32.mxu0 %v13117_v38  ;;  %v3613_v38 = vld [vmem:[#allocation9 + $0xc8] sm:$0xff] }
 0x2c8   : > { %8162 = vmatmul.mubr.f32.gmra.mrb[4].mxu0 %v11059_v15  ;;  %v13131_v15 = vld [vmem:[#allocation53_spill] sm:$0xff] }
 0x2c9   : > { %8164 = vmatprep.mubr.f32.mxu0 %v13118_v50  ;;  %v9227_v50 = vpack.c.bf16 %v3613_v38, %v3612_v59 }
 0x2cc   : > { %8165 = vmatmul.mubr.f32.gmra.mrb[6].mxu0 %v11070_v10  ;;  %v13132_v10 = vld [vmem:[#allocation54_spill] sm:$0xff] }
 0x2cd   : > { %8167 = vmatprep.mubr.f32.mxu0 %v11074_v43  ;;  %v13133_v43 = vld [vmem:[#allocation55_spill] sm:$0xff] }
 0x2d0   : > { %8168 = vmatmul.mubr.f32.gmra.mrb[8].mxu0 %v11081_v0  ;;  %v13134_v0 = vld [vmem:[#allocation56_spill] sm:$0xff] }
 0x2d1   : > { %8170 = vmatprep.mubr.f32.mxu0 %v11085_v56  ;;  %v2772_v56 = vrot.slane %v11334_v47, 2  ;;  %v3616_v47 = vld [vmem:[#allocation9 + $0xe0] sm:$0xff] }
 0x2d4   : > { %8171 = vmatmul.mubr.f32.gmra.mrb[10].mxu0 %v11092_v9  ;;  %v2773_v9 = vrot.slane %v11339_v32, 2  ;;  %v3617_v32 = vld [vmem:[#allocation9 + $0xe8] sm:$0xff] }
 0x2d5   : > { %8173 = vmatprep.mubr.f32.mxu0 %v11096_v23  ;;  %v13135_v23 = vld [vmem:[#allocation57_spill] sm:$0xff]  ;;  %v9235_v21 = vpack.c.bf16 %v3617_v32, %v3616_v47 }
 0x2d8   : > { %8174 = vmatmul.mubr.f32.gmra.mrb[12].mxu0 %v11103_v61  ;;  %v13136_v61 = vld [vmem:[#allocation18_spill] sm:$0xff] }
 0x2d9   : > { %8176 = vmatprep.mubr.f32.mxu0 %v11107_v5  ;;  %v2775_v5 = vrot.slane %v350_v4, 2 }
 0x2dc   : > { %8177 = vmatmul.mubr.f32.gmra.mrb[14].mxu0 %v11114_v1  ;;  %v2774_v1 = vsel %vm994_vm1, %v2772_v56, %v2773_v9 }
 0x2dd   : > { %8179 = vmatprep.mubr.f32.mxu0 %v11118_v28  ;;  %v13137_v28 = vld [vmem:[#allocation19_spill] sm:$0xff] }
 0x2e0   : > { %8180 = vmatmul.mubr.f32.gmra.mrb[16].mxu0 %v11125_v29  ;;  %v2776_v29 = vsel %vm994_vm1, %v2773_v9, %v2775_v5 }
 0x2e1   : > { %8182 = vmatprep.mubr.f32.mxu0 %v13119_v45  ;;  %v3614_v45 = vld [vmem:[#allocation9 + $0xd0] sm:$0xff] }
 0x2e4   : > { %8183 = vmatmul.mubr.f32.gmra.mrb[18].mxu0 %v11136_v27  ;;  %v3604_v27 = vld [vmem:[#allocation9 + $0x80] sm:$0xff] }
 0x2e5   : > { %8185 = vmatprep.mubr.f32.mxu0 %v13120_v40  ;;  %v9211_v36 = vpack.c.bf16 %v3605_v34, %v3604_v27  ;;  %v3615_v40 = vld [vmem:[#allocation9 + $0xd8] sm:$0xff] }
 0x2e6   : > { %v9231_v25 = vpack.c.bf16 %v3615_v40, %v3614_v45 }
 0x2e7   : > { %9212 = vmatprep.subr.bf16.mxu1 %v9211_v36 }
 0x2e8   : > { %8186 = vmatmul.mubr.f32.gmra.mrb[20].mxu0 %v13129_v30  ;;  %9214 = vmatpush3.bf16.msra.mxu1 %v9211_v36 }
 0x2e9   : > { %8188 = vmatprep.mubr.f32.mxu0 %v13130_v42  ;;  %9216 = vmatprep.subr.bf16.mxu1 %v9215_v8 }
 0x2ec   : > { %8189 = vmatmul.mubr.f32.gmra.mrb[22].mxu0 %v13131_v15  ;;  %9218 = vmatpush3.bf16.msra.mxu1 %v9215_v8 }
 0x2ed   : > { %8191 = vmatprep.mubr.f32.mxu0 %v13132_v10  ;;  %9220 = vmatprep.subr.bf16.mxu1 %v9219_v37 }
 0x2f0   : > { %8192 = vmatmul.mubr.f32.gmra.mrb[24].mxu0 %v13133_v43  ;;  %9222 = vmatpush3.bf16.msra.mxu1 %v9219_v37 }
 0x2f1   : > { %8194 = vmatprep.mubr.f32.mxu0 %v13134_v0  ;;  %9224 = vmatprep.subr.bf16.mxu1 %v9223_v3 }
 0x2f4   : > { %8195 = vmatmul.mubr.f32.gmra.mrb[26].mxu0 %v13135_v23  ;;  %9226 = vmatpush3.bf16.msra.mxu1 %v9223_v3 }
 0x2f5   : > { %8197 = vmatprep.mubr.f32.mxu0 %v13136_v61  ;;  %9228 = vmatprep.subr.bf16.mxu1 %v9227_v50 }
 0x2f8   : > { %8198 = vmatmul.mubr.f32.gmra.mrb[28].mxu0 %v13137_v28  ;;  %9230 = vmatpush3.bf16.msra.mxu1 %v9227_v50 }
 0x2f9   : > { %8200 = vmatprep.mubr.f32.mxu0 %v2774_v1  ;;  %9232 = vmatprep.subr.bf16.mxu1 %v9231_v25 }
 0x2fc   : > { %8201 = vmatmul.mubr.f32.gmra.mrb[30].mxu0 %v2776_v29  ;;  %9234 = vmatpush3.bf16.msra.mxu1 %v9231_v25 }
 0x2fd   : > { %9236 = vmatprep.subr.bf16.mxu1 %v9235_v21 }
 0x300   : > { %9238 = vmatpush3.bf16.msra.mxu1 %v9235_v21 }
 0x301   : > { %9240 = vmatprep.subr.bf16.mxu1 %v9239_v63 }
 0x304   : > { %9242 = vmatpush3.bf16.msra.mxu1 %v9239_v63 }
 0x305   : > { %9244 = vmatprep.subr.bf16.mxu1 %v11411_v22 }
 0x393   : > { %v8157_v33 = vpop.f32.mrb[0].mxu0 }
 0x394   : > { %v11417_v16 = vadd.f32 %v8157_v33, %v11413_v57  ;;  %v2861_v48 = vpop.f32.mrb[1].mxu0 }
 0x395   : > { %v11420_v46 = vadd.f32 %v11413_v57, %v2861_v48 }
 0x396   : > { %v3129_v58 = vmul.f32 %v11417_v16, %v11417_v16 }
 0x397   : > { %v3128_v2 = vmul.f32 %v11420_v46, %v11420_v46  ;;  %v8160_v12 = vpop.f32.mrb[2].mxu0  ;;  %v3091_v19 = vadd.f32 %v11417_v16, %v11420_v46 }
 0x398   : > { %v2871_v24 = vpop.f32.mrb[3].mxu0  ;;  %v11429_v53 = vadd.f32 %v8160_v12, %v11413_v57 }
 0x399   : > { %v11432_v18 = vadd.f32 %v11413_v57, %v2871_v24  ;;  %v3160_v41 = vadd.f32 %v3129_v58, %v3128_v2 }
 0x39a   : > { %v3131_v60 = vmul.f32 %v11429_v53, %v11429_v53 }
 0x39b   : > { %v3092_v44 = vadd.f32 %v3091_v19, %v11432_v18  ;;  %v3130_v14 = vmul.f32 %v11432_v18, %v11432_v18  ;;  %v8163_v39 = vpop.f32.mrb[4].mxu0 }
 0x39c   : > { %v11438_v4 = vadd.f32 %v8163_v39, %v11413_v57  ;;  %v2881_v51 = vpop.f32.mrb[5].mxu0 }
 0x39d   : > { %v3161_v62 = vadd.f32 %v3160_v41, %v3130_v14  ;;  %v11443_v7 = vadd.f32 %v11413_v57, %v2881_v51  ;;  %v3093_v6 = vadd.f32 %v3092_v44, %v11429_v53 }
 0x39e   : > { %v3133_v10 = vmul.f32 %v11438_v4, %v11438_v4 }
 0x39f   : > { %v3094_v11 = vadd.f32 %v3093_v6, %v11443_v7  ;;  %v3132_v30 = vmul.f32 %v11443_v7, %v11443_v7  ;;  %v3162_v42 = vadd.f32 %v3161_v62, %v3131_v60  ;;  %v8166_v15 = vpop.f32.mrb[6].mxu0 }
 0x3a0   : > { %v2891_v43 = vpop.f32.mrb[7].mxu0  ;;  %v11452_v56 = vadd.f32 %v8166_v15, %v11413_v57 }
 0x3a1   : > { %v3163_v0 = vadd.f32 %v3162_v42, %v3132_v30  ;;  %v11455_v9 = vadd.f32 %v11413_v57, %v2891_v43  ;;  %v3095_v23 = vadd.f32 %v3094_v11, %v11438_v4 }
 0x3a2   : > { %v3135_v34 = vmul.f32 %v11452_v56, %v11452_v56 }
 0x3a3   : > { %v3096_v61 = vadd.f32 %v3095_v23, %v11455_v9  ;;  %v3134_v5 = vmul.f32 %v11455_v9, %v11455_v9  ;;  %v3164_v1 = vadd.f32 %v3163_v0, %v3133_v10  ;;  %v8169_v28 = vpop.f32.mrb[8].mxu0 }
 0x3a4   : > { %v11462_v29 = vadd.f32 %v8169_v28, %v11413_v57  ;;  %v2901_v27 = vpop.f32.mrb[9].mxu0 }
 0x3a5   : > { %v3165_v36 = vadd.f32 %v3164_v1, %v3134_v5  ;;  %v11467_v52 = vadd.f32 %v11413_v57, %v2901_v27  ;;  %v3097_v55 = vadd.f32 %v3096_v61, %v11452_v56 }
 0x3a6   : > { %v3137_v54 = vmul.f32 %v11462_v29, %v11462_v29 }
 0x3a7   : > { %v3098_v8 = vadd.f32 %v3097_v55, %v11467_v52  ;;  %v3136_v13 = vmul.f32 %v11467_v52, %v11467_v52  ;;  %v3166_v35 = vadd.f32 %v3165_v36, %v3135_v34  ;;  %v8172_v37 = vpop.f32.mrb[10].mxu0 }
 0x3a8   : > { %v2911_v26 = vpop.f32.mrb[11].mxu0  ;;  %v11476_v59 = vadd.f32 %v8172_v37, %v11413_v57 }
 0x3a9   : > { %v3167_v3 = vadd.f32 %v3166_v35, %v3136_v13  ;;  %v11479_v38 = vadd.f32 %v11413_v57, %v2911_v26  ;;  %v3099_v50 = vadd.f32 %v3098_v8, %v11462_v29 }
 0x3aa   : > { %v3139_v21 = vmul.f32 %v11476_v59, %v11476_v59 }
 0x3ab   : > { %v3100_v45 = vadd.f32 %v3099_v50, %v11479_v38  ;;  %v3138_v40 = vmul.f32 %v11479_v38, %v11479_v38  ;;  %v3168_v25 = vadd.f32 %v3167_v3, %v3137_v54  ;;  %v8175_v47 = vpop.f32.mrb[12].mxu0 }
 0x3ac   : > { %v11486_v32 = vadd.f32 %v8175_v47, %v11413_v57  ;;  %v2921_v49 = vpop.f32.mrb[13].mxu0 }
 0x3ad   : > { %v3169_v31 = vadd.f32 %v3168_v25, %v3138_v40  ;;  %v11491_v63 = vadd.f32 %v11413_v57, %v2921_v49  ;;  %v3101_v17 = vadd.f32 %v3100_v45, %v11476_v59 }
 0x3ae   : > { %v3141_v2 = vmul.f32 %v11486_v32, %v11486_v32 }
 0x3af   : > { %v3102_v20 = vadd.f32 %v3101_v17, %v11491_v63  ;;  %v3140_v33 = vmul.f32 %v11491_v63, %v11491_v63  ;;  %v3170_v48 = vadd.f32 %v3169_v31, %v3139_v21  ;;  %v8178_v58 = vpop.f32.mrb[14].mxu0 }
 0x3b0   : > { %v2931_v12 = vpop.f32.mrb[15].mxu0  ;;  %v11500_v19 = vadd.f32 %v8178_v58, %v11413_v57 }
 0x3b1   : > { %v3171_v24 = vadd.f32 %v3170_v48, %v3140_v33  ;;  %v11503_v41 = vadd.f32 %v11413_v57, %v2931_v12  ;;  %v3103_v44 = vadd.f32 %v3102_v20, %v11486_v32 }
 0x3b2   : > { %v3143_v11 = vmul.f32 %v11500_v19, %v11500_v19 }
 0x3b3   : > { %v3104_v14 = vadd.f32 %v3103_v44, %v11503_v41  ;;  %v3142_v39 = vmul.f32 %v11503_v41, %v11503_v41  ;;  %v3172_v51 = vadd.f32 %v3171_v24, %v3141_v2  ;;  %v8181_v60 = vpop.f32.mrb[16].mxu0 }
 0x3b4   : > { %v11510_v62 = vadd.f32 %v8181_v60, %v11413_v57  ;;  %v2941_v6 = vpop.f32.mrb[17].mxu0 }
 0x3b5   : > { %v3173_v30 = vadd.f32 %v3172_v51, %v3142_v39  ;;  %v11515_v42 = vadd.f32 %v11413_v57, %v2941_v6  ;;  %v3105_v15 = vadd.f32 %v3104_v14, %v11500_v19 }
 0x3b6   : > { %v3145_v61 = vmul.f32 %v11510_v62, %v11510_v62 }
 0x3b7   : > { %v3106_v10 = vadd.f32 %v3105_v15, %v11515_v42  ;;  %v3144_v43 = vmul.f32 %v11515_v42, %v11515_v42  ;;  %v3174_v0 = vadd.f32 %v3173_v30, %v3143_v11  ;;  %v8184_v23 = vpop.f32.mrb[18].mxu0 }
 0x3b8   : > { %v2951_v5 = vpop.f32.mrb[19].mxu0  ;;  %v11524_v28 = vadd.f32 %v8184_v23, %v11413_v57 }
 0x3b9   : > { %v3175_v1 = vadd.f32 %v3174_v0, %v3144_v43  ;;  %v11527_v27 = vadd.f32 %v11413_v57, %v2951_v5  ;;  %v3107_v34 = vadd.f32 %v3106_v10, %v11510_v62 }
 0x3ba   : > { %v3147_v54 = vmul.f32 %v11524_v28, %v11524_v28 }
 0x3bb   : > { %v3108_v36 = vadd.f32 %v3107_v34, %v11527_v27  ;;  %v3146_v55 = vmul.f32 %v11527_v27, %v11527_v27  ;;  %v3176_v8 = vadd.f32 %v3175_v1, %v3145_v61  ;;  %v8187_v13 = vpop.f32.mrb[20].mxu0 }
 0x3bc   : > { %v11534_v35 = vadd.f32 %v8187_v13, %v11413_v57  ;;  %v2961_v37 = vpop.f32.mrb[21].mxu0 }
 0x3bd   : > { %v3177_v26 = vadd.f32 %v3176_v8, %v3146_v55  ;;  %v11539_v3 = vadd.f32 %v11413_v57, %v2961_v37  ;;  %v3109_v50 = vadd.f32 %v3108_v36, %v11524_v28 }
 0x3be   : > { %v3149_v49 = vmul.f32 %v11534_v35, %v11534_v35 }
 0x3bf   : > { %v3110_v45 = vadd.f32 %v3109_v50, %v11539_v3  ;;  %v3148_v40 = vmul.f32 %v11539_v3, %v11539_v3  ;;  %v3178_v25 = vadd.f32 %v3177_v26, %v3147_v54  ;;  %v8190_v47 = vpop.f32.mrb[22].mxu0 }
 0x3c0   : > { %v2971_v21 = vpop.f32.mrb[23].mxu0  ;;  %v11548_v17 = vadd.f32 %v8190_v47, %v11413_v57 }
 0x3c1   : > { %v3179_v31 = vadd.f32 %v3178_v25, %v3148_v40  ;;  %v11551_v20 = vadd.f32 %v11413_v57, %v2971_v21  ;;  %v3111_v33 = vadd.f32 %v3110_v45, %v11534_v35 }
 0x3c2   : > { %v3151_v14 = vmul.f32 %v11548_v17, %v11548_v17 }
 0x3c3   : > { %v3112_v48 = vadd.f32 %v3111_v33, %v11551_v20  ;;  %v3150_v58 = vmul.f32 %v11551_v20, %v11551_v20  ;;  %v3180_v2 = vadd.f32 %v3179_v31, %v3149_v49  ;;  %v8193_v12 = vpop.f32.mrb[24].mxu0 }
 0x3c4   : > { %v11558_v24 = vadd.f32 %v8193_v12, %v11413_v57  ;;  %v2981_v44 = vpop.f32.mrb[25].mxu0 }
 0x3c5   : > { %v3181_v39 = vadd.f32 %v3180_v2, %v3150_v58  ;;  %v11563_v51 = vadd.f32 %v11413_v57, %v2981_v44  ;;  %v3113_v60 = vadd.f32 %v3112_v48, %v11548_v17 }
 0x3c6   : > { %v3153_v10 = vmul.f32 %v11558_v24, %v11558_v24 }
 0x3c7   : > { %v3114_v6 = vadd.f32 %v3113_v60, %v11563_v51  ;;  %v3152_v11 = vmul.f32 %v11563_v51, %v11563_v51  ;;  %v3182_v30 = vadd.f32 %v3181_v39, %v3151_v14  ;;  %v8196_v15 = vpop.f32.mrb[26].mxu0 }
 0x3c8   : > { %v2991_v43 = vpop.f32.mrb[27].mxu0  ;;  %v11572_v23 = vadd.f32 %v8196_v15, %v11413_v57 }
 0x3c9   : > { %v3183_v0 = vadd.f32 %v3182_v30, %v3152_v11  ;;  %v11575_v61 = vadd.f32 %v11413_v57, %v2991_v43  ;;  %v3115_v5 = vadd.f32 %v3114_v6, %v11558_v24 }
 0x3ca   : > { %v3155_v37 = vmul.f32 %v11572_v23, %v11572_v23 }
 0x3cb   : > { %v3116_v1 = vadd.f32 %v3115_v5, %v11575_v61  ;;  %v3154_v34 = vmul.f32 %v11575_v61, %v11575_v61  ;;  %v3184_v36 = vadd.f32 %v3183_v0, %v3153_v10  ;;  %v8199_v55 = vpop.f32.mrb[28].mxu0 }
 0x3cc   : > { %v11582_v8 = vadd.f32 %v8199_v55, %v11413_v57  ;;  %v3001_v13 = vpop.f32.mrb[29].mxu0 }
 0x3cd   : > { %v3185_v54 = vadd.f32 %v3184_v36, %v3154_v34  ;;  %v11587_v26 = vadd.f32 %v11413_v57, %v3001_v13  ;;  %v3117_v50 = vadd.f32 %v3116_v1, %v11572_v23 }
 0x3ce   : > { %v3157_v49 = vmul.f32 %v11582_v8, %v11582_v8 }
 0x3cf   : > { %v3118_v45 = vadd.f32 %v3117_v50, %v11587_v26  ;;  %v3156_v40 = vmul.f32 %v11587_v26, %v11587_v26  ;;  %v3186_v25 = vadd.f32 %v3185_v54, %v3155_v37  ;;  %v8202_v47 = vpop.f32.mrb[30].mxu0 }
 0x3d0   : > { %v3011_v21 = vpop.f32.mrb[31].mxu0  ;;  %v11596_v33 = vadd.f32 %v8202_v47, %v11413_v57 }
 0x3d1   : > { %v3187_v31 = vadd.f32 %v3186_v25, %v3156_v40  ;;  %v3089_v48 = vadd.f32 %v11413_v57, %v3011_v21  ;;  %v3119_v58 = vadd.f32 %v3118_v45, %v11582_v8 }
 0x3d2   : > { %v3159_v14 = vmul.f32 %v11596_v33, %v11596_v33 }
 0x3d3   : > { %v3120_v2 = vadd.f32 %v3119_v58, %v3089_v48  ;;  %v3158_v12 = vmul.f32 %v3089_v48, %v3089_v48  ;;  %v3188_v44 = vadd.f32 %v3187_v31, %v3157_v49 }
 0x3d5   : > { %v3121_v39 = vadd.f32 %v3120_v2, %v11596_v33  ;;  %v3189_v60 = vadd.f32 %v3188_v44, %v3158_v12 }
 0x3d7   : > { %v3122_v6 = vrot.slane %v3121_v39, 4  ;;  %v3190_v11 = vadd.f32 %v3189_v60, %v3159_v14 }
 0x3d9   : > { %v3123_v30 = vadd.f32 %v3122_v6, %v3121_v39  ;;  %v3191_v15 = vrot.slane %v3190_v11, 4 }
 0x3db   : > { %v3124_v10 = vrot.slane %v3123_v30, 2  ;;  %v3192_v43 = vadd.f32 %v3191_v15, %v3190_v11 }
 0x3dd   : > { %v3125_v0 = vadd.f32 %v3124_v10, %v3123_v30  ;;  %v3193_v5 = vrot.slane %v3192_v43, 2 }
 0x3df   : > { %v3126_v57 = vrot.slane %v3125_v0, 1  ;;  %v3194_v1 = vadd.f32 %v3193_v5, %v3192_v43 }
 0x3e1   : > { %v3127_v34 = vadd.f32 %v3126_v57, %v3125_v0  ;;  %v3195_v36 = vrot.slane %v3194_v1, 1 }
 0x3e3   : > { %v3196_v55 = vadd.f32 %v3195_v36, %v3194_v1  ;;  %v11603_v13 = vmul.f32 0.00390625, %v3127_v34 }
 0x3e5   : > { %v3198_v37 = vmul.f32 0.00390625, %v3196_v55  ;;  %v3199_v54 = vmul.f32 %v11603_v13, %v11603_v13  ;;  %v3232_v50 = vsub.f32 %v3089_v48, %v11603_v13  ;;  %v3212_v40 = vsub.f32 %v11479_v38, %v11603_v13 }
 0x3e6   : > { %v3213_v25 = vsub.f32 %v11476_v59, %v11603_v13  ;;  %v3214_v49 = vsub.f32 %v11491_v63, %v11603_v13  ;;  %v3215_v21 = vsub.f32 %v11486_v32, %v11603_v13  ;;  %v3216_v31 = vsub.f32 %v11503_v41, %v11603_v13 }
 0x3e7   : > { %v3200_v45 = vsub.f32 %v3198_v37, %v3199_v54  ;;  %v3217_v48 = vsub.f32 %v11500_v19, %v11603_v13  ;;  %v3218_v58 = vsub.f32 %v11515_v42, %v11603_v13  ;;  %v3219_v38 = vsub.f32 %v11510_v62, %v11603_v13 }
 0x3e8   : > { %v3220_v59 = vsub.f32 %v11527_v27, %v11603_v13  ;;  %v3221_v63 = vsub.f32 %v11524_v28, %v11603_v13  ;;  %v3222_v32 = vsub.f32 %v11539_v3, %v11603_v13  ;;  %v3223_v41 = vsub.f32 %v11534_v35, %v11603_v13 }
 0x3e9   : > { %v3201_v47 = vmax.f32 %v3200_v45, 0.0  ;;  %v3224_v19 = vsub.f32 %v11551_v20, %v11603_v13  ;;  %v3225_v42 = vsub.f32 %v11548_v17, %v11603_v13  ;;  %v3226_v62 = vsub.f32 %v11563_v51, %v11603_v13 }
 0x3ea   : > { %v3227_v27 = vsub.f32 %v11558_v24, %v11603_v13  ;;  %v3228_v28 = vsub.f32 %v11575_v61, %v11603_v13  ;;  %v3229_v3 = vsub.f32 %v11572_v23, %v11603_v13  ;;  %v3230_v35 = vsub.f32 %v11587_v26, %v11603_v13 }
 0x3eb   : > { %v3234_v2 = vadd.f32 1e-05, %v3201_v47  ;;  %v3231_v20 = vsub.f32 %v11582_v8, %v11603_v13  ;;  %v3233_v17 = vsub.f32 %v11596_v33, %v11603_v13  ;;  %v3202_v51 = vsub.f32 %v11420_v46, %v11603_v13 }
 0x3ec   : > { %v3203_v24 = vsub.f32 %v11417_v16, %v11603_v13  ;;  %v3204_v61 = vsub.f32 %v11432_v18, %v11603_v13  ;;  %v3205_v23 = vsub.f32 %v11429_v53, %v11603_v13  ;;  %v3206_v26 = vsub.f32 %v11443_v7, %v11603_v13 }
 0x3ed   : > { %10105 = vrsqrt.f32 %v3234_v2  ;;  %v3207_v8 = vsub.f32 %v11438_v4, %v11603_v13  ;;  %v3208_v33 = vsub.f32 %v11455_v9, %v11603_v13  ;;  %v3209_v46 = vsub.f32 %v11452_v56, %v11603_v13 }
 0x3ee   : > { %v3210_v16 = vsub.f32 %v11467_v52, %v11603_v13  ;;  %v3211_v18 = vsub.f32 %v11462_v29, %v11603_v13 }
 0x3f7   : > { %v10106_v12 = vpop.eup %10105 }
 0x3f8   : > { %v3266_v53 = vmul.f32 %v10106_v12, %v3232_v50  ;;  %v3236_v44 = vmul.f32 %v10106_v12, %v3202_v51  ;;  %v3237_v14 = vmul.f32 %v10106_v12, %v3203_v24  ;;  %v3238_v7 = vmul.f32 %v10106_v12, %v3204_v61 }
 0x3f9   : > { %v3239_v39 = vmul.f32 %v10106_v12, %v3205_v23  ;;  %v3240_v60 = vmul.f32 %v10106_v12, %v3206_v26  ;;  %v3241_v4 = vmul.f32 %v10106_v12, %v3207_v8  ;;  %v3242_v6 = vmul.f32 %v10106_v12, %v3208_v33 }
 0x3fa   : > { %v3298_v11 = vmax.f32 %v3266_v53, 0.0  ;;  %v11670_v30 = vmul.f32 %v10106_v12, %v3209_v46  ;;  %v11672_v9 = vmul.f32 %v10106_v12, %v3210_v16  ;;  %v11674_v56 = vmul.f32 %v10106_v12, %v3211_v18 }
 0x3fb   : > { %v11676_v15 = vmul.f32 %v10106_v12, %v3212_v40  ;;  %v11678_v52 = vmul.f32 %v10106_v12, %v3213_v25  ;;  %v11680_v29 = vmul.f32 %v10106_v12, %v3214_v49  ;;  %v11682_v10 = vmul.f32 %v10106_v12, %v3215_v21 }
 0x3fc   : > { %3331 = vst [vmem:[#allocation2 + $0x181] sm:$0xff] %v3298_v11  ;;  %3353 = vst [vmem:[#allocation2 + $0x17f] sm:$0x2] %v3298_v11  ;;  %v11684_v43 = vmul.f32 %v10106_v12, %v3216_v31  ;;  %v11686_v0 = vmul.f32 %v10106_v12, %v3217_v48  ;;  %v11688_v5 = vmul.f32 %v10106_v12, %v3218_v58  ;;  %v3268_v21 = vmax.f32 %v3236_v44, 0.0  ;;  %v3430_v44 = vld [vmem:[#allocation9 + $0x10] sm:$0xff]  ;;  %v3431_v11 = vld [vmem:[#allocation9 + $0x18] sm:$0xff] }
 0x3fd   : > { %v11690_v57 = vmul.f32 %v10106_v12, %v3219_v38  ;;  %v11692_v1 = vmul.f32 %v10106_v12, %v3220_v59  ;;  %v11694_v34 = vmul.f32 %v10106_v12, %v3221_v63  ;;  %v11696_v36 = vmul.f32 %v10106_v12, %v3222_v32 }
 0x3fe   : > { %v11698_v55 = vmul.f32 %v10106_v12, %v3223_v41  ;;  %v11700_v13 = vmul.f32 %v10106_v12, %v3224_v19  ;;  %v11702_v37 = vmul.f32 %v10106_v12, %v3225_v42  ;;  %v11704_v54 = vmul.f32 %v10106_v12, %v3226_v62  ;;  %3301 = vst [vmem:[#allocation2 + $0x19] sm:$0xff] %v3268_v21 }
 0x3ff   : > { %v11706_v50 = vmul.f32 %v10106_v12, %v3227_v27  ;;  %v11708_v45 = vmul.f32 %v10106_v12, %v3228_v28  ;;  %v11710_v40 = vmul.f32 %v10106_v12, %v3229_v3  ;;  %v11712_v25 = vmul.f32 %v10106_v12, %v3230_v35  ;;  %3338 = vst [vmem:[#allocation2 + $0x17] sm:$0x2] %v3268_v21 }
 0x400   : > { %v11714_v47 = vmul.f32 %v10106_v12, %v3231_v20  ;;  %v11716_v49 = vmul.f32 %v10106_v12, %v3233_v17  ;;  %v3269_v31 = vmax.f32 %v3237_v14, 0.0  ;;  %v3270_v48 = vmax.f32 %v3238_v7, 0.0 }
 0x401   : > { %v3271_v58 = vmax.f32 %v3239_v39, 0.0  ;;  %v3272_v38 = vmax.f32 %v3240_v60, 0.0  ;;  %v3273_v59 = vmax.f32 %v3241_v4, 0.0  ;;  %v3274_v2 = vmax.f32 %v3242_v6, 0.0 }
 0x402   : > { %v3275_v63 = vmax.f32 %v11670_v30, 0.0  ;;  %v3276_v32 = vmax.f32 %v11672_v9, 0.0  ;;  %v3277_v41 = vmax.f32 %v11674_v56, 0.0  ;;  %v3278_v19 = vmax.f32 %v11676_v15, 0.0  ;;  %3302 = vst [vmem:[#allocation2 + $0x21] sm:$0xff] %v3269_v31  ;;  %3303 = vst [vmem:[#allocation2 + $0x31] sm:$0xff] %v3270_v48 }
 0x403   : > { %3333 = vst [vmem:[#allocation2 + $0x1] sm:$0xff] %v3270_v48  ;;  %3339 = vst [vmem:[#allocation2 + $0x2f] sm:$0x2] %v3270_v48  ;;  %v3279_v42 = vmax.f32 %v11678_v52, 0.0  ;;  %v3280_v62 = vmax.f32 %v11680_v29, 0.0  ;;  %v3281_v27 = vmax.f32 %v11682_v10, 0.0 }
 0x404   : > { %3354 = vst [vmem:[#allocation2 + $0x23] sm:$0x40] %v3269_v31  ;;  %3370 = vst [vmem:[#allocation2 - $0x1] sm:$0x2] %v3270_v48  ;;  %v3282_v28 = vmax.f32 %v11684_v43, 0.0  ;;  %v3283_v3 = vmax.f32 %v11686_v0, 0.0 }
 0x405   : > { %3304 = vst [vmem:[#allocation2 + $0x39] sm:$0xff] %v3271_v58  ;;  %3305 = vst [vmem:[#allocation2 + $0x49] sm:$0xff] %v3272_v38  ;;  %v3284_v35 = vmax.f32 %v11688_v5, 0.0  ;;  %v3285_v20 = vmax.f32 %v11690_v57, 0.0  ;;  %v3286_v17 = vmax.f32 %v11692_v1, 0.0  ;;  %v3287_v51 = vmax.f32 %v11694_v34, 0.0 }
 0x406   : > { %3306 = vst [vmem:[#allocation2 + $0x51] sm:$0xff] %v3273_v59  ;;  %3307 = vst [vmem:[#allocation2 + $0x61] sm:$0xff] %v3274_v2  ;;  %v3288_v24 = vmax.f32 %v11696_v36, 0.0  ;;  %v3289_v61 = vmax.f32 %v11698_v55, 0.0  ;;  %v3290_v23 = vmax.f32 %v11700_v13, 0.0  ;;  %v3291_v26 = vmax.f32 %v11702_v37, 0.0 }
 0x407   : > { %3334 = vst [vmem:[#allocation2 + $0x9] sm:$0xff] %v3271_v58  ;;  %3340 = vst [vmem:[#allocation2 + $0x47] sm:$0x2] %v3272_v38  ;;  %v3292_v8 = vmax.f32 %v11704_v54, 0.0  ;;  %v3293_v12 = vmax.f32 %v11706_v50, 0.0  ;;  %v3294_v33 = vmax.f32 %v11708_v45, 0.0  ;;  %v9247_v5 = vpack.c.bf16 %v3431_v11, %v3430_v44 }
 0x408   : > { %3341 = vst [vmem:[#allocation2 + $0x5f] sm:$0x2] %v3274_v2  ;;  %3355 = vst [vmem:[#allocation2 + $0x3b] sm:$0x40] %v3271_v58  ;;  %v3295_v46 = vmax.f32 %v11710_v40, 0.0  ;;  %v3296_v16 = vmax.f32 %v11712_v25, 0.0 }
 0x409   : > { %3356 = vst [vmem:[#allocation2 + $0x53] sm:$0x40] %v3273_v59  ;;  %3371 = vst [vmem:[#allocation2 + $0xb] sm:$0x40] %v3271_v58  ;;  %v3297_v18 = vmax.f32 %v11714_v47, 0.0  ;;  %v3299_v53 = vmax.f32 %v11716_v49, 0.0 }
 0x40a   : > { %3308 = vst [vmem:[#allocation2 + $0x69] sm:$0xff] %v3275_v63  ;;  %3309 = vst [vmem:[#allocation2 + $0x79] sm:$0xff] %v3276_v32  ;;  %v11744_v7 = vld [vmem:[#allocation2 + $0x18] sm:$0xff]  ;;  %v11746_v39 = vld [vmem:[#allocation2 + $0x20] sm:$0xff] }
 0x40b   : > { %3310 = vst [vmem:[#allocation2 + $0x81] sm:$0xff] %v3277_v41  ;;  %3311 = vst [vmem:[#allocation2 + $0x91] sm:$0xff] %v3278_v19  ;;  %v11742_v14 = vld [vmem:[#allocation2] sm:$0xff]  ;;  %v3497_v56 = vrot.slane %v11744_v7, 1  ;;  %v3498_v15 = vrot.slane %v11746_v39, 1  ;;  %v11759_v29 = vld [vmem:[#allocation2 + $0x30] sm:$0xff] }
 0x40c   : > { %3342 = vst [vmem:[#allocation2 + $0x77] sm:$0x2] %v3276_v32  ;;  %3343 = vst [vmem:[#allocation2 + $0x8f] sm:$0x2] %v3278_v19  ;;  %v3492_v4 = vrot.slane %v11742_v14, 1  ;;  %v11761_v10 = vld [vmem:[#allocation2 + $0x38] sm:$0xff] }
 0x40d   : > { %3357 = vst [vmem:[#allocation2 + $0x6b] sm:$0x40] %v3275_v63  ;;  %3358 = vst [vmem:[#allocation2 + $0x83] sm:$0x40] %v3277_v41  ;;  %v11757_v52 = vld [vmem:[#allocation2 + $0x28] sm:$0x3]  ;;  %v11767_v36 = vsel %vm415_vm0, %v3497_v56, %v3498_v15 }
 0x40e   : > { %3312 = vst [vmem:[#allocation2 + $0x99] sm:$0xff] %v3279_v42  ;;  %3313 = vst [vmem:[#allocation2 + $0xa9] sm:$0xff] %v3280_v62  ;;  %v11748_v60 = vld [vmem:[#allocation2 + $0x8] sm:$0xff]  ;;  %v3500_v57 = vrot.slane %v11757_v52, 1  ;;  %v3432_v1 = vld [vmem:[#allocation9 + $0x20] sm:$0xff]  ;;  %v3502_v55 = vrot.slane %v11759_v29, 1 }
 0x40f   : > { %3314 = vst [vmem:[#allocation2 + $0xb1] sm:$0xff] %v3281_v27  ;;  %3315 = vst [vmem:[#allocation2 + $0xc1] sm:$0xff] %v3282_v28  ;;  %v3493_v30 = vrot.slane %v11748_v60, 1  ;;  %v3433_v34 = vld [vmem:[#allocation9 + $0x28] sm:$0xff]  ;;  %v3503_v13 = vrot.slane %v11761_v10, 1  ;;  %v11775_v54 = vld [vmem:[#allocation2 + $0x48] sm:$0xff] }
 0x410   : > { %3344 = vst [vmem:[#allocation2 + $0xa7] sm:$0x2] %v3280_v62  ;;  %3345 = vst [vmem:[#allocation2 + $0xbf] sm:$0x2] %v3282_v28  ;;  %v11751_v6 = vld [vmem:[#allocation2 + $0x10] sm:$0x3]  ;;  %v9251_v45 = vpack.c.bf16 %v3433_v34, %v3432_v1  ;;  %v11780_v40 = vsel %vm415_vm0, %v3498_v15, %v3500_v57 }
 0x411   : > { %3359 = vst [vmem:[#allocation2 + $0x9b] sm:$0x40] %v3279_v42  ;;  %3360 = vst [vmem:[#allocation2 + $0xb3] sm:$0x40] %v3281_v27  ;;  %v3495_v9 = vrot.slane %v11751_v6, 1  ;;  %v3494_v43 = vsel %vm415_vm0, %v3492_v4, %v3493_v30  ;;  %v11777_v50 = vld [vmem:[#allocation2 + $0x50] sm:$0xff]  ;;  %v11785_v21 = vsel %vm415_vm0, %v3502_v55, %v3503_v13 }
 0x412   : > { %3316 = vst [vmem:[#allocation2 + $0xc9] sm:$0xff] %v3283_v3  ;;  %3317 = vst [vmem:[#allocation2 + $0xd9] sm:$0xff] %v3284_v35  ;;  %8235 = vmatprep.mubr.f32.mxu1 %v3494_v43  ;;  %v11771_v37 = vld [vmem:[#allocation2 + $0x40] sm:$0x3]  ;;  %v3434_v47 = vld [vmem:[#allocation9 + $0x30] sm:$0xff]  ;;  %v3508_v31 = vrot.slane %v11777_v50, 1 }
 0x413   : > { %3318 = vst [vmem:[#allocation2 + $0xe1] sm:$0xff] %v3285_v20  ;;  %3319 = vst [vmem:[#allocation2 + $0xf1] sm:$0xff] %v3286_v17  ;;  %v3496_v0 = vsel %vm415_vm0, %v3493_v30, %v3495_v9  ;;  %v3505_v25 = vrot.slane %v11771_v37, 1  ;;  %v3435_v49 = vld [vmem:[#allocation9 + $0x38] sm:$0xff]  ;;  %v11789_v48 = vld [vmem:[#allocation2 + $0x58] sm:$0x3] }
 0x414   : > { %3346 = vst [vmem:[#allocation2 + $0xd7] sm:$0x2] %v3284_v35  ;;  %3347 = vst [vmem:[#allocation2 + $0xef] sm:$0x2] %v3286_v17  ;;  %8236 = vmatmul.mubr.f32.vlgmr.msra.gmra.mrb[0].mxu1 %v3496_v0  ;;  %v11792_v58 = vld [vmem:[#allocation2 + $0x60] sm:$0xff]  ;;  %v11794_v38 = vld [vmem:[#allocation2 + $0x68] sm:$0xff]  ;;  %v9255_v59 = vpack.c.bf16 %v3435_v49, %v3434_v47 }
 0x415   : > { %3361 = vst [vmem:[#allocation2 + $0xcb] sm:$0x40] %v3283_v3  ;;  %3362 = vst [vmem:[#allocation2 + $0xe3] sm:$0x40] %v3285_v20  ;;  %8238 = vmatprep.mubr.f32.mxu1 %v11767_v36  ;;  %9246 = vmatpush3.bf16.msra.mxu1 %v11411_v22  ;;  %v3507_v22 = vrot.slane %v11775_v54, 1  ;;  %v11797_v2 = vsel %vm415_vm0, %v3503_v13, %v3505_v25  ;;  %v3510_v63 = vrot.slane %v11789_v48, 1 }
 0x416   : > { %3320 = vst [vmem:[#allocation2 + $0xf9] sm:$0xff] %v3287_v51  ;;  %3321 = vst [vmem:[#allocation2 + $0x109] sm:$0xff] %v3288_v24  ;;  %9248 = vmatprep.subr.bf16.mxu1 %v9247_v5  ;;  %v3436_v32 = vld [vmem:[#allocation9 + $0x40] sm:$0xff]  ;;  %v3437_v41 = vld [vmem:[#allocation9 + $0x48] sm:$0xff]  ;;  %v3512_v42 = vrot.slane %v11792_v58, 1  ;;  %v3513_v62 = vrot.slane %v11794_v38, 1 }
 0x417   : > { %3322 = vst [vmem:[#allocation2 + $0x111] sm:$0xff] %v3289_v61  ;;  %3323 = vst [vmem:[#allocation2 + $0x121] sm:$0xff] %v3290_v23  ;;  %v11802_v19 = vsel %vm415_vm0, %v3507_v22, %v3508_v31  ;;  %v11806_v27 = vld [vmem:[#allocation2 + $0x70] sm:$0x3]  ;;  %v11809_v28 = vld [vmem:[#allocation2 + $0x78] sm:$0xff]  ;;  %v9259_v35 = vpack.c.bf16 %v3437_v41, %v3436_v32  ;;  %v11814_v20 = vsel %vm415_vm0, %v3508_v31, %v3510_v63 }
 0x418   : > { %3348 = vst [vmem:[#allocation2 + $0x107] sm:$0x2] %v3288_v24  ;;  %3349 = vst [vmem:[#allocation2 + $0x11f] sm:$0x2] %v3290_v23  ;;  %8239 = vmatmul.mubr.f32.gmra.mrb[2].mxu1 %v11780_v40  ;;  %v11811_v3 = vld [vmem:[#allocation2 + $0x80] sm:$0xff]  ;;  %v3515_v17 = vrot.slane %v11806_v27, 1 }
 0x419   : > { %3363 = vst [vmem:[#allocation2 + $0xfb] sm:$0x40] %v3287_v51  ;;  %3364 = vst [vmem:[#allocation2 + $0x113] sm:$0x40] %v3289_v61  ;;  %8241 = vmatprep.mubr.f32.mxu1 %v11785_v21  ;;  %9250 = vmatpush3.bf16.msra.mxu1 %v9247_v5  ;;  %v3438_v51 = vld [vmem:[#allocation9 + $0x50] sm:$0xff]  ;;  %v3439_v24 = vld [vmem:[#allocation9 + $0x58] sm:$0xff]  ;;  %v11819_v61 = vsel %vm415_vm0, %v3512_v42, %v3513_v62 }
 0x41a   : > { %3324 = vst [vmem:[#allocation2 + $0x129] sm:$0xff] %v3291_v26  ;;  %3325 = vst [vmem:[#allocation2 + $0x139] sm:$0xff] %v3292_v8  ;;  %9252 = vmatprep.subr.bf16.mxu1 %v9251_v45  ;;  %v3517_v23 = vrot.slane %v11809_v28, 1  ;;  %v3441_v44 = vld [vmem:[#allocation9 + $0x68] sm:$0xff]  ;;  %v11843_v56 = vld [vmem:[#allocation2 + $0xa8] sm:$0xff] }
 0x41b   : > { %3326 = vst [vmem:[#allocation2 + $0x141] sm:$0xff] %v3293_v12  ;;  %3327 = vst [vmem:[#allocation2 + $0x151] sm:$0xff] %v3294_v33  ;;  %v11840_v9 = vld [vmem:[#allocation2 + $0xa0] sm:$0x3]  ;;  %v11845_v15 = vld [vmem:[#allocation2 + $0xb0] sm:$0xff]  ;;  %v3527_v55 = vrot.slane %v11843_v56, 1 }
 0x41c   : > { %3350 = vst [vmem:[#allocation2 + $0x137] sm:$0x2] %v3292_v8  ;;  %3351 = vst [vmem:[#allocation2 + $0x14f] sm:$0x2] %v3294_v33  ;;  %8242 = vmatmul.mubr.f32.gmra.mrb[4].mxu1 %v11797_v2  ;;  %v11823_v8 = vld [vmem:[#allocation2 + $0x88] sm:$0x3] }
 0x41d   : > { %3365 = vst [vmem:[#allocation2 + $0x12b] sm:$0x40] %v3291_v26  ;;  %3366 = vst [vmem:[#allocation2 + $0x143] sm:$0x40] %v3293_v12  ;;  %8244 = vmatprep.mubr.f32.mxu1 %v11802_v19  ;;  %9254 = vmatpush3.bf16.msra.mxu1 %v9251_v45  ;;  %v3518_v26 = vrot.slane %v11811_v3, 1  ;;  %v11826_v12 = vld [vmem:[#allocation2 + $0x90] sm:$0xff] }
 0x41e   : > { %3328 = vst [vmem:[#allocation2 + $0x159] sm:$0xff] %v3295_v46  ;;  %3329 = vst [vmem:[#allocation2 + $0x169] sm:$0xff] %v3296_v16  ;;  %9256 = vmatprep.subr.bf16.mxu1 %v9255_v59  ;;  %v11828_v33 = vld [vmem:[#allocation2 + $0x98] sm:$0xff]  ;;  %v3522_v11 = vrot.slane %v11826_v12, 1  ;;  %v3525_v5 = vrot.slane %v11840_v9, 1  ;;  %v3442_v57 = vld [vmem:[#allocation9 + $0x70] sm:$0xff] }
 0x41f   : > { %3330 = vst [vmem:[#allocation2 + $0x171] sm:$0xff] %v3297_v18  ;;  %3332 = vst [vmem:[#allocation2 + $0x189] sm:$0xff] %v3299_v53  ;;  %v11836_v4 = vsel %vm415_vm0, %v3517_v23, %v3518_v26  ;;  %v3523_v30 = vrot.slane %v11828_v33, 1  ;;  %v3443_v1 = vld [vmem:[#allocation9 + $0x78] sm:$0xff]  ;;  %v3528_v13 = vrot.slane %v11845_v15, 1  ;;  %v11860_v25 = vld [vmem:[#allocation2 + $0xc0] sm:$0xff] }
 0x420   : > { %3336 = vst [vmem:[#allocation2 + $0x199] sm:$0xff] %v3296_v16  ;;  %3337 = vst [vmem:[#allocation2 + $0x1a1] sm:$0xff] %v3297_v18  ;;  %8245 = vmatmul.mubr.f32.gmra.mrb[6].mxu1 %v11814_v20  ;;  %v11857_v45 = vld [vmem:[#allocation2 + $0xb8] sm:$0x3]  ;;  %v11862_v47 = vld [vmem:[#allocation2 + $0xc8] sm:$0xff]  ;;  %v9271_v49 = vpack.c.bf16 %v3443_v1, %v3442_v57  ;;  %v3532_v41 = vrot.slane %v11860_v25, 1 }
 0x421   : > { %3352 = vst [vmem:[#allocation2 + $0x167] sm:$0x2] %v3296_v16  ;;  %3367 = vst [vmem:[#allocation2 + $0x15b] sm:$0x40] %v3295_v46  ;;  %8247 = vmatprep.mubr.f32.mxu1 %v11819_v61  ;;  %9258 = vmatpush3.bf16.msra.mxu1 %v9255_v59  ;;  %v9263_v46 = vpack.c.bf16 %v3439_v24, %v3438_v51  ;;  %v11853_v34 = vsel %vm415_vm0, %v3522_v11, %v3523_v30  ;;  %v3530_v31 = vrot.slane %v11857_v45, 1  ;;  %v4182_v59 = vld [vmem:[#allocation9 + $0x100] sm:$0xff] }
 0x422   : > { %3368 = vst [vmem:[#allocation2 + $0x173] sm:$0x40] %v3297_v18  ;;  %3369 = vst [vmem:[#allocation2 + $0x18b] sm:$0x40] %v3299_v53  ;;  %9260 = vmatprep.subr.bf16.mxu1 %v9259_v35  ;;  %v3440_v53 = vld [vmem:[#allocation9 + $0x60] sm:$0xff]  ;;  %v11865_v22 = vsel %vm415_vm0, %v3523_v30, %v3525_v5  ;;  %v4183_v63 = vld [vmem:[#allocation9 + $0x108] sm:$0xff]  ;;  %v11870_v32 = vsel %vm415_vm0, %v3527_v55, %v3528_v13 }
 0x423   : > { %3372 = vst [vmem:[#allocation2 + $0x197] sm:$0x2] %v3296_v16  ;;  %3373 = vst [vmem:[#allocation2 + $0x1a3] sm:$0x40] %v3297_v18  ;;  %v11831_v16 = vsel %vm415_vm0, %v3513_v62, %v3515_v17  ;;  %v3520_v18 = vrot.slane %v11823_v8, 1  ;;  %v9267_v43 = vpack.c.bf16 %v3441_v44, %v3440_v53  ;;  %v3533_v42 = vrot.slane %v11862_v47, 1 }
 0x424   : > { %13138 = vst [vmem:[#allocation20_spill] sm:$0xff] %v11797_v2  ;;  %13139 = vst [vmem:[#allocation21_spill] sm:$0xff] %v11802_v19  ;;  %8248 = vmatmul.mubr.f32.gmra.mrb[8].mxu1 %v11831_v16  ;;  %v11874_v62 = vld [vmem:[#allocation2 + $0xd0] sm:$0x3]  ;;  %v11879_v17 = vld [vmem:[#allocation2 + $0xe0] sm:$0xff]  ;;  %v11881_v51 = vpack.c.bf16 %v4183_v63, %v4182_v59  ;;  %v11884_v24 = vsel %vm415_vm0, %v3528_v13, %v3530_v31  ;;  %v4080_v2 = vrot.slane %v11759_v29, 2 }
 0x425   : > { %13140 = vst [vmem:[#allocation22_spill] sm:$0xff] %v11814_v20  ;;  %13141 = vst [vmem:[#allocation23_spill] sm:$0xff] %v11819_v61  ;;  %8250 = vmatprep.mubr.f32.mxu1 %v11836_v4  ;;  %9262 = vmatpush3.bf16.msra.mxu1 %v9259_v35  ;;  %v11848_v0 = vsel %vm415_vm0, %v3518_v26, %v3520_v18  ;;  %v11877_v35 = vld [vmem:[#allocation2 + $0xd8] sm:$0xff]  ;;  %v3535_v23 = vrot.slane %v11874_v62, 1  ;;  %v11889_v26 = vsel %vm415_vm0, %v3532_v41, %v3533_v42  ;;  %v11893_v53 = vld [vmem:[#allocation2 + $0xe8] sm:$0x3] }
 0x426   : > { %13142 = vst [vmem:[#allocation24_spill] sm:$0xff] %v11831_v16  ;;  %13143 = vst [vmem:[#allocation25_spill] sm:$0xff] %v11836_v4  ;;  %9264 = vmatprep.subr.bf16.mxu1 %v9263_v46  ;;  %v3538_v18 = vrot.slane %v11879_v17, 1  ;;  %v11896_v44 = vld [vmem:[#allocation2 + $0xf0] sm:$0xff]  ;;  %v11898_v11 = vld [vmem:[#allocation2 + $0xf8] sm:$0xff] }
 0x427   : > { %13144 = vst [vmem:[#allocation26_spill] sm:$0xff] %v11848_v0  ;;  %13145 = vst [vmem:[#allocation27_spill] sm:$0xff] %v11853_v34  ;;  %v11902_v30 = vsel %vm415_vm0, %v3533_v42, %v3535_v23  ;;  %v3542_v57 = vrot.slane %v11896_v44, 1  ;;  %v3543_v1 = vrot.slane %v11898_v11, 1  ;;  %v11911_v55 = vld [vmem:[#allocation2 + $0x100] sm:$0x3] }
 0x428   : > { %8251 = vmatmul.mubr.f32.gmra.mrb[10].mxu1 %v11848_v0  ;;  %13146 = vst [vmem:[#allocation28_spill] sm:$0xff] %v11865_v22  ;;  %13147 = vst [vmem:[#allocation29_spill] sm:$0xff] %v11870_v32  ;;  %v11914_v13 = vld [vmem:[#allocation2 + $0x108] sm:$0xff]  ;;  %v3545_v59 = vrot.slane %v11911_v55, 1  ;;  %v11928_v23 = vld [vmem:[#allocation2 + $0x118] sm:$0x3] }
 0x429   : > { %8253 = vmatprep.mubr.f32.mxu1 %v11853_v34  ;;  %9266 = vmatpush3.bf16.msra.mxu1 %v9263_v46  ;;  %13148 = vst [vmem:[#allocation30_spill] sm:$0xff] %v11884_v24  ;;  %13149 = vst [vmem:[#allocation31_spill] sm:$0xff] %v11889_v26  ;;  %v3537_v46 = vrot.slane %v11877_v35, 1  ;;  %v11924_v63 = vsel %vm415_vm0, %v3542_v57, %v3543_v1  ;;  %v3547_v41 = vrot.slane %v11914_v13, 1  ;;  %v11967_v34 = vld [vmem:[#allocation2 + $0x158] sm:$0xff]  ;;  %v11984_v16 = vld [vmem:[#allocation2 + $0x170] sm:$0xff] }
 0x42a   : > { %9268 = vmatprep.subr.bf16.mxu1 %v9267_v43  ;;  %13150 = vst [vmem:[#allocation32_spill] sm:$0xff] %v11902_v30  ;;  %13153 = vst [vmem:[#allocation35_spill] sm:$0xff] %v11924_v63  ;;  %v3563_v0 = vrot.slane %v11967_v34, 1  ;;  %v11979_v4 = vld [vmem:[#allocation2 + $0x160] sm:$0x3]  ;;  %v3568_v61 = vrot.slane %v11984_v16, 1 }
 0x42b   : > { %v11907_v5 = vsel %vm415_vm0, %v3537_v46, %v3538_v18  ;;  %v11931_v46 = vld [vmem:[#allocation2 + $0x120] sm:$0xff]  ;;  %v11996_v20 = vld [vmem:[#allocation2 + $0x178] sm:$0x3]  ;;  %v4185_v19 = vld [vmem:[#allocation9 + $0x118] sm:$0xff] }
 0x42c   : > { %8254 = vmatmul.mubr.f32.gmra.mrb[12].mxu1 %v11865_v22  ;;  %13151 = vst [vmem:[#allocation33_spill] sm:$0xff] %v11907_v5  ;;  %v11962_v22 = vld [vmem:[#allocation2 + $0x148] sm:$0x3] }
 0x42d   : > { %8256 = vmatprep.mubr.f32.mxu1 %v11870_v32  ;;  %9270 = vmatpush3.bf16.msra.mxu1 %v9267_v43  ;;  %v3540_v43 = vrot.slane %v11893_v53, 1 }
 0x42e   : > { %9272 = vmatprep.subr.bf16.mxu1 %v9271_v49 }
 0x42f   : > { %v11919_v31 = vsel %vm415_vm0, %v3538_v18, %v3540_v43  ;;  %v11936_v18 = vsel %vm415_vm0, %v3543_v1, %v3545_v59  ;;  %v3550_v43 = vrot.slane %v11928_v23, 1 }
 0x430   : > { %8257 = vmatmul.mubr.f32.gmra.mrb[14].mxu1 %v11884_v24  ;;  %13152 = vst [vmem:[#allocation34_spill] sm:$0xff] %v11919_v31  ;;  %13154 = vst [vmem:[#allocation36_spill] sm:$0xff] %v11936_v18  ;;  %v11950_v24 = vld [vmem:[#allocation2 + $0x140] sm:$0xff] }
 0x431   : > { %8259 = vmatprep.mubr.f32.mxu1 %v11889_v26  ;;  %9274 = vmatpush3.bf16.msra.mxu1 %v9271_v49  ;;  %v11916_v49 = vld [vmem:[#allocation2 + $0x110] sm:$0xff]  ;;  %v3558_v32 = vrot.slane %v11950_v24, 1 }
 0x432   : > { %9276 = vmatprep.subr.bf16.mxu1 %v11881_v51  ;;  %v3548_v42 = vrot.slane %v11916_v49, 1  ;;  %v11945_v26 = vld [vmem:[#allocation2 + $0x130] sm:$0x3] }
 0x433   : > { %v3555_v59 = vrot.slane %v11945_v26, 1 }
 0x434   : > { %8260 = vmatmul.mubr.f32.gmra.mrb[16].mxu1 %v11902_v30  ;;  %v11941_v57 = vsel %vm415_vm0, %v3547_v41, %v3548_v42  ;;  %v11953_v1 = vsel %vm415_vm0, %v3548_v42, %v3550_v43  ;;  %v3560_v43 = vrot.slane %v11962_v22, 1 }
 0x435   : > { %8262 = vmatprep.mubr.f32.mxu1 %v11907_v5  ;;  %v11933_v5 = vld [vmem:[#allocation2 + $0x128] sm:$0xff]  ;;  %13155 = vst [vmem:[#allocation37_spill] sm:$0xff] %v11941_v57  ;;  %13156 = vst [vmem:[#allocation38_spill] sm:$0xff] %v11953_v1 }
 0x436   : > { %v3553_v30 = vrot.slane %v11933_v5, 1 }
 0x438   : > { %8263 = vmatmul.mubr.f32.gmra.mrb[18].mxu1 %v11919_v31  ;;  %v3552_v31 = vrot.slane %v11931_v46, 1  ;;  %v11970_v42 = vsel %vm415_vm0, %v3553_v30, %v3555_v59  ;;  %v3565_v59 = vrot.slane %v11979_v4, 1 }
 0x439   : > { %8265 = vmatprep.mubr.f32.mxu1 %v11924_v63  ;;  %v11948_v63 = vld [vmem:[#allocation2 + $0x138] sm:$0xff]  ;;  %13158 = vst [vmem:[#allocation40_spill] sm:$0xff] %v11970_v42 }
 0x43a   : > { %v11958_v41 = vsel %vm415_vm0, %v3552_v31, %v3553_v30  ;;  %v11987_v30 = vsel %vm415_vm0, %v3558_v32, %v3560_v43 }
 0x43b   : > { %13157 = vst [vmem:[#allocation39_spill] sm:$0xff] %v11958_v41  ;;  %13160 = vst [vmem:[#allocation42_spill] sm:$0xff] %v11987_v30 }
 0x43c   : > { %8266 = vmatmul.mubr.f32.gmra.mrb[20].mxu1 %v11936_v18  ;;  %v3557_v18 = vrot.slane %v11948_v63, 1 }
 0x43d   : > { %8268 = vmatprep.mubr.f32.mxu1 %v11941_v57  ;;  %v11965_v57 = vld [vmem:[#allocation2 + $0x150] sm:$0xff] }
 0x43e   : > { %v11975_v31 = vsel %vm415_vm0, %v3557_v18, %v3558_v32  ;;  %v3570_v32 = vrot.slane %v11996_v20, 1 }
 0x43f   : > { %13159 = vst [vmem:[#allocation41_spill] sm:$0xff] %v11975_v31 }
 0x440   : > { %8269 = vmatmul.mubr.f32.gmra.mrb[22].mxu1 %v11953_v1  ;;  %v3562_v1 = vrot.slane %v11965_v57, 1 }
 0x441   : > { %8271 = vmatprep.mubr.f32.mxu1 %v11958_v41  ;;  %v11982_v41 = vld [vmem:[#allocation2 + $0x168] sm:$0xff] }
 0x442   : > { %v11992_v18 = vsel %vm415_vm0, %v3562_v1, %v3563_v0  ;;  %v12009_v1 = vsel %vm415_vm0, %v3568_v61, %v3570_v32 }
 0x443   : > { %13161 = vst [vmem:[#allocation43_spill] sm:$0xff] %v11992_v18  ;;  %13164 = vst [vmem:[#allocation48_spill] sm:$0xff] %v12009_v1 }
 0x444   : > { %8272 = vmatmul.mubr.f32.gmra.mrb[24].mxu1 %v11970_v42  ;;  %v3567_v42 = vrot.slane %v11982_v41, 1 }
 0x445   : > { %8274 = vmatprep.mubr.f32.mxu1 %v11975_v31  ;;  %v12000_v31 = vsel %vm415_vm0, %v3563_v0, %v3565_v59  ;;  %v4186_v59 = vld [vmem:[#allocation9 + $0x120] sm:$0xff] }
 0x446   : > { %13162 = vst [vmem:[#allocation45_spill] sm:$0xff] %v12000_v31  ;;  %v12005_v43 = vsel %vm415_vm0, %v3567_v42, %v3568_v61  ;;  %v4189_v61 = vld [vmem:[#allocation9 + $0x138] sm:$0xff] }
 0x447   : > { %13163 = vst [vmem:[#allocation47_spill] sm:$0xff] %v12005_v43 }
 0x448   : > { %8275 = vmatmul.mubr.f32.gmra.mrb[26].mxu1 %v11987_v30  ;;  %v4184_v30 = vld [vmem:[#allocation9 + $0x110] sm:$0xff] }
 0x449   : > { %8277 = vmatprep.mubr.f32.mxu1 %v11992_v18  ;;  %v9279_v0 = vpack.c.bf16 %v4185_v19, %v4184_v30  ;;  %v4187_v18 = vld [vmem:[#allocation9 + $0x128] sm:$0xff]  ;;  %v4190_v19 = vld [vmem:[#allocation9 + $0x140] sm:$0xff] }
 0x44a   : > { %v9283_v42 = vpack.c.bf16 %v4187_v18, %v4186_v59  ;;  %v4191_v30 = vld [vmem:[#allocation9 + $0x148] sm:$0xff]  ;;  %v4193_v18 = vld [vmem:[#allocation9 + $0x158] sm:$0xff]  ;;  %v4194_v59 = vld [vmem:[#allocation9 + $0x160] sm:$0xff] }
 0x44c   : > { %8278 = vmatmul.mubr.f32.gmra.mrb[28].mxu1 %v12000_v31  ;;  %v4460_v31 = vld [vmem:[#allocation9 + $0x1a8] sm:$0xff] }
 0x44d   : > { %8280 = vmatprep.mubr.f32.mxu1 %v12005_v43  ;;  %v4188_v43 = vld [vmem:[#allocation9 + $0x130] sm:$0xff] }
 0x44e   : > { %v9287_v32 = vpack.c.bf16 %v4189_v61, %v4188_v43  ;;  %v4195_v43 = vld [vmem:[#allocation9 + $0x168] sm:$0xff]  ;;  %v4196_v61 = vld [vmem:[#allocation9 + $0x170] sm:$0xff] }
 0x450   : > { %8281 = vmatmul.mubr.f32.gmra.mrb[30].mxu1 %v12009_v1  ;;  %v4192_v1 = vld [vmem:[#allocation9 + $0x150] sm:$0xff] }
 0x451   : > { %8315 = vmatprep.mubr.f32.mxu1 %v11742_v14 }
 0x454   : > { %8316 = vmatmul.mubr.f32.vlgmr.msra.gmra.mrb[0].mxu1 %v11748_v60 }
 0x455   : > { %8318 = vmatprep.mubr.f32.mxu1 %v11744_v7  ;;  %9278 = vmatpush3.bf16.msra.mxu1 %v11881_v51  ;;  %v9291_v51 = vpack.c.bf16 %v4191_v30, %v4190_v19  ;;  %v4197_v19 = vld [vmem:[#allocation9 + $0x178] sm:$0xff]  ;;  %v4455_v30 = vld [vmem:[#allocation9 + $0x180] sm:$0xff] }
 0x456   : > { %9280 = vmatprep.subr.bf16.mxu1 %v9279_v0 }
 0x458   : > { %8319 = vmatmul.mubr.f32.gmra.mrb[2].mxu1 %v11746_v39 }
 0x459   : > { %8321 = vmatprep.mubr.f32.mxu1 %v11759_v29  ;;  %9282 = vmatpush3.bf16.msra.mxu1 %v9279_v0  ;;  %v9295_v0 = vpack.c.bf16 %v4193_v18, %v4192_v1  ;;  %v4456_v1 = vld [vmem:[#allocation9 + $0x188] sm:$0xff]  ;;  %v4070_v18 = vrot.slane %v11742_v14, 2 }
 0x45a   : > { %9284 = vmatprep.subr.bf16.mxu1 %v9283_v42 }
 0x45c   : > { %8322 = vmatmul.mubr.f32.gmra.mrb[4].mxu1 %v11761_v10 }
 0x45d   : > { %8324 = vmatprep.mubr.f32.mxu1 %v11775_v54  ;;  %9286 = vmatpush3.bf16.msra.mxu1 %v9283_v42  ;;  %v9299_v42 = vpack.c.bf16 %v4195_v43, %v4194_v59  ;;  %v4073_v59 = vrot.slane %v11751_v6, 2  ;;  %v4457_v43 = vld [vmem:[#allocation9 + $0x190] sm:$0xff] }
 0x45e   : > { %9288 = vmatprep.subr.bf16.mxu1 %v9287_v32 }
 0x460   : > { %8325 = vmatmul.mubr.f32.gmra.mrb[6].mxu1 %v11777_v50 }
 0x461   : > { %8327 = vmatprep.mubr.f32.mxu1 %v11792_v58  ;;  %9290 = vmatpush3.bf16.msra.mxu1 %v9287_v32  ;;  %v9303_v32 = vpack.c.bf16 %v4197_v19, %v4196_v61  ;;  %v4075_v19 = vrot.slane %v11744_v7, 2 }
 0x462   : > { %9292 = vmatprep.subr.bf16.mxu1 %v9291_v51 }
 0x464   : > { %8328 = vmatmul.mubr.f32.gmra.mrb[8].mxu1 %v11794_v38 }
 0x465   : > { %8330 = vmatprep.mubr.f32.mxu1 %v11809_v28  ;;  %9294 = vmatpush3.bf16.msra.mxu1 %v9291_v51  ;;  %v9307_v51 = vpack.c.bf16 %v4456_v1, %v4455_v30  ;;  %v4459_v1 = vld [vmem:[#allocation9 + $0x1a0] sm:$0xff] }
 0x466   : > { %9296 = vmatprep.subr.bf16.mxu1 %v9295_v0 }
 0x468   : > { %8331 = vmatmul.mubr.f32.gmra.mrb[10].mxu1 %v11811_v3 }
 0x469   : > { %8333 = vmatprep.mubr.f32.mxu1 %v11826_v12  ;;  %9298 = vmatpush3.bf16.msra.mxu1 %v9295_v0  ;;  %v4071_v0 = vrot.slane %v11748_v60, 2  ;;  %v4078_v60 = vrot.slane %v11757_v52, 2  ;;  %v4083_v52 = vrot.slane %v11771_v37, 2  ;;  %v4088_v37 = vrot.slane %v11789_v48, 2 }
 0x46a   : > { %9300 = vmatprep.subr.bf16.mxu1 %v9299_v42  ;;  %v4093_v48 = vrot.slane %v11806_v27, 2  ;;  %v4098_v27 = vrot.slane %v11823_v8, 2  ;;  %v4103_v8 = vrot.slane %v11840_v9, 2  ;;  %v4108_v9 = vrot.slane %v11857_v45, 2 }
 0x46b   : > { %v4072_v61 = vsel %vm994_vm1, %v4070_v18, %v4071_v0  ;;  %v4074_v14 = vsel %vm994_vm1, %v4071_v0, %v4073_v59  ;;  %v4081_v18 = vrot.slane %v11761_v10, 2  ;;  %v4461_v0 = vld [vmem:[#allocation9 + $0x1b0] sm:$0xff]  ;;  %v4462_v59 = vld [vmem:[#allocation9 + $0x1b8] sm:$0xff]  ;;  %v4113_v45 = vrot.slane %v11874_v62, 2 }
 0x46c   : > { %8334 = vmatmul.mubr.f32.gmra.mrb[12].mxu1 %v11828_v33 }
 0x46d   : > { %8336 = vmatprep.mubr.f32.mxu1 %v11843_v56  ;;  %9302 = vmatpush3.bf16.msra.mxu1 %v9299_v42  ;;  %v4458_v42 = vld [vmem:[#allocation9 + $0x198] sm:$0xff] }
 0x46e   : > { %9304 = vmatprep.subr.bf16.mxu1 %v9303_v32  ;;  %v9311_v30 = vpack.c.bf16 %v4458_v42, %v4457_v43  ;;  %v12065_v42 = vsel %vm994_vm1, %v4080_v2, %v4081_v18 }
 0x470   : > { %8337 = vmatmul.mubr.f32.gmra.mrb[14].mxu1 %v11845_v15 }
 0x471   : > { %8339 = vmatprep.mubr.f32.mxu1 %v11860_v25  ;;  %9306 = vmatpush3.bf16.msra.mxu1 %v9303_v32  ;;  %v4076_v32 = vrot.slane %v11746_v39, 2 }
 0x472   : > { %9308 = vmatprep.subr.bf16.mxu1 %v9307_v51 }
 0x473   : > { %v12054_v6 = vsel %vm994_vm1, %v4075_v19, %v4076_v32  ;;  %v12060_v43 = vsel %vm994_vm1, %v4076_v32, %v4078_v60  ;;  %v4085_v19 = vrot.slane %v11775_v54, 2  ;;  %v4463_v32 = vld [vmem:[#allocation9 + $0x1c0] sm:$0xff]  ;;  %v4464_v60 = vld [vmem:[#allocation9 + $0x1c8] sm:$0xff] }
 0x474   : > { %8340 = vmatmul.mubr.f32.gmra.mrb[16].mxu1 %v11862_v47  ;;  %13165 = vst [vmem:[#allocation49_spill] sm:$0xff] %v12060_v43 }
 0x475   : > { %8342 = vmatprep.mubr.f32.mxu1 %v11877_v35 }
 0x478   : > { %8343 = vmatmul.mubr.f32.gmra.mrb[18].mxu1 %v11879_v17 }
 0x479   : > { %8345 = vmatprep.mubr.f32.mxu1 %v11896_v44 }
 0x47c   : > { %8346 = vmatmul.mubr.f32.gmra.mrb[20].mxu1 %v11898_v11 }
 0x47d   : > { %8348 = vmatprep.mubr.f32.mxu1 %v11914_v13 }
 0x480   : > { %8349 = vmatmul.mubr.f32.gmra.mrb[22].mxu1 %v11916_v49 }
 0x481   : > { %8351 = vmatprep.mubr.f32.mxu1 %v11931_v46 }
 0x484   : > { %8352 = vmatmul.mubr.f32.gmra.mrb[24].mxu1 %v11933_v5 }
 0x485   : > { %8354 = vmatprep.mubr.f32.mxu1 %v11948_v63 }
 0x488   : > { %8355 = vmatmul.mubr.f32.gmra.mrb[26].mxu1 %v11950_v24 }
 0x489   : > { %8357 = vmatprep.mubr.f32.mxu1 %v11965_v57 }
 0x48c   : > { %8358 = vmatmul.mubr.f32.gmra.mrb[28].mxu1 %v11967_v34 }
 0x48d   : > { %8360 = vmatprep.mubr.f32.mxu1 %v11982_v41 }
 0x490   : > { %8361 = vmatmul.mubr.f32.gmra.mrb[30].mxu1 %v11984_v16 }
 0x491   : > { %8395 = vmatprep.mubr.f32.mxu1 %v4072_v61  ;;  %v9315_v61 = vpack.c.bf16 %v4460_v31, %v4459_v1  ;;  %v9319_v31 = vpack.c.bf16 %v4462_v59, %v4461_v0  ;;  %v4090_v1 = vrot.slane %v11792_v58, 2  ;;  %v4466_v0 = vld [vmem:[#allocation9 + $0x1d8] sm:$0xff] }
 0x494   : > { %8396 = vmatmul.mubr.f32.vlgmr.msra.gmra.mrb[0].mxu1 %v4074_v14  ;;  %v4086_v14 = vrot.slane %v11777_v50, 2 }
 0x495   : > { %8398 = vmatprep.mubr.f32.mxu1 %v12054_v6  ;;  %9310 = vmatpush3.bf16.msra.mxu1 %v9307_v51  ;;  %v12071_v51 = vsel %vm994_vm1, %v4081_v18, %v4083_v52  ;;  %v4465_v52 = vld [vmem:[#allocation9 + $0x1d0] sm:$0xff] }
 0x496   : > { %9312 = vmatprep.subr.bf16.mxu1 %v9311_v30  ;;  %13166 = vst [vmem:[#allocation50_spill] sm:$0xff] %v12071_v51  ;;  %v12076_v2 = vsel %vm994_vm1, %v4085_v19, %v4086_v14  ;;  %v12082_v18 = vsel %vm994_vm1, %v4086_v14, %v4088_v37  ;;  %v4095_v19 = vrot.slane %v11809_v28, 2  ;;  %v4467_v37 = vld [vmem:[#allocation9 + $0x1e0] sm:$0xff] }
 0x497   : > { %13167 = vst [vmem:[#allocation44_spill] sm:$0xff] %v12076_v2  ;;  %13168 = vst [vmem:[#allocation17_spill] sm:$0xff] %v12082_v18 }
 0x498   : > { %8399 = vmatmul.mubr.f32.gmra.mrb[2].mxu1 %v12060_v43  ;;  %v4091_v43 = vrot.slane %v11794_v38, 2 }
 0x499   : > { %8401 = vmatprep.mubr.f32.mxu1 %v12065_v42  ;;  %9314 = vmatpush3.bf16.msra.mxu1 %v9311_v30  ;;  %v9323_v30 = vpack.c.bf16 %v4464_v60, %v4463_v32  ;;  %v4468_v32 = vld [vmem:[#allocation9 + $0x1e8] sm:$0xff] }
 0x49a   : > { %9316 = vmatprep.subr.bf16.mxu1 %v9315_v61  ;;  %v12087_v59 = vsel %vm994_vm1, %v4090_v1, %v4091_v43  ;;  %v12093_v14 = vsel %vm994_vm1, %v4091_v43, %v4093_v48  ;;  %v4100_v1 = vrot.slane %v11826_v12, 2  ;;  %v4469_v48 = vld [vmem:[#allocation9 + $0x1f0] sm:$0xff] }
 0x49b   : > { %13169 = vst [vmem:[#allocation46_spill] sm:$0xff] %v12087_v59  ;;  %13170 = vst [vmem:[#allocation51_spill] sm:$0xff] %v12093_v14 }
 0x49c   : > { %8402 = vmatmul.mubr.f32.gmra.mrb[4].mxu1 %v12071_v51  ;;  %v4096_v51 = vrot.slane %v11811_v3, 2 }
 0x49d   : > { %8404 = vmatprep.mubr.f32.mxu1 %v12076_v2  ;;  %9318 = vmatpush3.bf16.msra.mxu1 %v9315_v61  ;;  %v9327_v61 = vpack.c.bf16 %v4466_v0, %v4465_v52  ;;  %v4470_v52 = vld [vmem:[#allocation9 + $0x1f8] sm:$0xff] }
 0x49e   : > { %9320 = vmatprep.subr.bf16.mxu1 %v9319_v31  ;;  %v12098_v60 = vsel %vm994_vm1, %v4095_v19, %v4096_v51  ;;  %v12104_v43 = vsel %vm994_vm1, %v4096_v51, %v4098_v27  ;;  %v4105_v19 = vrot.slane %v11843_v56, 2  ;;  %v4738_v27 = vld [vmem:[#allocation9 + $0x200] sm:$0xff] }
 0x49f   : > { %13171 = vst [vmem:[#allocation52_spill] sm:$0xff] %v12104_v43 }
 0x4a0   : > { %8405 = vmatmul.mubr.f32.gmra.mrb[6].mxu1 %v12082_v18  ;;  %v4101_v18 = vrot.slane %v11828_v33, 2 }
 0x4a1   : > { %8407 = vmatprep.mubr.f32.mxu1 %v12087_v59  ;;  %9322 = vmatpush3.bf16.msra.mxu1 %v9319_v31  ;;  %v9331_v31 = vpack.c.bf16 %v4468_v32, %v4467_v37  ;;  %v4739_v37 = vld [vmem:[#allocation9 + $0x208] sm:$0xff] }
 0x4a2   : > { %9324 = vmatprep.subr.bf16.mxu1 %v9323_v30  ;;  %v12109_v0 = vsel %vm994_vm1, %v4100_v1, %v4101_v18  ;;  %v12115_v51 = vsel %vm994_vm1, %v4101_v18, %v4103_v8  ;;  %v4110_v1 = vrot.slane %v11860_v25, 2 }
 0x4a4   : > { %8408 = vmatmul.mubr.f32.gmra.mrb[8].mxu1 %v12093_v14  ;;  %v4106_v14 = vrot.slane %v11845_v15, 2 }
 0x4a5   : > { %8410 = vmatprep.mubr.f32.mxu1 %v12098_v60  ;;  %9326 = vmatpush3.bf16.msra.mxu1 %v9323_v30  ;;  %v9335_v30 = vpack.c.bf16 %v4470_v52, %v4469_v48  ;;  %v4115_v48 = vrot.slane %v11877_v35, 2  ;;  %v4116_v52 = vrot.slane %v11879_v17, 2 }
 0x4a6   : > { %9328 = vmatprep.subr.bf16.mxu1 %v9327_v61  ;;  %v12120_v32 = vsel %vm994_vm1, %v4105_v19, %v4106_v14  ;;  %v12128_v18 = vsel %vm994_vm1, %v4106_v14, %v4108_v9  ;;  %v4118_v14 = vrot.slane %v11893_v53, 2  ;;  %v4120_v19 = vrot.slane %v11896_v44, 2 }
 0x4a7   : > { %v12145_v62 = vsel %vm994_vm1, %v4115_v48, %v4116_v52  ;;  %v4121_v9 = vrot.slane %v11898_v11, 2  ;;  %v4130_v48 = vrot.slane %v11931_v46, 2 }
 0x4a8   : > { %8411 = vmatmul.mubr.f32.gmra.mrb[10].mxu1 %v12104_v43  ;;  %v4111_v43 = vrot.slane %v11862_v47, 2 }
 0x4a9   : > { %8413 = vmatprep.mubr.f32.mxu1 %v12109_v0  ;;  %9330 = vmatpush3.bf16.msra.mxu1 %v9327_v61  ;;  %v12125_v61 = vpack.c.bf16 %v4739_v37, %v4738_v27  ;;  %v4123_v27 = vrot.slane %v11911_v55, 2  ;;  %v12156_v53 = vsel %vm994_vm1, %v4120_v19, %v4121_v9  ;;  %v4126_v37 = vrot.slane %v11916_v49, 2 }
 0x4aa   : > { %9332 = vmatprep.subr.bf16.mxu1 %v9331_v31  ;;  %v12133_v8 = vsel %vm994_vm1, %v4110_v1, %v4111_v43  ;;  %v4133_v19 = vrot.slane %v11945_v26, 2 }
 0x4ab   : > { %v12162_v1 = vsel %vm994_vm1, %v4121_v9, %v4123_v27  ;;  %v4135_v9 = vrot.slane %v11948_v63, 2  ;;  %v4136_v27 = vrot.slane %v11950_v24, 2 }
 0x4ac   : > { %8414 = vmatmul.mubr.f32.gmra.mrb[12].mxu1 %v12115_v51 }
 0x4ad   : > { %8416 = vmatprep.mubr.f32.mxu1 %v12120_v32  ;;  %9334 = vmatpush3.bf16.msra.mxu1 %v9331_v31  ;;  %v12140_v31 = vsel %vm994_vm1, %v4111_v43, %v4113_v45  ;;  %v4125_v43 = vrot.slane %v11914_v13, 2  ;;  %v4128_v45 = vrot.slane %v11928_v23, 2  ;;  %v12189_v26 = vsel %vm994_vm1, %v4135_v9, %v4136_v27 }
 0x4ae   : > { %9336 = vmatprep.subr.bf16.mxu1 %v9335_v30  ;;  %13175 = vst [vmem:[#allocation56_spill] sm:$0xff] %v12189_v26 }
 0x4af   : > { %v12167_v55 = vsel %vm994_vm1, %v4125_v43, %v4126_v37 }
 0x4b0   : > { %8417 = vmatmul.mubr.f32.gmra.mrb[14].mxu1 %v12128_v18  ;;  %13172 = vst [vmem:[#allocation53_spill] sm:$0xff] %v12167_v55 }
 0x4b1   : > { %8419 = vmatprep.mubr.f32.mxu1 %v12133_v8  ;;  %9338 = vmatpush3.bf16.msra.mxu1 %v9335_v30  ;;  %v12151_v30 = vsel %vm994_vm1, %v4116_v52, %v4118_v14  ;;  %v4131_v52 = vrot.slane %v11933_v5, 2  ;;  %v12173_v14 = vsel %vm994_vm1, %v4126_v37, %v4128_v45  ;;  %v4140_v37 = vrot.slane %v11965_v57, 2 }
 0x4b2   : > { %9340 = vmatprep.subr.bf16.mxu1 %v12125_v61  ;;  %v4141_v45 = vrot.slane %v11967_v34, 2 }
 0x4b3   : > { %v12178_v23 = vsel %vm994_vm1, %v4130_v48, %v4131_v52  ;;  %v12184_v43 = vsel %vm994_vm1, %v4131_v52, %v4133_v19  ;;  %v4145_v52 = vrot.slane %v11982_v41, 2  ;;  %v4146_v19 = vrot.slane %v11984_v16, 2 }
 0x4b4   : > { %8420 = vmatmul.mubr.f32.gmra.mrb[16].mxu1 %v12140_v31  ;;  %13173 = vst [vmem:[#allocation54_spill] sm:$0xff] %v12178_v23  ;;  %13174 = vst [vmem:[#allocation55_spill] sm:$0xff] %v12184_v43 }
 0x4b5   : > { %8422 = vmatprep.mubr.f32.mxu1 %v12145_v62 }
 0x4b8   : > { %8423 = vmatmul.mubr.f32.gmra.mrb[18].mxu1 %v12151_v30 }
 0x4b9   : > { %8425 = vmatprep.mubr.f32.mxu1 %v12156_v53 }
 0x4bc   : > { %8426 = vmatmul.mubr.f32.gmra.mrb[20].mxu1 %v12162_v1 }
 0x4bd   : > { %8428 = vmatprep.mubr.f32.mxu1 %v12167_v55  ;;  %v4138_v55 = vrot.slane %v11962_v22, 2  ;;  %v12200_v22 = vsel %vm994_vm1, %v4140_v37, %v4141_v45  ;;  %v4741_v37 = vld [vmem:[#allocation9 + $0x218] sm:$0xff] }
 0x4be   : > { %13177 = vst [vmem:[#allocation18_spill] sm:$0xff] %v12200_v22 }
 0x4bf   : > { %v12195_v48 = vsel %vm994_vm1, %v4136_v27, %v4138_v55  ;;  %v4740_v27 = vld [vmem:[#allocation9 + $0x210] sm:$0xff] }
 0x4c0   : > { %8429 = vmatmul.mubr.f32.gmra.mrb[22].mxu1 %v12173_v14  ;;  %13176 = vst [vmem:[#allocation57_spill] sm:$0xff] %v12195_v48 }
 0x4c1   : > { %8431 = vmatprep.mubr.f32.mxu1 %v12178_v23  ;;  %v4143_v23 = vrot.slane %v11979_v4, 2  ;;  %v12211_v4 = vsel %vm994_vm1, %v4145_v52, %v4146_v19  ;;  %v4744_v52 = vld [vmem:[#allocation9 + $0x230] sm:$0xff] }
 0x4c2   : > { %13179 = vst [vmem:[#allocation58_spill] sm:$0xff] %v12211_v4 }
 0x4c3   : > { %v12206_v9 = vsel %vm994_vm1, %v4141_v45, %v4143_v23  ;;  %v9343_v23 = vpack.c.bf16 %v4741_v37, %v4740_v27  ;;  %v4742_v45 = vld [vmem:[#allocation9 + $0x220] sm:$0xff]  ;;  %v4747_v27 = vld [vmem:[#allocation9 + $0x248] sm:$0xff]  ;;  %v4753_v37 = vld [vmem:[#allocation9 + $0x278] sm:$0xff] }
 0x4c4   : > { %8432 = vmatmul.mubr.f32.gmra.mrb[24].mxu1 %v12184_v43  ;;  %13178 = vst [vmem:[#allocation19_spill] sm:$0xff] %v12206_v9 }
 0x4c5   : > { %8434 = vmatprep.mubr.f32.mxu1 %v12189_v26  ;;  %v4148_v26 = vrot.slane %v11996_v20, 2 }
 0x4c7   : > { %v12215_v55 = vsel %vm994_vm1, %v4146_v19, %v4148_v26  ;;  %v4745_v26 = vld [vmem:[#allocation9 + $0x238] sm:$0xff]  ;;  %v4746_v19 = vld [vmem:[#allocation9 + $0x240] sm:$0xff] }
 0x4c8   : > { %8435 = vmatmul.mubr.f32.gmra.mrb[26].mxu1 %v12195_v48  ;;  %13180 = vst [vmem:[#allocation59_spill] sm:$0xff] %v12215_v55 }
 0x4c9   : > { %8437 = vmatprep.mubr.f32.mxu1 %v12200_v22  ;;  %v4743_v22 = vld [vmem:[#allocation9 + $0x228] sm:$0xff] }
 0x4ca   : > { %v9347_v20 = vpack.c.bf16 %v4743_v22, %v4742_v45  ;;  %v4751_v22 = vld [vmem:[#allocation9 + $0x268] sm:$0xff] }
 0x4cc   : > { %8438 = vmatmul.mubr.f32.gmra.mrb[28].mxu1 %v12206_v9 }
 0x4cd   : > { %8440 = vmatprep.mubr.f32.mxu1 %v12211_v4 }
 0x4d0   : > { %8441 = vmatmul.mubr.f32.gmra.mrb[30].mxu1 %v12215_v55 }
 0x4d1   : > { %8475 = vmatprep.mubr.f32.mxu1 %v11744_v7  ;;  %v9351_v7 = vpack.c.bf16 %v4745_v26, %v4744_v52  ;;  %v5031_v52 = vld [vmem:[#allocation9 + $0x2e8] sm:$0xff] }
 0x4d2   : > { %v13187_v26 = vld [vmem:[#allocation26_spill] sm:$0xff] }
 0x4d4   : > { %8476 = vmatmul.mubr.f32.vlgmr.msra.gmra.mrb[0].mxu1 %v11746_v39  ;;  %v9355_v39 = vpack.c.bf16 %v4747_v27, %v4746_v19  ;;  %v5032_v27 = vld [vmem:[#allocation9 + $0x2f0] sm:$0xff] }
 0x4d5   : > { %8478 = vmatprep.mubr.f32.mxu1 %v11759_v29  ;;  %9342 = vmatpush3.bf16.msra.mxu1 %v12125_v61  ;;  %v4748_v29 = vld [vmem:[#allocation9 + $0x250] sm:$0xff]  ;;  %v4749_v61 = vld [vmem:[#allocation9 + $0x258] sm:$0xff] }
 0x4d6   : > { %9344 = vmatprep.subr.bf16.mxu1 %v9343_v23 }
 0x4d8   : > { %8479 = vmatmul.mubr.f32.gmra.mrb[2].mxu1 %v11761_v10  ;;  %v9359_v10 = vpack.c.bf16 %v4749_v61, %v4748_v29  ;;  %v13189_v29 = vld [vmem:[#allocation28_spill] sm:$0xff]  ;;  %v13190_v61 = vld [vmem:[#allocation29_spill] sm:$0xff] }
 0x4d9   : > { %8481 = vmatprep.mubr.f32.mxu1 %v11775_v54  ;;  %9346 = vmatpush3.bf16.msra.mxu1 %v9343_v23  ;;  %v4750_v54 = vld [vmem:[#allocation9 + $0x260] sm:$0xff]  ;;  %v5019_v23 = vld [vmem:[#allocation9 + $0x288] sm:$0xff] }
 0x4da   : > { %9348 = vmatprep.subr.bf16.mxu1 %v9347_v20 }
 0x4dc   : > { %8482 = vmatmul.mubr.f32.gmra.mrb[4].mxu1 %v11777_v50  ;;  %v9363_v50 = vpack.c.bf16 %v4751_v22, %v4750_v54  ;;  %v5291_v54 = vld [vmem:[#allocation9 + $0x300] sm:$0xff]  ;;  %v5292_v22 = vld [vmem:[#allocation9 + $0x308] sm:$0xff] }
 0x4dd   : > { %8484 = vmatprep.mubr.f32.mxu1 %v11792_v58  ;;  %9350 = vmatpush3.bf16.msra.mxu1 %v9347_v20  ;;  %v4752_v58 = vld [vmem:[#allocation9 + $0x270] sm:$0xff]  ;;  %v5030_v20 = vld [vmem:[#allocation9 + $0x2e0] sm:$0xff] }
 0x4de   : > { %9352 = vmatprep.subr.bf16.mxu1 %v9351_v7  ;;  %v9395_v19 = vpack.c.bf16 %v5031_v52, %v5030_v20 }
 0x4e0   : > { %8485 = vmatmul.mubr.f32.gmra.mrb[6].mxu1 %v11794_v38  ;;  %v9367_v38 = vpack.c.bf16 %v4753_v37, %v4752_v58  ;;  %v13192_v58 = vld [vmem:[#allocation31_spill] sm:$0xff]  ;;  %v9403_v37 = vpack.c.bf16 %v5292_v22, %v5291_v54  ;;  %v5296_v54 = vld [vmem:[#allocation9 + $0x328] sm:$0xff] }
 0x4e1   : > { %8487 = vmatprep.mubr.f32.mxu1 %v11809_v28  ;;  %9354 = vmatpush3.bf16.msra.mxu1 %v9351_v7  ;;  %v5018_v28 = vld [vmem:[#allocation9 + $0x280] sm:$0xff]  ;;  %v13188_v7 = vld [vmem:[#allocation27_spill] sm:$0xff] }
 0x4e2   : > { %9356 = vmatprep.subr.bf16.mxu1 %v9355_v39  ;;  %v13209_v22 = vld [vmem:[#allocation49_spill] sm:$0xff] }
 0x4e4   : > { %8488 = vmatmul.mubr.f32.gmra.mrb[8].mxu1 %v11811_v3  ;;  %v9371_v3 = vpack.c.bf16 %v5019_v23, %v5018_v28  ;;  %v13194_v28 = vld [vmem:[#allocation33_spill] sm:$0xff]  ;;  %v13195_v23 = vld [vmem:[#allocation34_spill] sm:$0xff] }
 0x4e5   : > { %8490 = vmatprep.mubr.f32.mxu1 %v11826_v12  ;;  %9358 = vmatpush3.bf16.msra.mxu1 %v9355_v39  ;;  %v12249_v12 = vld [vmem:[#allocation2 + $0x180] sm:$0xff]  ;;  %v5033_v39 = vld [vmem:[#allocation9 + $0x2f8] sm:$0xff] }
 0x4e6   : > { %9360 = vmatprep.subr.bf16.mxu1 %v9359_v10 }
 0x4e8   : > { %8491 = vmatmul.mubr.f32.gmra.mrb[10].mxu1 %v11828_v33  ;;  %v12252_v33 = vld [vmem:[#allocation2 + $0x188] sm:$0xff] }
 0x4e9   : > { %8493 = vmatprep.mubr.f32.mxu1 %v11843_v56  ;;  %9362 = vmatpush3.bf16.msra.mxu1 %v9359_v10  ;;  %v5020_v56 = vld [vmem:[#allocation9 + $0x290] sm:$0xff]  ;;  %v9399_v10 = vpack.c.bf16 %v5033_v39, %v5032_v27  ;;  %v5294_v27 = vld [vmem:[#allocation9 + $0x318] sm:$0xff] }
 0x4ea   : > { %9364 = vmatprep.subr.bf16.mxu1 %v9363_v50 }
 0x4ec   : > { %8494 = vmatmul.mubr.f32.gmra.mrb[12].mxu1 %v11845_v15  ;;  %v5021_v15 = vld [vmem:[#allocation9 + $0x298] sm:$0xff] }
 0x4ed   : > { %8496 = vmatprep.mubr.f32.mxu1 %v11860_v25  ;;  %9366 = vmatpush3.bf16.msra.mxu1 %v9363_v50  ;;  %v9375_v25 = vpack.c.bf16 %v5021_v15, %v5020_v56  ;;  %v13191_v50 = vld [vmem:[#allocation30_spill] sm:$0xff]  ;;  %v13197_v56 = vld [vmem:[#allocation36_spill] sm:$0xff]  ;;  %v13198_v15 = vld [vmem:[#allocation37_spill] sm:$0xff] }
 0x4ee   : > { %9368 = vmatprep.subr.bf16.mxu1 %v9367_v38 }
 0x4f0   : > { %8497 = vmatmul.mubr.f32.gmra.mrb[14].mxu1 %v11862_v47  ;;  %v5022_v47 = vld [vmem:[#allocation9 + $0x2a0] sm:$0xff] }
 0x4f1   : > { %8499 = vmatprep.mubr.f32.mxu1 %v11877_v35  ;;  %9370 = vmatpush3.bf16.msra.mxu1 %v9367_v38  ;;  %v5023_v35 = vld [vmem:[#allocation9 + $0x2a8] sm:$0xff]  ;;  %v13193_v38 = vld [vmem:[#allocation32_spill] sm:$0xff] }
 0x4f2   : > { %9372 = vmatprep.subr.bf16.mxu1 %v9371_v3 }
 0x4f4   : > { %8500 = vmatmul.mubr.f32.gmra.mrb[16].mxu1 %v11879_v17  ;;  %v5025_v17 = vld [vmem:[#allocation9 + $0x2b8] sm:$0xff] }
 0x4f5   : > { %8502 = vmatprep.mubr.f32.mxu1 %v11896_v44  ;;  %v13182_v44 = vld [vmem:[#allocation21_spill] sm:$0xff] }
 0x4f8   : > { %8503 = vmatmul.mubr.f32.gmra.mrb[18].mxu1 %v11898_v11 }
 0x4f9   : > { %8505 = vmatprep.mubr.f32.mxu1 %v11914_v13  ;;  %v13183_v13 = vld [vmem:[#allocation22_spill] sm:$0xff] }
 0x4fc   : > { %8506 = vmatmul.mubr.f32.gmra.mrb[20].mxu1 %v11916_v49  ;;  %v13184_v49 = vld [vmem:[#allocation23_spill] sm:$0xff] }
 0x4fd   : > { %8508 = vmatprep.mubr.f32.mxu1 %v11931_v46  ;;  %v5029_v46 = vld [vmem:[#allocation9 + $0x2d8] sm:$0xff] }
 0x500   : > { %8509 = vmatmul.mubr.f32.gmra.mrb[22].mxu1 %v11933_v5  ;;  %v5027_v5 = vld [vmem:[#allocation9 + $0x2c8] sm:$0xff] }
 0x501   : > { %8511 = vmatprep.mubr.f32.mxu1 %v11948_v63  ;;  %v5028_v63 = vld [vmem:[#allocation9 + $0x2d0] sm:$0xff] }
 0x502   : > { %v9391_v45 = vpack.c.bf16 %v5029_v46, %v5028_v63  ;;  %v13206_v63 = vld [vmem:[#allocation47_spill] sm:$0xff] }
 0x504   : > { %8512 = vmatmul.mubr.f32.gmra.mrb[24].mxu1 %v11950_v24  ;;  %v13181_v24 = vld [vmem:[#allocation20_spill] sm:$0xff] }
 0x505   : > { %8514 = vmatprep.mubr.f32.mxu1 %v11965_v57  ;;  %v13185_v57 = vld [vmem:[#allocation24_spill] sm:$0xff] }
 0x508   : > { %8515 = vmatmul.mubr.f32.gmra.mrb[26].mxu1 %v11967_v34  ;;  %v5024_v34 = vld [vmem:[#allocation9 + $0x2b0] sm:$0xff] }
 0x509   : > { %8517 = vmatprep.mubr.f32.mxu1 %v11982_v41  ;;  %v9383_v11 = vpack.c.bf16 %v5025_v17, %v5024_v34  ;;  %v13186_v41 = vld [vmem:[#allocation25_spill] sm:$0xff]  ;;  %v13203_v34 = vld [vmem:[#allocation42_spill] sm:$0xff]  ;;  %v13204_v17 = vld [vmem:[#allocation43_spill] sm:$0xff] }
 0x50c   : > { %8518 = vmatmul.mubr.f32.gmra.mrb[28].mxu1 %v11984_v16  ;;  %v9379_v16 = vpack.c.bf16 %v5023_v35, %v5022_v47  ;;  %v13200_v47 = vld [vmem:[#allocation39_spill] sm:$0xff]  ;;  %v13201_v35 = vld [vmem:[#allocation40_spill] sm:$0xff] }
 0x50d   : > { %8520 = vmatprep.mubr.f32.mxu1 %v12249_v12 }
 0x510   : > { %8521 = vmatmul.mubr.f32.gmra.mrb[30].mxu1 %v12252_v33 }
 0x511   : > { %8555 = vmatprep.mubr.f32.mxu1 %v11767_v36  ;;  %v5026_v36 = vld [vmem:[#allocation9 + $0x2c0] sm:$0xff] }
 0x514   : > { %8556 = vmatmul.mubr.f32.vlgmr.msra.gmra.mrb[0].mxu1 %v11780_v40  ;;  %v9387_v40 = vpack.c.bf16 %v5027_v5, %v5026_v36  ;;  %v4731_v36 = vrot.slane %v12249_v12, 1  ;;  %v4732_v5 = vrot.slane %v12252_v33, 1 }
 0x515   : > { %8558 = vmatprep.mubr.f32.mxu1 %v11785_v21  ;;  %9374 = vmatpush3.bf16.msra.mxu1 %v9371_v3  ;;  %v13196_v3 = vld [vmem:[#allocation35_spill] sm:$0xff] }
 0x516   : > { %9376 = vmatprep.subr.bf16.mxu1 %v9375_v25  ;;  %v12291_v20 = vsel %vm415_vm0, %v4731_v36, %v4732_v5 }
 0x517   : > { %13208 = vst [vmem:[#allocation20_spill] sm:$0xff] %v12291_v20 }
 0x518   : > { %8559 = vmatmul.mubr.f32.gmra.mrb[2].mxu1 %v13181_v24 }
 0x519   : > { %8561 = vmatprep.mubr.f32.mxu1 %v13182_v44  ;;  %9378 = vmatpush3.bf16.msra.mxu1 %v9375_v25  ;;  %v13199_v25 = vld [vmem:[#allocation38_spill] sm:$0xff] }
 0x51a   : > { %9380 = vmatprep.subr.bf16.mxu1 %v9379_v16 }
 0x51c   : > { %8562 = vmatmul.mubr.f32.gmra.mrb[4].mxu1 %v13183_v13 }
 0x51d   : > { %8564 = vmatprep.mubr.f32.mxu1 %v13184_v49  ;;  %9382 = vmatpush3.bf16.msra.mxu1 %v9379_v16  ;;  %v13202_v16 = vld [vmem:[#allocation41_spill] sm:$0xff] }
 0x51e   : > { %9384 = vmatprep.subr.bf16.mxu1 %v9383_v11 }
 0x520   : > { %8565 = vmatmul.mubr.f32.gmra.mrb[6].mxu1 %v13185_v57 }
 0x521   : > { %8567 = vmatprep.mubr.f32.mxu1 %v13186_v41  ;;  %9386 = vmatpush3.bf16.msra.mxu1 %v9383_v11  ;;  %v13205_v11 = vld [vmem:[#allocation45_spill] sm:$0xff] }
 0x522   : > { %9388 = vmatprep.subr.bf16.mxu1 %v9387_v40 }
 0x524   : > { %8568 = vmatmul.mubr.f32.gmra.mrb[8].mxu1 %v13187_v26 }
 0x525   : > { %8570 = vmatprep.mubr.f32.mxu1 %v13188_v7  ;;  %9390 = vmatpush3.bf16.msra.mxu1 %v9387_v40  ;;  %v12285_v40 = vld [vmem:[#allocation2 + $0x190] sm:$0x3] }
 0x526   : > { %9392 = vmatprep.subr.bf16.mxu1 %v9391_v45  ;;  %v4734_v46 = vrot.slane %v12285_v40, 1 }
 0x528   : > { %8571 = vmatmul.mubr.f32.gmra.mrb[10].mxu1 %v13189_v29  ;;  %v12295_v52 = vsel %vm415_vm0, %v4732_v5, %v4734_v46  ;;  %v13210_v5 = vld [vmem:[#allocation50_spill] sm:$0xff] }
 0x529   : > { %8573 = vmatprep.mubr.f32.mxu1 %v13190_v61  ;;  %9394 = vmatpush3.bf16.msra.mxu1 %v9391_v45  ;;  %v13207_v45 = vld [vmem:[#allocation48_spill] sm:$0xff] }
 0x52a   : > { %9396 = vmatprep.subr.bf16.mxu1 %v9395_v19 }
 0x52c   : > { %8574 = vmatmul.mubr.f32.gmra.mrb[12].mxu1 %v13191_v50 }
 0x52d   : > { %8576 = vmatprep.mubr.f32.mxu1 %v13192_v58  ;;  %9398 = vmatpush3.bf16.msra.mxu1 %v9395_v19  ;;  %v5293_v19 = vld [vmem:[#allocation9 + $0x310] sm:$0xff] }
 0x52e   : > { %9400 = vmatprep.subr.bf16.mxu1 %v9399_v10  ;;  %v9407_v39 = vpack.c.bf16 %v5294_v27, %v5293_v19  ;;  %v5300_v19 = vld [vmem:[#allocation9 + $0x348] sm:$0xff] }
 0x52f   : > { %v13211_v27 = vld [vmem:[#allocation17_spill] sm:$0xff] }
 0x530   : > { %8577 = vmatmul.mubr.f32.gmra.mrb[14].mxu1 %v13193_v38 }
 0x531   : > { %8579 = vmatprep.mubr.f32.mxu1 %v13194_v28  ;;  %9402 = vmatpush3.bf16.msra.mxu1 %v9399_v10  ;;  %v5295_v10 = vld [vmem:[#allocation9 + $0x320] sm:$0xff] }
 0x532   : > { %9404 = vmatprep.subr.bf16.mxu1 %v9403_v37  ;;  %v9411_v36 = vpack.c.bf16 %v5296_v54, %v5295_v10  ;;  %v5302_v10 = vld [vmem:[#allocation9 + $0x358] sm:$0xff] }
 0x533   : > { %v13212_v54 = vld [vmem:[#allocation51_spill] sm:$0xff] }
 0x534   : > { %8580 = vmatmul.mubr.f32.gmra.mrb[16].mxu1 %v13195_v23 }
 0x535   : > { %8582 = vmatprep.mubr.f32.mxu1 %v13196_v3 }
 0x538   : > { %8583 = vmatmul.mubr.f32.gmra.mrb[18].mxu1 %v13197_v56 }
 0x539   : > { %8585 = vmatprep.mubr.f32.mxu1 %v13198_v15 }
 0x53c   : > { %8586 = vmatmul.mubr.f32.gmra.mrb[20].mxu1 %v13199_v25 }
 0x53d   : > { %8588 = vmatprep.mubr.f32.mxu1 %v13200_v47 }
 0x540   : > { %8589 = vmatmul.mubr.f32.gmra.mrb[22].mxu1 %v13201_v35 }
 0x541   : > { %8591 = vmatprep.mubr.f32.mxu1 %v13202_v16 }
 0x544   : > { %8592 = vmatmul.mubr.f32.gmra.mrb[24].mxu1 %v13203_v34 }
 0x545   : > { %8594 = vmatprep.mubr.f32.mxu1 %v13204_v17 }
 0x548   : > { %8595 = vmatmul.mubr.f32.gmra.mrb[26].mxu1 %v13205_v11 }
 0x549   : > { %8597 = vmatprep.mubr.f32.mxu1 %v13206_v63 }
 0x54c   : > { %8598 = vmatmul.mubr.f32.gmra.mrb[28].mxu1 %v13207_v45  ;;  %v5298_v45 = vld [vmem:[#allocation9 + $0x338] sm:$0xff] }
 0x54d   : > { %8600 = vmatprep.mubr.f32.mxu1 %v12291_v20  ;;  %v5297_v20 = vld [vmem:[#allocation9 + $0x330] sm:$0xff] }
 0x54e   : > { %v9415_v46 = vpack.c.bf16 %v5298_v45, %v5297_v20  ;;  %v5304_v45 = vld [vmem:[#allocation9 + $0x368] sm:$0xff]  ;;  %v13213_v20 = vld [vmem:[#allocation52_spill] sm:$0xff] }
 0x550   : > { %8601 = vmatmul.mubr.f32.gmra.mrb[30].mxu1 %v12295_v52 }
 0x551   : > { %8635 = vmatprep.mubr.f32.mxu1 %v12054_v6  ;;  %v5299_v6 = vld [vmem:[#allocation9 + $0x340] sm:$0xff] }
 0x554   : > { %8636 = vmatmul.mubr.f32.vlgmr.msra.gmra.mrb[0].mxu1 %v13209_v22  ;;  %v5301_v22 = vld [vmem:[#allocation9 + $0x350] sm:$0xff] }
 0x555   : > { %8638 = vmatprep.mubr.f32.mxu1 %v12065_v42  ;;  %9406 = vmatpush3.bf16.msra.mxu1 %v9403_v37  ;;  %v9419_v37 = vpack.c.bf16 %v5300_v19, %v5299_v6  ;;  %v5306_v6 = vld [vmem:[#allocation9 + $0x378] sm:$0xff]  ;;  %v5574_v19 = vld [vmem:[#allocation9 + $0x380] sm:$0xff] }
 0x556   : > { %9408 = vmatprep.subr.bf16.mxu1 %v9407_v39 }
 0x558   : > { %8639 = vmatmul.mubr.f32.gmra.mrb[2].mxu1 %v13210_v5 }
 0x559   : > { %8641 = vmatprep.mubr.f32.mxu1 %v12076_v2  ;;  %9410 = vmatpush3.bf16.msra.mxu1 %v9407_v39  ;;  %v9423_v39 = vpack.c.bf16 %v5302_v10, %v5301_v22  ;;  %v5303_v2 = vld [vmem:[#allocation9 + $0x360] sm:$0xff]  ;;  %v5575_v22 = vld [vmem:[#allocation9 + $0x388] sm:$0xff] }
 0x55a   : > { %9412 = vmatprep.subr.bf16.mxu1 %v9411_v36  ;;  %v13216_v10 = vld [vmem:[#allocation56_spill] sm:$0xff] }
 0x55c   : > { %8642 = vmatmul.mubr.f32.gmra.mrb[4].mxu1 %v13211_v27 }
 0x55d   : > { %8644 = vmatprep.mubr.f32.mxu1 %v12087_v59  ;;  %9414 = vmatpush3.bf16.msra.mxu1 %v9411_v36  ;;  %v9427_v36 = vpack.c.bf16 %v5304_v45, %v5303_v2  ;;  %v5305_v59 = vld [vmem:[#allocation9 + $0x370] sm:$0xff]  ;;  %v13214_v2 = vld [vmem:[#allocation53_spill] sm:$0xff]  ;;  %v5011_v45 = vrot.slane %v12249_v12, 2 }
 0x55e   : > { %9416 = vmatprep.subr.bf16.mxu1 %v9415_v46 }
 0x560   : > { %8645 = vmatmul.mubr.f32.gmra.mrb[6].mxu1 %v13212_v54 }
 0x561   : > { %8647 = vmatprep.mubr.f32.mxu1 %v12098_v60  ;;  %9418 = vmatpush3.bf16.msra.mxu1 %v9415_v46  ;;  %v9431_v46 = vpack.c.bf16 %v5306_v6, %v5305_v59  ;;  %v13215_v59 = vld [vmem:[#allocation54_spill] sm:$0xff]  ;;  %v5014_v6 = vrot.slane %v12285_v40, 2 }
 0x562   : > { %9420 = vmatprep.subr.bf16.mxu1 %v9419_v37  ;;  %v10138_v40 = vld [vmem:[#allocation2 + $0x38] sm:$0xff] }
 0x564   : > { %8648 = vmatmul.mubr.f32.gmra.mrb[8].mxu1 %v13213_v20 }
 0x565   : > { %8650 = vmatprep.mubr.f32.mxu1 %v12109_v0  ;;  %9422 = vmatpush3.bf16.msra.mxu1 %v9419_v37  ;;  %v9435_v37 = vpack.c.bf16 %v5575_v22, %v5574_v19  ;;  %v5576_v22 = vld [vmem:[#allocation9 + $0x390] sm:$0xff] }
 0x566   : > { %9424 = vmatprep.subr.bf16.mxu1 %v9423_v39 }
 0x568   : > { %8651 = vmatmul.mubr.f32.gmra.mrb[10].mxu1 %v12115_v51 }
 0x569   : > { %8653 = vmatprep.mubr.f32.mxu1 %v12120_v32  ;;  %9426 = vmatpush3.bf16.msra.mxu1 %v9423_v39  ;;  %v13217_v39 = vld [vmem:[#allocation18_spill] sm:$0xff] }
 0x56a   : > { %9428 = vmatprep.subr.bf16.mxu1 %v9427_v36 }
 0x56c   : > { %8654 = vmatmul.mubr.f32.gmra.mrb[12].mxu1 %v12128_v18 }
 0x56d   : > { %8656 = vmatprep.mubr.f32.mxu1 %v12133_v8  ;;  %9430 = vmatpush3.bf16.msra.mxu1 %v9427_v36  ;;  %v5012_v36 = vrot.slane %v12252_v33, 2 }
 0x56e   : > { %9432 = vmatprep.subr.bf16.mxu1 %v9431_v46 }
 0x56f   : > { %v12336_v19 = vsel %vm994_vm1, %v5012_v36, %v5014_v6  ;;  %v10141_v6 = vld [vmem:[#allocation2 + $0x60] sm:$0xff] }
 0x570   : > { %8657 = vmatmul.mubr.f32.gmra.mrb[14].mxu1 %v12140_v31  ;;  %13219 = vst [vmem:[#allocation22_spill] sm:$0xff] %v12336_v19 }
 0x571   : > { %8659 = vmatprep.mubr.f32.mxu1 %v12145_v62  ;;  %9434 = vmatpush3.bf16.msra.mxu1 %v9431_v46  ;;  %v12332_v46 = vsel %vm994_vm1, %v5011_v45, %v5012_v36  ;;  %v10140_v36 = vld [vmem:[#allocation2 + $0x50] sm:$0xff] }
 0x572   : > { %9436 = vmatprep.subr.bf16.mxu1 %v9435_v37  ;;  %13218 = vst [vmem:[#allocation21_spill] sm:$0xff] %v12332_v46 }
 0x574   : > { %8660 = vmatmul.mubr.f32.gmra.mrb[16].mxu1 %v12151_v30 }
 0x575   : > { %8662 = vmatprep.mubr.f32.mxu1 %v12156_v53 }
 0x578   : > { %8663 = vmatmul.mubr.f32.gmra.mrb[18].mxu1 %v12162_v1 }
 0x579   : > { %8665 = vmatprep.mubr.f32.mxu1 %v13214_v2 }
 0x57c   : > { %8666 = vmatmul.mubr.f32.gmra.mrb[20].mxu1 %v12173_v14 }
 0x57d   : > { %8668 = vmatprep.mubr.f32.mxu1 %v13215_v59  ;;  %v10143_v59 = vld [vmem:[#allocation2 + $0x78] sm:$0xff] }
 0x580   : > { %8669 = vmatmul.mubr.f32.gmra.mrb[22].mxu1 %v12184_v43  ;;  %v5581_v43 = vld [vmem:[#allocation9 + $0x3b8] sm:$0xff] }
 0x581   : > { %8671 = vmatprep.mubr.f32.mxu1 %v13216_v10  ;;  %v5579_v10 = vld [vmem:[#allocation9 + $0x3a8] sm:$0xff] }
 0x584   : > { %8672 = vmatmul.mubr.f32.gmra.mrb[24].mxu1 %v12195_v48 }
 0x585   : > { %8674 = vmatprep.mubr.f32.mxu1 %v13217_v39  ;;  %v10137_v39 = vld [vmem:[#allocation2 + $0x30] sm:$0xff] }
 0x588   : > { %8675 = vmatmul.mubr.f32.gmra.mrb[26].mxu1 %v12206_v9  ;;  %v5577_v9 = vld [vmem:[#allocation9 + $0x398] sm:$0xff] }
 0x589   : > { %8677 = vmatprep.mubr.f32.mxu1 %v12211_v4  ;;  %v9439_v48 = vpack.c.bf16 %v5577_v9, %v5576_v22  ;;  %v5578_v4 = vld [vmem:[#allocation9 + $0x3a0] sm:$0xff]  ;;  %v5583_v9 = vld [vmem:[#allocation9 + $0x3c8] sm:$0xff]  ;;  %v10142_v22 = vld [vmem:[#allocation2 + $0x68] sm:$0xff] }
 0x58a   : > { %v9443_v45 = vpack.c.bf16 %v5579_v10, %v5578_v4  ;;  %v5585_v4 = vld [vmem:[#allocation9 + $0x3d8] sm:$0xff]  ;;  %v10144_v10 = vld [vmem:[#allocation2 + $0x80] sm:$0xff] }
 0x58c   : > { %8678 = vmatmul.mubr.f32.gmra.mrb[28].mxu1 %v12215_v55  ;;  %v10139_v55 = vld [vmem:[#allocation2 + $0x48] sm:$0xff] }
 0x58d   : > { %8680 = vmatprep.mubr.f32.mxu1 %v12332_v46  ;;  %v5580_v46 = vld [vmem:[#allocation9 + $0x3b0] sm:$0xff] }
 0x590   : > { %8681 = vmatmul.mubr.f32.gmra.mrb[30].mxu1 %v12336_v19  ;;  %v9447_v19 = vpack.c.bf16 %v5581_v43, %v5580_v46  ;;  %v5587_v43 = vld [vmem:[#allocation9 + $0x3e8] sm:$0xff] }
 0x591   : > { %8715 = vmatprep.mubr.f32.mxu1 %v10137_v39  ;;  %v5582_v39 = vld [vmem:[#allocation9 + $0x3c0] sm:$0xff] }
 0x592   : > { %v10146_v46 = vld [vmem:[#allocation2 + $0x98] sm:$0xff] }
 0x594   : > { %8716 = vmatmul.mubr.f32.vlgmr.msra.gmra.mrb[0].mxu1 %v10138_v40  ;;  %v10145_v40 = vld [vmem:[#allocation2 + $0x90] sm:$0xff] }
 0x595   : > { %8718 = vmatprep.mubr.f32.mxu1 %v10139_v55  ;;  %9438 = vmatpush3.bf16.msra.mxu1 %v9435_v37  ;;  %v9451_v55 = vpack.c.bf16 %v5583_v9, %v5582_v39  ;;  %v5584_v37 = vld [vmem:[#allocation9 + $0x3d0] sm:$0xff]  ;;  %v5589_v39 = vld [vmem:[#allocation9 + $0x3f8] sm:$0xff] }
 0x596   : > { %9440 = vmatprep.subr.bf16.mxu1 %v9439_v48  ;;  %v10148_v9 = vld [vmem:[#allocation2 + $0xb0] sm:$0xff] }
 0x598   : > { %8719 = vmatmul.mubr.f32.gmra.mrb[2].mxu1 %v10140_v36  ;;  %v5586_v36 = vld [vmem:[#allocation9 + $0x3e0] sm:$0xff] }
 0x599   : > { %8721 = vmatprep.mubr.f32.mxu1 %v10141_v6  ;;  %9442 = vmatpush3.bf16.msra.mxu1 %v9439_v48  ;;  %v9455_v48 = vpack.c.bf16 %v5585_v4, %v5584_v37  ;;  %v10147_v6 = vld [vmem:[#allocation2 + $0xa8] sm:$0xff]  ;;  %v5855_v37 = vld [vmem:[#allocation9 + $0x408] sm:$0xff] }
 0x59a   : > { %9444 = vmatprep.subr.bf16.mxu1 %v9443_v45  ;;  %v10150_v4 = vld [vmem:[#allocation2 + $0xc8] sm:$0xff] }
 0x59c   : > { %8722 = vmatmul.mubr.f32.gmra.mrb[4].mxu1 %v10142_v22  ;;  %v10149_v22 = vld [vmem:[#allocation2 + $0xc0] sm:$0xff] }
 0x59d   : > { %8724 = vmatprep.mubr.f32.mxu1 %v10143_v59  ;;  %9446 = vmatpush3.bf16.msra.mxu1 %v9443_v45  ;;  %v9459_v59 = vpack.c.bf16 %v5587_v43, %v5586_v36  ;;  %v5588_v45 = vld [vmem:[#allocation9 + $0x3f0] sm:$0xff]  ;;  %v10153_v36 = vld [vmem:[#allocation2 + $0xf0] sm:$0xff]  ;;  %v10154_v43 = vld [vmem:[#allocation2 + $0xf8] sm:$0xff] }
 0x59e   : > { %9448 = vmatprep.subr.bf16.mxu1 %v9447_v19 }
 0x5a0   : > { %8725 = vmatmul.mubr.f32.gmra.mrb[6].mxu1 %v10144_v10  ;;  %v5854_v10 = vld [vmem:[#allocation9 + $0x400] sm:$0xff] }
 0x5a1   : > { %8727 = vmatprep.mubr.f32.mxu1 %v10145_v40  ;;  %9450 = vmatpush3.bf16.msra.mxu1 %v9447_v19  ;;  %v9463_v19 = vpack.c.bf16 %v5589_v39, %v5588_v45  ;;  %v10151_v40 = vld [vmem:[#allocation2 + $0xd8] sm:$0xff]  ;;  %v10157_v45 = vld [vmem:[#allocation2 + $0x120] sm:$0xff]  ;;  %v10158_v39 = vld [vmem:[#allocation2 + $0x128] sm:$0xff] }
 0x5a2   : > { %9452 = vmatprep.subr.bf16.mxu1 %v9451_v55 }
 0x5a4   : > { %8728 = vmatmul.mubr.f32.gmra.mrb[8].mxu1 %v10146_v46  ;;  %v10152_v46 = vld [vmem:[#allocation2 + $0xe0] sm:$0xff] }
 0x5a5   : > { %8730 = vmatprep.mubr.f32.mxu1 %v10147_v6  ;;  %9454 = vmatpush3.bf16.msra.mxu1 %v9451_v55  ;;  %v9467_v55 = vpack.c.bf16 %v5855_v37, %v5854_v10  ;;  %v10156_v6 = vld [vmem:[#allocation2 + $0x110] sm:$0xff]  ;;  %v10162_v10 = vld [vmem:[#allocation2 + $0x158] sm:$0xff] }
 0x5a6   : > { %9456 = vmatprep.subr.bf16.mxu1 %v9455_v48  ;;  %v10164_v37 = vld [vmem:[#allocation2 + $0x170] sm:$0xff] }
 0x5a8   : > { %8731 = vmatmul.mubr.f32.gmra.mrb[10].mxu1 %v10148_v9  ;;  %v10159_v9 = vld [vmem:[#allocation2 + $0x138] sm:$0xff] }
 0x5a9   : > { %8733 = vmatprep.mubr.f32.mxu1 %v10149_v22  ;;  %9458 = vmatpush3.bf16.msra.mxu1 %v9455_v48  ;;  %v10155_v48 = vld [vmem:[#allocation2 + $0x108] sm:$0xff]  ;;  %v10161_v22 = vld [vmem:[#allocation2 + $0x150] sm:$0xff] }
 0x5aa   : > { %9460 = vmatprep.subr.bf16.mxu1 %v9459_v59 }
 0x5ac   : > { %8734 = vmatmul.mubr.f32.gmra.mrb[12].mxu1 %v10150_v4  ;;  %v12341_v4 = vld [vmem:[#allocation2 + $0x198] sm:$0xff] }
 0x5ad   : > { %8736 = vmatprep.mubr.f32.mxu1 %v10151_v40  ;;  %9462 = vmatpush3.bf16.msra.mxu1 %v9459_v59  ;;  %v10160_v59 = vld [vmem:[#allocation2 + $0x140] sm:$0xff] }
 0x5ae   : > { %9464 = vmatprep.subr.bf16.mxu1 %v9463_v19  ;;  %v12344_v40 = vld [vmem:[#allocation2 + $0x1a0] sm:$0xff] }
 0x5b0   : > { %8737 = vmatmul.mubr.f32.gmra.mrb[14].mxu1 %v10152_v46  ;;  %v5856_v46 = vld [vmem:[#allocation9 + $0x410] sm:$0xff] }
 0x5b1   : > { %8739 = vmatprep.mubr.f32.mxu1 %v10153_v36  ;;  %9466 = vmatpush3.bf16.msra.mxu1 %v9463_v19  ;;  %v10163_v19 = vld [vmem:[#allocation2 + $0x168] sm:$0xff] }
 0x5b2   : > { %9468 = vmatprep.subr.bf16.mxu1 %v9467_v55  ;;  %v5857_v36 = vld [vmem:[#allocation9 + $0x418] sm:$0xff] }
 0x5b4   : > { %8740 = vmatmul.mubr.f32.gmra.mrb[16].mxu1 %v10154_v43  ;;  %v9471_v43 = vpack.c.bf16 %v5857_v36, %v5856_v46 }
 0x5b5   : > { %8742 = vmatprep.mubr.f32.mxu1 %v10155_v48  ;;  %v5858_v48 = vld [vmem:[#allocation9 + $0x420] sm:$0xff] }
 0x5b8   : > { %8743 = vmatmul.mubr.f32.gmra.mrb[18].mxu1 %v10156_v6  ;;  %v5859_v6 = vld [vmem:[#allocation9 + $0x428] sm:$0xff] }
 0x5b9   : > { %8745 = vmatprep.mubr.f32.mxu1 %v10157_v45  ;;  %v5861_v45 = vld [vmem:[#allocation9 + $0x438] sm:$0xff] }
 0x5bc   : > { %8746 = vmatmul.mubr.f32.gmra.mrb[20].mxu1 %v10158_v39 }
 0x5bd   : > { %8748 = vmatprep.mubr.f32.mxu1 %v10159_v9  ;;  %v5863_v9 = vld [vmem:[#allocation9 + $0x448] sm:$0xff] }
 0x5c0   : > { %8749 = vmatmul.mubr.f32.gmra.mrb[22].mxu1 %v10160_v59  ;;  %v5867_v59 = vld [vmem:[#allocation9 + $0x468] sm:$0xff] }
 0x5c1   : > { %8751 = vmatprep.mubr.f32.mxu1 %v10161_v22  ;;  %v5869_v22 = vld [vmem:[#allocation9 + $0x478] sm:$0xff] }
 0x5c4   : > { %8752 = vmatmul.mubr.f32.gmra.mrb[24].mxu1 %v10162_v10 }
 0x5c5   : > { %8754 = vmatprep.mubr.f32.mxu1 %v10163_v19 }
 0x5c8   : > { %8755 = vmatmul.mubr.f32.gmra.mrb[26].mxu1 %v10164_v37 }
 0x5c9   : > { %8757 = vmatprep.mubr.f32.mxu1 %v12249_v12  ;;  %v9475_v12 = vpack.c.bf16 %v5859_v6, %v5858_v48 }
 0x5cc   : > { %8758 = vmatmul.mubr.f32.gmra.mrb[28].mxu1 %v12252_v33  ;;  %v5860_v33 = vld [vmem:[#allocation9 + $0x430] sm:$0xff] }
 0x5cd   : > { %8760 = vmatprep.mubr.f32.mxu1 %v12341_v4  ;;  %v9479_v39 = vpack.c.bf16 %v5861_v45, %v5860_v33 }
 0x5d0   : > { %8761 = vmatmul.mubr.f32.gmra.mrb[30].mxu1 %v12344_v40 }
 0x5d1   : > { %8795 = vmatprep.mubr.f32.mxu1 %v11785_v21  ;;  %v5862_v21 = vld [vmem:[#allocation9 + $0x440] sm:$0xff] }
 0x5d4   : > { %8796 = vmatmul.mubr.f32.vlgmr.msra.gmra.mrb[0].mxu1 %v13181_v24  ;;  %v9483_v24 = vpack.c.bf16 %v5863_v9, %v5862_v21 }
 0x5d5   : > { %8798 = vmatprep.mubr.f32.mxu1 %v13182_v44  ;;  %9470 = vmatpush3.bf16.msra.mxu1 %v9467_v55  ;;  %v5864_v44 = vld [vmem:[#allocation9 + $0x450] sm:$0xff]  ;;  %v5865_v55 = vld [vmem:[#allocation9 + $0x458] sm:$0xff] }
 0x5d6   : > { %9472 = vmatprep.subr.bf16.mxu1 %v9471_v43 }
 0x5d8   : > { %8799 = vmatmul.mubr.f32.gmra.mrb[2].mxu1 %v13183_v13  ;;  %v9487_v13 = vpack.c.bf16 %v5865_v55, %v5864_v44 }
 0x5d9   : > { %8801 = vmatprep.mubr.f32.mxu1 %v13184_v49  ;;  %9474 = vmatpush3.bf16.msra.mxu1 %v9471_v43  ;;  %v5866_v49 = vld [vmem:[#allocation9 + $0x460] sm:$0xff] }
 0x5da   : > { %9476 = vmatprep.subr.bf16.mxu1 %v9475_v12 }
 0x5dc   : > { %8802 = vmatmul.mubr.f32.gmra.mrb[4].mxu1 %v13185_v57  ;;  %v9491_v57 = vpack.c.bf16 %v5867_v59, %v5866_v49 }
 0x5dd   : > { %8804 = vmatprep.mubr.f32.mxu1 %v13186_v41  ;;  %9478 = vmatpush3.bf16.msra.mxu1 %v9475_v12  ;;  %v5868_v41 = vld [vmem:[#allocation9 + $0x470] sm:$0xff] }
 0x5de   : > { %9480 = vmatprep.subr.bf16.mxu1 %v9479_v39 }
 0x5e0   : > { %8805 = vmatmul.mubr.f32.gmra.mrb[6].mxu1 %v13187_v26  ;;  %v9495_v26 = vpack.c.bf16 %v5869_v22, %v5868_v41 }
 0x5e1   : > { %8807 = vmatprep.mubr.f32.mxu1 %v13188_v7  ;;  %9482 = vmatpush3.bf16.msra.mxu1 %v9479_v39  ;;  %v5567_v7 = vrot.slane %v12341_v4, 1 }
 0x5e2   : > { %9484 = vmatprep.subr.bf16.mxu1 %v9483_v24 }
 0x5e4   : > { %8808 = vmatmul.mubr.f32.gmra.mrb[8].mxu1 %v13189_v29  ;;  %v5568_v29 = vrot.slane %v12344_v40, 1 }
 0x5e5   : > { %8810 = vmatprep.mubr.f32.mxu1 %v13190_v61  ;;  %9486 = vmatpush3.bf16.msra.mxu1 %v9483_v24  ;;  %v13220_v61 = vld [vmem:[#allocation48_spill] sm:$0xff] }
 0x5e6   : > { %9488 = vmatprep.subr.bf16.mxu1 %v9487_v13 }
 0x5e8   : > { %8811 = vmatmul.mubr.f32.gmra.mrb[10].mxu1 %v13191_v50  ;;  %v3427_v50 = vld [vmem:[#allocation2 + $0x1a8] sm:$0x3] }
 0x5e9   : > { %8813 = vmatprep.mubr.f32.mxu1 %v13192_v58  ;;  %9490 = vmatpush3.bf16.msra.mxu1 %v9487_v13  ;;  %v13221_v58 = vld [vmem:[#allocation20_spill] sm:$0xff] }
 0x5ea   : > { %9492 = vmatprep.subr.bf16.mxu1 %v9491_v57 }
 0x5ec   : > { %8814 = vmatmul.mubr.f32.gmra.mrb[12].mxu1 %v13193_v38  ;;  %v5570_v38 = vrot.slane %v3427_v50, 1 }
 0x5ed   : > { %8816 = vmatprep.mubr.f32.mxu1 %v13194_v28  ;;  %9494 = vmatpush3.bf16.msra.mxu1 %v9491_v57  ;;  %v5569_v28 = vsel %vm415_vm0, %v5567_v7, %v5568_v29 }
 0x5ee   : > { %9496 = vmatprep.subr.bf16.mxu1 %v9495_v26 }
 0x5f0   : > { %8817 = vmatmul.mubr.f32.gmra.mrb[14].mxu1 %v13195_v23  ;;  %v5571_v23 = vsel %vm415_vm0, %v5568_v29, %v5570_v38 }
 0x5f1   : > { %8819 = vmatprep.mubr.f32.mxu1 %v13196_v3  ;;  %9498 = vmatpush3.bf16.msra.mxu1 %v9495_v26  ;;  %v13222_v3 = vld [vmem:[#allocation44_spill] sm:$0xff] }
 0x5f4   : > { %8820 = vmatmul.mubr.f32.gmra.mrb[16].mxu1 %v13197_v56  ;;  %v13223_v56 = vld [vmem:[#allocation46_spill] sm:$0xff] }
 0x5f5   : > { %8822 = vmatprep.mubr.f32.mxu1 %v13198_v15 }
 0x5f8   : > { %8823 = vmatmul.mubr.f32.gmra.mrb[18].mxu1 %v13199_v25 }
 0x5f9   : > { %8825 = vmatprep.mubr.f32.mxu1 %v13200_v47  ;;  %v12415_v47 = vld [vmem:[#allocation11] ss:$0 sm:$0xff] }
 0x5fc   : > { %8826 = vmatmul.mubr.f32.gmra.mrb[20].mxu1 %v13201_v35 }
 0x5fd   : > { %8828 = vmatprep.mubr.f32.mxu1 %v13202_v16 }
 0x600   : > { %8829 = vmatmul.mubr.f32.gmra.mrb[22].mxu1 %v13203_v34 }
 0x601   : > { %8831 = vmatprep.mubr.f32.mxu1 %v13204_v17 }
 0x604   : > { %8832 = vmatmul.mubr.f32.gmra.mrb[24].mxu1 %v13205_v11 }
 0x605   : > { %8834 = vmatprep.mubr.f32.mxu1 %v13206_v63 }
 0x608   : > { %8835 = vmatmul.mubr.f32.gmra.mrb[26].mxu1 %v13220_v61 }
 0x609   : > { %8837 = vmatprep.mubr.f32.mxu1 %v13221_v58 }
 0x60c   : > { %8838 = vmatmul.mubr.f32.gmra.mrb[28].mxu1 %v12295_v52 }
 0x60d   : > { %8840 = vmatprep.mubr.f32.mxu1 %v5569_v28 }
 0x610   : > { %8841 = vmatmul.mubr.f32.gmra.mrb[30].mxu1 %v5571_v23 }
 0x611   : > { %8875 = vmatprep.mubr.f32.mxu1 %v12065_v42  ;;  %v13224_v42 = vld [vmem:[#allocation54_spill] sm:$0xff] }
 0x614   : > { %8876 = vmatmul.mubr.f32.vlgmr.msra.gmra.mrb[0].mxu1 %v13210_v5 }
 0x615   : > { %8878 = vmatprep.mubr.f32.mxu1 %v13222_v3 }
 0x618   : > { %8879 = vmatmul.mubr.f32.gmra.mrb[2].mxu1 %v13211_v27 }
 0x619   : > { %8881 = vmatprep.mubr.f32.mxu1 %v13223_v56 }
 0x61c   : > { %8882 = vmatmul.mubr.f32.gmra.mrb[4].mxu1 %v13212_v54 }
 0x61d   : > { %8884 = vmatprep.mubr.f32.mxu1 %v12098_v60  ;;  %v13225_v60 = vld [vmem:[#allocation55_spill] sm:$0xff] }
 0x620   : > { %8885 = vmatmul.mubr.f32.gmra.mrb[6].mxu1 %v13213_v20 }
 0x621   : > { %8887 = vmatprep.mubr.f32.mxu1 %v12109_v0  ;;  %v13226_v0 = vld [vmem:[#allocation56_spill] sm:$0xff] }
 0x624   : > { %8888 = vmatmul.mubr.f32.gmra.mrb[8].mxu1 %v12115_v51  ;;  %v13227_v51 = vld [vmem:[#allocation57_spill] sm:$0xff] }
 0x625   : > { %8890 = vmatprep.mubr.f32.mxu1 %v12120_v32  ;;  %v13228_v32 = vld [vmem:[#allocation18_spill] sm:$0xff] }
 0x628   : > { %8891 = vmatmul.mubr.f32.gmra.mrb[10].mxu1 %v12128_v18  ;;  %v13229_v18 = vld [vmem:[#allocation19_spill] sm:$0xff] }
 0x629   : > { %8893 = vmatprep.mubr.f32.mxu1 %v12133_v8  ;;  %v13230_v8 = vld [vmem:[#allocation58_spill] sm:$0xff] }
 0x62c   : > { %8894 = vmatmul.mubr.f32.gmra.mrb[12].mxu1 %v12140_v31  ;;  %v5847_v31 = vrot.slane %v12341_v4, 2 }
 0x62d   : > { %8896 = vmatprep.mubr.f32.mxu1 %v12145_v62  ;;  %v5848_v62 = vrot.slane %v12344_v40, 2 }
 0x62f   : > { %v5849_v15 = vsel %vm994_vm1, %v5847_v31, %v5848_v62 }
 0x630   : > { %8897 = vmatmul.mubr.f32.gmra.mrb[14].mxu1 %v12151_v30  ;;  %v13231_v30 = vld [vmem:[#allocation59_spill] sm:$0xff] }
 0x631   : > { %8899 = vmatprep.mubr.f32.mxu1 %v12156_v53  ;;  %v13232_v53 = vld [vmem:[#allocation21_spill] sm:$0xff] }
 0x634   : > { %8900 = vmatmul.mubr.f32.gmra.mrb[16].mxu1 %v12162_v1  ;;  %v5850_v1 = vrot.slane %v3427_v50, 2 }
 0x635   : > { %8902 = vmatprep.mubr.f32.mxu1 %v13214_v2 }
 0x636   : > { %v5851_v25 = vsel %vm994_vm1, %v5848_v62, %v5850_v1 }
 0x638   : > { %8903 = vmatmul.mubr.f32.gmra.mrb[18].mxu1 %v12173_v14  ;;  %v13233_v14 = vld [vmem:[#allocation22_spill] sm:$0xff] }
 0x639   : > { %8905 = vmatprep.mubr.f32.mxu1 %v13224_v42 }
 0x63c   : > { %8906 = vmatmul.mubr.f32.gmra.mrb[20].mxu1 %v13225_v60 }
 0x63d   : > { %8908 = vmatprep.mubr.f32.mxu1 %v13226_v0 }
 0x640   : > { %8909 = vmatmul.mubr.f32.gmra.mrb[22].mxu1 %v13227_v51 }
 0x641   : > { %8911 = vmatprep.mubr.f32.mxu1 %v13228_v32 }
 0x644   : > { %8912 = vmatmul.mubr.f32.gmra.mrb[24].mxu1 %v13229_v18 }
 0x645   : > { %8914 = vmatprep.mubr.f32.mxu1 %v13230_v8 }
 0x648   : > { %8915 = vmatmul.mubr.f32.gmra.mrb[26].mxu1 %v13231_v30 }
 0x649   : > { %8917 = vmatprep.mubr.f32.mxu1 %v13232_v53 }
 0x64c   : > { %8918 = vmatmul.mubr.f32.gmra.mrb[28].mxu1 %v13233_v14 }
 0x64d   : > { %8920 = vmatprep.mubr.f32.mxu1 %v5849_v15 }
 0x650   : > { %8921 = vmatmul.mubr.f32.gmra.mrb[30].mxu1 %v5851_v25 }
 0x6e7   : > { %v8877_v35 = vpop.f32.mrb[0].mxu1 }
 0x6e8   : > { %v12418_v16 = vadd.f32 %v8877_v35, %v12415_v47  ;;  %v5936_v34 = vpop.f32.mrb[1].mxu1 }
 0x6e9   : > { %v12421_v17 = vadd.f32 %v12415_v47, %v5936_v34 }
 0x6ea   : > { %v6204_v11 = vmul.f32 %v12418_v16, %v12418_v16 }
 0x6eb   : > { %v6203_v63 = vmul.f32 %v12421_v17, %v12421_v17  ;;  %v8880_v52 = vpop.f32.mrb[2].mxu1  ;;  %v6166_v27 = vadd.f32 %v12418_v16, %v12421_v17 }
 0x6ec   : > { %v5946_v5 = vpop.f32.mrb[3].mxu1  ;;  %v12430_v54 = vadd.f32 %v8880_v52, %v12415_v47 }
 0x6ed   : > { %v12433_v20 = vadd.f32 %v12415_v47, %v5946_v5  ;;  %v6235_v2 = vadd.f32 %v6204_v11, %v6203_v63 }
 0x6ee   : > { %v6206_v46 = vmul.f32 %v12430_v54, %v12430_v54 }
 0x6ef   : > { %v6167_v10 = vadd.f32 %v6166_v27, %v12433_v20  ;;  %v6205_v19 = vmul.f32 %v12433_v20, %v12433_v20  ;;  %v8883_v37 = vpop.f32.mrb[4].mxu1 }
 0x6f0   : > { %v12439_v4 = vadd.f32 %v8883_v37, %v12415_v47  ;;  %v5956_v40 = vpop.f32.mrb[5].mxu1 }
 0x6f1   : > { %v6236_v36 = vadd.f32 %v6235_v2, %v6205_v19  ;;  %v12444_v43 = vadd.f32 %v12415_v47, %v5956_v40  ;;  %v6168_v48 = vadd.f32 %v6167_v10, %v12430_v54 }
 0x6f2   : > { %v6208_v39 = vmul.f32 %v12439_v4, %v12439_v4 }
 0x6f3   : > { %v6169_v6 = vadd.f32 %v6168_v48, %v12444_v43  ;;  %v6207_v12 = vmul.f32 %v12444_v43, %v12444_v43  ;;  %v6237_v33 = vadd.f32 %v6236_v36, %v6206_v46  ;;  %v8886_v45 = vpop.f32.mrb[6].mxu1 }
 0x6f4   : > { %v5966_v21 = vpop.f32.mrb[7].mxu1  ;;  %v12453_v24 = vadd.f32 %v8886_v45, %v12415_v47 }
 0x6f5   : > { %v6238_v9 = vadd.f32 %v6237_v33, %v6207_v12  ;;  %v12456_v44 = vadd.f32 %v12415_v47, %v5966_v21  ;;  %v6170_v55 = vadd.f32 %v6169_v6, %v12439_v4 }
 0x6f6   : > { %v6210_v26 = vmul.f32 %v12453_v24, %v12453_v24 }
 0x6f7   : > { %v6171_v13 = vadd.f32 %v6170_v55, %v12456_v44  ;;  %v6209_v49 = vmul.f32 %v12456_v44, %v12456_v44  ;;  %v6239_v59 = vadd.f32 %v6238_v9, %v6208_v39  ;;  %v8889_v57 = vpop.f32.mrb[8].mxu1 }
 0x6f8   : > { %v12463_v41 = vadd.f32 %v8889_v57, %v12415_v47  ;;  %v5976_v22 = vpop.f32.mrb[9].mxu1 }
 0x6f9   : > { %v6240_v7 = vadd.f32 %v6239_v59, %v6209_v49  ;;  %v12468_v29 = vadd.f32 %v12415_v47, %v5976_v22  ;;  %v6172_v61 = vadd.f32 %v6171_v13, %v12453_v24 }
 0x6fa   : > { %v6212_v23 = vmul.f32 %v12463_v41, %v12463_v41 }
 0x6fb   : > { %v6173_v50 = vadd.f32 %v6172_v61, %v12468_v29  ;;  %v6211_v58 = vmul.f32 %v12468_v29, %v12468_v29  ;;  %v6241_v38 = vadd.f32 %v6240_v7, %v6210_v26  ;;  %v8892_v28 = vpop.f32.mrb[10].mxu1 }
 0x6fc   : > { %v5986_v3 = vpop.f32.mrb[11].mxu1  ;;  %v12477_v42 = vadd.f32 %v8892_v28, %v12415_v47 }
 0x6fd   : > { %v6242_v56 = vadd.f32 %v6241_v38, %v6211_v58  ;;  %v12480_v60 = vadd.f32 %v12415_v47, %v5986_v3  ;;  %v6174_v0 = vadd.f32 %v6173_v50, %v12463_v41 }
 0x6fe   : > { %v6214_v30 = vmul.f32 %v12477_v42, %v12477_v42 }
 0x6ff   : > { %v6175_v51 = vadd.f32 %v6174_v0, %v12480_v60  ;;  %v6213_v32 = vmul.f32 %v12480_v60, %v12480_v60  ;;  %v6243_v18 = vadd.f32 %v6242_v56, %v6212_v23  ;;  %v8895_v8 = vpop.f32.mrb[12].mxu1 }
 0x700   : > { %v12487_v31 = vadd.f32 %v8895_v8, %v12415_v47  ;;  %v5996_v62 = vpop.f32.mrb[13].mxu1 }
 0x701   : > { %v6244_v53 = vadd.f32 %v6243_v18, %v6213_v32  ;;  %v12492_v1 = vadd.f32 %v12415_v47, %v5996_v62  ;;  %v6176_v14 = vadd.f32 %v6175_v51, %v12477_v42 }
 0x702   : > { %v6216_v11 = vmul.f32 %v12487_v31, %v12487_v31 }
 0x703   : > { %v6177_v15 = vadd.f32 %v6176_v14, %v12492_v1  ;;  %v6215_v25 = vmul.f32 %v12492_v1, %v12492_v1  ;;  %v6245_v35 = vadd.f32 %v6244_v53, %v6214_v30  ;;  %v8898_v34 = vpop.f32.mrb[14].mxu1 }
 0x704   : > { %v6006_v63 = vpop.f32.mrb[15].mxu1  ;;  %v12501_v5 = vadd.f32 %v8898_v34, %v12415_v47 }
 0x705   : > { %v6246_v52 = vadd.f32 %v6245_v35, %v6215_v25  ;;  %v12504_v27 = vadd.f32 %v12415_v47, %v6006_v63  ;;  %v6178_v2 = vadd.f32 %v6177_v15, %v12487_v31 }
 0x706   : > { %v6218_v48 = vmul.f32 %v12501_v5, %v12501_v5 }
 0x707   : > { %v6179_v10 = vadd.f32 %v6178_v2, %v12504_v27  ;;  %v6217_v19 = vmul.f32 %v12504_v27, %v12504_v27  ;;  %v6247_v37 = vadd.f32 %v6246_v52, %v6216_v11  ;;  %v8901_v40 = vpop.f32.mrb[16].mxu1 }
 0x708   : > { %v12511_v46 = vadd.f32 %v8901_v40, %v12415_v47  ;;  %v6016_v36 = vpop.f32.mrb[17].mxu1 }
 0x709   : > { %v6248_v6 = vadd.f32 %v6247_v37, %v6217_v19  ;;  %v12516_v12 = vadd.f32 %v12415_v47, %v6016_v36  ;;  %v6180_v33 = vadd.f32 %v6179_v10, %v12501_v5 }
 0x70a   : > { %v6220_v55 = vmul.f32 %v12511_v46, %v12511_v46 }
 0x70b   : > { %v6181_v45 = vadd.f32 %v6180_v33, %v12516_v12  ;;  %v6219_v39 = vmul.f32 %v12516_v12, %v12516_v12  ;;  %v6249_v21 = vadd.f32 %v6248_v6, %v6218_v48  ;;  %v8904_v9 = vpop.f32.mrb[18].mxu1 }
 0x70c   : > { %v6026_v13 = vpop.f32.mrb[19].mxu1  ;;  %v12525_v59 = vadd.f32 %v8904_v9, %v12415_v47 }
 0x70d   : > { %v6250_v49 = vadd.f32 %v6249_v21, %v6219_v39  ;;  %v12528_v57 = vadd.f32 %v12415_v47, %v6026_v13  ;;  %v6182_v22 = vadd.f32 %v6181_v45, %v12511_v46 }
 0x70e   : > { %v6222_v28 = vmul.f32 %v12525_v59, %v12525_v59 }
 0x70f   : > { %v6183_v26 = vadd.f32 %v6182_v22, %v12528_v57  ;;  %v6221_v7 = vmul.f32 %v12528_v57, %v12528_v57  ;;  %v6251_v61 = vadd.f32 %v6250_v49, %v6220_v55  ;;  %v8907_v50 = vpop.f32.mrb[20].mxu1 }
 0x710   : > { %v12535_v58 = vadd.f32 %v8907_v50, %v12415_v47  ;;  %v6036_v38 = vpop.f32.mrb[21].mxu1 }
 0x711   : > { %v6252_v23 = vadd.f32 %v6251_v61, %v6221_v7  ;;  %v12540_v3 = vadd.f32 %v12415_v47, %v6036_v38  ;;  %v6184_v56 = vadd.f32 %v6183_v26, %v12525_v59 }
 0x712   : > { %v6224_v8 = vmul.f32 %v12535_v58, %v12535_v58 }
 0x713   : > { %v6185_v0 = vadd.f32 %v6184_v56, %v12540_v3  ;;  %v6223_v51 = vmul.f32 %v12540_v3, %v12540_v3  ;;  %v6253_v32 = vadd.f32 %v6252_v23, %v6222_v28  ;;  %v8910_v18 = vpop.f32.mrb[22].mxu1 }
 0x714   : > { %v6046_v62 = vpop.f32.mrb[23].mxu1  ;;  %v12549_v53 = vadd.f32 %v8910_v18, %v12415_v47 }
 0x715   : > { %v6254_v30 = vadd.f32 %v6253_v32, %v6223_v51  ;;  %v12552_v14 = vadd.f32 %v12415_v47, %v6046_v62  ;;  %v6186_v15 = vadd.f32 %v6185_v0, %v12535_v58 }
 0x716   : > { %v6226_v2 = vmul.f32 %v12549_v53, %v12549_v53 }
 0x717   : > { %v6187_v25 = vadd.f32 %v6186_v15, %v12552_v14  ;;  %v6225_v35 = vmul.f32 %v12552_v14, %v12552_v14  ;;  %v6255_v34 = vadd.f32 %v6254_v30, %v6224_v8  ;;  %v8913_v11 = vpop.f32.mrb[24].mxu1 }
 0x718   : > { %v12559_v63 = vadd.f32 %v8913_v11, %v12415_v47  ;;  %v6056_v52 = vpop.f32.mrb[25].mxu1 }
 0x719   : > { %v6256_v10 = vadd.f32 %v6255_v34, %v6225_v35  ;;  %v12564_v19 = vadd.f32 %v12415_v47, %v6056_v52  ;;  %v6188_v37 = vadd.f32 %v6187_v25, %v12549_v53 }
 0x71a   : > { %v6228_v33 = vmul.f32 %v12559_v63, %v12559_v63 }
 0x71b   : > { %v6189_v40 = vadd.f32 %v6188_v37, %v12564_v19  ;;  %v6227_v36 = vmul.f32 %v12564_v19, %v12564_v19  ;;  %v6257_v48 = vadd.f32 %v6256_v10, %v6226_v2  ;;  %v8916_v6 = vpop.f32.mrb[26].mxu1 }
 0x71c   : > { %v6066_v45 = vpop.f32.mrb[27].mxu1  ;;  %v12573_v21 = vadd.f32 %v8916_v6, %v12415_v47 }
 0x71d   : > { %v6258_v39 = vadd.f32 %v6257_v48, %v6227_v36  ;;  %v12576_v9 = vadd.f32 %v12415_v47, %v6066_v45  ;;  %v6190_v55 = vadd.f32 %v6189_v40, %v12559_v63 }
 0x71e   : > { %v6230_v50 = vmul.f32 %v12573_v21, %v12573_v21 }
 0x71f   : > { %v6191_v13 = vadd.f32 %v6190_v55, %v12576_v9  ;;  %v6229_v49 = vmul.f32 %v12576_v9, %v12576_v9  ;;  %v6259_v22 = vadd.f32 %v6258_v39, %v6228_v33  ;;  %v8919_v26 = vpop.f32.mrb[28].mxu1 }
 0x720   : > { %v12583_v7 = vadd.f32 %v8919_v26, %v12415_v47  ;;  %v6076_v61 = vpop.f32.mrb[29].mxu1 }
 0x721   : > { %v6260_v38 = vadd.f32 %v6259_v22, %v6229_v49  ;;  %v12588_v28 = vadd.f32 %v12415_v47, %v6076_v61  ;;  %v6192_v23 = vadd.f32 %v6191_v13, %v12573_v21 }
 0x722   : > { %v6232_v18 = vmul.f32 %v12583_v7, %v12583_v7 }
 0x723   : > { %v6193_v56 = vadd.f32 %v6192_v23, %v12588_v28  ;;  %v6231_v0 = vmul.f32 %v12588_v28, %v12588_v28  ;;  %v6261_v51 = vadd.f32 %v6260_v38, %v6230_v50  ;;  %v8922_v32 = vpop.f32.mrb[30].mxu1 }
 0x724   : > { %v6086_v8 = vpop.f32.mrb[31].mxu1  ;;  %v12597_v30 = vadd.f32 %v8922_v32, %v12415_v47 }
 0x725   : > { %v6262_v62 = vadd.f32 %v6261_v51, %v6231_v0  ;;  %v12600_v15 = vadd.f32 %v12415_v47, %v6086_v8  ;;  %v6194_v25 = vadd.f32 %v6193_v56, %v12583_v7 }
 0x726   : > { %v6234_v52 = vmul.f32 %v12597_v30, %v12597_v30 }
 0x727   : > { %v6195_v35 = vadd.f32 %v6194_v25, %v12600_v15  ;;  %v6233_v34 = vmul.f32 %v12600_v15, %v12600_v15  ;;  %v6263_v11 = vadd.f32 %v6262_v62, %v6232_v18 }
 0x729   : > { %v6196_v2 = vadd.f32 %v6195_v35, %v12597_v30  ;;  %v6264_v10 = vadd.f32 %v6263_v11, %v6233_v34 }
 0x72b   : > { %v6197_v37 = vrot.slane %v6196_v2, 4  ;;  %v6265_v40 = vadd.f32 %v6264_v10, %v6234_v52  ;;  %v6611_v10 = vld [vmem:[%s10647_s16 + $0x181] sm:$0xff] }
 0x72d   : > { %v6198_v36 = vadd.f32 %v6197_v37, %v6196_v2  ;;  %v6266_v48 = vrot.slane %v6265_v40, 4 }
 0x72f   : > { %v6199_v47 = vrot.slane %v6198_v36, 2  ;;  %v6267_v6 = vadd.f32 %v6266_v48, %v6265_v40 }
 0x731   : > { %v6200_v33 = vadd.f32 %v6199_v47, %v6198_v36  ;;  %v6268_v45 = vrot.slane %v6267_v6, 2 }
 0x733   : > { %v6201_v39 = vrot.slane %v6200_v33, 1  ;;  %v6269_v55 = vadd.f32 %v6268_v45, %v6267_v6  ;;  %v6582_v45 = vld [vmem:[%s10647_s16 + $0x21] sm:$0xff] }
 0x735   : > { %v6202_v13 = vadd.f32 %v6201_v39, %v6200_v33  ;;  %v6270_v49 = vrot.slane %v6269_v55, 1 }
 0x737   : > { %v6271_v22 = vadd.f32 %v6270_v49, %v6269_v55  ;;  %v12609_v26 = vmul.f32 0.00390625, %v6202_v13 }
 0x739   : > { %v6273_v61 = vmul.f32 0.00390625, %v6271_v22  ;;  %v6274_v50 = vmul.f32 %v12609_v26, %v12609_v26  ;;  %v6307_v38 = vsub.f32 %v12600_v15, %v12609_v26  ;;  %v6287_v56 = vsub.f32 %v12480_v60, %v12609_v26  ;;  %v6584_v22 = vld [vmem:[%s10647_s16 + $0x39] sm:$0xff] }
 0x73a   : > { %v6288_v0 = vsub.f32 %v12477_v42, %v12609_v26  ;;  %v6289_v32 = vsub.f32 %v12492_v1, %v12609_v26  ;;  %v6290_v18 = vsub.f32 %v12487_v31, %v12609_v26  ;;  %v6291_v8 = vsub.f32 %v12504_v27, %v12609_v26 }
 0x73b   : > { %v6275_v23 = vsub.f32 %v6273_v61, %v6274_v50  ;;  %v6292_v62 = vsub.f32 %v12501_v5, %v12609_v26  ;;  %v6293_v15 = vsub.f32 %v12516_v12, %v12609_v26  ;;  %v6294_v60 = vsub.f32 %v12511_v46, %v12609_v26  ;;  %v6583_v61 = vld [vmem:[%s10647_s16 + $0x31] sm:$0xff] }
 0x73c   : > { %v6295_v42 = vsub.f32 %v12528_v57, %v12609_v26  ;;  %v6296_v31 = vsub.f32 %v12525_v59, %v12609_v26  ;;  %v6297_v1 = vsub.f32 %v12540_v3, %v12609_v26  ;;  %v6298_v5 = vsub.f32 %v12535_v58, %v12609_v26  ;;  %v6586_v50 = vld [vmem:[%s10647_s16 + $0x51] sm:$0xff] }
 0x73d   : > { %v6276_v51 = vmax.f32 %v6275_v23, 0.0  ;;  %v6299_v27 = vsub.f32 %v12552_v14, %v12609_v26  ;;  %v6300_v46 = vsub.f32 %v12549_v53, %v12609_v26  ;;  %v6301_v12 = vsub.f32 %v12564_v19, %v12609_v26 }
 0x73e   : > { %v6302_v57 = vsub.f32 %v12559_v63, %v12609_v26  ;;  %v6303_v59 = vsub.f32 %v12576_v9, %v12609_v26  ;;  %v6304_v58 = vsub.f32 %v12573_v21, %v12609_v26  ;;  %v6305_v3 = vsub.f32 %v12588_v28, %v12609_v26  ;;  %v6598_v9 = vld [vmem:[%s10647_s16 + $0xe1] sm:$0xff] }
 0x73f   : > { %v6309_v25 = vadd.f32 1e-05, %v6276_v51  ;;  %v6306_v53 = vsub.f32 %v12583_v7, %v12609_v26  ;;  %v6308_v14 = vsub.f32 %v12597_v30, %v12609_v26  ;;  %v6277_v19 = vsub.f32 %v12421_v17, %v12609_v26  ;;  %v6602_v7 = vld [vmem:[%s10647_s16 + $0x111] sm:$0xff]  ;;  %v6603_v30 = vld [vmem:[%s10647_s16 + $0x121] sm:$0xff] }
 0x740   : > { %v6278_v63 = vsub.f32 %v12418_v16, %v12609_v26  ;;  %v6279_v35 = vsub.f32 %v12433_v20, %v12609_v26  ;;  %v6280_v34 = vsub.f32 %v12430_v54, %v12609_v26  ;;  %v6281_v11 = vsub.f32 %v12444_v43, %v12609_v26 }
 0x741   : > { %10107 = vrsqrt.f32 %v6309_v25  ;;  %v6282_v52 = vsub.f32 %v12439_v4, %v12609_v26  ;;  %v6283_v17 = vsub.f32 %v12456_v44, %v12609_v26  ;;  %v6284_v16 = vsub.f32 %v12453_v24, %v12609_v26  ;;  %v6590_v25 = vld [vmem:[%s10647_s16 + $0x81] sm:$0xff] }
 0x742   : > { %v6285_v20 = vsub.f32 %v12468_v29, %v12609_v26  ;;  %v6286_v54 = vsub.f32 %v12463_v41, %v12609_v26  ;;  %v6581_v41 = vld [vmem:[%s10647_s16 + $0x19] sm:$0xff]  ;;  %v6606_v26 = vld [vmem:[%s10647_s16 + $0x141] sm:$0xff] }
 0x74b   : > { %v10108_v2 = vpop.eup %10107 }
 0x74c   : > { %v6341_v43 = vmul.f32 %v10108_v2, %v6307_v38  ;;  %v6311_v37 = vmul.f32 %v10108_v2, %v6277_v19  ;;  %v6312_v40 = vmul.f32 %v10108_v2, %v6278_v63  ;;  %v6313_v4 = vmul.f32 %v10108_v2, %v6279_v35  ;;  %v6585_v38 = vld [vmem:[%s10647_s16 + $0x49] sm:$0xff]  ;;  %v6589_v19 = vld [vmem:[%s10647_s16 + $0x79] sm:$0xff] }
 0x74d   : > { %v6314_v36 = vmul.f32 %v10108_v2, %v6280_v34  ;;  %v6315_v44 = vmul.f32 %v10108_v2, %v6281_v11  ;;  %v6316_v48 = vmul.f32 %v10108_v2, %v6282_v52  ;;  %v6317_v24 = vmul.f32 %v10108_v2, %v6283_v17 }
 0x74e   : > { %v6406_v47 = vadd.f32 %v6611_v10, %v6341_v43  ;;  %v6318_v6 = vmul.f32 %v10108_v2, %v6284_v16  ;;  %v6319_v33 = vmul.f32 %v10108_v2, %v6285_v20  ;;  %v6320_v29 = vmul.f32 %v10108_v2, %v6286_v54  ;;  %v6599_v16 = vld [vmem:[%s10647_s16 + $0xf1] sm:$0xff] }
 0x74f   : > { %v6321_v39 = vmul.f32 %v10108_v2, %v6287_v56  ;;  %v6322_v55 = vmul.f32 %v10108_v2, %v6288_v0  ;;  %v6323_v13 = vmul.f32 %v10108_v2, %v6289_v32  ;;  %v6324_v49 = vmul.f32 %v10108_v2, %v6290_v18  ;;  %v6588_v32 = vld [vmem:[%s10647_s16 + $0x69] sm:$0xff]  ;;  %v6587_v18 = vld [vmem:[%s10647_s16 + $0x61] sm:$0xff] }
 0x750   : > { %6438 = vst [vmem:[%s12687_s26 + $0xf0] sm:$0xff] %v6406_v47  ;;  %v6325_v23 = vmul.f32 %v10108_v2, %v6291_v8  ;;  %v12690_v51 = vmul.f32 %v10108_v2, %v6292_v62  ;;  %v12692_v56 = vmul.f32 %v10108_v2, %v6293_v15  ;;  %v12694_v0 = vmul.f32 %v10108_v2, %v6294_v60  ;;  %v6592_v62 = vld [vmem:[%s10647_s16 + $0x99] sm:$0xff]  ;;  %v6591_v15 = vld [vmem:[%s10647_s16 + $0x91] sm:$0xff] }
 0x751   : > { %v6329_v63 = vmul.f32 %v10108_v2, %v6295_v42  ;;  %v12700_v35 = vmul.f32 %v10108_v2, %v6296_v31  ;;  %v12702_v34 = vmul.f32 %v10108_v2, %v6297_v1  ;;  %v12704_v8 = vmul.f32 %v10108_v2, %v6298_v5  ;;  %v6594_v60 = vld [vmem:[%s10647_s16 + $0xb1] sm:$0xff]  ;;  %v6593_v42 = vld [vmem:[%s10647_s16 + $0xa9] sm:$0xff]  ;;  %v6595_v1 = vld [vmem:[%s10647_s16 + $0xc1] sm:$0xff] }
 0x752   : > { %v6333_v11 = vmul.f32 %v10108_v2, %v6299_v27  ;;  %v12709_v52 = vmul.f32 %v10108_v2, %v6300_v46  ;;  %v12711_v10 = vmul.f32 %v10108_v2, %v6301_v12  ;;  %v12713_v17 = vmul.f32 %v10108_v2, %v6302_v57  ;;  %v6596_v31 = vld [vmem:[%s10647_s16 + $0xc9] sm:$0xff]  ;;  %v6597_v57 = vld [vmem:[%s10647_s16 + $0xd9] sm:$0xff] }
 0x753   : > { %v12721_v5 = vmul.f32 %v10108_v2, %v6303_v59  ;;  %v12726_v27 = vmul.f32 %v10108_v2, %v6304_v58  ;;  %v12731_v46 = vmul.f32 %v10108_v2, %v6305_v3  ;;  %v12736_v12 = vmul.f32 %v10108_v2, %v6306_v53  ;;  %v6600_v59 = vld [vmem:[%s10647_s16 + $0xf9] sm:$0xff]  ;;  %v6601_v53 = vld [vmem:[%s10647_s16 + $0x109] sm:$0xff] }
 0x754   : > { %v12744_v21 = vmul.f32 %v10108_v2, %v6308_v14  ;;  %v6376_v58 = vadd.f32 %v6581_v41, %v6311_v37  ;;  %v6377_v28 = vadd.f32 %v6582_v45, %v6312_v40  ;;  %v6378_v3 = vadd.f32 %v6583_v61, %v6313_v4  ;;  %v6605_v4 = vld [vmem:[%s10647_s16 + $0x139] sm:$0xff]  ;;  %v6609_v45 = vld [vmem:[%s10647_s16 + $0x169] sm:$0xff] }
 0x755   : > { %13234 = vst [vmem:[#allocation23_spill] sm:$0xff] %v12736_v12  ;;  %v6379_v20 = vadd.f32 %v6584_v22, %v6314_v36  ;;  %v6380_v54 = vadd.f32 %v6585_v38, %v6315_v44  ;;  %v6381_v43 = vadd.f32 %v6586_v50, %v6316_v48  ;;  %v6382_v47 = vadd.f32 %v6587_v18, %v6317_v24  ;;  %v6604_v12 = vld [vmem:[%s10647_s16 + $0x129] sm:$0xff]  ;;  %v6608_v36 = vld [vmem:[%s10647_s16 + $0x159] sm:$0xff]  ;;  %v6607_v44 = vld [vmem:[%s10647_s16 + $0x151] sm:$0xff] }
 0x756   : > { %v6383_v14 = vadd.f32 %v6588_v32, %v6318_v6  ;;  %v6384_v2 = vadd.f32 %v6589_v19, %v6319_v33  ;;  %v6385_v37 = vadd.f32 %v6590_v25, %v6320_v29  ;;  %v6386_v40 = vadd.f32 %v6591_v15, %v6321_v39  ;;  %6408 = vst [vmem:[%s12687_s26] sm:$0xff] %v6376_v58  ;;  %v6610_v29 = vld [vmem:[%s10647_s16 + $0x171] sm:$0xff]  ;;  %v6612_v41 = vld [vmem:[%s10647_s16 + $0x189] sm:$0xff] }
 0x757   : > { %6409 = vst [vmem:[%s12687_s26 + $0x8] sm:$0xff] %v6377_v28  ;;  %6410 = vst [vmem:[%s12687_s26 + $0x10] sm:$0xff] %v6378_v3  ;;  %v6387_v48 = vadd.f32 %v6592_v62, %v6322_v55  ;;  %v6388_v24 = vadd.f32 %v6593_v42, %v6323_v13  ;;  %v6389_v6 = vadd.f32 %v6594_v60, %v6324_v49 }
 0x758   : > { %v6390_v33 = vadd.f32 %v6595_v1, %v6325_v23  ;;  %6411 = vst [vmem:[%s12687_s26 + $0x18] sm:$0xff] %v6379_v20  ;;  %6412 = vst [vmem:[%s12687_s26 + $0x20] sm:$0xff] %v6380_v54  ;;  %v6391_v39 = vadd.f32 %v6596_v31, %v12690_v51  ;;  %v6392_v55 = vadd.f32 %v6597_v57, %v12692_v56 }
 0x759   : > { %6413 = vst [vmem:[%s12687_s26 + $0x28] sm:$0xff] %v6381_v43  ;;  %6414 = vst [vmem:[%s12687_s26 + $0x30] sm:$0xff] %v6382_v47  ;;  %v6393_v13 = vadd.f32 %v6598_v9, %v12694_v0  ;;  %v6394_v49 = vadd.f32 %v6599_v16, %v6329_v63  ;;  %v6395_v22 = vadd.f32 %v6600_v59, %v12700_v35 }
 0x75a   : > { %6415 = vst [vmem:[%s12687_s26 + $0x38] sm:$0xff] %v6383_v14  ;;  %6416 = vst [vmem:[%s12687_s26 + $0x40] sm:$0xff] %v6384_v2  ;;  %v6396_v61 = vadd.f32 %v6601_v53, %v12702_v34  ;;  %v6397_v50 = vadd.f32 %v6602_v7, %v12704_v8  ;;  %v6398_v38 = vadd.f32 %v6603_v30, %v6333_v11 }
 0x75b   : > { %6417 = vst [vmem:[%s12687_s26 + $0x48] sm:$0xff] %v6385_v37  ;;  %6418 = vst [vmem:[%s12687_s26 + $0x50] sm:$0xff] %v6386_v40  ;;  %v6399_v23 = vadd.f32 %v6604_v12, %v12709_v52  ;;  %v6400_v51 = vadd.f32 %v6605_v4, %v12711_v10  ;;  %v6401_v56 = vadd.f32 %v6606_v26, %v12713_v17 }
 0x75c   : > { %6419 = vst [vmem:[%s12687_s26 + $0x58] sm:$0xff] %v6387_v48  ;;  %6420 = vst [vmem:[%s12687_s26 + $0x60] sm:$0xff] %v6388_v24  ;;  %v6402_v0 = vadd.f32 %v6607_v44, %v12721_v5  ;;  %v6403_v32 = vadd.f32 %v6608_v36, %v12726_v27  ;;  %v6404_v18 = vadd.f32 %v6609_v45, %v12731_v46  ;;  %v13235_v25 = vld [vmem:[#allocation23_spill] sm:$0xff] }
 0x75d   : > { %6421 = vst [vmem:[%s12687_s26 + $0x68] sm:$0xff] %v6389_v6  ;;  %6422 = vst [vmem:[%s12687_s26 + $0x70] sm:$0xff] %v6390_v33  ;;  %v6405_v19 = vadd.f32 %v6610_v29, %v13235_v25  ;;  %v6407_v63 = vadd.f32 %v6612_v41, %v12744_v21 }
 0x75e   : > { %6423 = vst [vmem:[%s12687_s26 + $0x78] sm:$0xff] %v6391_v39  ;;  %6424 = vst [vmem:[%s12687_s26 + $0x80] sm:$0xff] %v6392_v55 }
 0x75f   : > { %6425 = vst [vmem:[%s12687_s26 + $0x88] sm:$0xff] %v6393_v13  ;;  %6426 = vst [vmem:[%s12687_s26 + $0x90] sm:$0xff] %v6394_v49 }
 0x760   : > { %6427 = vst [vmem:[%s12687_s26 + $0x98] sm:$0xff] %v6395_v22  ;;  %6428 = vst [vmem:[%s12687_s26 + $0xa0] sm:$0xff] %v6396_v61 }
 0x761   : > { %6429 = vst [vmem:[%s12687_s26 + $0xa8] sm:$0xff] %v6397_v50  ;;  %6430 = vst [vmem:[%s12687_s26 + $0xb0] sm:$0xff] %v6398_v38 }
 0x762   : > { %6431 = vst [vmem:[%s12687_s26 + $0xb8] sm:$0xff] %v6399_v23  ;;  %6432 = vst [vmem:[%s12687_s26 + $0xc0] sm:$0xff] %v6400_v51 }
 0x763   : > { %6433 = vst [vmem:[%s12687_s26 + $0xc8] sm:$0xff] %v6401_v56  ;;  %6434 = vst [vmem:[%s12687_s26 + $0xd0] sm:$0xff] %v6402_v0 }
 0x764   : > { %6435 = vst [vmem:[%s12687_s26 + $0xd8] sm:$0xff] %v6403_v32  ;;  %6436 = vst [vmem:[%s12687_s26 + $0xe0] sm:$0xff] %v6404_v18 }
 0x765   : > { %6437 = vst [vmem:[%s12687_s26 + $0xe8] sm:$0xff] %v6405_v19  ;;  %6439 = vst [vmem:[%s12687_s26 + $0xf8] sm:$0xff] %v6407_v63 }
 0x766   : > { %10320 = shalt.err (!%p10317_p13)
}
 0x767   : > { %s10321_s30 = scalar_lea.hbm %s12794_s17, 4096  ;;  %s10325_s16 = scalar_lea.hbm %s12863_s5, 8192 }
 0x768   : > { %p10322_p9 = scmp.ne.s32.totalorder %s12794_s17, %s10321_s30  ;;  %p10326_p6 = scmp.lt.u32.totalorder %s12794_s17, %s12863_s5 }
 0x769   : > { %p10327_p4 = scmp.lt.u32.totalorder %s10325_s16, %s10321_s30  ;;  %p10329_p3 = scmp.lt.u32.totalorder %s10321_s30, %s12794_s17 }
 0x76a   : > { %p10323_p0 = pnand %p10322_p9, %p10588_p10 }
 0x76b   : > { %p10328_p8 = por %p10327_p4, %p10326_p6 }
 0x76c   : > { %p10324_p11 = pneg %p10323_p0 }
 0x76d   : > { %p10330_p5 = por %p10329_p3, %p10328_p8 }
 0x76f   : > { %p10331_p7 = pnand %p10330_p5, %p10324_p11 }
 0x771   : > { %10334 = shalt.err (!%p10331_p7)
}
 0x772   : > { %s10391_s27 = smov 128   ;;  %s10392_s8 = smov 8  }
 0x773   : > { %10032 = dma.vmem_to_hbm [thread:$0]  (%p10588_p10), %s12798_s13, 4096, %s12794_s17, %s6441_s22, %s10391_s27, %s10391_s27, %s10392_s8  }
 0x774 PF: > { %s6469_s28 = sand.u32 1, %s10369_s18   ;;  %p13236_p12 = scmp.ne.s32.totalorder %s13031_s25, 0 }
 0x775   : > { %p13237_p1 = scmp.ge.s32.totalorder %s10381_s21, 2  ;;  %s6470_s11 = scalar_lea.sflag [#allocation5], %s6469_s28 }
 0x777   : > { %p10052_p2 = pnand %p13237_p1, %p13236_p12 }
 0x779   : > { %10364 = dma.done.wait (!%p10052_p2), %s6470_s11, 4096  }
 0x77a   : > { %10366 = vsyncadd (!%p10052_p2), %s6470_s11, 4294963200  ;;  %p20_p13 = scmp.ge.s32.totalorder %s10578_s14, 4   ;;  %s13238_s18 = smov %s10373_s19 }
 0x77b   : > { %s13239_s19 = smov %s10377_s20  ;;  %s13240_s20 = smov %s10594_s10 }
 0x77c   : > { %s13241_s21 = smov %s10578_s14  ;;  %22 = sbr.rel (!%p20_p13) target bundleno = 7 (0x7), region = 104 }
 0x783   :  { %6475 = vsyncpa [#allocation4], 1 }
 0x784   :  { %6477 = vsyncpa [#allocation4 + $0x1], 1 }
 0x785   :  { %6478 = vsyncpa [#allocation7], 1 }
 0x786   :  { %6479 = vsyncpa [#allocation10], 1 }
 0x787   :  { %6480 = vsyncpa [#allocation5], 1 }
 0x788   :  { %6482 = vsyncpa [#allocation5 + $0x1], 1 }

// kernel: tpu_custom_call.1
= control target key start
LH: loop header
LB: loop body
LE: loop exit
PB: predicated region body
PF: predicated region fallthrough
CT: control target
= control target key end

     0   :  { %10 = vsyncpa [#allocation4], 0  ;;  %s12858_s0 = inlined_call_operand.hbm [shape: f32[2,18,18,128], index: 0, kind: input, shape index: {}]   ;;  %s12859_s1 = inlined_call_operand.hbm [shape: f32[1152,128], index: 1, kind: input, shape index: {}]   ;;  %s12860_s2 = inlined_call_operand.hbm [shape: f32[1,128], index: 2, kind: input, shape index: {}]   ;;  %s12861_s3 = inlined_call_operand.hbm [shape: f32[1152,128], index: 3, kind: input, shape index: {}]   ;;  %s12862_s4 = inlined_call_operand.hbm [shape: f32[1,128], index: 4, kind: input, shape index: {}]   ;;  %s12863_s5 = inlined_call_operand.hbm [shape: f32[2,16,16,128], index: 5, kind: output, shape index: {}]  }
   0x1   :  { %12 = vsyncpa [#allocation4 + $0x1], 0 }
   0x2   :  { %13 = vsyncpa [#allocation7], 0 }
   0x3   :  { %14 = vsyncpa [#allocation10], 0 }
   0x4   :  { %15 = vsyncpa [#allocation5], 0 }
   0x5   :  { %17 = vsyncpa [#allocation5 + $0x1], 0  ;;  %s10423_s18 = smov 0   ;;  %s10425_s19 = smov 0  }
   0x6   :  { %s10427_s20 = smov 0   ;;  %s10429_s21 = smov 0  }
   0x7 LB: > { %s10444_s22 = sadd.s32 4294967295, %s10381_s21   ;;  %s6565_s23 = sadd.s32 4294967294, %s10381_s21   ;;  %s10381_s21 = sphi %s10429_s21, %s13241_s21   ;;  %s10377_s20 = sphi %s10427_s20, %s13240_s20   ;;  %s10373_s19 = sphi %s10425_s19, %s13239_s19   ;;  %s10369_s18 = sphi %s10423_s18, %s13238_s18  }
   0x8   : > { %p43_p0 = scmp.ne.s32.totalorder %s10373_s19, %s10369_s18  ;;  %p12864_p1 = scmp.eq.s32.totalorder %s10444_s22, 0 }
   0x9   : > { %p157_p3 = scmp.eq.s32.totalorder %s6565_s23, 1  ;;  %p6566_p5 = scmp.ge.s32.totalorder %s10381_s21, 1 }
   0xa   : > { %p10453_p4 = por %p12864_p1, %p43_p0  ;;  %p164_p7 = scmp.lt.s32.totalorder %s10381_s21, 3 }
   0xb   : > { %p10458_p6 = por %p157_p3, %p43_p0  ;;  %s10383_s27 = smov [#allocation6]  }
   0xc   : > { %s13030_s24 = scalar_select %p10453_p4, 1, 0 }
   0xd   : > { %s13031_s25 = scalar_select %p10458_p6, 1, 0 }
   0xe   : > { %p10463_p8 = pnand %p6566_p5, %p164_p7  ;;  %s176_s28 = sshll.u32 %s10383_s27, 4  ;;  %s10467_s28 = int_to_ptr.vmem [resolvable:$true] %s176_s28 }
   0xf   : > { %s10384_s30 = smov [#allocation9]   ;;  %s10385_s7 = smov [#allocation8]  }
  0x10   : > { %s13032_s26 = scalar_select %p10463_p8, 1, 0 }
  0x11   : > { %p10034_p9 = pneg %p10463_p8  ;;  %s200_s6 = sshll.u32 %s10384_s30, 4  ;;  %s10478_s6 = int_to_ptr.vmem [resolvable:$true] %s200_s6 }
  0x12   : > { %s10480_s8 = sshll.u32 %s10385_s7, 4  ;;  %s10165_s11 = scalar_lea.hbm %s12859_s1, 18432  ;;  %s191_s8 = int_to_ptr.vmem [resolvable:$true] %s10480_s8 }
  0x13   : > { %p10474_p11 = pnand %p10034_p9, %p12864_p1  ;;  %p10166_p12 = scmp.ne.s32.totalorder %s12859_s1, %s10165_s11 }
  0x14   : > { %p10172_p5 = scmp.lt.u32.totalorder %s10165_s11, %s12859_s1 }
  0x15   : > { %p10490_p13 = pneg %p10474_p11 }
  0x17   : > { %p10168_p0 = pnand %p10490_p13, %p10166_p12 }
  0x19   : > { %p10169_p3 = pneg %p10168_p0 }
  0x1b   : > { %p10174_p7 = pnand %p10172_p5, %p10169_p3 }
  0x1d   : > { %10177 = shalt.err (!%p10174_p7)
}
  0x1e   : > { %s10178_s17 = scalar_lea.vmem %s10467_s28, 18432  ;;  %p10186_p2 = scmp.lt.s32.totalorder %s10467_s28, %s10467_s28 }
  0x1f   : > { %p10179_p9 = scmp.ne.s32.totalorder %s10467_s28, %s10178_s17  ;;  %p10187_p6 = scmp.lt.s32.totalorder %s10178_s17, %s10178_s17 }
  0x21   : > { %p10181_p10 = pnand %p10179_p9, %p10490_p13  ;;  %p10188_p12 = por %p10187_p6, %p10186_p2 }
  0x23   : > { %p10182_p1 = pneg %p10181_p10 }
  0x25   : > { %p10189_p0 = pnand %p10188_p12, %p10182_p1 }
  0x27   : > { %10192 = shalt.err (!%p10189_p0)
}
  0x28   : > { %s12867_s23 = smov 128   ;;  %s10387_s27 = smov 8  }
  0x29   : > { %10037 = dma.hbm_to_vmem [thread:$0]  (!%p10474_p11), %s12859_s1, 18432, %s10467_s28, [#allocation7], %s12867_s23, %s12867_s23, %s10387_s27  }
  0x2a   : > { %s10193_s11 = scalar_lea.hbm %s12861_s3, 18432 }
  0x2b   : > { %p10194_p1 = scmp.ne.s32.totalorder %s12861_s3, %s10193_s11  ;;  %p10200_p10 = scmp.lt.u32.totalorder %s10193_s11, %s12861_s3 }
  0x2d   : > { %p10196_p2 = pnand %p10194_p1, %p10490_p13 }
  0x2f   : > { %p10197_p6 = pneg %p10196_p2 }
  0x31   : > { %p10202_p3 = pnand %p10200_p10, %p10197_p6 }
  0x33   : > { %10205 = shalt.err (!%p10202_p3)
}
  0x34   : > { %s10206_s28 = scalar_lea.vmem %s10478_s6, 18432  ;;  %p10214_p12 = scmp.lt.s32.totalorder %s10478_s6, %s10478_s6 }
  0x35   : > { %p10207_p5 = scmp.ne.s32.totalorder %s10478_s6, %s10206_s28  ;;  %p10215_p0 = scmp.lt.s32.totalorder %s10206_s28, %s10206_s28 }
  0x37   : > { %p10209_p7 = pnand %p10207_p5, %p10490_p13  ;;  %p10216_p1 = por %p10215_p0, %p10214_p12 }
  0x39   : > { %p10210_p9 = pneg %p10209_p7 }
  0x3b   : > { %p10217_p2 = pnand %p10216_p1, %p10210_p9 }
  0x3d   : > { %10220 = shalt.err (!%p10217_p2)
}
  0x3e   : > { %10043 = dma.hbm_to_vmem [thread:$0]  (!%p10474_p11), %s12861_s3, 18432, %s10478_s6, [#allocation10], %s12867_s23, %s12867_s23, %s10387_s27  }
  0x3f   : > { %s10221_s10 = scalar_lea.hbm %s12860_s2, 16 }
  0x40   : > { %p10222_p6 = scmp.ne.s32.totalorder %s12860_s2, %s10221_s10  ;;  %p10228_p5 = scmp.lt.u32.totalorder %s10221_s10, %s12860_s2 }
  0x42   : > { %p10224_p10 = pnand %p10222_p6, %p10490_p13 }
  0x44   : > { %p10225_p3 = pneg %p10224_p10 }
  0x46   : > { %p10230_p7 = pnand %p10228_p5, %p10225_p3 }
  0x48   : > { %10233 = shalt.err (!%p10230_p7)
}
  0x49   : > { %s10234_s16 = scalar_lea.vmem %s191_s8, 16  ;;  %s10241_s6 = scalar_lea.vmem %s191_s8, 32 }
  0x4a   : > { %p10235_p9 = scmp.ne.s32.totalorder %s191_s8, %s10234_s16  ;;  %p10242_p1 = scmp.lt.s32.totalorder %s191_s8, %s191_s8 }
  0x4b   : > { %p10243_p2 = scmp.lt.s32.totalorder %s10241_s6, %s10234_s16 }
  0x4c   : > { %p10237_p12 = pnand %p10235_p9, %p10490_p13 }
  0x4d   : > { %p10244_p4 = por %p10243_p2, %p10242_p1 }
  0x4e   : > { %p10238_p0 = pneg %p10237_p12 }
  0x50   : > { %p10245_p8 = pnand %p10244_p4, %p10238_p0 }
  0x52   : > { %10248 = shalt.err (!%p10245_p8)
}
  0x53   : > { %10040 = dma.hbm_to_vmem [thread:$0]  (!%p10474_p11), %s12860_s2, 16, %s191_s8, [#allocation7]  }
  0x54   : > { %s10388_s30 = smov [#allocation11]   ;;  %s10249_s11 = scalar_lea.hbm %s12862_s4, 16 }
  0x55   : > { %s214_s7 = sshll.u32 %s10388_s30, 4  ;;  %p10250_p6 = scmp.ne.s32.totalorder %s12862_s4, %s10249_s11  ;;  %s215_s7 = int_to_ptr.vmem [resolvable:$true] %s214_s7 }
  0x56   : > { %p10256_p10 = scmp.lt.u32.totalorder %s10249_s11, %s12862_s4 }
  0x57   : > { %p10252_p4 = pnand %p10250_p6, %p10490_p13 }
  0x59   : > { %p10253_p8 = pneg %p10252_p4 }
  0x5b   : > { %p10258_p3 = pnand %p10256_p10, %p10253_p8 }
  0x5d   : > { %10261 = shalt.err (!%p10258_p3)
}
  0x5e   : > { %s10262_s8 = scalar_lea.vmem %s215_s7, 16  ;;  %s10269_s6 = scalar_lea.vmem %s215_s7, 32 }
  0x5f   : > { %p10263_p5 = scmp.ne.s32.totalorder %s215_s7, %s10262_s8  ;;  %p10270_p12 = scmp.lt.s32.totalorder %s215_s7, %s215_s7 }
  0x60   : > { %p10271_p0 = scmp.lt.s32.totalorder %s10269_s6, %s10262_s8 }
  0x61   : > { %p10265_p7 = pnand %p10263_p5, %p10490_p13 }
  0x62   : > { %p10272_p1 = por %p10271_p0, %p10270_p12 }
  0x63   : > { %p10266_p9 = pneg %p10265_p7 }
  0x65   : > { %p10273_p2 = pnand %p10272_p1, %p10266_p9 }
  0x67   : > { %10276 = shalt.err (!%p10273_p2)
}
  0x68   : > { %10046 = dma.hbm_to_vmem [thread:$0]  (!%p10474_p11), %s12862_s4, 16, %s215_s7, [#allocation10]  }
  0x69   : > { %s10578_s14 = sadd.s32 1, %s10381_s21   ;;  %s30_s30 = sadd.s32 1, %s10377_s20 }
  0x6a   : > { %s27_s29 = ssub.s32 %s10381_s21, %s10578_s14  ;;  %p37_p13 = scmp.ne.s32.totalorder %s10377_s20, %s10373_s19 }
  0x6b   : > { %p28_p6 = scmp.eq.s32.totalorder %s27_s29, 0  ;;  %p38_p4 = scmp.eq.s32.totalorder %s10381_s21, 0 }
  0x6c   : > { %p13035_p8 = scmp.eq.s32.totalorder %s10444_s22, 1  ;;  %p10059_p3 = scmp.lt.s32.totalorder %s10381_s21, 2 }
  0x6d   : > { %s10594_s10 = scalar_select %p28_p6, %s10377_s20, %s30_s30  }
  0x6e   : > { %p10588_p10 = por %p13035_p8, %p37_p13  ;;  %p39_p5 = por %p38_p4, %p37_p13 }
  0x6f   : > { %s225_s11 = sand.u32 1, %s10377_s20   ;;  %s10012_s7 = smul.u32 6912, %s10381_s21 }
  0x70   : > { %s10011_s12 = smul.u32 432, %s225_s11  ;;  %p10598_p11 = pnand %p10059_p3, %p39_p5 }
  0x71   : > { %s10605_s8 = scalar_lea.hbm %s12858_s0, %s10012_s7  ;;  %s10609_s17 = scalar_lea.sflag [#allocation4], %s225_s11 }
  0x72   : > { %s229_s6 = scalar_lea.vmem [#allocation3], %s10011_s12  ;;  %s10277_s30 = scalar_lea.hbm %s10605_s8, 6912 }
  0x73   : > { %s236_s28 = sshll.u32 %s229_s6, 4  ;;  %p10278_p7 = scmp.ne.s32.totalorder %s10605_s8, %s10277_s30  ;;  %s10607_s28 = int_to_ptr.vmem [resolvable:$true] %s236_s28 }
  0x74   : > { %p10279_p9 = pneg %p10598_p11  ;;  %s10282_s15 = scalar_lea.hbm %s12858_s0, 13824 }
  0x75   : > { %p10283_p1 = scmp.lt.u32.totalorder %s10605_s8, %s12858_s0  ;;  %p10284_p2 = scmp.lt.u32.totalorder %s10282_s15, %s10277_s30 }
  0x76   : > { %p10280_p12 = pnand %p10279_p9, %p10278_p7  ;;  %p10286_p6 = scmp.lt.u32.totalorder %s10277_s30, %s10605_s8 }
  0x77   : > { %p10285_p13 = por %p10284_p2, %p10283_p1 }
  0x78   : > { %p10281_p0 = pneg %p10280_p12 }
  0x79   : > { %p10287_p4 = por %p10286_p6, %p10285_p13 }
  0x7b   : > { %p10288_p8 = pnand %p10287_p4, %p10281_p0 }
  0x7d   : > { %10291 = shalt.err (!%p10288_p8)
}
  0x7e   : > { %s10292_s11 = scalar_lea.vmem %s10607_s28, 6912  ;;  %s10389_s12 = smov [#allocation3]  }
  0x7f   : > { %p10293_p3 = scmp.ne.s32.totalorder %s10607_s28, %s10292_s11  ;;  %s10297_s6 = sshll.u32 %s10389_s12, 4  ;;  %s10298_s6 = int_to_ptr.vmem [resolvable:$false] %s10297_s6 }
  0x80   : > { %s10299_s23 = scalar_lea.vmem %s10298_s6, 13824  ;;  %p10300_p12 = scmp.lt.s32.totalorder %s10607_s28, %s10298_s6 }
  0x81   : > { %p10295_p5 = pnand %p10293_p3, %p10279_p9  ;;  %p10301_p1 = scmp.lt.s32.totalorder %s10299_s23, %s10292_s11 }
  0x83   : > { %p10296_p7 = pneg %p10295_p5  ;;  %p10302_p2 = por %p10301_p1, %p10300_p12 }
  0x85   : > { %p10303_p13 = pnand %p10302_p2, %p10296_p7 }
  0x87   : > { %10306 = shalt.err (!%p10303_p13)
}
  0x88   : > { %s13038_s30 = smov 128   ;;  %p13039_p9 = scmp.ne.s32.totalorder %s13032_s26, 0 }
  0x89   : > { %10050 = dma.hbm_to_vmem [thread:$0]  (!%p10598_p11), %s10605_s8, 6912, %s10607_s28, %s10609_s17, %s13038_s30, %s13038_s30, %s10387_s27  }
  0x8a   : > { %248 = sbr.rel (%p13039_p9) target bundleno = 1908 (0x774), region = 40 }
  0x91   : > { %s10643_s29 = sand.u32 1, %s10373_s19   ;;  %p13040_p0 = scmp.ne.s32.totalorder %s13030_s24, 0 }
  0x92   : > { %s10013_s7 = smul.u32 432, %s10643_s29  ;;  %s251_s15 = scalar_lea.sflag [#allocation4], %s10643_s29 }
  0x94   : > { %s10647_s16 = scalar_lea.vmem [#allocation3], %s10013_s7 }
  0x95   : > { %10352 = dma.done.wait (%p13040_p0), %s251_s15, 6912  }
  0x96   : > { %10354 = vsyncadd (%p13040_p0), %s251_s15, 4294960384  ;;  %p13041_p11 = scmp.eq.s32.totalorder %s10444_s22, 0 }
  0x98   : > { %10356 = dma.done.wait (%p13041_p11), [#allocation7], 18448   ;;  %p13042_p6 = pmov %p13041_p11 }
  0x9a   : > { %10358 = vsyncadd (%p13042_p6), [#allocation7], 4294948848  ;;  %p13043_p4 = pmov %p13042_p6 }
  0x9c   : > { %10360 = dma.done.wait (%p13043_p4), [#allocation10], 18448   ;;  %p13044_p8 = pmov %p13043_p4 }
  0x9d   : > { %v528_v0 = vld [vmem:[#allocation6 + $0x80] sm:$0xff]  ;;  %v529_v1 = vld [vmem:[#allocation6 + $0x88] sm:$0xff]  ;;  %v530_v2 = vld [vmem:[#allocation6 + $0x90] sm:$0xff]  ;;  %vm415_vm0 = vcmask 1046528   ;;  %vm994_vm1 = vcmask 1045504   ;;  %s6578_s24 = sshll.u32 %s10643_s29, 8 }
  0x9e   : > { %10362 = vsyncadd (%p13044_p8), [#allocation10], 4294948848  ;;  %v8923_v3 = vpack.c.bf16 %v529_v1, %v528_v0  ;;  %v531_v4 = vld [vmem:[#allocation6 + $0x98] sm:$0xff]  ;;  %v532_v6 = vld [vmem:[#allocation6 + $0xa0] sm:$0xff]  ;;  %s12687_s26 = scalar_lea.vmem [#allocation12], %s6578_s24  ;;  %s6618_s27 = sshll.u32 %s10444_s22, 12 }
  0x9f   : > { %v8927_v5 = vpack.c.bf16 %v531_v4, %v530_v2  ;;  %v533_v7 = vld [vmem:[#allocation6 + $0xa8] sm:$0xff]  ;;  %v10662_v9 = vld [vmem:[%s10647_s16] sm:$0xff]  ;;  %v535_v12 = vld [vmem:[#allocation6 + $0xb8] sm:$0xff]  ;;  %s6454_s13 = sshll.u32 %s12687_s26, 4  ;;  %s12794_s17 = scalar_lea.hbm %s12863_s5, %s6618_s27  ;;  %s12798_s13 = int_to_ptr.vmem [resolvable:$true] %s6454_s13 }
  0xa0   : > { %8924 = vmatprep.subr.bf16.mxu0 %v8923_v3  ;;  %v8931_v8 = vpack.c.bf16 %v533_v7, %v532_v6  ;;  %v10665_v10 = vld [vmem:[%s10647_s16 + $0x8] sm:$0xff]  ;;  %v534_v11 = vld [vmem:[#allocation6 + $0xb0] sm:$0xff]  ;;  %v416_v13 = vrot.slane %v10662_v9, 1  ;;  %v536_v17 = vld [vmem:[#allocation6 + $0xc0] sm:$0xff]  ;;  %s6441_s22 = scalar_lea.sflag [#allocation5], %s10643_s29  ;;  %s10307_s11 = scalar_lea.vmem %s12798_s13, 4096 }
  0xa1   : > { %8926 = vmatpush3.bf16.msra.mxu0 %v8923_v3  ;;  %v417_v14 = vrot.slane %v10665_v10, 1  ;;  %v8935_v16 = vpack.c.bf16 %v535_v12, %v534_v11  ;;  %v537_v18 = vld [vmem:[#allocation6 + $0xc8] sm:$0xff]  ;;  %v538_v20 = vld [vmem:[#allocation6 + $0xd0] sm:$0xff]  ;;  %v539_v21 = vld [vmem:[#allocation6 + $0xd8] sm:$0xff]  ;;  %p10308_p3 = scmp.ne.s32.totalorder %s12798_s13, %s10307_s11  ;;  %s10390_s12 = smov [#allocation12]  }
  0xa2   : > { %8928 = vmatprep.subr.bf16.mxu0 %v8927_v5  ;;  %v8939_v19 = vpack.c.bf16 %v537_v18, %v536_v17  ;;  %v8943_v22 = vpack.c.bf16 %v539_v21, %v538_v20  ;;  %v540_v23 = vld [vmem:[#allocation6 + $0xe0] sm:$0xff]  ;;  %v541_v24 = vld [vmem:[#allocation6 + $0xe8] sm:$0xff]  ;;  %v542_v26 = vld [vmem:[#allocation6 + $0xf0] sm:$0xff]  ;;  %s10311_s6 = sshll.u32 %s10390_s12, 4  ;;  %s10312_s6 = int_to_ptr.vmem [resolvable:$false] %s10311_s6 }
  0xa3   : > { %v418_v15 = vsel %vm415_vm0, %v416_v13, %v417_v14  ;;  %v8947_v25 = vpack.c.bf16 %v541_v24, %v540_v23  ;;  %v543_v27 = vld [vmem:[#allocation6 + $0xf8] sm:$0xff]  ;;  %v10671_v29 = vld [vmem:[%s10647_s16 + $0x10] sm:$0x3]  ;;  %v352_v31 = vld [vmem:[#allocation6 + $0x8] sm:$0xff]  ;;  %p10309_p5 = pnand %p10308_p3, %p10588_p10  ;;  %s10313_s23 = scalar_lea.vmem %s10312_s6, 8192 }
  0xa4   : > { %7515 = vmatprep.mubr.f32.mxu0 %v418_v15  ;;  %v8951_v28 = vpack.c.bf16 %v543_v27, %v542_v26  ;;  %v351_v30 = vld [vmem:[#allocation6] sm:$0xff]  ;;  %v10674_v32 = vld [vmem:[%s10647_s16 + $0x18] sm:$0xff]  ;;  %v419_v34 = vrot.slane %v10671_v29, 1  ;;  %v10683_v38 = vld [vmem:[%s10647_s16 + $0x28] sm:$0x3]  ;;  %p10314_p12 = scmp.lt.s32.totalorder %s12798_s13, %s10312_s6  ;;  %p10315_p1 = scmp.lt.s32.totalorder %s10313_s23, %s10307_s11 }
  0xa5   : > { %8930 = vmatpush3.bf16.msra.mxu0 %v8927_v5  ;;  %v10677_v33 = vld [vmem:[%s10647_s16 + $0x20] sm:$0xff]  ;;  %v8955_v35 = vpack.c.bf16 %v352_v31, %v351_v30  ;;  %v421_v36 = vrot.slane %v10674_v32, 1  ;;  %v10686_v39 = vld [vmem:[%s10647_s16 + $0x30] sm:$0xff]  ;;  %v10689_v40 = vld [vmem:[%s10647_s16 + $0x38] sm:$0xff]  ;;  %v424_v44 = vrot.slane %v10683_v38, 1  ;;  %p10310_p7 = pneg %p10309_p5 }
  0xa6   : > { %8932 = vmatprep.subr.bf16.mxu0 %v8931_v8  ;;  %v422_v37 = vrot.slane %v10677_v33, 1  ;;  %v353_v41 = vld [vmem:[#allocation6 + $0x10] sm:$0xff]  ;;  %v354_v42 = vld [vmem:[#allocation6 + $0x18] sm:$0xff]  ;;  %v420_v43 = vsel %vm415_vm0, %v417_v14, %v419_v34  ;;  %v426_v46 = vrot.slane %v10686_v39, 1  ;;  %v427_v47 = vrot.slane %v10689_v40, 1  ;;  %v355_v52 = vld [vmem:[#allocation6 + $0x20] sm:$0xff]  ;;  %p10316_p2 = por %p10315_p1, %p10314_p12 }
  0xa7   : > { %v10699_v48 = vld [vmem:[%s10647_s16 + $0x40] sm:$0x3]  ;;  %v8959_v49 = vpack.c.bf16 %v354_v42, %v353_v41  ;;  %v10702_v50 = vld [vmem:[%s10647_s16 + $0x48] sm:$0xff]  ;;  %v10705_v51 = vld [vmem:[%s10647_s16 + $0x50] sm:$0xff] }
  0xa8   : > { %v10694_v45 = vsel %vm415_vm0, %v421_v36, %v422_v37  ;;  %v356_v53 = vld [vmem:[#allocation6 + $0x28] sm:$0xff]  ;;  %v10709_v54 = vsel %vm415_vm0, %v422_v37, %v424_v44  ;;  %v429_v55 = vrot.slane %v10699_v48, 1  ;;  %v10713_v56 = vsel %vm415_vm0, %v426_v46, %v427_v47  ;;  %v10721_v60 = vld [vmem:[%s10647_s16 + $0x60] sm:$0xff]  ;;  %v358_v0 = vld [vmem:[#allocation6 + $0x38] sm:$0xff]  ;;  %p10317_p13 = pnand %p10316_p2, %p10310_p7 }
  0xa9   : > { %8934 = vmatpush3.bf16.msra.mxu0 %v8931_v8  ;;  %13045 = vst [vmem:[#allocation17_spill] sm:$0xff] %v10713_v56  ;;  %v431_v57 = vrot.slane %v10702_v50, 1  ;;  %v432_v58 = vrot.slane %v10705_v51, 1  ;;  %v10718_v59 = vld [vmem:[%s10647_s16 + $0x58] sm:$0x3]  ;;  %v8963_v61 = vpack.c.bf16 %v356_v53, %v355_v52  ;;  %v10724_v62 = vld [vmem:[%s10647_s16 + $0x68] sm:$0xff] }
  0xaa   : > { %8936 = vmatprep.subr.bf16.mxu0 %v8935_v16  ;;  %v357_v63 = vld [vmem:[#allocation6 + $0x30] sm:$0xff]  ;;  %v10729_v1 = vsel %vm415_vm0, %v427_v47, %v429_v55  ;;  %v434_v2 = vrot.slane %v10718_v59, 1  ;;  %v436_v4 = vrot.slane %v10721_v60, 1  ;;  %v437_v5 = vrot.slane %v10724_v62, 1  ;;  %v10741_v7 = vld [vmem:[%s10647_s16 + $0x78] sm:$0xff]  ;;  %v359_v12 = vld [vmem:[#allocation6 + $0x40] sm:$0xff] }
  0xab   : > { %13046 = vst [vmem:[#allocation18_spill] sm:$0xff] %v10729_v1  ;;  %v10733_v3 = vsel %vm415_vm0, %v431_v57, %v432_v58  ;;  %v10738_v6 = vld [vmem:[%s10647_s16 + $0x70] sm:$0x3]  ;;  %v8967_v8 = vpack.c.bf16 %v358_v0, %v357_v63  ;;  %v10744_v11 = vld [vmem:[%s10647_s16 + $0x80] sm:$0xff]  ;;  %v360_v13 = vld [vmem:[#allocation6 + $0x48] sm:$0xff]  ;;  %v441_v17 = vrot.slane %v10741_v7, 1 }
  0xac   : > { %13047 = vst [vmem:[#allocation19_spill] sm:$0xff] %v10733_v3  ;;  %v10749_v14 = vsel %vm415_vm0, %v432_v58, %v434_v2  ;;  %v439_v15 = vrot.slane %v10738_v6, 1  ;;  %v442_v18 = vrot.slane %v10744_v11, 1  ;;  %v10761_v20 = vld [vmem:[%s10647_s16 + $0x90] sm:$0xff]  ;;  %v8971_v21 = vpack.c.bf16 %v360_v13, %v359_v12  ;;  %v362_v24 = vld [vmem:[#allocation6 + $0x58] sm:$0xff]  ;;  %v364_v41 = vld [vmem:[#allocation6 + $0x68] sm:$0xff] }
  0xad   : > { %8938 = vmatpush3.bf16.msra.mxu0 %v8935_v16  ;;  %13048 = vst [vmem:[#allocation20_spill] sm:$0xff] %v10749_v14  ;;  %v10753_v16 = vsel %vm415_vm0, %v436_v4, %v437_v5  ;;  %v361_v23 = vld [vmem:[#allocation6 + $0x50] sm:$0xff]  ;;  %v10781_v34 = vld [vmem:[%s10647_s16 + $0xa8] sm:$0xff]  ;;  %v363_v37 = vld [vmem:[#allocation6 + $0x60] sm:$0xff] }
  0xae   : > { %8940 = vmatprep.subr.bf16.mxu0 %v8939_v19  ;;  %13049 = vst [vmem:[#allocation21_spill] sm:$0xff] %v10753_v16  ;;  %v10773_v27 = vsel %vm415_vm0, %v441_v17, %v442_v18  ;;  %v10778_v31 = vld [vmem:[%s10647_s16 + $0xa0] sm:$0x3]  ;;  %v10784_v36 = vld [vmem:[%s10647_s16 + $0xb0] sm:$0xff]  ;;  %v451_v46 = vrot.slane %v10781_v34, 1  ;;  %v8979_v53 = vpack.c.bf16 %v364_v41, %v363_v37  ;;  %v10804_v55 = vld [vmem:[%s10647_s16 + $0xc8] sm:$0xff] }
  0xaf   : > { %13051 = vst [vmem:[#allocation23_spill] sm:$0xff] %v10773_v27  ;;  %v452_v47 = vrot.slane %v10784_v36, 1  ;;  %v10801_v52 = vld [vmem:[%s10647_s16 + $0xc0] sm:$0xff]  ;;  %v366_v58 = vld [vmem:[#allocation6 + $0x78] sm:$0xff]  ;;  %v457_v4 = vrot.slane %v10804_v55, 1  ;;  %v1108_v17 = vld [vmem:[#allocation6 + $0x108] sm:$0xff] }
  0xb0   : > { %v365_v57 = vld [vmem:[#allocation6 + $0x70] sm:$0xff]  ;;  %v456_v2 = vrot.slane %v10801_v52, 1  ;;  %v10846_v37 = vld [vmem:[%s10647_s16 + $0xf8] sm:$0xff] }
  0xb1   : > { %8942 = vmatpush3.bf16.msra.mxu0 %v8939_v19  ;;  %v10758_v19 = vld [vmem:[%s10647_s16 + $0x88] sm:$0x3]  ;;  %v10813_v0 = vsel %vm415_vm0, %v451_v46, %v452_v47  ;;  %v8983_v12 = vpack.c.bf16 %v366_v58, %v365_v57  ;;  %v10824_v13 = vld [vmem:[%s10647_s16 + $0xe0] sm:$0xff] }
  0xb2   : > { %8944 = vmatprep.subr.bf16.mxu0 %v8943_v22  ;;  %v444_v26 = vrot.slane %v10758_v19, 1  ;;  %13055 = vst [vmem:[#allocation27_spill] sm:$0xff] %v10813_v0  ;;  %v10860_v57 = vld [vmem:[%s10647_s16 + $0x100] sm:$0x3]  ;;  %v10864_v58 = vld [vmem:[%s10647_s16 + $0x108] sm:$0xff] }
  0xb4   : > { %v10789_v42 = vsel %vm415_vm0, %v442_v18, %v444_v26  ;;  %v462_v26 = vrot.slane %v10824_v13, 1 }
  0xb5   : > { %8946 = vmatpush3.bf16.msra.mxu0 %v8943_v22  ;;  %v10764_v22 = vld [vmem:[%s10647_s16 + $0x98] sm:$0xff]  ;;  %13052 = vst [vmem:[#allocation24_spill] sm:$0xff] %v10789_v42 }
  0xb6   : > { %8948 = vmatprep.subr.bf16.mxu0 %v8947_v25  ;;  %v447_v30 = vrot.slane %v10764_v22, 1 }
  0xb9   : > { %8950 = vmatpush3.bf16.msra.mxu0 %v8947_v25  ;;  %v10769_v25 = vsel %vm415_vm0, %v437_v5, %v439_v15  ;;  %v10818_v5 = vld [vmem:[%s10647_s16 + $0xd0] sm:$0x3] }
  0xba   : > { %8952 = vmatprep.subr.bf16.mxu0 %v8951_v28  ;;  %13050 = vst [vmem:[#allocation22_spill] sm:$0xff] %v10769_v25  ;;  %v1107_v15 = vld [vmem:[#allocation6 + $0x100] sm:$0xff] }
  0xbd   : > { %8954 = vmatpush3.bf16.msra.mxu0 %v8951_v28  ;;  %v446_v28 = vrot.slane %v10761_v20, 1 }
  0xbe   : > { %8956 = vmatprep.subr.bf16.mxu0 %v8955_v35 }
  0xbf   : > { %v10793_v44 = vsel %vm415_vm0, %v446_v28, %v447_v30  ;;  %v10838_v28 = vld [vmem:[%s10647_s16 + $0xe8] sm:$0x3] }
  0xc0   : > { %7516 = vmatmul.mubr.f32.vlgmr.msra.gmra.mrb[0].mxu0 %v420_v43  ;;  %v449_v43 = vrot.slane %v10778_v31, 1  ;;  %13053 = vst [vmem:[#allocation25_spill] sm:$0xff] %v10793_v44 }
  0xc1   : > { %8958 = vmatpush3.bf16.msra.mxu0 %v8955_v35  ;;  %7518 = vmatprep.mubr.f32.mxu0 %v10694_v45  ;;  %v8975_v35 = vpack.c.bf16 %v362_v24, %v361_v23  ;;  %v10833_v23 = vsel %vm415_vm0, %v456_v2, %v457_v4 }
  0xc2   : > { %8960 = vmatprep.subr.bf16.mxu0 %v8959_v49  ;;  %13057 = vst [vmem:[#allocation29_spill] sm:$0xff] %v10833_v23 }
  0xc4   : > { %7519 = vmatmul.mubr.f32.gmra.mrb[2].mxu0 %v10709_v54 }
  0xc5   : > { %7521 = vmatprep.mubr.f32.mxu0 %v10713_v56  ;;  %8962 = vmatpush3.bf16.msra.mxu0 %v8959_v49  ;;  %v10798_v49 = vld [vmem:[%s10647_s16 + $0xb8] sm:$0x3] }
  0xc6   : > { %8964 = vmatprep.subr.bf16.mxu0 %v8963_v61  ;;  %v454_v63 = vrot.slane %v10798_v49, 1  ;;  %v1387_v56 = vld [vmem:[#allocation6 + $0x1b8] sm:$0xff] }
  0xc8   : > { %7522 = vmatmul.mubr.f32.gmra.mrb[4].mxu0 %v10729_v1  ;;  %v10829_v18 = vsel %vm415_vm0, %v452_v47, %v454_v63  ;;  %v10867_v63 = vld [vmem:[%s10647_s16 + $0x110] sm:$0xff]  ;;  %v1110_v1 = vld [vmem:[#allocation6 + $0x118] sm:$0xff] }
  0xc9   : > { %7524 = vmatprep.mubr.f32.mxu0 %v10733_v3  ;;  %8966 = vmatpush3.bf16.msra.mxu0 %v8963_v61  ;;  %v10809_v61 = vsel %vm415_vm0, %v447_v30, %v449_v43  ;;  %13056 = vst [vmem:[#allocation28_spill] sm:$0xff] %v10829_v18  ;;  %v10840_v30 = vpack.c.bf16 %v1108_v17, %v1107_v15  ;;  %v464_v43 = vrot.slane %v10838_v28, 1  ;;  %v471_v15 = vrot.slane %v10864_v58, 1  ;;  %v10961_v3 = vld [vmem:[%s10647_s16 + $0x178] sm:$0x3] }
  0xca   : > { %8968 = vmatprep.subr.bf16.mxu0 %v8967_v8  ;;  %13054 = vst [vmem:[#allocation26_spill] sm:$0xff] %v10809_v61  ;;  %v472_v17 = vrot.slane %v10867_v63, 1 }
  0xcb   : > { %v10872_v2 = vsel %vm415_vm0, %v462_v26, %v464_v43 }
  0xcc   : > { %7525 = vmatmul.mubr.f32.gmra.mrb[6].mxu0 %v10749_v14  ;;  %13060 = vst [vmem:[#allocation32_spill] sm:$0xff] %v10872_v2 }
  0xcd   : > { %7527 = vmatprep.mubr.f32.mxu0 %v10753_v16  ;;  %8970 = vmatpush3.bf16.msra.mxu0 %v8967_v8  ;;  %v10821_v8 = vld [vmem:[%s10647_s16 + $0xd8] sm:$0xff]  ;;  %v10944_v16 = vld [vmem:[%s10647_s16 + $0x168] sm:$0xff] }
  0xce   : > { %8972 = vmatprep.subr.bf16.mxu0 %v8971_v21  ;;  %v461_v24 = vrot.slane %v10821_v8, 1 }
  0xd0   : > { %7528 = vmatmul.mubr.f32.gmra.mrb[8].mxu0 %v10769_v25  ;;  %v10855_v46 = vsel %vm415_vm0, %v461_v24, %v462_v26  ;;  %v10884_v24 = vld [vmem:[%s10647_s16 + $0x120] sm:$0xff] }
  0xd1   : > { %7530 = vmatprep.mubr.f32.mxu0 %v10773_v27  ;;  %8974 = vmatpush3.bf16.msra.mxu0 %v8971_v21  ;;  %v459_v21 = vrot.slane %v10818_v5, 1  ;;  %13059 = vst [vmem:[#allocation31_spill] sm:$0xff] %v10855_v46  ;;  %v10941_v25 = vld [vmem:[%s10647_s16 + $0x160] sm:$0x3] }
  0xd2   : > { %8976 = vmatprep.subr.bf16.mxu0 %v8975_v35 }
  0xd3   : > { %v10851_v41 = vsel %vm415_vm0, %v457_v4, %v459_v21  ;;  %v469_v4 = vrot.slane %v10860_v57, 1  ;;  %v10881_v21 = vld [vmem:[%s10647_s16 + $0x118] sm:$0x3] }
  0xd4   : > { %7531 = vmatmul.mubr.f32.gmra.mrb[10].mxu0 %v10789_v42  ;;  %13058 = vst [vmem:[#allocation30_spill] sm:$0xff] %v10851_v41  ;;  %v474_v43 = vrot.slane %v10881_v21, 1 }
  0xd5   : > { %7533 = vmatprep.mubr.f32.mxu0 %v10793_v44  ;;  %8978 = vmatpush3.bf16.msra.mxu0 %v8975_v35  ;;  %v10843_v35 = vld [vmem:[%s10647_s16 + $0xf0] sm:$0xff]  ;;  %v10921_v44 = vld [vmem:[%s10647_s16 + $0x148] sm:$0x3] }
  0xd6   : > { %8980 = vmatprep.subr.bf16.mxu0 %v8979_v53  ;;  %v466_v47 = vrot.slane %v10843_v35, 1 }
  0xd8   : > { %7534 = vmatmul.mubr.f32.gmra.mrb[12].mxu0 %v10809_v61 }
  0xd9   : > { %7536 = vmatprep.mubr.f32.mxu0 %v10813_v0  ;;  %8982 = vmatpush3.bf16.msra.mxu0 %v8979_v53  ;;  %v467_v53 = vrot.slane %v10846_v37, 1 }
  0xda   : > { %8984 = vmatprep.subr.bf16.mxu0 %v8983_v12 }
  0xdb   : > { %v10892_v26 = vsel %vm415_vm0, %v467_v53, %v469_v4 }
  0xdc   : > { %7537 = vmatmul.mubr.f32.gmra.mrb[14].mxu0 %v10829_v18  ;;  %13062 = vst [vmem:[#allocation34_spill] sm:$0xff] %v10892_v26  ;;  %v10901_v18 = vld [vmem:[%s10647_s16 + $0x130] sm:$0x3] }
  0xdd   : > { %7539 = vmatprep.mubr.f32.mxu0 %v10833_v23  ;;  %8986 = vmatpush3.bf16.msra.mxu0 %v8983_v12  ;;  %v10876_v12 = vsel %vm415_vm0, %v466_v47, %v467_v53  ;;  %v10896_v47 = vsel %vm415_vm0, %v471_v15, %v472_v17  ;;  %v10912_v53 = vsel %vm415_vm0, %v472_v17, %v474_v43  ;;  %v479_v4 = vrot.slane %v10901_v18, 1 }
  0xde   : > { %8988 = vmatprep.subr.bf16.mxu0 %v10840_v30  ;;  %13061 = vst [vmem:[#allocation33_spill] sm:$0xff] %v10876_v12  ;;  %13063 = vst [vmem:[#allocation35_spill] sm:$0xff] %v10896_v47 }
  0xdf   : > { %13064 = vst [vmem:[#allocation36_spill] sm:$0xff] %v10912_v53 }
  0xe0   : > { %7540 = vmatmul.mubr.f32.gmra.mrb[16].mxu0 %v10851_v41  ;;  %v476_v41 = vrot.slane %v10884_v24, 1 }
  0xe1   : > { %7542 = vmatprep.mubr.f32.mxu0 %v10855_v46  ;;  %v10887_v46 = vld [vmem:[%s10647_s16 + $0x128] sm:$0xff] }
  0xe2   : > { %v477_v23 = vrot.slane %v10887_v46, 1 }
  0xe4   : > { %7543 = vmatmul.mubr.f32.gmra.mrb[18].mxu0 %v10872_v2  ;;  %v10904_v2 = vld [vmem:[%s10647_s16 + $0x138] sm:$0xff]  ;;  %v10916_v15 = vsel %vm415_vm0, %v476_v41, %v477_v23  ;;  %v10932_v17 = vsel %vm415_vm0, %v477_v23, %v479_v4  ;;  %v484_v41 = vrot.slane %v10921_v44, 1 }
  0xe5   : > { %7545 = vmatprep.mubr.f32.mxu0 %v10876_v12  ;;  %v10907_v12 = vld [vmem:[%s10647_s16 + $0x140] sm:$0xff]  ;;  %13065 = vst [vmem:[#allocation37_spill] sm:$0xff] %v10916_v15  ;;  %v481_v0 = vrot.slane %v10904_v2, 1  ;;  %13066 = vst [vmem:[#allocation38_spill] sm:$0xff] %v10932_v17 }
  0xe6   : > { %v482_v61 = vrot.slane %v10907_v12, 1 }
  0xe8   : > { %7546 = vmatmul.mubr.f32.gmra.mrb[20].mxu0 %v10892_v26  ;;  %v10924_v26 = vld [vmem:[%s10647_s16 + $0x150] sm:$0xff]  ;;  %v10936_v43 = vsel %vm415_vm0, %v481_v0, %v482_v61  ;;  %v10952_v23 = vsel %vm415_vm0, %v482_v61, %v484_v41  ;;  %v489_v0 = vrot.slane %v10941_v25, 1  ;;  %v494_v61 = vrot.slane %v10961_v3, 1 }
  0xe9   : > { %7548 = vmatprep.mubr.f32.mxu0 %v10896_v47  ;;  %v10927_v47 = vld [vmem:[%s10647_s16 + $0x158] sm:$0xff]  ;;  %13067 = vst [vmem:[#allocation39_spill] sm:$0xff] %v10936_v43  ;;  %v486_v42 = vrot.slane %v10924_v26, 1  ;;  %13068 = vst [vmem:[#allocation40_spill] sm:$0xff] %v10952_v23 }
  0xea   : > { %v487_v27 = vrot.slane %v10927_v47, 1 }
  0xec   : > { %7549 = vmatmul.mubr.f32.gmra.mrb[22].mxu0 %v10912_v53  ;;  %v10947_v53 = vld [vmem:[%s10647_s16 + $0x170] sm:$0xff]  ;;  %v10956_v4 = vsel %vm415_vm0, %v486_v42, %v487_v27 }
  0xed   : > { %7551 = vmatprep.mubr.f32.mxu0 %v10916_v15  ;;  %13069 = vst [vmem:[#allocation41_spill] sm:$0xff] %v10956_v4  ;;  %v491_v15 = vrot.slane %v10944_v16, 1  ;;  %v492_v14 = vrot.slane %v10947_v53, 1 }
  0xef   : > { %v10970_v41 = vsel %vm415_vm0, %v491_v15, %v492_v14  ;;  %v10975_v42 = vsel %vm415_vm0, %v492_v14, %v494_v61  ;;  %v1114_v14 = vld [vmem:[#allocation6 + $0x138] sm:$0xff] }
  0xf0   : > { %7552 = vmatmul.mubr.f32.gmra.mrb[24].mxu0 %v10932_v17  ;;  %13071 = vst [vmem:[#allocation43_spill] sm:$0xff] %v10970_v41  ;;  %13072 = vst [vmem:[#allocation44_spill] sm:$0xff] %v10975_v42  ;;  %v1109_v17 = vld [vmem:[#allocation6 + $0x110] sm:$0xff] }
  0xf1   : > { %7554 = vmatprep.mubr.f32.mxu0 %v10936_v43  ;;  %v10966_v43 = vsel %vm415_vm0, %v487_v27, %v489_v0  ;;  %v8991_v27 = vpack.c.bf16 %v1110_v1, %v1109_v17  ;;  %v1111_v0 = vld [vmem:[#allocation6 + $0x120] sm:$0xff]  ;;  %v1116_v17 = vld [vmem:[#allocation6 + $0x148] sm:$0xff] }
  0xf2   : > { %13070 = vst [vmem:[#allocation42_spill] sm:$0xff] %v10966_v43  ;;  %v1115_v1 = vld [vmem:[#allocation6 + $0x140] sm:$0xff] }
  0xf4   : > { %7555 = vmatmul.mubr.f32.gmra.mrb[26].mxu0 %v10952_v23  ;;  %v1385_v23 = vld [vmem:[#allocation6 + $0x1a8] sm:$0xff] }
  0xf5   : > { %7557 = vmatprep.mubr.f32.mxu0 %v10956_v4  ;;  %v1112_v4 = vld [vmem:[#allocation6 + $0x128] sm:$0xff] }
  0xf6   : > { %v8995_v15 = vpack.c.bf16 %v1112_v4, %v1111_v0  ;;  %v1118_v4 = vld [vmem:[#allocation6 + $0x158] sm:$0xff]  ;;  %v1119_v0 = vld [vmem:[#allocation6 + $0x160] sm:$0xff] }
  0xf8   : > { %7558 = vmatmul.mubr.f32.gmra.mrb[28].mxu0 %v10966_v43  ;;  %v1384_v43 = vld [vmem:[#allocation6 + $0x1a0] sm:$0xff] }
  0xf9   : > { %7560 = vmatprep.mubr.f32.mxu0 %v10970_v41  ;;  %v1113_v41 = vld [vmem:[#allocation6 + $0x130] sm:$0xff] }
  0xfa   : > { %v8999_v61 = vpack.c.bf16 %v1114_v14, %v1113_v41  ;;  %v1120_v41 = vld [vmem:[#allocation6 + $0x168] sm:$0xff]  ;;  %v1121_v14 = vld [vmem:[#allocation6 + $0x170] sm:$0xff] }
  0xfc   : > { %7561 = vmatmul.mubr.f32.gmra.mrb[30].mxu0 %v10975_v42  ;;  %v1117_v42 = vld [vmem:[#allocation6 + $0x150] sm:$0xff] }
  0xfd   : > { %7595 = vmatprep.mubr.f32.mxu0 %v10662_v9 }
 0x100   : > { %7596 = vmatmul.mubr.f32.vlgmr.msra.gmra.mrb[0].mxu0 %v10665_v10 }
 0x101   : > { %8990 = vmatpush3.bf16.msra.mxu0 %v10840_v30  ;;  %7598 = vmatprep.mubr.f32.mxu0 %v10674_v32  ;;  %v9003_v30 = vpack.c.bf16 %v1116_v17, %v1115_v1  ;;  %v1122_v1 = vld [vmem:[#allocation6 + $0x178] sm:$0xff]  ;;  %v1380_v17 = vld [vmem:[#allocation6 + $0x180] sm:$0xff] }
 0x102   : > { %8992 = vmatprep.subr.bf16.mxu0 %v8991_v27 }
 0x104   : > { %7599 = vmatmul.mubr.f32.gmra.mrb[2].mxu0 %v10677_v33 }
 0x105   : > { %7601 = vmatprep.mubr.f32.mxu0 %v10686_v39  ;;  %8994 = vmatpush3.bf16.msra.mxu0 %v8991_v27  ;;  %v9007_v27 = vpack.c.bf16 %v1118_v4, %v1117_v42  ;;  %v1381_v42 = vld [vmem:[#allocation6 + $0x188] sm:$0xff]  ;;  %v995_v4 = vrot.slane %v10662_v9, 2 }
 0x106   : > { %8996 = vmatprep.subr.bf16.mxu0 %v8995_v15 }
 0x108   : > { %7602 = vmatmul.mubr.f32.gmra.mrb[4].mxu0 %v10689_v40 }
 0x109   : > { %7604 = vmatprep.mubr.f32.mxu0 %v10702_v50  ;;  %8998 = vmatpush3.bf16.msra.mxu0 %v8995_v15  ;;  %v9011_v15 = vpack.c.bf16 %v1120_v41, %v1119_v0  ;;  %v998_v0 = vrot.slane %v10671_v29, 2  ;;  %v1005_v29 = vrot.slane %v10686_v39, 2 }
 0x10a   : > { %9000 = vmatprep.subr.bf16.mxu0 %v8999_v61 }
 0x10c   : > { %7605 = vmatmul.mubr.f32.gmra.mrb[6].mxu0 %v10705_v51 }
 0x10d   : > { %7607 = vmatprep.mubr.f32.mxu0 %v10721_v60  ;;  %9002 = vmatpush3.bf16.msra.mxu0 %v8999_v61  ;;  %v9015_v61 = vpack.c.bf16 %v1122_v1, %v1121_v14  ;;  %v1001_v14 = vrot.slane %v10677_v33, 2  ;;  %v1382_v1 = vld [vmem:[#allocation6 + $0x190] sm:$0xff] }
 0x10e   : > { %9004 = vmatprep.subr.bf16.mxu0 %v9003_v30 }
 0x110   : > { %7608 = vmatmul.mubr.f32.gmra.mrb[8].mxu0 %v10724_v62 }
 0x111   : > { %7610 = vmatprep.mubr.f32.mxu0 %v10741_v7  ;;  %9006 = vmatpush3.bf16.msra.mxu0 %v9003_v30  ;;  %v9019_v30 = vpack.c.bf16 %v1381_v42, %v1380_v17  ;;  %v1006_v42 = vrot.slane %v10689_v40, 2 }
 0x112   : > { %9008 = vmatprep.subr.bf16.mxu0 %v9007_v27 }
 0x114   : > { %7611 = vmatmul.mubr.f32.gmra.mrb[10].mxu0 %v10744_v11 }
 0x115   : > { %7613 = vmatprep.mubr.f32.mxu0 %v10761_v20  ;;  %9010 = vmatpush3.bf16.msra.mxu0 %v9007_v27  ;;  %v996_v27 = vrot.slane %v10665_v10, 2  ;;  %v1003_v10 = vrot.slane %v10683_v38, 2  ;;  %v11030_v38 = vsel %vm994_vm1, %v1005_v29, %v1006_v42  ;;  %v1389_v29 = vld [vmem:[#allocation6 + $0x1c8] sm:$0xff] }
 0x116   : > { %9012 = vmatprep.subr.bf16.mxu0 %v9011_v15  ;;  %13073 = vst [vmem:[#allocation45_spill] sm:$0xff] %v11030_v38 }
 0x117   : > { %v997_v41 = vsel %vm994_vm1, %v995_v4, %v996_v27  ;;  %v999_v9 = vsel %vm994_vm1, %v996_v27, %v998_v0  ;;  %v1008_v27 = vrot.slane %v10699_v48, 2  ;;  %v1010_v0 = vrot.slane %v10702_v50, 2 }
 0x118   : > { %7614 = vmatmul.mubr.f32.gmra.mrb[12].mxu0 %v10764_v22  ;;  %v1013_v48 = vrot.slane %v10718_v59, 2  ;;  %v1018_v59 = vrot.slane %v10738_v6, 2  ;;  %v1023_v6 = vrot.slane %v10758_v19, 2  ;;  %v1028_v19 = vrot.slane %v10778_v31, 2 }
 0x119   : > { %7616 = vmatprep.mubr.f32.mxu0 %v10781_v34  ;;  %9014 = vmatpush3.bf16.msra.mxu0 %v9011_v15  ;;  %v1000_v15 = vrot.slane %v10674_v32, 2  ;;  %v1033_v31 = vrot.slane %v10798_v49, 2  ;;  %v1038_v49 = vrot.slane %v10818_v5, 2 }
 0x11a   : > { %9016 = vmatprep.subr.bf16.mxu0 %v9015_v61 }
 0x11b   : > { %v11020_v17 = vsel %vm994_vm1, %v1000_v15, %v1001_v14  ;;  %v1011_v15 = vrot.slane %v10705_v51, 2 }
 0x11c   : > { %7617 = vmatmul.mubr.f32.gmra.mrb[14].mxu0 %v10784_v36 }
 0x11d   : > { %7619 = vmatprep.mubr.f32.mxu0 %v10801_v52  ;;  %9018 = vmatpush3.bf16.msra.mxu0 %v9015_v61  ;;  %v1383_v61 = vld [vmem:[#allocation6 + $0x198] sm:$0xff] }
 0x11e   : > { %9020 = vmatprep.subr.bf16.mxu0 %v9019_v30  ;;  %v9023_v4 = vpack.c.bf16 %v1383_v61, %v1382_v1  ;;  %v9027_v1 = vpack.c.bf16 %v1385_v23, %v1384_v43  ;;  %v1386_v61 = vld [vmem:[#allocation6 + $0x1b0] sm:$0xff]  ;;  %v1388_v23 = vld [vmem:[#allocation6 + $0x1c0] sm:$0xff] }
 0x11f   : > { %v9031_v43 = vpack.c.bf16 %v1387_v56, %v1386_v61  ;;  %v9035_v56 = vpack.c.bf16 %v1389_v29, %v1388_v23  ;;  %v1390_v61 = vld [vmem:[#allocation6 + $0x1d0] sm:$0xff]  ;;  %v1392_v29 = vld [vmem:[#allocation6 + $0x1e0] sm:$0xff] }
 0x120   : > { %7620 = vmatmul.mubr.f32.gmra.mrb[16].mxu0 %v10804_v55 }
 0x121   : > { %7622 = vmatprep.mubr.f32.mxu0 %v10821_v8 }
 0x124   : > { %7623 = vmatmul.mubr.f32.gmra.mrb[18].mxu0 %v10824_v13 }
 0x125   : > { %7625 = vmatprep.mubr.f32.mxu0 %v10843_v35 }
 0x128   : > { %7626 = vmatmul.mubr.f32.gmra.mrb[20].mxu0 %v10846_v37 }
 0x129   : > { %7628 = vmatprep.mubr.f32.mxu0 %v10864_v58 }
 0x12c   : > { %7629 = vmatmul.mubr.f32.gmra.mrb[22].mxu0 %v10867_v63 }
 0x12d   : > { %7631 = vmatprep.mubr.f32.mxu0 %v10884_v24 }
 0x130   : > { %7632 = vmatmul.mubr.f32.gmra.mrb[24].mxu0 %v10887_v46 }
 0x131   : > { %7634 = vmatprep.mubr.f32.mxu0 %v10904_v2 }
 0x134   : > { %7635 = vmatmul.mubr.f32.gmra.mrb[26].mxu0 %v10907_v12 }
 0x135   : > { %7637 = vmatprep.mubr.f32.mxu0 %v10924_v26 }
 0x138   : > { %7638 = vmatmul.mubr.f32.gmra.mrb[28].mxu0 %v10927_v47 }
 0x139   : > { %7640 = vmatprep.mubr.f32.mxu0 %v10944_v16 }
 0x13c   : > { %7641 = vmatmul.mubr.f32.gmra.mrb[30].mxu0 %v10947_v53 }
 0x13d   : > { %7675 = vmatprep.mubr.f32.mxu0 %v997_v41  ;;  %v11026_v41 = vsel %vm994_vm1, %v1001_v14, %v1003_v10  ;;  %v11041_v14 = vsel %vm994_vm1, %v1010_v0, %v1011_v15  ;;  %v1016_v10 = vrot.slane %v10724_v62, 2  ;;  %v1021_v0 = vrot.slane %v10744_v11, 2 }
 0x13e   : > { %13074 = vst [vmem:[#allocation46_spill] sm:$0xff] %v11041_v14 }
 0x140   : > { %7676 = vmatmul.mubr.f32.vlgmr.msra.gmra.mrb[0].mxu0 %v999_v9  ;;  %v1015_v9 = vrot.slane %v10721_v60, 2 }
 0x141   : > { %9022 = vmatpush3.bf16.msra.mxu0 %v9019_v30  ;;  %7678 = vmatprep.mubr.f32.mxu0 %v11020_v17  ;;  %v11037_v30 = vsel %vm994_vm1, %v1006_v42, %v1008_v27  ;;  %v11048_v42 = vsel %vm994_vm1, %v1011_v15, %v1013_v48  ;;  %v1020_v27 = vrot.slane %v10741_v7, 2  ;;  %v11059_v15 = vsel %vm994_vm1, %v1016_v10, %v1018_v59 }
 0x142   : > { %9024 = vmatprep.subr.bf16.mxu0 %v9023_v4  ;;  %v1025_v48 = vrot.slane %v10761_v20, 2  ;;  %v1030_v59 = vrot.slane %v10781_v34, 2 }
 0x144   : > { %7679 = vmatmul.mubr.f32.gmra.mrb[2].mxu0 %v11026_v41 }
 0x145   : > { %7681 = vmatprep.mubr.f32.mxu0 %v11030_v38  ;;  %9026 = vmatpush3.bf16.msra.mxu0 %v9023_v4  ;;  %v11052_v4 = vsel %vm994_vm1, %v1015_v9, %v1016_v10  ;;  %v1391_v38 = vld [vmem:[#allocation6 + $0x1d8] sm:$0xff]  ;;  %v1026_v9 = vrot.slane %v10764_v22, 2  ;;  %v11070_v10 = vsel %vm994_vm1, %v1021_v0, %v1023_v6  ;;  %v1035_v6 = vrot.slane %v10801_v52, 2 }
 0x146   : > { %9028 = vmatprep.subr.bf16.mxu0 %v9027_v1  ;;  %13075 = vst [vmem:[#allocation47_spill] sm:$0xff] %v11052_v4  ;;  %v9039_v23 = vpack.c.bf16 %v1391_v38, %v1390_v61  ;;  %v1394_v61 = vld [vmem:[#allocation6 + $0x1f0] sm:$0xff] }
 0x148   : > { %7682 = vmatmul.mubr.f32.gmra.mrb[4].mxu0 %v11037_v30 }
 0x149   : > { %7684 = vmatprep.mubr.f32.mxu0 %v11041_v14  ;;  %9030 = vmatpush3.bf16.msra.mxu0 %v9027_v1  ;;  %v11063_v1 = vsel %vm994_vm1, %v1020_v27, %v1021_v0  ;;  %v1393_v14 = vld [vmem:[#allocation6 + $0x1e8] sm:$0xff]  ;;  %v1031_v27 = vrot.slane %v10784_v36, 2  ;;  %v11081_v0 = vsel %vm994_vm1, %v1026_v9, %v1028_v19  ;;  %v1040_v19 = vrot.slane %v10821_v8, 2 }
 0x14a   : > { %9032 = vmatprep.subr.bf16.mxu0 %v9031_v43  ;;  %13076 = vst [vmem:[#allocation48_spill] sm:$0xff] %v11063_v1  ;;  %v9043_v38 = vpack.c.bf16 %v1393_v14, %v1392_v29  ;;  %v1663_v29 = vld [vmem:[#allocation6 + $0x200] sm:$0xff] }
 0x14c   : > { %7685 = vmatmul.mubr.f32.gmra.mrb[6].mxu0 %v11048_v42 }
 0x14d   : > { %7687 = vmatprep.mubr.f32.mxu0 %v11052_v4  ;;  %9034 = vmatpush3.bf16.msra.mxu0 %v9031_v43  ;;  %v11074_v43 = vsel %vm994_vm1, %v1025_v48, %v1026_v9  ;;  %v1395_v4 = vld [vmem:[#allocation6 + $0x1f8] sm:$0xff]  ;;  %v1036_v48 = vrot.slane %v10804_v55, 2  ;;  %v11092_v9 = vsel %vm994_vm1, %v1031_v27, %v1033_v31  ;;  %v1046_v31 = vrot.slane %v10846_v37, 2 }
 0x14e   : > { %9036 = vmatprep.subr.bf16.mxu0 %v9035_v56  ;;  %v9047_v14 = vpack.c.bf16 %v1395_v4, %v1394_v61 }
 0x14f   : > { %v11103_v61 = vsel %vm994_vm1, %v1036_v48, %v1038_v49  ;;  %v1053_v49 = vrot.slane %v10881_v21, 2  ;;  %v1060_v21 = vrot.slane %v10904_v2, 2 }
 0x150   : > { %7688 = vmatmul.mubr.f32.gmra.mrb[8].mxu0 %v11059_v15 }
 0x151   : > { %7690 = vmatprep.mubr.f32.mxu0 %v11063_v1  ;;  %9038 = vmatpush3.bf16.msra.mxu0 %v9035_v56  ;;  %v11085_v56 = vsel %vm994_vm1, %v1030_v59, %v1031_v27  ;;  %v1664_v1 = vld [vmem:[#allocation6 + $0x208] sm:$0xff]  ;;  %v1041_v59 = vrot.slane %v10824_v13, 2  ;;  %v1043_v27 = vrot.slane %v10838_v28, 2 }
 0x152   : > { %9040 = vmatprep.subr.bf16.mxu0 %v9039_v23  ;;  %v9051_v4 = vpack.c.bf16 %v1664_v1, %v1663_v29 }
 0x153   : > { %v11107_v5 = vsel %vm994_vm1, %v1040_v19, %v1041_v59  ;;  %v11114_v1 = vsel %vm994_vm1, %v1041_v59, %v1043_v27  ;;  %v1056_v59 = vrot.slane %v10887_v46, 2 }
 0x154   : > { %7691 = vmatmul.mubr.f32.gmra.mrb[10].mxu0 %v11070_v10 }
 0x155   : > { %7693 = vmatprep.mubr.f32.mxu0 %v11074_v43  ;;  %9042 = vmatpush3.bf16.msra.mxu0 %v9039_v23  ;;  %v11096_v23 = vsel %vm994_vm1, %v1035_v6, %v1036_v48  ;;  %v1048_v6 = vrot.slane %v10860_v57, 2  ;;  %v1050_v48 = vrot.slane %v10864_v58, 2  ;;  %v1055_v57 = vrot.slane %v10884_v24, 2 }
 0x156   : > { %9044 = vmatprep.subr.bf16.mxu0 %v9043_v38 }
 0x157   : > { %v11125_v29 = vsel %vm994_vm1, %v1046_v31, %v1048_v6  ;;  %v1061_v6 = vrot.slane %v10907_v12, 2 }
 0x158   : > { %7694 = vmatmul.mubr.f32.gmra.mrb[12].mxu0 %v11081_v0 }
 0x159   : > { %7696 = vmatprep.mubr.f32.mxu0 %v11085_v56  ;;  %9046 = vmatpush3.bf16.msra.mxu0 %v9043_v38  ;;  %v1045_v38 = vrot.slane %v10843_v35, 2 }
 0x15a   : > { %9048 = vmatprep.subr.bf16.mxu0 %v9047_v14 }
 0x15b   : > { %v11118_v28 = vsel %vm994_vm1, %v1045_v38, %v1046_v31  ;;  %v1058_v38 = vrot.slane %v10901_v18, 2  ;;  %v11140_v31 = vsel %vm994_vm1, %v1055_v57, %v1056_v59  ;;  %v1065_v18 = vrot.slane %v10924_v26, 2 }
 0x15c   : > { %7697 = vmatmul.mubr.f32.gmra.mrb[14].mxu0 %v11092_v9  ;;  %13078 = vst [vmem:[#allocation50_spill] sm:$0xff] %v11140_v31 }
 0x15d   : > { %7699 = vmatprep.mubr.f32.mxu0 %v11096_v23  ;;  %9050 = vmatpush3.bf16.msra.mxu0 %v9047_v14  ;;  %v1051_v14 = vrot.slane %v10867_v63, 2 }
 0x15e   : > { %9052 = vmatprep.subr.bf16.mxu0 %v9051_v4 }
 0x15f   : > { %v11129_v19 = vsel %vm994_vm1, %v1050_v48, %v1051_v14  ;;  %v11136_v27 = vsel %vm994_vm1, %v1051_v14, %v1053_v49  ;;  %v11147_v48 = vsel %vm994_vm1, %v1056_v59, %v1058_v38  ;;  %v11151_v14 = vsel %vm994_vm1, %v1060_v21, %v1061_v6 }
 0x160   : > { %7700 = vmatmul.mubr.f32.gmra.mrb[16].mxu0 %v11103_v61  ;;  %13077 = vst [vmem:[#allocation49_spill] sm:$0xff] %v11129_v19  ;;  %13079 = vst [vmem:[#allocation51_spill] sm:$0xff] %v11147_v48  ;;  %v1066_v49 = vrot.slane %v10927_v47, 2  ;;  %v1071_v38 = vrot.slane %v10947_v53, 2 }
 0x161   : > { %7702 = vmatprep.mubr.f32.mxu0 %v11107_v5  ;;  %13080 = vst [vmem:[#allocation52_spill] sm:$0xff] %v11151_v14 }
 0x162   : > { %v11162_v59 = vsel %vm994_vm1, %v1065_v18, %v1066_v49  ;;  %v1666_v18 = vld [vmem:[#allocation6 + $0x218] sm:$0xff] }
 0x163   : > { %13082 = vst [vmem:[#allocation54_spill] sm:$0xff] %v11162_v59 }
 0x164   : > { %7703 = vmatmul.mubr.f32.gmra.mrb[18].mxu0 %v11114_v1 }
 0x165   : > { %7705 = vmatprep.mubr.f32.mxu0 %v11118_v28 }
 0x168   : > { %7706 = vmatmul.mubr.f32.gmra.mrb[20].mxu0 %v11125_v29 }
 0x169   : > { %7708 = vmatprep.mubr.f32.mxu0 %v11129_v19  ;;  %v1063_v19 = vrot.slane %v10921_v44, 2  ;;  %v1070_v44 = vrot.slane %v10944_v16, 2 }
 0x16b   : > { %v11158_v57 = vsel %vm994_vm1, %v1061_v6, %v1063_v19  ;;  %v11173_v19 = vsel %vm994_vm1, %v1070_v44, %v1071_v38  ;;  %v1665_v6 = vld [vmem:[#allocation6 + $0x210] sm:$0xff] }
 0x16c   : > { %7709 = vmatmul.mubr.f32.gmra.mrb[22].mxu0 %v11136_v27  ;;  %13081 = vst [vmem:[#allocation53_spill] sm:$0xff] %v11158_v57  ;;  %13084 = vst [vmem:[#allocation56_spill] sm:$0xff] %v11173_v19  ;;  %v1669_v44 = vld [vmem:[#allocation6 + $0x230] sm:$0xff] }
 0x16d   : > { %7711 = vmatprep.mubr.f32.mxu0 %v11140_v31  ;;  %v1068_v31 = vrot.slane %v10941_v25, 2 }
 0x16f   : > { %v11169_v21 = vsel %vm994_vm1, %v1066_v49, %v1068_v31  ;;  %v9055_v31 = vpack.c.bf16 %v1666_v18, %v1665_v6  ;;  %v1667_v49 = vld [vmem:[#allocation6 + $0x220] sm:$0xff]  ;;  %v1944_v6 = vld [vmem:[#allocation6 + $0x288] sm:$0xff]  ;;  %v13092_v18 = vld [vmem:[#allocation23_spill] sm:$0xff] }
 0x170   : > { %7712 = vmatmul.mubr.f32.gmra.mrb[24].mxu0 %v11147_v48  ;;  %13083 = vst [vmem:[#allocation55_spill] sm:$0xff] %v11169_v21 }
 0x171   : > { %7714 = vmatprep.mubr.f32.mxu0 %v11151_v14  ;;  %v1073_v14 = vrot.slane %v10961_v3, 2 }
 0x173   : > { %v11178_v25 = vsel %vm994_vm1, %v1071_v38, %v1073_v14  ;;  %v1672_v38 = vld [vmem:[#allocation6 + $0x248] sm:$0xff] }
 0x174   : > { %7715 = vmatmul.mubr.f32.gmra.mrb[26].mxu0 %v11158_v57  ;;  %13085 = vst [vmem:[#allocation57_spill] sm:$0xff] %v11178_v25 }
 0x175   : > { %7717 = vmatprep.mubr.f32.mxu0 %v11162_v59  ;;  %v1668_v59 = vld [vmem:[#allocation6 + $0x228] sm:$0xff] }
 0x176   : > { %v9059_v3 = vpack.c.bf16 %v1668_v59, %v1667_v49  ;;  %v1676_v59 = vld [vmem:[#allocation6 + $0x268] sm:$0xff]  ;;  %v1955_v49 = vld [vmem:[#allocation6 + $0x2e0] sm:$0xff] }
 0x178   : > { %7718 = vmatmul.mubr.f32.gmra.mrb[28].mxu0 %v11169_v21 }
 0x179   : > { %7720 = vmatprep.mubr.f32.mxu0 %v11173_v19  ;;  %v1670_v19 = vld [vmem:[#allocation6 + $0x238] sm:$0xff] }
 0x17a   : > { %v9063_v14 = vpack.c.bf16 %v1670_v19, %v1669_v44  ;;  %v1678_v19 = vld [vmem:[#allocation6 + $0x278] sm:$0xff] }
 0x17b   : > { %v13093_v44 = vld [vmem:[#allocation24_spill] sm:$0xff] }
 0x17c   : > { %7721 = vmatmul.mubr.f32.gmra.mrb[30].mxu0 %v11178_v25 }
 0x17d   : > { %7755 = vmatprep.mubr.f32.mxu0 %v10674_v32  ;;  %v1671_v32 = vld [vmem:[#allocation6 + $0x240] sm:$0xff] }
 0x180   : > { %7756 = vmatmul.mubr.f32.vlgmr.msra.gmra.mrb[0].mxu0 %v10677_v33  ;;  %v9067_v33 = vpack.c.bf16 %v1672_v38, %v1671_v32  ;;  %v1957_v38 = vld [vmem:[#allocation6 + $0x2f0] sm:$0xff] }
 0x181   : > { %9054 = vmatpush3.bf16.msra.mxu0 %v9051_v4  ;;  %7758 = vmatprep.mubr.f32.mxu0 %v10686_v39  ;;  %v1673_v39 = vld [vmem:[#allocation6 + $0x250] sm:$0xff]  ;;  %v1674_v4 = vld [vmem:[#allocation6 + $0x258] sm:$0xff] }
 0x182   : > { %9056 = vmatprep.subr.bf16.mxu0 %v9055_v31 }
 0x184   : > { %7759 = vmatmul.mubr.f32.gmra.mrb[2].mxu0 %v10689_v40  ;;  %v9071_v40 = vpack.c.bf16 %v1674_v4, %v1673_v39  ;;  %v13095_v39 = vld [vmem:[#allocation26_spill] sm:$0xff]  ;;  %v13096_v4 = vld [vmem:[#allocation27_spill] sm:$0xff] }
 0x185   : > { %7761 = vmatprep.mubr.f32.mxu0 %v10702_v50  ;;  %9058 = vmatpush3.bf16.msra.mxu0 %v9055_v31  ;;  %v1675_v50 = vld [vmem:[#allocation6 + $0x260] sm:$0xff] }
 0x186   : > { %9060 = vmatprep.subr.bf16.mxu0 %v9059_v3 }
 0x188   : > { %7762 = vmatmul.mubr.f32.gmra.mrb[4].mxu0 %v10705_v51  ;;  %v9075_v51 = vpack.c.bf16 %v1676_v59, %v1675_v50  ;;  %v2216_v50 = vld [vmem:[#allocation6 + $0x300] sm:$0xff]  ;;  %v2217_v59 = vld [vmem:[#allocation6 + $0x308] sm:$0xff] }
 0x189   : > { %7764 = vmatprep.mubr.f32.mxu0 %v10721_v60  ;;  %9062 = vmatpush3.bf16.msra.mxu0 %v9059_v3  ;;  %v1677_v60 = vld [vmem:[#allocation6 + $0x270] sm:$0xff]  ;;  %v1956_v3 = vld [vmem:[#allocation6 + $0x2e8] sm:$0xff] }
 0x18a   : > { %9064 = vmatprep.subr.bf16.mxu0 %v9063_v14  ;;  %v9107_v32 = vpack.c.bf16 %v1956_v3, %v1955_v49  ;;  %v13114_v49 = vld [vmem:[#allocation44_spill] sm:$0xff] }
 0x18c   : > { %7765 = vmatmul.mubr.f32.gmra.mrb[6].mxu0 %v10724_v62  ;;  %v9079_v62 = vpack.c.bf16 %v1678_v19, %v1677_v60  ;;  %v13098_v60 = vld [vmem:[#allocation29_spill] sm:$0xff]  ;;  %v9115_v19 = vpack.c.bf16 %v2217_v59, %v2216_v50 }
 0x18d   : > { %7767 = vmatprep.mubr.f32.mxu0 %v10741_v7  ;;  %9066 = vmatpush3.bf16.msra.mxu0 %v9063_v14  ;;  %v1943_v7 = vld [vmem:[#allocation6 + $0x280] sm:$0xff]  ;;  %v2221_v50 = vld [vmem:[#allocation6 + $0x328] sm:$0xff] }
 0x18e   : > { %9068 = vmatprep.subr.bf16.mxu0 %v9067_v33  ;;  %v13094_v14 = vld [vmem:[#allocation25_spill] sm:$0xff] }
 0x18f   : > { %v13115_v59 = vld [vmem:[#allocation45_spill] sm:$0xff] }
 0x190   : > { %7768 = vmatmul.mubr.f32.gmra.mrb[8].mxu0 %v10744_v11  ;;  %v9083_v11 = vpack.c.bf16 %v1944_v6, %v1943_v7  ;;  %v13100_v7 = vld [vmem:[#allocation31_spill] sm:$0xff]  ;;  %v13101_v6 = vld [vmem:[#allocation32_spill] sm:$0xff] }
 0x191   : > { %7770 = vmatprep.mubr.f32.mxu0 %v10761_v20  ;;  %9070 = vmatpush3.bf16.msra.mxu0 %v9067_v33  ;;  %v11211_v20 = vld [vmem:[%s10647_s16 + $0x180] sm:$0xff]  ;;  %v1958_v33 = vld [vmem:[#allocation6 + $0x2f8] sm:$0xff] }
 0x192   : > { %9072 = vmatprep.subr.bf16.mxu0 %v9071_v40 }
 0x194   : > { %7771 = vmatmul.mubr.f32.gmra.mrb[10].mxu0 %v10764_v22  ;;  %v11216_v22 = vld [vmem:[%s10647_s16 + $0x188] sm:$0xff] }
 0x195   : > { %7773 = vmatprep.mubr.f32.mxu0 %v10781_v34  ;;  %9074 = vmatpush3.bf16.msra.mxu0 %v9071_v40  ;;  %v1945_v34 = vld [vmem:[#allocation6 + $0x290] sm:$0xff]  ;;  %v9111_v40 = vpack.c.bf16 %v1958_v33, %v1957_v38  ;;  %v2219_v38 = vld [vmem:[#allocation6 + $0x318] sm:$0xff] }
 0x196   : > { %9076 = vmatprep.subr.bf16.mxu0 %v9075_v51 }
 0x198   : > { %7774 = vmatmul.mubr.f32.gmra.mrb[12].mxu0 %v10784_v36  ;;  %v1946_v36 = vld [vmem:[#allocation6 + $0x298] sm:$0xff] }
 0x199   : > { %7776 = vmatprep.mubr.f32.mxu0 %v10801_v52  ;;  %9078 = vmatpush3.bf16.msra.mxu0 %v9075_v51  ;;  %v9087_v52 = vpack.c.bf16 %v1946_v36, %v1945_v34  ;;  %v13097_v51 = vld [vmem:[#allocation28_spill] sm:$0xff]  ;;  %v13103_v34 = vld [vmem:[#allocation34_spill] sm:$0xff]  ;;  %v13104_v36 = vld [vmem:[#allocation35_spill] sm:$0xff] }
 0x19a   : > { %9080 = vmatprep.subr.bf16.mxu0 %v9079_v62 }
 0x19c   : > { %7777 = vmatmul.mubr.f32.gmra.mrb[14].mxu0 %v10804_v55  ;;  %v1947_v55 = vld [vmem:[#allocation6 + $0x2a0] sm:$0xff] }
 0x19d   : > { %7779 = vmatprep.mubr.f32.mxu0 %v10821_v8  ;;  %9082 = vmatpush3.bf16.msra.mxu0 %v9079_v62  ;;  %v1948_v8 = vld [vmem:[#allocation6 + $0x2a8] sm:$0xff] }
 0x19e   : > { %9084 = vmatprep.subr.bf16.mxu0 %v9083_v11  ;;  %v13099_v62 = vld [vmem:[#allocation30_spill] sm:$0xff] }
 0x1a0   : > { %7780 = vmatmul.mubr.f32.gmra.mrb[16].mxu0 %v10824_v13  ;;  %v9091_v13 = vpack.c.bf16 %v1948_v8, %v1947_v55  ;;  %v13106_v55 = vld [vmem:[#allocation37_spill] sm:$0xff]  ;;  %v13107_v8 = vld [vmem:[#allocation38_spill] sm:$0xff] }
 0x1a1   : > { %7782 = vmatprep.mubr.f32.mxu0 %v10843_v35  ;;  %v1949_v35 = vld [vmem:[#allocation6 + $0x2b0] sm:$0xff] }
 0x1a4   : > { %7783 = vmatmul.mubr.f32.gmra.mrb[18].mxu0 %v10846_v37  ;;  %v1950_v37 = vld [vmem:[#allocation6 + $0x2b8] sm:$0xff] }
 0x1a5   : > { %7785 = vmatprep.mubr.f32.mxu0 %v10864_v58  ;;  %v13088_v58 = vld [vmem:[#allocation19_spill] sm:$0xff] }
 0x1a8   : > { %7786 = vmatmul.mubr.f32.gmra.mrb[20].mxu0 %v10867_v63  ;;  %v9095_v63 = vpack.c.bf16 %v1950_v37, %v1949_v35  ;;  %v13109_v35 = vld [vmem:[#allocation40_spill] sm:$0xff]  ;;  %v13110_v37 = vld [vmem:[#allocation41_spill] sm:$0xff] }
 0x1a9   : > { %7788 = vmatprep.mubr.f32.mxu0 %v10884_v24  ;;  %v13090_v24 = vld [vmem:[#allocation21_spill] sm:$0xff] }
 0x1ac   : > { %7789 = vmatmul.mubr.f32.gmra.mrb[22].mxu0 %v10887_v46  ;;  %v13087_v46 = vld [vmem:[#allocation18_spill] sm:$0xff] }
 0x1ad   : > { %7791 = vmatprep.mubr.f32.mxu0 %v10904_v2  ;;  %v1952_v2 = vld [vmem:[#allocation6 + $0x2c8] sm:$0xff] }
 0x1b0   : > { %7792 = vmatmul.mubr.f32.gmra.mrb[24].mxu0 %v10907_v12  ;;  %v13089_v12 = vld [vmem:[#allocation20_spill] sm:$0xff] }
 0x1b1   : > { %7794 = vmatprep.mubr.f32.mxu0 %v10924_v26  ;;  %v1953_v26 = vld [vmem:[#allocation6 + $0x2d0] sm:$0xff] }
 0x1b4   : > { %7795 = vmatmul.mubr.f32.gmra.mrb[26].mxu0 %v10927_v47  ;;  %v1954_v47 = vld [vmem:[#allocation6 + $0x2d8] sm:$0xff] }
 0x1b5   : > { %7797 = vmatprep.mubr.f32.mxu0 %v10944_v16  ;;  %v13086_v16 = vld [vmem:[#allocation17_spill] sm:$0xff]  ;;  %v9103_v31 = vpack.c.bf16 %v1954_v47, %v1953_v26  ;;  %v13112_v26 = vld [vmem:[#allocation43_spill] sm:$0xff] }
 0x1b8   : > { %7798 = vmatmul.mubr.f32.gmra.mrb[28].mxu0 %v10947_v53  ;;  %v13091_v53 = vld [vmem:[#allocation22_spill] sm:$0xff] }
 0x1b9   : > { %7800 = vmatprep.mubr.f32.mxu0 %v11211_v20 }
 0x1bc   : > { %7801 = vmatmul.mubr.f32.gmra.mrb[30].mxu0 %v11216_v22 }
 0x1bd   : > { %7835 = vmatprep.mubr.f32.mxu0 %v10694_v45  ;;  %v1951_v45 = vld [vmem:[#allocation6 + $0x2c0] sm:$0xff] }
 0x1c0   : > { %7836 = vmatmul.mubr.f32.vlgmr.msra.gmra.mrb[0].mxu0 %v10709_v54  ;;  %v9099_v54 = vpack.c.bf16 %v1952_v2, %v1951_v45  ;;  %v1657_v45 = vrot.slane %v11216_v22, 1  ;;  %v11249_v2 = vld [vmem:[%s10647_s16 + $0x190] sm:$0x3] }
 0x1c1   : > { %9086 = vmatpush3.bf16.msra.mxu0 %v9083_v11  ;;  %7838 = vmatprep.mubr.f32.mxu0 %v13086_v16  ;;  %v13102_v11 = vld [vmem:[#allocation33_spill] sm:$0xff]  ;;  %v1659_v47 = vrot.slane %v11249_v2, 1 }
 0x1c2   : > { %9088 = vmatprep.subr.bf16.mxu0 %v9087_v52 }
 0x1c3   : > { %v11260_v3 = vsel %vm415_vm0, %v1657_v45, %v1659_v47 }
 0x1c4   : > { %7839 = vmatmul.mubr.f32.gmra.mrb[2].mxu0 %v13087_v46 }
 0x1c5   : > { %7841 = vmatprep.mubr.f32.mxu0 %v13088_v58  ;;  %9090 = vmatpush3.bf16.msra.mxu0 %v9087_v52  ;;  %v13105_v52 = vld [vmem:[#allocation36_spill] sm:$0xff] }
 0x1c6   : > { %9092 = vmatprep.subr.bf16.mxu0 %v9091_v13 }
 0x1c8   : > { %7842 = vmatmul.mubr.f32.gmra.mrb[4].mxu0 %v13089_v12 }
 0x1c9   : > { %7844 = vmatprep.mubr.f32.mxu0 %v13090_v24  ;;  %9094 = vmatpush3.bf16.msra.mxu0 %v9091_v13  ;;  %v13108_v13 = vld [vmem:[#allocation39_spill] sm:$0xff] }
 0x1ca   : > { %9096 = vmatprep.subr.bf16.mxu0 %v9095_v63 }
 0x1cc   : > { %7845 = vmatmul.mubr.f32.gmra.mrb[6].mxu0 %v13091_v53 }
 0x1cd   : > { %7847 = vmatprep.mubr.f32.mxu0 %v13092_v18  ;;  %9098 = vmatpush3.bf16.msra.mxu0 %v9095_v63  ;;  %v1656_v63 = vrot.slane %v11211_v20, 1 }
 0x1ce   : > { %9100 = vmatprep.subr.bf16.mxu0 %v9099_v54 }
 0x1d0   : > { %7848 = vmatmul.mubr.f32.gmra.mrb[8].mxu0 %v13093_v44 }
 0x1d1   : > { %7850 = vmatprep.mubr.f32.mxu0 %v13094_v14  ;;  %9102 = vmatpush3.bf16.msra.mxu0 %v9099_v54  ;;  %v13111_v54 = vld [vmem:[#allocation42_spill] sm:$0xff] }
 0x1d2   : > { %9104 = vmatprep.subr.bf16.mxu0 %v9103_v31 }
 0x1d4   : > { %7851 = vmatmul.mubr.f32.gmra.mrb[10].mxu0 %v13095_v39 }
 0x1d5   : > { %7853 = vmatprep.mubr.f32.mxu0 %v13096_v4  ;;  %9106 = vmatpush3.bf16.msra.mxu0 %v9103_v31  ;;  %v11255_v31 = vsel %vm415_vm0, %v1656_v63, %v1657_v45  ;;  %v13116_v45 = vld [vmem:[#allocation46_spill] sm:$0xff] }
 0x1d6   : > { %9108 = vmatprep.subr.bf16.mxu0 %v9107_v32  ;;  %13113 = vst [vmem:[#allocation17_spill] sm:$0xff] %v11255_v31 }
 0x1d8   : > { %7854 = vmatmul.mubr.f32.gmra.mrb[12].mxu0 %v13097_v51 }
 0x1d9   : > { %7856 = vmatprep.mubr.f32.mxu0 %v13098_v60  ;;  %9110 = vmatpush3.bf16.msra.mxu0 %v9107_v32  ;;  %v2218_v32 = vld [vmem:[#allocation6 + $0x310] sm:$0xff] }
 0x1da   : > { %9112 = vmatprep.subr.bf16.mxu0 %v9111_v40  ;;  %v9119_v33 = vpack.c.bf16 %v2219_v38, %v2218_v32  ;;  %v2225_v32 = vld [vmem:[#allocation6 + $0x348] sm:$0xff]  ;;  %v13117_v38 = vld [vmem:[#allocation47_spill] sm:$0xff] }
 0x1dc   : > { %7857 = vmatmul.mubr.f32.gmra.mrb[14].mxu0 %v13099_v62 }
 0x1dd   : > { %7859 = vmatprep.mubr.f32.mxu0 %v13100_v7  ;;  %9114 = vmatpush3.bf16.msra.mxu0 %v9111_v40  ;;  %v2220_v40 = vld [vmem:[#allocation6 + $0x320] sm:$0xff] }
 0x1de   : > { %9116 = vmatprep.subr.bf16.mxu0 %v9115_v19  ;;  %v9123_v63 = vpack.c.bf16 %v2221_v50, %v2220_v40  ;;  %v2227_v40 = vld [vmem:[#allocation6 + $0x358] sm:$0xff] }
 0x1df   : > { %v13118_v50 = vld [vmem:[#allocation48_spill] sm:$0xff] }
 0x1e0   : > { %7860 = vmatmul.mubr.f32.gmra.mrb[16].mxu0 %v13101_v6 }
 0x1e1   : > { %7862 = vmatprep.mubr.f32.mxu0 %v13102_v11 }
 0x1e4   : > { %7863 = vmatmul.mubr.f32.gmra.mrb[18].mxu0 %v13103_v34 }
 0x1e5   : > { %7865 = vmatprep.mubr.f32.mxu0 %v13104_v36 }
 0x1e8   : > { %7866 = vmatmul.mubr.f32.gmra.mrb[20].mxu0 %v13105_v52 }
 0x1e9   : > { %7868 = vmatprep.mubr.f32.mxu0 %v13106_v55 }
 0x1ec   : > { %7869 = vmatmul.mubr.f32.gmra.mrb[22].mxu0 %v13107_v8 }
 0x1ed   : > { %7871 = vmatprep.mubr.f32.mxu0 %v13108_v13 }
 0x1f0   : > { %7872 = vmatmul.mubr.f32.gmra.mrb[24].mxu0 %v13109_v35 }
 0x1f1   : > { %7874 = vmatprep.mubr.f32.mxu0 %v13110_v37 }
 0x1f4   : > { %7875 = vmatmul.mubr.f32.gmra.mrb[26].mxu0 %v13111_v54 }
 0x1f5   : > { %7877 = vmatprep.mubr.f32.mxu0 %v13112_v26 }
 0x1f8   : > { %7878 = vmatmul.mubr.f32.gmra.mrb[28].mxu0 %v13114_v49  ;;  %v2223_v49 = vld [vmem:[#allocation6 + $0x338] sm:$0xff] }
 0x1f9   : > { %7880 = vmatprep.mubr.f32.mxu0 %v11255_v31  ;;  %v2222_v31 = vld [vmem:[#allocation6 + $0x330] sm:$0xff] }
 0x1fa   : > { %v9127_v47 = vpack.c.bf16 %v2223_v49, %v2222_v31  ;;  %v2229_v31 = vld [vmem:[#allocation6 + $0x368] sm:$0xff] }
 0x1fc   : > { %7881 = vmatmul.mubr.f32.gmra.mrb[30].mxu0 %v11260_v3 }
 0x1fd   : > { %7915 = vmatprep.mubr.f32.mxu0 %v11020_v17  ;;  %v2224_v17 = vld [vmem:[#allocation6 + $0x340] sm:$0xff] }
 0x200   : > { %7916 = vmatmul.mubr.f32.vlgmr.msra.gmra.mrb[0].mxu0 %v11026_v41  ;;  %v9131_v41 = vpack.c.bf16 %v2225_v32, %v2224_v17  ;;  %v2231_v17 = vld [vmem:[#allocation6 + $0x378] sm:$0xff]  ;;  %v2499_v32 = vld [vmem:[#allocation6 + $0x380] sm:$0xff] }
 0x201   : > { %9118 = vmatpush3.bf16.msra.mxu0 %v9115_v19  ;;  %7918 = vmatprep.mubr.f32.mxu0 %v13115_v59  ;;  %v2226_v19 = vld [vmem:[#allocation6 + $0x350] sm:$0xff] }
 0x202   : > { %9120 = vmatprep.subr.bf16.mxu0 %v9119_v33 }
 0x204   : > { %7919 = vmatmul.mubr.f32.gmra.mrb[2].mxu0 %v11037_v30 }
 0x205   : > { %7921 = vmatprep.mubr.f32.mxu0 %v13116_v45  ;;  %9122 = vmatpush3.bf16.msra.mxu0 %v9119_v33  ;;  %v9135_v33 = vpack.c.bf16 %v2227_v40, %v2226_v19  ;;  %v2228_v45 = vld [vmem:[#allocation6 + $0x360] sm:$0xff]  ;;  %v2500_v19 = vld [vmem:[#allocation6 + $0x388] sm:$0xff] }
 0x206   : > { %9124 = vmatprep.subr.bf16.mxu0 %v9123_v63  ;;  %v9139_v49 = vpack.c.bf16 %v2229_v31, %v2228_v45  ;;  %v13119_v45 = vld [vmem:[#allocation49_spill] sm:$0xff]  ;;  %v13120_v40 = vld [vmem:[#allocation50_spill] sm:$0xff] }
 0x207   : > { %v13122_v31 = vld [vmem:[#allocation54_spill] sm:$0xff] }
 0x208   : > { %7922 = vmatmul.mubr.f32.gmra.mrb[4].mxu0 %v11048_v42 }
 0x209   : > { %7924 = vmatprep.mubr.f32.mxu0 %v13117_v38  ;;  %9126 = vmatpush3.bf16.msra.mxu0 %v9123_v63  ;;  %v2230_v63 = vld [vmem:[#allocation6 + $0x370] sm:$0xff] }
 0x20a   : > { %9128 = vmatprep.subr.bf16.mxu0 %v9127_v47 }
 0x20c   : > { %7925 = vmatmul.mubr.f32.gmra.mrb[6].mxu0 %v11059_v15 }
 0x20d   : > { %7927 = vmatprep.mubr.f32.mxu0 %v13118_v50  ;;  %9130 = vmatpush3.bf16.msra.mxu0 %v9127_v47  ;;  %v9143_v47 = vpack.c.bf16 %v2231_v17, %v2230_v63  ;;  %v1937_v63 = vrot.slane %v11216_v22, 2  ;;  %v13123_v17 = vld [vmem:[#allocation56_spill] sm:$0xff] }
 0x20e   : > { %9132 = vmatprep.subr.bf16.mxu0 %v9131_v41 }
 0x210   : > { %7928 = vmatmul.mubr.f32.gmra.mrb[8].mxu0 %v11070_v10 }
 0x211   : > { %7930 = vmatprep.mubr.f32.mxu0 %v11074_v43  ;;  %9134 = vmatpush3.bf16.msra.mxu0 %v9131_v41  ;;  %v9147_v41 = vpack.c.bf16 %v2500_v19, %v2499_v32 }
 0x212   : > { %9136 = vmatprep.subr.bf16.mxu0 %v9135_v33 }
 0x214   : > { %7931 = vmatmul.mubr.f32.gmra.mrb[10].mxu0 %v11081_v0 }
 0x215   : > { %7933 = vmatprep.mubr.f32.mxu0 %v11085_v56  ;;  %9138 = vmatpush3.bf16.msra.mxu0 %v9135_v33  ;;  %v13121_v33 = vld [vmem:[#allocation52_spill] sm:$0xff] }
 0x216   : > { %9140 = vmatprep.subr.bf16.mxu0 %v9139_v49 }
 0x218   : > { %7934 = vmatmul.mubr.f32.gmra.mrb[12].mxu0 %v11092_v9 }
 0x219   : > { %7936 = vmatprep.mubr.f32.mxu0 %v11096_v23  ;;  %9142 = vmatpush3.bf16.msra.mxu0 %v9139_v49  ;;  %v1936_v49 = vrot.slane %v11211_v20, 2 }
 0x21a   : > { %9144 = vmatprep.subr.bf16.mxu0 %v9143_v47 }
 0x21b   : > { %v11296_v32 = vsel %vm994_vm1, %v1936_v49, %v1937_v63  ;;  %v10110_v49 = vld [vmem:[%s10647_s16 + $0x38] sm:$0xff] }
 0x21c   : > { %7937 = vmatmul.mubr.f32.gmra.mrb[14].mxu0 %v11103_v61  ;;  %13124 = vst [vmem:[#allocation18_spill] sm:$0xff] %v11296_v32 }
 0x21d   : > { %7939 = vmatprep.mubr.f32.mxu0 %v11107_v5  ;;  %9146 = vmatpush3.bf16.msra.mxu0 %v9143_v47  ;;  %v1939_v47 = vrot.slane %v11249_v2, 2 }
 0x21e   : > { %9148 = vmatprep.subr.bf16.mxu0 %v9147_v41 }
 0x21f   : > { %v11301_v19 = vsel %vm994_vm1, %v1937_v63, %v1939_v47  ;;  %v2505_v47 = vld [vmem:[#allocation6 + $0x3b0] sm:$0xff] }
 0x220   : > { %7940 = vmatmul.mubr.f32.gmra.mrb[16].mxu0 %v11114_v1  ;;  %13125 = vst [vmem:[#allocation19_spill] sm:$0xff] %v11301_v19 }
 0x221   : > { %7942 = vmatprep.mubr.f32.mxu0 %v11118_v28 }
 0x224   : > { %7943 = vmatmul.mubr.f32.gmra.mrb[18].mxu0 %v11125_v29 }
 0x225   : > { %7945 = vmatprep.mubr.f32.mxu0 %v13119_v45 }
 0x228   : > { %7946 = vmatmul.mubr.f32.gmra.mrb[20].mxu0 %v11136_v27 }
 0x229   : > { %7948 = vmatprep.mubr.f32.mxu0 %v13120_v40 }
 0x22c   : > { %7949 = vmatmul.mubr.f32.gmra.mrb[22].mxu0 %v11147_v48  ;;  %v10112_v48 = vld [vmem:[%s10647_s16 + $0x50] sm:$0xff] }
 0x22d   : > { %7951 = vmatprep.mubr.f32.mxu0 %v13121_v33  ;;  %v2504_v33 = vld [vmem:[#allocation6 + $0x3a8] sm:$0xff] }
 0x230   : > { %7952 = vmatmul.mubr.f32.gmra.mrb[24].mxu0 %v11158_v57  ;;  %v2502_v57 = vld [vmem:[#allocation6 + $0x398] sm:$0xff] }
 0x231   : > { %7954 = vmatprep.mubr.f32.mxu0 %v13122_v31  ;;  %v2501_v31 = vld [vmem:[#allocation6 + $0x390] sm:$0xff] }
 0x232   : > { %v9151_v2 = vpack.c.bf16 %v2502_v57, %v2501_v31  ;;  %v2508_v31 = vld [vmem:[#allocation6 + $0x3c8] sm:$0xff] }
 0x234   : > { %7955 = vmatmul.mubr.f32.gmra.mrb[26].mxu0 %v11169_v21  ;;  %v10109_v21 = vld [vmem:[%s10647_s16 + $0x30] sm:$0xff] }
 0x235   : > { %7957 = vmatprep.mubr.f32.mxu0 %v13123_v17  ;;  %v2503_v17 = vld [vmem:[#allocation6 + $0x3a0] sm:$0xff] }
 0x236   : > { %v9155_v63 = vpack.c.bf16 %v2504_v33, %v2503_v17  ;;  %v2509_v33 = vld [vmem:[#allocation6 + $0x3d0] sm:$0xff] }
 0x237   : > { %v10116_v17 = vld [vmem:[%s10647_s16 + $0x80] sm:$0xff] }
 0x238   : > { %7958 = vmatmul.mubr.f32.gmra.mrb[28].mxu0 %v11178_v25  ;;  %v10111_v25 = vld [vmem:[%s10647_s16 + $0x48] sm:$0xff] }
 0x239   : > { %7960 = vmatprep.mubr.f32.mxu0 %v11296_v32  ;;  %v2506_v32 = vld [vmem:[#allocation6 + $0x3b8] sm:$0xff] }
 0x23a   : > { %v9159_v57 = vpack.c.bf16 %v2506_v32, %v2505_v47  ;;  %v2512_v47 = vld [vmem:[#allocation6 + $0x3e8] sm:$0xff] }
 0x23c   : > { %7961 = vmatmul.mubr.f32.gmra.mrb[30].mxu0 %v11301_v19  ;;  %v10113_v19 = vld [vmem:[%s10647_s16 + $0x60] sm:$0xff] }
 0x23d   : > { %7995 = vmatprep.mubr.f32.mxu0 %v10109_v21  ;;  %v2507_v21 = vld [vmem:[#allocation6 + $0x3c0] sm:$0xff] }
 0x240   : > { %7996 = vmatmul.mubr.f32.vlgmr.msra.gmra.mrb[0].mxu0 %v10110_v49  ;;  %v10115_v49 = vld [vmem:[%s10647_s16 + $0x78] sm:$0xff] }
 0x241   : > { %9150 = vmatpush3.bf16.msra.mxu0 %v9147_v41  ;;  %7998 = vmatprep.mubr.f32.mxu0 %v10111_v25  ;;  %v10114_v41 = vld [vmem:[%s10647_s16 + $0x68] sm:$0xff]  ;;  %v9163_v25 = vpack.c.bf16 %v2508_v31, %v2507_v21  ;;  %v2513_v21 = vld [vmem:[#allocation6 + $0x3f0] sm:$0xff] }
 0x242   : > { %9152 = vmatprep.subr.bf16.mxu0 %v9151_v2  ;;  %v2514_v31 = vld [vmem:[#allocation6 + $0x3f8] sm:$0xff] }
 0x244   : > { %7999 = vmatmul.mubr.f32.gmra.mrb[2].mxu0 %v10112_v48  ;;  %v2510_v48 = vld [vmem:[#allocation6 + $0x3d8] sm:$0xff] }
 0x245   : > { %8001 = vmatprep.mubr.f32.mxu0 %v10113_v19  ;;  %9154 = vmatpush3.bf16.msra.mxu0 %v9151_v2  ;;  %v10117_v19 = vld [vmem:[%s10647_s16 + $0x90] sm:$0xff]  ;;  %v9167_v32 = vpack.c.bf16 %v2510_v48, %v2509_v33  ;;  %v9175_v33 = vpack.c.bf16 %v2514_v31, %v2513_v21  ;;  %v10127_v21 = vld [vmem:[%s10647_s16 + $0x108] sm:$0xff] }
 0x246   : > { %9156 = vmatprep.subr.bf16.mxu0 %v9155_v63  ;;  %v2511_v2 = vld [vmem:[#allocation6 + $0x3e0] sm:$0xff] }
 0x247   : > { %v2779_v48 = vld [vmem:[#allocation6 + $0x400] sm:$0xff] }
 0x248   : > { %8002 = vmatmul.mubr.f32.gmra.mrb[4].mxu0 %v10114_v41  ;;  %v10118_v41 = vld [vmem:[%s10647_s16 + $0x98] sm:$0xff]  ;;  %v10128_v31 = vld [vmem:[%s10647_s16 + $0x110] sm:$0xff] }
 0x249   : > { %8004 = vmatprep.mubr.f32.mxu0 %v10115_v49  ;;  %9158 = vmatpush3.bf16.msra.mxu0 %v9155_v63  ;;  %v10119_v49 = vld [vmem:[%s10647_s16 + $0xa8] sm:$0xff]  ;;  %v9171_v63 = vpack.c.bf16 %v2512_v47, %v2511_v2  ;;  %v10124_v47 = vld [vmem:[%s10647_s16 + $0xe0] sm:$0xff] }
 0x24a   : > { %9160 = vmatprep.subr.bf16.mxu0 %v9159_v57 }
 0x24c   : > { %8005 = vmatmul.mubr.f32.gmra.mrb[6].mxu0 %v10116_v17  ;;  %v10120_v17 = vld [vmem:[%s10647_s16 + $0xb0] sm:$0xff] }
 0x24d   : > { %8007 = vmatprep.mubr.f32.mxu0 %v10117_v19  ;;  %9162 = vmatpush3.bf16.msra.mxu0 %v9159_v57  ;;  %v10121_v57 = vld [vmem:[%s10647_s16 + $0xc0] sm:$0xff]  ;;  %v2780_v19 = vld [vmem:[#allocation6 + $0x408] sm:$0xff] }
 0x24e   : > { %9164 = vmatprep.subr.bf16.mxu0 %v9163_v25  ;;  %v9179_v2 = vpack.c.bf16 %v2780_v19, %v2779_v48  ;;  %v10133_v48 = vld [vmem:[%s10647_s16 + $0x150] sm:$0xff]  ;;  %v10134_v19 = vld [vmem:[%s10647_s16 + $0x158] sm:$0xff] }
 0x250   : > { %8008 = vmatmul.mubr.f32.gmra.mrb[8].mxu0 %v10118_v41  ;;  %v10122_v41 = vld [vmem:[%s10647_s16 + $0xc8] sm:$0xff] }
 0x251   : > { %8010 = vmatprep.mubr.f32.mxu0 %v10119_v49  ;;  %9166 = vmatpush3.bf16.msra.mxu0 %v9163_v25  ;;  %v10123_v25 = vld [vmem:[%s10647_s16 + $0xd8] sm:$0xff] }
 0x252   : > { %9168 = vmatprep.subr.bf16.mxu0 %v9167_v32  ;;  %v10126_v49 = vld [vmem:[%s10647_s16 + $0xf8] sm:$0xff] }
 0x254   : > { %8011 = vmatmul.mubr.f32.gmra.mrb[10].mxu0 %v10120_v17  ;;  %v10130_v17 = vld [vmem:[%s10647_s16 + $0x128] sm:$0xff] }
 0x255   : > { %8013 = vmatprep.mubr.f32.mxu0 %v10121_v57  ;;  %9170 = vmatpush3.bf16.msra.mxu0 %v9167_v32  ;;  %v10125_v32 = vld [vmem:[%s10647_s16 + $0xf0] sm:$0xff]  ;;  %v10131_v57 = vld [vmem:[%s10647_s16 + $0x138] sm:$0xff] }
 0x256   : > { %9172 = vmatprep.subr.bf16.mxu0 %v9171_v63 }
 0x258   : > { %8014 = vmatmul.mubr.f32.gmra.mrb[12].mxu0 %v10122_v41  ;;  %v10135_v41 = vld [vmem:[%s10647_s16 + $0x168] sm:$0xff] }
 0x259   : > { %8016 = vmatprep.mubr.f32.mxu0 %v10123_v25  ;;  %9174 = vmatpush3.bf16.msra.mxu0 %v9171_v63  ;;  %v10129_v63 = vld [vmem:[%s10647_s16 + $0x120] sm:$0xff]  ;;  %v10136_v25 = vld [vmem:[%s10647_s16 + $0x170] sm:$0xff] }
 0x25a   : > { %9176 = vmatprep.subr.bf16.mxu0 %v9175_v33 }
 0x25c   : > { %8017 = vmatmul.mubr.f32.gmra.mrb[14].mxu0 %v10124_v47  ;;  %v11334_v47 = vld [vmem:[%s10647_s16 + $0x198] sm:$0xff] }
 0x25d   : > { %8019 = vmatprep.mubr.f32.mxu0 %v10125_v32  ;;  %9178 = vmatpush3.bf16.msra.mxu0 %v9175_v33  ;;  %v10132_v33 = vld [vmem:[%s10647_s16 + $0x140] sm:$0xff] }
 0x25e   : > { %9180 = vmatprep.subr.bf16.mxu0 %v9179_v2  ;;  %v11339_v32 = vld [vmem:[%s10647_s16 + $0x1a0] sm:$0xff] }
 0x260   : > { %8020 = vmatmul.mubr.f32.gmra.mrb[16].mxu0 %v10126_v49  ;;  %v2781_v49 = vld [vmem:[#allocation6 + $0x410] sm:$0xff] }
 0x261   : > { %8022 = vmatprep.mubr.f32.mxu0 %v10127_v21  ;;  %v2782_v21 = vld [vmem:[#allocation6 + $0x418] sm:$0xff] }
 0x264   : > { %8023 = vmatmul.mubr.f32.gmra.mrb[18].mxu0 %v10128_v31  ;;  %v9183_v31 = vpack.c.bf16 %v2782_v21, %v2781_v49  ;;  %v3618_v49 = vld [vmem:[#allocation9 + $0xf0] sm:$0xff] }
 0x265   : > { %8025 = vmatprep.mubr.f32.mxu0 %v10129_v63  ;;  %v2783_v63 = vld [vmem:[#allocation6 + $0x420] sm:$0xff] }
 0x268   : > { %8026 = vmatmul.mubr.f32.gmra.mrb[20].mxu0 %v10130_v17  ;;  %v2784_v17 = vld [vmem:[#allocation6 + $0x428] sm:$0xff] }
 0x269   : > { %8028 = vmatprep.mubr.f32.mxu0 %v10131_v57  ;;  %v2786_v57 = vld [vmem:[#allocation6 + $0x438] sm:$0xff] }
 0x26c   : > { %8029 = vmatmul.mubr.f32.gmra.mrb[22].mxu0 %v10132_v33 }
 0x26d   : > { %8031 = vmatprep.mubr.f32.mxu0 %v10133_v48  ;;  %v2788_v48 = vld [vmem:[#allocation6 + $0x448] sm:$0xff] }
 0x270   : > { %8032 = vmatmul.mubr.f32.gmra.mrb[24].mxu0 %v10134_v19  ;;  %v2792_v19 = vld [vmem:[#allocation6 + $0x468] sm:$0xff] }
 0x271   : > { %8034 = vmatprep.mubr.f32.mxu0 %v10135_v41  ;;  %v2794_v41 = vld [vmem:[#allocation6 + $0x478] sm:$0xff] }
 0x274   : > { %8035 = vmatmul.mubr.f32.gmra.mrb[26].mxu0 %v10136_v25 }
 0x275   : > { %8037 = vmatprep.mubr.f32.mxu0 %v11211_v20  ;;  %v9187_v20 = vpack.c.bf16 %v2784_v17, %v2783_v63  ;;  %v3428_v17 = vld [vmem:[#allocation9] sm:$0xff] }
 0x278   : > { %8038 = vmatmul.mubr.f32.gmra.mrb[28].mxu0 %v11216_v22  ;;  %v2785_v22 = vld [vmem:[#allocation6 + $0x430] sm:$0xff] }
 0x279   : > { %8040 = vmatprep.mubr.f32.mxu0 %v11334_v47  ;;  %v9191_v33 = vpack.c.bf16 %v2786_v57, %v2785_v22  ;;  %v11413_v57 = vld [vmem:[#allocation8] ss:$0 sm:$0xff] }
 0x27c   : > { %8041 = vmatmul.mubr.f32.gmra.mrb[30].mxu0 %v11339_v32 }
 0x27d   : > { %8075 = vmatprep.mubr.f32.mxu0 %v13086_v16  ;;  %v2787_v16 = vld [vmem:[#allocation6 + $0x440] sm:$0xff] }
 0x280   : > { %8076 = vmatmul.mubr.f32.vlgmr.msra.gmra.mrb[0].mxu0 %v13087_v46  ;;  %v9195_v46 = vpack.c.bf16 %v2788_v48, %v2787_v16 }
 0x281   : > { %9182 = vmatpush3.bf16.msra.mxu0 %v9179_v2  ;;  %8078 = vmatprep.mubr.f32.mxu0 %v13088_v58  ;;  %v2789_v58 = vld [vmem:[#allocation6 + $0x450] sm:$0xff]  ;;  %v2790_v2 = vld [vmem:[#allocation6 + $0x458] sm:$0xff] }
 0x282   : > { %9184 = vmatprep.subr.bf16.mxu0 %v9183_v31 }
 0x284   : > { %8079 = vmatmul.mubr.f32.gmra.mrb[2].mxu0 %v13089_v12  ;;  %v9199_v12 = vpack.c.bf16 %v2790_v2, %v2789_v58 }
 0x285   : > { %8081 = vmatprep.mubr.f32.mxu0 %v13090_v24  ;;  %9186 = vmatpush3.bf16.msra.mxu0 %v9183_v31  ;;  %v2791_v24 = vld [vmem:[#allocation6 + $0x460] sm:$0xff] }
 0x286   : > { %9188 = vmatprep.subr.bf16.mxu0 %v9187_v20  ;;  %v3619_v31 = vld [vmem:[#allocation9 + $0xf8] sm:$0xff] }
 0x287   : > { %v9239_v63 = vpack.c.bf16 %v3619_v31, %v3618_v49 }
 0x288   : > { %8082 = vmatmul.mubr.f32.gmra.mrb[4].mxu0 %v13091_v53  ;;  %v9203_v53 = vpack.c.bf16 %v2792_v19, %v2791_v24 }
 0x289   : > { %8084 = vmatprep.mubr.f32.mxu0 %v13092_v18  ;;  %9190 = vmatpush3.bf16.msra.mxu0 %v9187_v20  ;;  %v2793_v18 = vld [vmem:[#allocation6 + $0x470] sm:$0xff] }
 0x28a   : > { %9192 = vmatprep.subr.bf16.mxu0 %v9191_v33  ;;  %v3429_v20 = vld [vmem:[#allocation9 + $0x8] sm:$0xff] }
 0x28b   : > { %v11411_v22 = vpack.c.bf16 %v3429_v20, %v3428_v17 }
 0x28c   : > { %8085 = vmatmul.mubr.f32.gmra.mrb[6].mxu0 %v13093_v44  ;;  %v9207_v44 = vpack.c.bf16 %v2794_v41, %v2793_v18 }
 0x28d   : > { %8087 = vmatprep.mubr.f32.mxu0 %v13094_v14  ;;  %9194 = vmatpush3.bf16.msra.mxu0 %v9191_v33  ;;  %v2492_v14 = vrot.slane %v11334_v47, 1 }
 0x28e   : > { %9196 = vmatprep.subr.bf16.mxu0 %v9195_v46 }
 0x290   : > { %8088 = vmatmul.mubr.f32.gmra.mrb[8].mxu0 %v13095_v39  ;;  %v2493_v39 = vrot.slane %v11339_v32, 1 }
 0x291   : > { %8090 = vmatprep.mubr.f32.mxu0 %v13096_v4  ;;  %9198 = vmatpush3.bf16.msra.mxu0 %v9195_v46  ;;  %v350_v4 = vld [vmem:[%s10647_s16 + $0x1a8] sm:$0x3] }
 0x292   : > { %9200 = vmatprep.subr.bf16.mxu0 %v9199_v12 }
 0x294   : > { %8091 = vmatmul.mubr.f32.gmra.mrb[10].mxu0 %v13097_v51  ;;  %v13126_v51 = vld [vmem:[#allocation44_spill] sm:$0xff] }
 0x295   : > { %8093 = vmatprep.mubr.f32.mxu0 %v13098_v60  ;;  %9202 = vmatpush3.bf16.msra.mxu0 %v9199_v12  ;;  %v13127_v60 = vld [vmem:[#allocation17_spill] sm:$0xff] }
 0x296   : > { %9204 = vmatprep.subr.bf16.mxu0 %v9203_v53 }
 0x298   : > { %8094 = vmatmul.mubr.f32.gmra.mrb[12].mxu0 %v13099_v62  ;;  %v2495_v62 = vrot.slane %v350_v4, 1 }
 0x299   : > { %8096 = vmatprep.mubr.f32.mxu0 %v13100_v7  ;;  %9206 = vmatpush3.bf16.msra.mxu0 %v9203_v53  ;;  %v2494_v7 = vsel %vm415_vm0, %v2492_v14, %v2493_v39 }
 0x29a   : > { %9208 = vmatprep.subr.bf16.mxu0 %v9207_v44 }
 0x29c   : > { %8097 = vmatmul.mubr.f32.gmra.mrb[14].mxu0 %v13101_v6  ;;  %v2496_v6 = vsel %vm415_vm0, %v2493_v39, %v2495_v62 }
 0x29d   : > { %8099 = vmatprep.mubr.f32.mxu0 %v13102_v11  ;;  %9210 = vmatpush3.bf16.msra.mxu0 %v9207_v44  ;;  %v13128_v11 = vld [vmem:[#allocation46_spill] sm:$0xff] }
 0x2a0   : > { %8100 = vmatmul.mubr.f32.gmra.mrb[16].mxu0 %v13103_v34  ;;  %v3605_v34 = vld [vmem:[#allocation9 + $0x88] sm:$0xff] }
 0x2a1   : > { %8102 = vmatprep.mubr.f32.mxu0 %v13104_v36 }
 0x2a4   : > { %8103 = vmatmul.mubr.f32.gmra.mrb[18].mxu0 %v13105_v52  ;;  %v3606_v52 = vld [vmem:[#allocation9 + $0x90] sm:$0xff] }
 0x2a5   : > { %8105 = vmatprep.mubr.f32.mxu0 %v13106_v55  ;;  %v3607_v55 = vld [vmem:[#allocation9 + $0x98] sm:$0xff] }
 0x2a8   : > { %8106 = vmatmul.mubr.f32.gmra.mrb[20].mxu0 %v13107_v8  ;;  %v9215_v8 = vpack.c.bf16 %v3607_v55, %v3606_v52 }
 0x2a9   : > { %8108 = vmatprep.mubr.f32.mxu0 %v13108_v13  ;;  %v3608_v13 = vld [vmem:[#allocation9 + $0xa0] sm:$0xff] }
 0x2ac   : > { %8109 = vmatmul.mubr.f32.gmra.mrb[22].mxu0 %v13109_v35  ;;  %v3609_v35 = vld [vmem:[#allocation9 + $0xa8] sm:$0xff] }
 0x2ad   : > { %8111 = vmatprep.mubr.f32.mxu0 %v13110_v37  ;;  %v9219_v37 = vpack.c.bf16 %v3609_v35, %v3608_v13 }
 0x2b0   : > { %8112 = vmatmul.mubr.f32.gmra.mrb[24].mxu0 %v13111_v54  ;;  %v3610_v54 = vld [vmem:[#allocation9 + $0xb0] sm:$0xff] }
 0x2b1   : > { %8114 = vmatprep.mubr.f32.mxu0 %v13112_v26  ;;  %v3611_v26 = vld [vmem:[#allocation9 + $0xb8] sm:$0xff] }
 0x2b4   : > { %8115 = vmatmul.mubr.f32.gmra.mrb[26].mxu0 %v13126_v51 }
 0x2b5   : > { %8117 = vmatprep.mubr.f32.mxu0 %v13127_v60 }
 0x2b8   : > { %8118 = vmatmul.mubr.f32.gmra.mrb[28].mxu0 %v11260_v3  ;;  %v9223_v3 = vpack.c.bf16 %v3611_v26, %v3610_v54 }
 0x2b9   : > { %8120 = vmatprep.mubr.f32.mxu0 %v2494_v7 }
 0x2bc   : > { %8121 = vmatmul.mubr.f32.gmra.mrb[30].mxu0 %v2496_v6 }
 0x2bd   : > { %8155 = vmatprep.mubr.f32.mxu0 %v13115_v59  ;;  %v3612_v59 = vld [vmem:[#allocation9 + $0xc0] sm:$0xff] }
 0x2c0   : > { %8156 = vmatmul.mubr.f32.vlgmr.msra.gmra.mrb[0].mxu0 %v11037_v30  ;;  %v13129_v30 = vld [vmem:[#allocation51_spill] sm:$0xff] }
 0x2c1   : > { %8158 = vmatprep.mubr.f32.mxu0 %v13128_v11 }
 0x2c4   : > { %8159 = vmatmul.mubr.f32.gmra.mrb[2].mxu0 %v11048_v42  ;;  %v13130_v42 = vld [vmem:[#allocation52_spill] sm:$0xff] }
 0x2c5   : > { %8161 = vmatprep.mubr.f32.mxu0 %v13117_v38  ;;  %v3613_v38 = vld [vmem:[#allocation9 + $0xc8] sm:$0xff] }
 0x2c8   : > { %8162 = vmatmul.mubr.f32.gmra.mrb[4].mxu0 %v11059_v15  ;;  %v13131_v15 = vld [vmem:[#allocation53_spill] sm:$0xff] }
 0x2c9   : > { %8164 = vmatprep.mubr.f32.mxu0 %v13118_v50  ;;  %v9227_v50 = vpack.c.bf16 %v3613_v38, %v3612_v59 }
 0x2cc   : > { %8165 = vmatmul.mubr.f32.gmra.mrb[6].mxu0 %v11070_v10  ;;  %v13132_v10 = vld [vmem:[#allocation54_spill] sm:$0xff] }
 0x2cd   : > { %8167 = vmatprep.mubr.f32.mxu0 %v11074_v43  ;;  %v13133_v43 = vld [vmem:[#allocation55_spill] sm:$0xff] }
 0x2d0   : > { %8168 = vmatmul.mubr.f32.gmra.mrb[8].mxu0 %v11081_v0  ;;  %v13134_v0 = vld [vmem:[#allocation56_spill] sm:$0xff] }
 0x2d1   : > { %8170 = vmatprep.mubr.f32.mxu0 %v11085_v56  ;;  %v2772_v56 = vrot.slane %v11334_v47, 2  ;;  %v3616_v47 = vld [vmem:[#allocation9 + $0xe0] sm:$0xff] }
 0x2d4   : > { %8171 = vmatmul.mubr.f32.gmra.mrb[10].mxu0 %v11092_v9  ;;  %v2773_v9 = vrot.slane %v11339_v32, 2  ;;  %v3617_v32 = vld [vmem:[#allocation9 + $0xe8] sm:$0xff] }
 0x2d5   : > { %8173 = vmatprep.mubr.f32.mxu0 %v11096_v23  ;;  %v13135_v23 = vld [vmem:[#allocation57_spill] sm:$0xff]  ;;  %v9235_v21 = vpack.c.bf16 %v3617_v32, %v3616_v47 }
 0x2d8   : > { %8174 = vmatmul.mubr.f32.gmra.mrb[12].mxu0 %v11103_v61  ;;  %v13136_v61 = vld [vmem:[#allocation18_spill] sm:$0xff] }
 0x2d9   : > { %8176 = vmatprep.mubr.f32.mxu0 %v11107_v5  ;;  %v2775_v5 = vrot.slane %v350_v4, 2 }
 0x2dc   : > { %8177 = vmatmul.mubr.f32.gmra.mrb[14].mxu0 %v11114_v1  ;;  %v2774_v1 = vsel %vm994_vm1, %v2772_v56, %v2773_v9 }
 0x2dd   : > { %8179 = vmatprep.mubr.f32.mxu0 %v11118_v28  ;;  %v13137_v28 = vld [vmem:[#allocation19_spill] sm:$0xff] }
 0x2e0   : > { %8180 = vmatmul.mubr.f32.gmra.mrb[16].mxu0 %v11125_v29  ;;  %v2776_v29 = vsel %vm994_vm1, %v2773_v9, %v2775_v5 }
 0x2e1   : > { %8182 = vmatprep.mubr.f32.mxu0 %v13119_v45  ;;  %v3614_v45 = vld [vmem:[#allocation9 + $0xd0] sm:$0xff] }
 0x2e4   : > { %8183 = vmatmul.mubr.f32.gmra.mrb[18].mxu0 %v11136_v27  ;;  %v3604_v27 = vld [vmem:[#allocation9 + $0x80] sm:$0xff] }
 0x2e5   : > { %8185 = vmatprep.mubr.f32.mxu0 %v13120_v40  ;;  %v9211_v36 = vpack.c.bf16 %v3605_v34, %v3604_v27  ;;  %v3615_v40 = vld [vmem:[#allocation9 + $0xd8] sm:$0xff] }
 0x2e6   : > { %v9231_v25 = vpack.c.bf16 %v3615_v40, %v3614_v45 }
 0x2e7   : > { %9212 = vmatprep.subr.bf16.mxu1 %v9211_v36 }
 0x2e8   : > { %8186 = vmatmul.mubr.f32.gmra.mrb[20].mxu0 %v13129_v30  ;;  %9214 = vmatpush3.bf16.msra.mxu1 %v9211_v36 }
 0x2e9   : > { %8188 = vmatprep.mubr.f32.mxu0 %v13130_v42  ;;  %9216 = vmatprep.subr.bf16.mxu1 %v9215_v8 }
 0x2ec   : > { %8189 = vmatmul.mubr.f32.gmra.mrb[22].mxu0 %v13131_v15  ;;  %9218 = vmatpush3.bf16.msra.mxu1 %v9215_v8 }
 0x2ed   : > { %8191 = vmatprep.mubr.f32.mxu0 %v13132_v10  ;;  %9220 = vmatprep.subr.bf16.mxu1 %v9219_v37 }
 0x2f0   : > { %8192 = vmatmul.mubr.f32.gmra.mrb[24].mxu0 %v13133_v43  ;;  %9222 = vmatpush3.bf16.msra.mxu1 %v9219_v37 }
 0x2f1   : > { %8194 = vmatprep.mubr.f32.mxu0 %v13134_v0  ;;  %9224 = vmatprep.subr.bf16.mxu1 %v9223_v3 }
 0x2f4   : > { %8195 = vmatmul.mubr.f32.gmra.mrb[26].mxu0 %v13135_v23  ;;  %9226 = vmatpush3.bf16.msra.mxu1 %v9223_v3 }
 0x2f5   : > { %8197 = vmatprep.mubr.f32.mxu0 %v13136_v61  ;;  %9228 = vmatprep.subr.bf16.mxu1 %v9227_v50 }
 0x2f8   : > { %8198 = vmatmul.mubr.f32.gmra.mrb[28].mxu0 %v13137_v28  ;;  %9230 = vmatpush3.bf16.msra.mxu1 %v9227_v50 }
 0x2f9   : > { %8200 = vmatprep.mubr.f32.mxu0 %v2774_v1  ;;  %9232 = vmatprep.subr.bf16.mxu1 %v9231_v25 }
 0x2fc   : > { %8201 = vmatmul.mubr.f32.gmra.mrb[30].mxu0 %v2776_v29  ;;  %9234 = vmatpush3.bf16.msra.mxu1 %v9231_v25 }
 0x2fd   : > { %9236 = vmatprep.subr.bf16.mxu1 %v9235_v21 }
 0x300   : > { %9238 = vmatpush3.bf16.msra.mxu1 %v9235_v21 }
 0x301   : > { %9240 = vmatprep.subr.bf16.mxu1 %v9239_v63 }
 0x304   : > { %9242 = vmatpush3.bf16.msra.mxu1 %v9239_v63 }
 0x305   : > { %9244 = vmatprep.subr.bf16.mxu1 %v11411_v22 }
 0x393   : > { %v8157_v33 = vpop.f32.mrb[0].mxu0 }
 0x394   : > { %v11417_v16 = vadd.f32 %v8157_v33, %v11413_v57  ;;  %v2861_v48 = vpop.f32.mrb[1].mxu0 }
 0x395   : > { %v11420_v46 = vadd.f32 %v11413_v57, %v2861_v48 }
 0x396   : > { %v3129_v58 = vmul.f32 %v11417_v16, %v11417_v16 }
 0x397   : > { %v3128_v2 = vmul.f32 %v11420_v46, %v11420_v46  ;;  %v8160_v12 = vpop.f32.mrb[2].mxu0  ;;  %v3091_v19 = vadd.f32 %v11417_v16, %v11420_v46 }
 0x398   : > { %v2871_v24 = vpop.f32.mrb[3].mxu0  ;;  %v11429_v53 = vadd.f32 %v8160_v12, %v11413_v57 }
 0x399   : > { %v11432_v18 = vadd.f32 %v11413_v57, %v2871_v24  ;;  %v3160_v41 = vadd.f32 %v3129_v58, %v3128_v2 }
 0x39a   : > { %v3131_v60 = vmul.f32 %v11429_v53, %v11429_v53 }
 0x39b   : > { %v3092_v44 = vadd.f32 %v3091_v19, %v11432_v18  ;;  %v3130_v14 = vmul.f32 %v11432_v18, %v11432_v18  ;;  %v8163_v39 = vpop.f32.mrb[4].mxu0 }
 0x39c   : > { %v11438_v4 = vadd.f32 %v8163_v39, %v11413_v57  ;;  %v2881_v51 = vpop.f32.mrb[5].mxu0 }
 0x39d   : > { %v3161_v62 = vadd.f32 %v3160_v41, %v3130_v14  ;;  %v11443_v7 = vadd.f32 %v11413_v57, %v2881_v51  ;;  %v3093_v6 = vadd.f32 %v3092_v44, %v11429_v53 }
 0x39e   : > { %v3133_v10 = vmul.f32 %v11438_v4, %v11438_v4 }
 0x39f   : > { %v3094_v11 = vadd.f32 %v3093_v6, %v11443_v7  ;;  %v3132_v30 = vmul.f32 %v11443_v7, %v11443_v7  ;;  %v3162_v42 = vadd.f32 %v3161_v62, %v3131_v60  ;;  %v8166_v15 = vpop.f32.mrb[6].mxu0 }
 0x3a0   : > { %v2891_v43 = vpop.f32.mrb[7].mxu0  ;;  %v11452_v56 = vadd.f32 %v8166_v15, %v11413_v57 }
 0x3a1   : > { %v3163_v0 = vadd.f32 %v3162_v42, %v3132_v30  ;;  %v11455_v9 = vadd.f32 %v11413_v57, %v2891_v43  ;;  %v3095_v23 = vadd.f32 %v3094_v11, %v11438_v4 }
 0x3a2   : > { %v3135_v34 = vmul.f32 %v11452_v56, %v11452_v56 }
 0x3a3   : > { %v3096_v61 = vadd.f32 %v3095_v23, %v11455_v9  ;;  %v3134_v5 = vmul.f32 %v11455_v9, %v11455_v9  ;;  %v3164_v1 = vadd.f32 %v3163_v0, %v3133_v10  ;;  %v8169_v28 = vpop.f32.mrb[8].mxu0 }
 0x3a4   : > { %v11462_v29 = vadd.f32 %v8169_v28, %v11413_v57  ;;  %v2901_v27 = vpop.f32.mrb[9].mxu0 }
 0x3a5   : > { %v3165_v36 = vadd.f32 %v3164_v1, %v3134_v5  ;;  %v11467_v52 = vadd.f32 %v11413_v57, %v2901_v27  ;;  %v3097_v55 = vadd.f32 %v3096_v61, %v11452_v56 }
 0x3a6   : > { %v3137_v54 = vmul.f32 %v11462_v29, %v11462_v29 }
 0x3a7   : > { %v3098_v8 = vadd.f32 %v3097_v55, %v11467_v52  ;;  %v3136_v13 = vmul.f32 %v11467_v52, %v11467_v52  ;;  %v3166_v35 = vadd.f32 %v3165_v36, %v3135_v34  ;;  %v8172_v37 = vpop.f32.mrb[10].mxu0 }
 0x3a8   : > { %v2911_v26 = vpop.f32.mrb[11].mxu0  ;;  %v11476_v59 = vadd.f32 %v8172_v37, %v11413_v57 }
 0x3a9   : > { %v3167_v3 = vadd.f32 %v3166_v35, %v3136_v13  ;;  %v11479_v38 = vadd.f32 %v11413_v57, %v2911_v26  ;;  %v3099_v50 = vadd.f32 %v3098_v8, %v11462_v29 }
 0x3aa   : > { %v3139_v21 = vmul.f32 %v11476_v59, %v11476_v59 }
 0x3ab   : > { %v3100_v45 = vadd.f32 %v3099_v50, %v11479_v38  ;;  %v3138_v40 = vmul.f32 %v11479_v38, %v11479_v38  ;;  %v3168_v25 = vadd.f32 %v3167_v3, %v3137_v54  ;;  %v8175_v47 = vpop.f32.mrb[12].mxu0 }
 0x3ac   : > { %v11486_v32 = vadd.f32 %v8175_v47, %v11413_v57  ;;  %v2921_v49 = vpop.f32.mrb[13].mxu0 }
 0x3ad   : > { %v3169_v31 = vadd.f32 %v3168_v25, %v3138_v40  ;;  %v11491_v63 = vadd.f32 %v11413_v57, %v2921_v49  ;;  %v3101_v17 = vadd.f32 %v3100_v45, %v11476_v59 }
 0x3ae   : > { %v3141_v2 = vmul.f32 %v11486_v32, %v11486_v32 }
 0x3af   : > { %v3102_v20 = vadd.f32 %v3101_v17, %v11491_v63  ;;  %v3140_v33 = vmul.f32 %v11491_v63, %v11491_v63  ;;  %v3170_v48 = vadd.f32 %v3169_v31, %v3139_v21  ;;  %v8178_v58 = vpop.f32.mrb[14].mxu0 }
 0x3b0   : > { %v2931_v12 = vpop.f32.mrb[15].mxu0  ;;  %v11500_v19 = vadd.f32 %v8178_v58, %v11413_v57 }
 0x3b1   : > { %v3171_v24 = vadd.f32 %v3170_v48, %v3140_v33  ;;  %v11503_v41 = vadd.f32 %v11413_v57, %v2931_v12  ;;  %v3103_v44 = vadd.f32 %v3102_v20, %v11486_v32 }
 0x3b2   : > { %v3143_v11 = vmul.f32 %v11500_v19, %v11500_v19 }
 0x3b3   : > { %v3104_v14 = vadd.f32 %v3103_v44, %v11503_v41  ;;  %v3142_v39 = vmul.f32 %v11503_v41, %v11503_v41  ;;  %v3172_v51 = vadd.f32 %v3171_v24, %v3141_v2  ;;  %v8181_v60 = vpop.f32.mrb[16].mxu0 }
 0x3b4   : > { %v11510_v62 = vadd.f32 %v8181_v60, %v11413_v57  ;;  %v2941_v6 = vpop.f32.mrb[17].mxu0 }
 0x3b5   : > { %v3173_v30 = vadd.f32 %v3172_v51, %v3142_v39  ;;  %v11515_v42 = vadd.f32 %v11413_v57, %v2941_v6  ;;  %v3105_v15 = vadd.f32 %v3104_v14, %v11500_v19 }
 0x3b6   : > { %v3145_v61 = vmul.f32 %v11510_v62, %v11510_v62 }
 0x3b7   : > { %v3106_v10 = vadd.f32 %v3105_v15, %v11515_v42  ;;  %v3144_v43 = vmul.f32 %v11515_v42, %v11515_v42  ;;  %v3174_v0 = vadd.f32 %v3173_v30, %v3143_v11  ;;  %v8184_v23 = vpop.f32.mrb[18].mxu0 }
 0x3b8   : > { %v2951_v5 = vpop.f32.mrb[19].mxu0  ;;  %v11524_v28 = vadd.f32 %v8184_v23, %v11413_v57 }
 0x3b9   : > { %v3175_v1 = vadd.f32 %v3174_v0, %v3144_v43  ;;  %v11527_v27 = vadd.f32 %v11413_v57, %v2951_v5  ;;  %v3107_v34 = vadd.f32 %v3106_v10, %v11510_v62 }
 0x3ba   : > { %v3147_v54 = vmul.f32 %v11524_v28, %v11524_v28 }
 0x3bb   : > { %v3108_v36 = vadd.f32 %v3107_v34, %v11527_v27  ;;  %v3146_v55 = vmul.f32 %v11527_v27, %v11527_v27  ;;  %v3176_v8 = vadd.f32 %v3175_v1, %v3145_v61  ;;  %v8187_v13 = vpop.f32.mrb[20].mxu0 }
 0x3bc   : > { %v11534_v35 = vadd.f32 %v8187_v13, %v11413_v57  ;;  %v2961_v37 = vpop.f32.mrb[21].mxu0 }
 0x3bd   : > { %v3177_v26 = vadd.f32 %v3176_v8, %v3146_v55  ;;  %v11539_v3 = vadd.f32 %v11413_v57, %v2961_v37  ;;  %v3109_v50 = vadd.f32 %v3108_v36, %v11524_v28 }
 0x3be   : > { %v3149_v49 = vmul.f32 %v11534_v35, %v11534_v35 }
 0x3bf   : > { %v3110_v45 = vadd.f32 %v3109_v50, %v11539_v3  ;;  %v3148_v40 = vmul.f32 %v11539_v3, %v11539_v3  ;;  %v3178_v25 = vadd.f32 %v3177_v26, %v3147_v54  ;;  %v8190_v47 = vpop.f32.mrb[22].mxu0 }
 0x3c0   : > { %v2971_v21 = vpop.f32.mrb[23].mxu0  ;;  %v11548_v17 = vadd.f32 %v8190_v47, %v11413_v57 }
 0x3c1   : > { %v3179_v31 = vadd.f32 %v3178_v25, %v3148_v40  ;;  %v11551_v20 = vadd.f32 %v11413_v57, %v2971_v21  ;;  %v3111_v33 = vadd.f32 %v3110_v45, %v11534_v35 }
 0x3c2   : > { %v3151_v14 = vmul.f32 %v11548_v17, %v11548_v17 }
 0x3c3   : > { %v3112_v48 = vadd.f32 %v3111_v33, %v11551_v20  ;;  %v3150_v58 = vmul.f32 %v11551_v20, %v11551_v20  ;;  %v3180_v2 = vadd.f32 %v3179_v31, %v3149_v49  ;;  %v8193_v12 = vpop.f32.mrb[24].mxu0 }
 0x3c4   : > { %v11558_v24 = vadd.f32 %v8193_v12, %v11413_v57  ;;  %v2981_v44 = vpop.f32.mrb[25].mxu0 }
 0x3c5   : > { %v3181_v39 = vadd.f32 %v3180_v2, %v3150_v58  ;;  %v11563_v51 = vadd.f32 %v11413_v57, %v2981_v44  ;;  %v3113_v60 = vadd.f32 %v3112_v48, %v11548_v17 }
 0x3c6   : > { %v3153_v10 = vmul.f32 %v11558_v24, %v11558_v24 }
 0x3c7   : > { %v3114_v6 = vadd.f32 %v3113_v60, %v11563_v51  ;;  %v3152_v11 = vmul.f32 %v11563_v51, %v11563_v51  ;;  %v3182_v30 = vadd.f32 %v3181_v39, %v3151_v14  ;;  %v8196_v15 = vpop.f32.mrb[26].mxu0 }
 0x3c8   : > { %v2991_v43 = vpop.f32.mrb[27].mxu0  ;;  %v11572_v23 = vadd.f32 %v8196_v15, %v11413_v57 }
 0x3c9   : > { %v3183_v0 = vadd.f32 %v3182_v30, %v3152_v11  ;;  %v11575_v61 = vadd.f32 %v11413_v57, %v2991_v43  ;;  %v3115_v5 = vadd.f32 %v3114_v6, %v11558_v24 }
 0x3ca   : > { %v3155_v37 = vmul.f32 %v11572_v23, %v11572_v23 }
 0x3cb   : > { %v3116_v1 = vadd.f32 %v3115_v5, %v11575_v61  ;;  %v3154_v34 = vmul.f32 %v11575_v61, %v11575_v61  ;;  %v3184_v36 = vadd.f32 %v3183_v0, %v3153_v10  ;;  %v8199_v55 = vpop.f32.mrb[28].mxu0 }
 0x3cc   : > { %v11582_v8 = vadd.f32 %v8199_v55, %v11413_v57  ;;  %v3001_v13 = vpop.f32.mrb[29].mxu0 }
 0x3cd   : > { %v3185_v54 = vadd.f32 %v3184_v36, %v3154_v34  ;;  %v11587_v26 = vadd.f32 %v11413_v57, %v3001_v13  ;;  %v3117_v50 = vadd.f32 %v3116_v1, %v11572_v23 }
 0x3ce   : > { %v3157_v49 = vmul.f32 %v11582_v8, %v11582_v8 }
 0x3cf   : > { %v3118_v45 = vadd.f32 %v3117_v50, %v11587_v26  ;;  %v3156_v40 = vmul.f32 %v11587_v26, %v11587_v26  ;;  %v3186_v25 = vadd.f32 %v3185_v54, %v3155_v37  ;;  %v8202_v47 = vpop.f32.mrb[30].mxu0 }
 0x3d0   : > { %v3011_v21 = vpop.f32.mrb[31].mxu0  ;;  %v11596_v33 = vadd.f32 %v8202_v47, %v11413_v57 }
 0x3d1   : > { %v3187_v31 = vadd.f32 %v3186_v25, %v3156_v40  ;;  %v3089_v48 = vadd.f32 %v11413_v57, %v3011_v21  ;;  %v3119_v58 = vadd.f32 %v3118_v45, %v11582_v8 }
 0x3d2   : > { %v3159_v14 = vmul.f32 %v11596_v33, %v11596_v33 }
 0x3d3   : > { %v3120_v2 = vadd.f32 %v3119_v58, %v3089_v48  ;;  %v3158_v12 = vmul.f32 %v3089_v48, %v3089_v48  ;;  %v3188_v44 = vadd.f32 %v3187_v31, %v3157_v49 }
 0x3d5   : > { %v3121_v39 = vadd.f32 %v3120_v2, %v11596_v33  ;;  %v3189_v60 = vadd.f32 %v3188_v44, %v3158_v12 }
 0x3d7   : > { %v3122_v6 = vrot.slane %v3121_v39, 4  ;;  %v3190_v11 = vadd.f32 %v3189_v60, %v3159_v14 }
 0x3d9   : > { %v3123_v30 = vadd.f32 %v3122_v6, %v3121_v39  ;;  %v3191_v15 = vrot.slane %v3190_v11, 4 }
 0x3db   : > { %v3124_v10 = vrot.slane %v3123_v30, 2  ;;  %v3192_v43 = vadd.f32 %v3191_v15, %v3190_v11 }
 0x3dd   : > { %v3125_v0 = vadd.f32 %v3124_v10, %v3123_v30  ;;  %v3193_v5 = vrot.slane %v3192_v43, 2 }
 0x3df   : > { %v3126_v57 = vrot.slane %v3125_v0, 1  ;;  %v3194_v1 = vadd.f32 %v3193_v5, %v3192_v43 }
 0x3e1   : > { %v3127_v34 = vadd.f32 %v3126_v57, %v3125_v0  ;;  %v3195_v36 = vrot.slane %v3194_v1, 1 }
 0x3e3   : > { %v3196_v55 = vadd.f32 %v3195_v36, %v3194_v1  ;;  %v11603_v13 = vmul.f32 0.00390625, %v3127_v34 }
 0x3e5   : > { %v3198_v37 = vmul.f32 0.00390625, %v3196_v55  ;;  %v3199_v54 = vmul.f32 %v11603_v13, %v11603_v13  ;;  %v3232_v50 = vsub.f32 %v3089_v48, %v11603_v13  ;;  %v3212_v40 = vsub.f32 %v11479_v38, %v11603_v13 }
 0x3e6   : > { %v3213_v25 = vsub.f32 %v11476_v59, %v11603_v13  ;;  %v3214_v49 = vsub.f32 %v11491_v63, %v11603_v13  ;;  %v3215_v21 = vsub.f32 %v11486_v32, %v11603_v13  ;;  %v3216_v31 = vsub.f32 %v11503_v41, %v11603_v13 }
 0x3e7   : > { %v3200_v45 = vsub.f32 %v3198_v37, %v3199_v54  ;;  %v3217_v48 = vsub.f32 %v11500_v19, %v11603_v13  ;;  %v3218_v58 = vsub.f32 %v11515_v42, %v11603_v13  ;;  %v3219_v38 = vsub.f32 %v11510_v62, %v11603_v13 }
 0x3e8   : > { %v3220_v59 = vsub.f32 %v11527_v27, %v11603_v13  ;;  %v3221_v63 = vsub.f32 %v11524_v28, %v11603_v13  ;;  %v3222_v32 = vsub.f32 %v11539_v3, %v11603_v13  ;;  %v3223_v41 = vsub.f32 %v11534_v35, %v11603_v13 }
 0x3e9   : > { %v3201_v47 = vmax.f32 %v3200_v45, 0.0  ;;  %v3224_v19 = vsub.f32 %v11551_v20, %v11603_v13  ;;  %v3225_v42 = vsub.f32 %v11548_v17, %v11603_v13  ;;  %v3226_v62 = vsub.f32 %v11563_v51, %v11603_v13 }
 0x3ea   : > { %v3227_v27 = vsub.f32 %v11558_v24, %v11603_v13  ;;  %v3228_v28 = vsub.f32 %v11575_v61, %v11603_v13  ;;  %v3229_v3 = vsub.f32 %v11572_v23, %v11603_v13  ;;  %v3230_v35 = vsub.f32 %v11587_v26, %v11603_v13 }
 0x3eb   : > { %v3234_v2 = vadd.f32 1e-05, %v3201_v47  ;;  %v3231_v20 = vsub.f32 %v11582_v8, %v11603_v13  ;;  %v3233_v17 = vsub.f32 %v11596_v33, %v11603_v13  ;;  %v3202_v51 = vsub.f32 %v11420_v46, %v11603_v13 }
 0x3ec   : > { %v3203_v24 = vsub.f32 %v11417_v16, %v11603_v13  ;;  %v3204_v61 = vsub.f32 %v11432_v18, %v11603_v13  ;;  %v3205_v23 = vsub.f32 %v11429_v53, %v11603_v13  ;;  %v3206_v26 = vsub.f32 %v11443_v7, %v11603_v13 }
 0x3ed   : > { %10105 = vrsqrt.f32 %v3234_v2  ;;  %v3207_v8 = vsub.f32 %v11438_v4, %v11603_v13  ;;  %v3208_v33 = vsub.f32 %v11455_v9, %v11603_v13  ;;  %v3209_v46 = vsub.f32 %v11452_v56, %v11603_v13 }
 0x3ee   : > { %v3210_v16 = vsub.f32 %v11467_v52, %v11603_v13  ;;  %v3211_v18 = vsub.f32 %v11462_v29, %v11603_v13 }
 0x3f7   : > { %v10106_v12 = vpop.eup %10105 }
 0x3f8   : > { %v3266_v53 = vmul.f32 %v10106_v12, %v3232_v50  ;;  %v3236_v44 = vmul.f32 %v10106_v12, %v3202_v51  ;;  %v3237_v14 = vmul.f32 %v10106_v12, %v3203_v24  ;;  %v3238_v7 = vmul.f32 %v10106_v12, %v3204_v61 }
 0x3f9   : > { %v3239_v39 = vmul.f32 %v10106_v12, %v3205_v23  ;;  %v3240_v60 = vmul.f32 %v10106_v12, %v3206_v26  ;;  %v3241_v4 = vmul.f32 %v10106_v12, %v3207_v8  ;;  %v3242_v6 = vmul.f32 %v10106_v12, %v3208_v33 }
 0x3fa   : > { %v3298_v11 = vmax.f32 %v3266_v53, 0.0  ;;  %v11670_v30 = vmul.f32 %v10106_v12, %v3209_v46  ;;  %v11672_v9 = vmul.f32 %v10106_v12, %v3210_v16  ;;  %v11674_v56 = vmul.f32 %v10106_v12, %v3211_v18 }
 0x3fb   : > { %v11676_v15 = vmul.f32 %v10106_v12, %v3212_v40  ;;  %v11678_v52 = vmul.f32 %v10106_v12, %v3213_v25  ;;  %v11680_v29 = vmul.f32 %v10106_v12, %v3214_v49  ;;  %v11682_v10 = vmul.f32 %v10106_v12, %v3215_v21 }
 0x3fc   : > { %3331 = vst [vmem:[#allocation2 + $0x181] sm:$0xff] %v3298_v11  ;;  %3353 = vst [vmem:[#allocation2 + $0x17f] sm:$0x2] %v3298_v11  ;;  %v11684_v43 = vmul.f32 %v10106_v12, %v3216_v31  ;;  %v11686_v0 = vmul.f32 %v10106_v12, %v3217_v48  ;;  %v11688_v5 = vmul.f32 %v10106_v12, %v3218_v58  ;;  %v3268_v21 = vmax.f32 %v3236_v44, 0.0  ;;  %v3430_v44 = vld [vmem:[#allocation9 + $0x10] sm:$0xff]  ;;  %v3431_v11 = vld [vmem:[#allocation9 + $0x18] sm:$0xff] }
 0x3fd   : > { %v11690_v57 = vmul.f32 %v10106_v12, %v3219_v38  ;;  %v11692_v1 = vmul.f32 %v10106_v12, %v3220_v59  ;;  %v11694_v34 = vmul.f32 %v10106_v12, %v3221_v63  ;;  %v11696_v36 = vmul.f32 %v10106_v12, %v3222_v32 }
 0x3fe   : > { %v11698_v55 = vmul.f32 %v10106_v12, %v3223_v41  ;;  %v11700_v13 = vmul.f32 %v10106_v12, %v3224_v19  ;;  %v11702_v37 = vmul.f32 %v10106_v12, %v3225_v42  ;;  %v11704_v54 = vmul.f32 %v10106_v12, %v3226_v62  ;;  %3301 = vst [vmem:[#allocation2 + $0x19] sm:$0xff] %v3268_v21 }
 0x3ff   : > { %v11706_v50 = vmul.f32 %v10106_v12, %v3227_v27  ;;  %v11708_v45 = vmul.f32 %v10106_v12, %v3228_v28  ;;  %v11710_v40 = vmul.f32 %v10106_v12, %v3229_v3  ;;  %v11712_v25 = vmul.f32 %v10106_v12, %v3230_v35  ;;  %3338 = vst [vmem:[#allocation2 + $0x17] sm:$0x2] %v3268_v21 }
 0x400   : > { %v11714_v47 = vmul.f32 %v10106_v12, %v3231_v20  ;;  %v11716_v49 = vmul.f32 %v10106_v12, %v3233_v17  ;;  %v3269_v31 = vmax.f32 %v3237_v14, 0.0  ;;  %v3270_v48 = vmax.f32 %v3238_v7, 0.0 }
 0x401   : > { %v3271_v58 = vmax.f32 %v3239_v39, 0.0  ;;  %v3272_v38 = vmax.f32 %v3240_v60, 0.0  ;;  %v3273_v59 = vmax.f32 %v3241_v4, 0.0  ;;  %v3274_v2 = vmax.f32 %v3242_v6, 0.0 }
 0x402   : > { %v3275_v63 = vmax.f32 %v11670_v30, 0.0  ;;  %v3276_v32 = vmax.f32 %v11672_v9, 0.0  ;;  %v3277_v41 = vmax.f32 %v11674_v56, 0.0  ;;  %v3278_v19 = vmax.f32 %v11676_v15, 0.0  ;;  %3302 = vst [vmem:[#allocation2 + $0x21] sm:$0xff] %v3269_v31  ;;  %3303 = vst [vmem:[#allocation2 + $0x31] sm:$0xff] %v3270_v48 }
 0x403   : > { %3333 = vst [vmem:[#allocation2 + $0x1] sm:$0xff] %v3270_v48  ;;  %3339 = vst [vmem:[#allocation2 + $0x2f] sm:$0x2] %v3270_v48  ;;  %v3279_v42 = vmax.f32 %v11678_v52, 0.0  ;;  %v3280_v62 = vmax.f32 %v11680_v29, 0.0  ;;  %v3281_v27 = vmax.f32 %v11682_v10, 0.0 }
 0x404   : > { %3354 = vst [vmem:[#allocation2 + $0x23] sm:$0x40] %v3269_v31  ;;  %3370 = vst [vmem:[#allocation2 - $0x1] sm:$0x2] %v3270_v48  ;;  %v3282_v28 = vmax.f32 %v11684_v43, 0.0  ;;  %v3283_v3 = vmax.f32 %v11686_v0, 0.0 }
 0x405   : > { %3304 = vst [vmem:[#allocation2 + $0x39] sm:$0xff] %v3271_v58  ;;  %3305 = vst [vmem:[#allocation2 + $0x49] sm:$0xff] %v3272_v38  ;;  %v3284_v35 = vmax.f32 %v11688_v5, 0.0  ;;  %v3285_v20 = vmax.f32 %v11690_v57, 0.0  ;;  %v3286_v17 = vmax.f32 %v11692_v1, 0.0  ;;  %v3287_v51 = vmax.f32 %v11694_v34, 0.0 }
 0x406   : > { %3306 = vst [vmem:[#allocation2 + $0x51] sm:$0xff] %v3273_v59  ;;  %3307 = vst [vmem:[#allocation2 + $0x61] sm:$0xff] %v3274_v2  ;;  %v3288_v24 = vmax.f32 %v11696_v36, 0.0  ;;  %v3289_v61 = vmax.f32 %v11698_v55, 0.0  ;;  %v3290_v23 = vmax.f32 %v11700_v13, 0.0  ;;  %v3291_v26 = vmax.f32 %v11702_v37, 0.0 }
 0x407   : > { %3334 = vst [vmem:[#allocation2 + $0x9] sm:$0xff] %v3271_v58  ;;  %3340 = vst [vmem:[#allocation2 + $0x47] sm:$0x2] %v3272_v38  ;;  %v3292_v8 = vmax.f32 %v11704_v54, 0.0  ;;  %v3293_v12 = vmax.f32 %v11706_v50, 0.0  ;;  %v3294_v33 = vmax.f32 %v11708_v45, 0.0  ;;  %v9247_v5 = vpack.c.bf16 %v3431_v11, %v3430_v44 }
 0x408   : > { %3341 = vst [vmem:[#allocation2 + $0x5f] sm:$0x2] %v3274_v2  ;;  %3355 = vst [vmem:[#allocation2 + $0x3b] sm:$0x40] %v3271_v58  ;;  %v3295_v46 = vmax.f32 %v11710_v40, 0.0  ;;  %v3296_v16 = vmax.f32 %v11712_v25, 0.0 }
 0x409   : > { %3356 = vst [vmem:[#allocation2 + $0x53] sm:$0x40] %v3273_v59  ;;  %3371 = vst [vmem:[#allocation2 + $0xb] sm:$0x40] %v3271_v58  ;;  %v3297_v18 = vmax.f32 %v11714_v47, 0.0  ;;  %v3299_v53 = vmax.f32 %v11716_v49, 0.0 }
 0x40a   : > { %3308 = vst [vmem:[#allocation2 + $0x69] sm:$0xff] %v3275_v63  ;;  %3309 = vst [vmem:[#allocation2 + $0x79] sm:$0xff] %v3276_v32  ;;  %v11744_v7 = vld [vmem:[#allocation2 + $0x18] sm:$0xff]  ;;  %v11746_v39 = vld [vmem:[#allocation2 + $0x20] sm:$0xff] }
 0x40b   : > { %3310 = vst [vmem:[#allocation2 + $0x81] sm:$0xff] %v3277_v41  ;;  %3311 = vst [vmem:[#allocation2 + $0x91] sm:$0xff] %v3278_v19  ;;  %v11742_v14 = vld [vmem:[#allocation2] sm:$0xff]  ;;  %v3497_v56 = vrot.slane %v11744_v7, 1  ;;  %v3498_v15 = vrot.slane %v11746_v39, 1  ;;  %v11759_v29 = vld [vmem:[#allocation2 + $0x30] sm:$0xff] }
 0x40c   : > { %3342 = vst [vmem:[#allocation2 + $0x77] sm:$0x2] %v3276_v32  ;;  %3343 = vst [vmem:[#allocation2 + $0x8f] sm:$0x2] %v3278_v19  ;;  %v3492_v4 = vrot.slane %v11742_v14, 1  ;;  %v11761_v10 = vld [vmem:[#allocation2 + $0x38] sm:$0xff] }
 0x40d   : > { %3357 = vst [vmem:[#allocation2 + $0x6b] sm:$0x40] %v3275_v63  ;;  %3358 = vst [vmem:[#allocation2 + $0x83] sm:$0x40] %v3277_v41  ;;  %v11757_v52 = vld [vmem:[#allocation2 + $0x28] sm:$0x3]  ;;  %v11767_v36 = vsel %vm415_vm0, %v3497_v56, %v3498_v15 }
 0x40e   : > { %3312 = vst [vmem:[#allocation2 + $0x99] sm:$0xff] %v3279_v42  ;;  %3313 = vst [vmem:[#allocation2 + $0xa9] sm:$0xff] %v3280_v62  ;;  %v11748_v60 = vld [vmem:[#allocation2 + $0x8] sm:$0xff]  ;;  %v3500_v57 = vrot.slane %v11757_v52, 1  ;;  %v3432_v1 = vld [vmem:[#allocation9 + $0x20] sm:$0xff]  ;;  %v3502_v55 = vrot.slane %v11759_v29, 1 }
 0x40f   : > { %3314 = vst [vmem:[#allocation2 + $0xb1] sm:$0xff] %v3281_v27  ;;  %3315 = vst [vmem:[#allocation2 + $0xc1] sm:$0xff] %v3282_v28  ;;  %v3493_v30 = vrot.slane %v11748_v60, 1  ;;  %v3433_v34 = vld [vmem:[#allocation9 + $0x28] sm:$0xff]  ;;  %v3503_v13 = vrot.slane %v11761_v10, 1  ;;  %v11775_v54 = vld [vmem:[#allocation2 + $0x48] sm:$0xff] }
 0x410   : > { %3344 = vst [vmem:[#allocation2 + $0xa7] sm:$0x2] %v3280_v62  ;;  %3345 = vst [vmem:[#allocation2 + $0xbf] sm:$0x2] %v3282_v28  ;;  %v11751_v6 = vld [vmem:[#allocation2 + $0x10] sm:$0x3]  ;;  %v9251_v45 = vpack.c.bf16 %v3433_v34, %v3432_v1  ;;  %v11780_v40 = vsel %vm415_vm0, %v3498_v15, %v3500_v57 }
 0x411   : > { %3359 = vst [vmem:[#allocation2 + $0x9b] sm:$0x40] %v3279_v42  ;;  %3360 = vst [vmem:[#allocation2 + $0xb3] sm:$0x40] %v3281_v27  ;;  %v3495_v9 = vrot.slane %v11751_v6, 1  ;;  %v3494_v43 = vsel %vm415_vm0, %v3492_v4, %v3493_v30  ;;  %v11777_v50 = vld [vmem:[#allocation2 + $0x50] sm:$0xff]  ;;  %v11785_v21 = vsel %vm415_vm0, %v3502_v55, %v3503_v13 }
 0x412   : > { %3316 = vst [vmem:[#allocation2 + $0xc9] sm:$0xff] %v3283_v3  ;;  %3317 = vst [vmem:[#allocation2 + $0xd9] sm:$0xff] %v3284_v35  ;;  %8235 = vmatprep.mubr.f32.mxu1 %v3494_v43  ;;  %v11771_v37 = vld [vmem:[#allocation2 + $0x40] sm:$0x3]  ;;  %v3434_v47 = vld [vmem:[#allocation9 + $0x30] sm:$0xff]  ;;  %v3508_v31 = vrot.slane %v11777_v50, 1 }
 0x413   : > { %3318 = vst [vmem:[#allocation2 + $0xe1] sm:$0xff] %v3285_v20  ;;  %3319 = vst [vmem:[#allocation2 + $0xf1] sm:$0xff] %v3286_v17  ;;  %v3496_v0 = vsel %vm415_vm0, %v3493_v30, %v3495_v9  ;;  %v3505_v25 = vrot.slane %v11771_v37, 1  ;;  %v3435_v49 = vld [vmem:[#allocation9 + $0x38] sm:$0xff]  ;;  %v11789_v48 = vld [vmem:[#allocation2 + $0x58] sm:$0x3] }
 0x414   : > { %3346 = vst [vmem:[#allocation2 + $0xd7] sm:$0x2] %v3284_v35  ;;  %3347 = vst [vmem:[#allocation2 + $0xef] sm:$0x2] %v3286_v17  ;;  %8236 = vmatmul.mubr.f32.vlgmr.msra.gmra.mrb[0].mxu1 %v3496_v0  ;;  %v11792_v58 = vld [vmem:[#allocation2 + $0x60] sm:$0xff]  ;;  %v11794_v38 = vld [vmem:[#allocation2 + $0x68] sm:$0xff]  ;;  %v9255_v59 = vpack.c.bf16 %v3435_v49, %v3434_v47 }
 0x415   : > { %3361 = vst [vmem:[#allocation2 + $0xcb] sm:$0x40] %v3283_v3  ;;  %3362 = vst [vmem:[#allocation2 + $0xe3] sm:$0x40] %v3285_v20  ;;  %8238 = vmatprep.mubr.f32.mxu1 %v11767_v36  ;;  %9246 = vmatpush3.bf16.msra.mxu1 %v11411_v22  ;;  %v3507_v22 = vrot.slane %v11775_v54, 1  ;;  %v11797_v2 = vsel %vm415_vm0, %v3503_v13, %v3505_v25  ;;  %v3510_v63 = vrot.slane %v11789_v48, 1 }
 0x416   : > { %3320 = vst [vmem:[#allocation2 + $0xf9] sm:$0xff] %v3287_v51  ;;  %3321 = vst [vmem:[#allocation2 + $0x109] sm:$0xff] %v3288_v24  ;;  %9248 = vmatprep.subr.bf16.mxu1 %v9247_v5  ;;  %v3436_v32 = vld [vmem:[#allocation9 + $0x40] sm:$0xff]  ;;  %v3437_v41 = vld [vmem:[#allocation9 + $0x48] sm:$0xff]  ;;  %v3512_v42 = vrot.slane %v11792_v58, 1  ;;  %v3513_v62 = vrot.slane %v11794_v38, 1 }
 0x417   : > { %3322 = vst [vmem:[#allocation2 + $0x111] sm:$0xff] %v3289_v61  ;;  %3323 = vst [vmem:[#allocation2 + $0x121] sm:$0xff] %v3290_v23  ;;  %v11802_v19 = vsel %vm415_vm0, %v3507_v22, %v3508_v31  ;;  %v11806_v27 = vld [vmem:[#allocation2 + $0x70] sm:$0x3]  ;;  %v11809_v28 = vld [vmem:[#allocation2 + $0x78] sm:$0xff]  ;;  %v9259_v35 = vpack.c.bf16 %v3437_v41, %v3436_v32  ;;  %v11814_v20 = vsel %vm415_vm0, %v3508_v31, %v3510_v63 }
 0x418   : > { %3348 = vst [vmem:[#allocation2 + $0x107] sm:$0x2] %v3288_v24  ;;  %3349 = vst [vmem:[#allocation2 + $0x11f] sm:$0x2] %v3290_v23  ;;  %8239 = vmatmul.mubr.f32.gmra.mrb[2].mxu1 %v11780_v40  ;;  %v11811_v3 = vld [vmem:[#allocation2 + $0x80] sm:$0xff]  ;;  %v3515_v17 = vrot.slane %v11806_v27, 1 }
 0x419   : > { %3363 = vst [vmem:[#allocation2 + $0xfb] sm:$0x40] %v3287_v51  ;;  %3364 = vst [vmem:[#allocation2 + $0x113] sm:$0x40] %v3289_v61  ;;  %8241 = vmatprep.mubr.f32.mxu1 %v11785_v21  ;;  %9250 = vmatpush3.bf16.msra.mxu1 %v9247_v5  ;;  %v3438_v51 = vld [vmem:[#allocation9 + $0x50] sm:$0xff]  ;;  %v3439_v24 = vld [vmem:[#allocation9 + $0x58] sm:$0xff]  ;;  %v11819_v61 = vsel %vm415_vm0, %v3512_v42, %v3513_v62 }
 0x41a   : > { %3324 = vst [vmem:[#allocation2 + $0x129] sm:$0xff] %v3291_v26  ;;  %3325 = vst [vmem:[#allocation2 + $0x139] sm:$0xff] %v3292_v8  ;;  %9252 = vmatprep.subr.bf16.mxu1 %v9251_v45  ;;  %v3517_v23 = vrot.slane %v11809_v28, 1  ;;  %v3441_v44 = vld [vmem:[#allocation9 + $0x68] sm:$0xff]  ;;  %v11843_v56 = vld [vmem:[#allocation2 + $0xa8] sm:$0xff] }
 0x41b   : > { %3326 = vst [vmem:[#allocation2 + $0x141] sm:$0xff] %v3293_v12  ;;  %3327 = vst [vmem:[#allocation2 + $0x151] sm:$0xff] %v3294_v33  ;;  %v11840_v9 = vld [vmem:[#allocation2 + $0xa0] sm:$0x3]  ;;  %v11845_v15 = vld [vmem:[#allocation2 + $0xb0] sm:$0xff]  ;;  %v3527_v55 = vrot.slane %v11843_v56, 1 }
 0x41c   : > { %3350 = vst [vmem:[#allocation2 + $0x137] sm:$0x2] %v3292_v8  ;;  %3351 = vst [vmem:[#allocation2 + $0x14f] sm:$0x2] %v3294_v33  ;;  %8242 = vmatmul.mubr.f32.gmra.mrb[4].mxu1 %v11797_v2  ;;  %v11823_v8 = vld [vmem:[#allocation2 + $0x88] sm:$0x3] }
 0x41d   : > { %3365 = vst [vmem:[#allocation2 + $0x12b] sm:$0x40] %v3291_v26  ;;  %3366 = vst [vmem:[#allocation2 + $0x143] sm:$0x40] %v3293_v12  ;;  %8244 = vmatprep.mubr.f32.mxu1 %v11802_v19  ;;  %9254 = vmatpush3.bf16.msra.mxu1 %v9251_v45  ;;  %v3518_v26 = vrot.slane %v11811_v3, 1  ;;  %v11826_v12 = vld [vmem:[#allocation2 + $0x90] sm:$0xff] }
 0x41e   : > { %3328 = vst [vmem:[#allocation2 + $0x159] sm:$0xff] %v3295_v46  ;;  %3329 = vst [vmem:[#allocation2 + $0x169] sm:$0xff] %v3296_v16  ;;  %9256 = vmatprep.subr.bf16.mxu1 %v9255_v59  ;;  %v11828_v33 = vld [vmem:[#allocation2 + $0x98] sm:$0xff]  ;;  %v3522_v11 = vrot.slane %v11826_v12, 1  ;;  %v3525_v5 = vrot.slane %v11840_v9, 1  ;;  %v3442_v57 = vld [vmem:[#allocation9 + $0x70] sm:$0xff] }
 0x41f   : > { %3330 = vst [vmem:[#allocation2 + $0x171] sm:$0xff] %v3297_v18  ;;  %3332 = vst [vmem:[#allocation2 + $0x189] sm:$0xff] %v3299_v53  ;;  %v11836_v4 = vsel %vm415_vm0, %v3517_v23, %v3518_v26  ;;  %v3523_v30 = vrot.slane %v11828_v33, 1  ;;  %v3443_v1 = vld [vmem:[#allocation9 + $0x78] sm:$0xff]  ;;  %v3528_v13 = vrot.slane %v11845_v15, 1  ;;  %v11860_v25 = vld [vmem:[#allocation2 + $0xc0] sm:$0xff] }
 0x420   : > { %3336 = vst [vmem:[#allocation2 + $0x199] sm:$0xff] %v3296_v16  ;;  %3337 = vst [vmem:[#allocation2 + $0x1a1] sm:$0xff] %v3297_v18  ;;  %8245 = vmatmul.mubr.f32.gmra.mrb[6].mxu1 %v11814_v20  ;;  %v11857_v45 = vld [vmem:[#allocation2 + $0xb8] sm:$0x3]  ;;  %v11862_v47 = vld [vmem:[#allocation2 + $0xc8] sm:$0xff]  ;;  %v9271_v49 = vpack.c.bf16 %v3443_v1, %v3442_v57  ;;  %v3532_v41 = vrot.slane %v11860_v25, 1 }
 0x421   : > { %3352 = vst [vmem:[#allocation2 + $0x167] sm:$0x2] %v3296_v16  ;;  %3367 = vst [vmem:[#allocation2 + $0x15b] sm:$0x40] %v3295_v46  ;;  %8247 = vmatprep.mubr.f32.mxu1 %v11819_v61  ;;  %9258 = vmatpush3.bf16.msra.mxu1 %v9255_v59  ;;  %v9263_v46 = vpack.c.bf16 %v3439_v24, %v3438_v51  ;;  %v11853_v34 = vsel %vm415_vm0, %v3522_v11, %v3523_v30  ;;  %v3530_v31 = vrot.slane %v11857_v45, 1  ;;  %v4182_v59 = vld [vmem:[#allocation9 + $0x100] sm:$0xff] }
 0x422   : > { %3368 = vst [vmem:[#allocation2 + $0x173] sm:$0x40] %v3297_v18  ;;  %3369 = vst [vmem:[#allocation2 + $0x18b] sm:$0x40] %v3299_v53  ;;  %9260 = vmatprep.subr.bf16.mxu1 %v9259_v35  ;;  %v3440_v53 = vld [vmem:[#allocation9 + $0x60] sm:$0xff]  ;;  %v11865_v22 = vsel %vm415_vm0, %v3523_v30, %v3525_v5  ;;  %v4183_v63 = vld [vmem:[#allocation9 + $0x108] sm:$0xff]  ;;  %v11870_v32 = vsel %vm415_vm0, %v3527_v55, %v3528_v13 }
 0x423   : > { %3372 = vst [vmem:[#allocation2 + $0x197] sm:$0x2] %v3296_v16  ;;  %3373 = vst [vmem:[#allocation2 + $0x1a3] sm:$0x40] %v3297_v18  ;;  %v11831_v16 = vsel %vm415_vm0, %v3513_v62, %v3515_v17  ;;  %v3520_v18 = vrot.slane %v11823_v8, 1  ;;  %v9267_v43 = vpack.c.bf16 %v3441_v44, %v3440_v53  ;;  %v3533_v42 = vrot.slane %v11862_v47, 1 }
 0x424   : > { %13138 = vst [vmem:[#allocation20_spill] sm:$0xff] %v11797_v2  ;;  %13139 = vst [vmem:[#allocation21_spill] sm:$0xff] %v11802_v19  ;;  %8248 = vmatmul.mubr.f32.gmra.mrb[8].mxu1 %v11831_v16  ;;  %v11874_v62 = vld [vmem:[#allocation2 + $0xd0] sm:$0x3]  ;;  %v11879_v17 = vld [vmem:[#allocation2 + $0xe0] sm:$0xff]  ;;  %v11881_v51 = vpack.c.bf16 %v4183_v63, %v4182_v59  ;;  %v11884_v24 = vsel %vm415_vm0, %v3528_v13, %v3530_v31  ;;  %v4080_v2 = vrot.slane %v11759_v29, 2 }
 0x425   : > { %13140 = vst [vmem:[#allocation22_spill] sm:$0xff] %v11814_v20  ;;  %13141 = vst [vmem:[#allocation23_spill] sm:$0xff] %v11819_v61  ;;  %8250 = vmatprep.mubr.f32.mxu1 %v11836_v4  ;;  %9262 = vmatpush3.bf16.msra.mxu1 %v9259_v35  ;;  %v11848_v0 = vsel %vm415_vm0, %v3518_v26, %v3520_v18  ;;  %v11877_v35 = vld [vmem:[#allocation2 + $0xd8] sm:$0xff]  ;;  %v3535_v23 = vrot.slane %v11874_v62, 1  ;;  %v11889_v26 = vsel %vm415_vm0, %v3532_v41, %v3533_v42  ;;  %v11893_v53 = vld [vmem:[#allocation2 + $0xe8] sm:$0x3] }
 0x426   : > { %13142 = vst [vmem:[#allocation24_spill] sm:$0xff] %v11831_v16  ;;  %13143 = vst [vmem:[#allocation25_spill] sm:$0xff] %v11836_v4  ;;  %9264 = vmatprep.subr.bf16.mxu1 %v9263_v46  ;;  %v3538_v18 = vrot.slane %v11879_v17, 1  ;;  %v11896_v44 = vld [vmem:[#allocation2 + $0xf0] sm:$0xff]  ;;  %v11898_v11 = vld [vmem:[#allocation2 + $0xf8] sm:$0xff] }
 0x427   : > { %13144 = vst [vmem:[#allocation26_spill] sm:$0xff] %v11848_v0  ;;  %13145 = vst [vmem:[#allocation27_spill] sm:$0xff] %v11853_v34  ;;  %v11902_v30 = vsel %vm415_vm0, %v3533_v42, %v3535_v23  ;;  %v3542_v57 = vrot.slane %v11896_v44, 1  ;;  %v3543_v1 = vrot.slane %v11898_v11, 1  ;;  %v11911_v55 = vld [vmem:[#allocation2 + $0x100] sm:$0x3] }
 0x428   : > { %8251 = vmatmul.mubr.f32.gmra.mrb[10].mxu1 %v11848_v0  ;;  %13146 = vst [vmem:[#allocation28_spill] sm:$0xff] %v11865_v22  ;;  %13147 = vst [vmem:[#allocation29_spill] sm:$0xff] %v11870_v32  ;;  %v11914_v13 = vld [vmem:[#allocation2 + $0x108] sm:$0xff]  ;;  %v3545_v59 = vrot.slane %v11911_v55, 1  ;;  %v11928_v23 = vld [vmem:[#allocation2 + $0x118] sm:$0x3] }
 0x429   : > { %8253 = vmatprep.mubr.f32.mxu1 %v11853_v34  ;;  %9266 = vmatpush3.bf16.msra.mxu1 %v9263_v46  ;;  %13148 = vst [vmem:[#allocation30_spill] sm:$0xff] %v11884_v24  ;;  %13149 = vst [vmem:[#allocation31_spill] sm:$0xff] %v11889_v26  ;;  %v3537_v46 = vrot.slane %v11877_v35, 1  ;;  %v11924_v63 = vsel %vm415_vm0, %v3542_v57, %v3543_v1  ;;  %v3547_v41 = vrot.slane %v11914_v13, 1  ;;  %v11967_v34 = vld [vmem:[#allocation2 + $0x158] sm:$0xff]  ;;  %v11984_v16 = vld [vmem:[#allocation2 + $0x170] sm:$0xff] }
 0x42a   : > { %9268 = vmatprep.subr.bf16.mxu1 %v9267_v43  ;;  %13150 = vst [vmem:[#allocation32_spill] sm:$0xff] %v11902_v30  ;;  %13153 = vst [vmem:[#allocation35_spill] sm:$0xff] %v11924_v63  ;;  %v3563_v0 = vrot.slane %v11967_v34, 1  ;;  %v11979_v4 = vld [vmem:[#allocation2 + $0x160] sm:$0x3]  ;;  %v3568_v61 = vrot.slane %v11984_v16, 1 }
 0x42b   : > { %v11907_v5 = vsel %vm415_vm0, %v3537_v46, %v3538_v18  ;;  %v11931_v46 = vld [vmem:[#allocation2 + $0x120] sm:$0xff]  ;;  %v11996_v20 = vld [vmem:[#allocation2 + $0x178] sm:$0x3]  ;;  %v4185_v19 = vld [vmem:[#allocation9 + $0x118] sm:$0xff] }
 0x42c   : > { %8254 = vmatmul.mubr.f32.gmra.mrb[12].mxu1 %v11865_v22  ;;  %13151 = vst [vmem:[#allocation33_spill] sm:$0xff] %v11907_v5  ;;  %v11962_v22 = vld [vmem:[#allocation2 + $0x148] sm:$0x3] }
 0x42d   : > { %8256 = vmatprep.mubr.f32.mxu1 %v11870_v32  ;;  %9270 = vmatpush3.bf16.msra.mxu1 %v9267_v43  ;;  %v3540_v43 = vrot.slane %v11893_v53, 1 }
 0x42e   : > { %9272 = vmatprep.subr.bf16.mxu1 %v9271_v49 }
 0x42f   : > { %v11919_v31 = vsel %vm415_vm0, %v3538_v18, %v3540_v43  ;;  %v11936_v18 = vsel %vm415_vm0, %v3543_v1, %v3545_v59  ;;  %v3550_v43 = vrot.slane %v11928_v23, 1 }
 0x430   : > { %8257 = vmatmul.mubr.f32.gmra.mrb[14].mxu1 %v11884_v24  ;;  %13152 = vst [vmem:[#allocation34_spill] sm:$0xff] %v11919_v31  ;;  %13154 = vst [vmem:[#allocation36_spill] sm:$0xff] %v11936_v18  ;;  %v11950_v24 = vld [vmem:[#allocation2 + $0x140] sm:$0xff] }
 0x431   : > { %8259 = vmatprep.mubr.f32.mxu1 %v11889_v26  ;;  %9274 = vmatpush3.bf16.msra.mxu1 %v9271_v49  ;;  %v11916_v49 = vld [vmem:[#allocation2 + $0x110] sm:$0xff]  ;;  %v3558_v32 = vrot.slane %v11950_v24, 1 }
 0x432   : > { %9276 = vmatprep.subr.bf16.mxu1 %v11881_v51  ;;  %v3548_v42 = vrot.slane %v11916_v49, 1  ;;  %v11945_v26 = vld [vmem:[#allocation2 + $0x130] sm:$0x3] }
 0x433   : > { %v3555_v59 = vrot.slane %v11945_v26, 1 }
 0x434   : > { %8260 = vmatmul.mubr.f32.gmra.mrb[16].mxu1 %v11902_v30  ;;  %v11941_v57 = vsel %vm415_vm0, %v3547_v41, %v3548_v42  ;;  %v11953_v1 = vsel %vm415_vm0, %v3548_v42, %v3550_v43  ;;  %v3560_v43 = vrot.slane %v11962_v22, 1 }
 0x435   : > { %8262 = vmatprep.mubr.f32.mxu1 %v11907_v5  ;;  %v11933_v5 = vld [vmem:[#allocation2 + $0x128] sm:$0xff]  ;;  %13155 = vst [vmem:[#allocation37_spill] sm:$0xff] %v11941_v57  ;;  %13156 = vst [vmem:[#allocation38_spill] sm:$0xff] %v11953_v1 }
 0x436   : > { %v3553_v30 = vrot.slane %v11933_v5, 1 }
 0x438   : > { %8263 = vmatmul.mubr.f32.gmra.mrb[18].mxu1 %v11919_v31  ;;  %v3552_v31 = vrot.slane %v11931_v46, 1  ;;  %v11970_v42 = vsel %vm415_vm0, %v3553_v30, %v3555_v59  ;;  %v3565_v59 = vrot.slane %v11979_v4, 1 }
 0x439   : > { %8265 = vmatprep.mubr.f32.mxu1 %v11924_v63  ;;  %v11948_v63 = vld [vmem:[#allocation2 + $0x138] sm:$0xff]  ;;  %13158 = vst [vmem:[#allocation40_spill] sm:$0xff] %v11970_v42 }
 0x43a   : > { %v11958_v41 = vsel %vm415_vm0, %v3552_v31, %v3553_v30  ;;  %v11987_v30 = vsel %vm415_vm0, %v3558_v32, %v3560_v43 }
 0x43b   : > { %13157 = vst [vmem:[#allocation39_spill] sm:$0xff] %v11958_v41  ;;  %13160 = vst [vmem:[#allocation42_spill] sm:$0xff] %v11987_v30 }
 0x43c   : > { %8266 = vmatmul.mubr.f32.gmra.mrb[20].mxu1 %v11936_v18  ;;  %v3557_v18 = vrot.slane %v11948_v63, 1 }
 0x43d   : > { %8268 = vmatprep.mubr.f32.mxu1 %v11941_v57  ;;  %v11965_v57 = vld [vmem:[#allocation2 + $0x150] sm:$0xff] }
 0x43e   : > { %v11975_v31 = vsel %vm415_vm0, %v3557_v18, %v3558_v32  ;;  %v3570_v32 = vrot.slane %v11996_v20, 1 }
 0x43f   : > { %13159 = vst [vmem:[#allocation41_spill] sm:$0xff] %v11975_v31 }
 0x440   : > { %8269 = vmatmul.mubr.f32.gmra.mrb[22].mxu1 %v11953_v1  ;;  %v3562_v1 = vrot.slane %v11965_v57, 1 }
 0x441   : > { %8271 = vmatprep.mubr.f32.mxu1 %v11958_v41  ;;  %v11982_v41 = vld [vmem:[#allocation2 + $0x168] sm:$0xff] }
 0x442   : > { %v11992_v18 = vsel %vm415_vm0, %v3562_v1, %v3563_v0  ;;  %v12009_v1 = vsel %vm415_vm0, %v3568_v61, %v3570_v32 }
 0x443   : > { %13161 = vst [vmem:[#allocation43_spill] sm:$0xff] %v11992_v18  ;;  %13164 = vst [vmem:[#allocation48_spill] sm:$0xff] %v12009_v1 }
 0x444   : > { %8272 = vmatmul.mubr.f32.gmra.mrb[24].mxu1 %v11970_v42  ;;  %v3567_v42 = vrot.slane %v11982_v41, 1 }
 0x445   : > { %8274 = vmatprep.mubr.f32.mxu1 %v11975_v31  ;;  %v12000_v31 = vsel %vm415_vm0, %v3563_v0, %v3565_v59  ;;  %v4186_v59 = vld [vmem:[#allocation9 + $0x120] sm:$0xff] }
 0x446   : > { %13162 = vst [vmem:[#allocation45_spill] sm:$0xff] %v12000_v31  ;;  %v12005_v43 = vsel %vm415_vm0, %v3567_v42, %v3568_v61  ;;  %v4189_v61 = vld [vmem:[#allocation9 + $0x138] sm:$0xff] }
 0x447   : > { %13163 = vst [vmem:[#allocation47_spill] sm:$0xff] %v12005_v43 }
 0x448   : > { %8275 = vmatmul.mubr.f32.gmra.mrb[26].mxu1 %v11987_v30  ;;  %v4184_v30 = vld [vmem:[#allocation9 + $0x110] sm:$0xff] }
 0x449   : > { %8277 = vmatprep.mubr.f32.mxu1 %v11992_v18  ;;  %v9279_v0 = vpack.c.bf16 %v4185_v19, %v4184_v30  ;;  %v4187_v18 = vld [vmem:[#allocation9 + $0x128] sm:$0xff]  ;;  %v4190_v19 = vld [vmem:[#allocation9 + $0x140] sm:$0xff] }
 0x44a   : > { %v9283_v42 = vpack.c.bf16 %v4187_v18, %v4186_v59  ;;  %v4191_v30 = vld [vmem:[#allocation9 + $0x148] sm:$0xff]  ;;  %v4193_v18 = vld [vmem:[#allocation9 + $0x158] sm:$0xff]  ;;  %v4194_v59 = vld [vmem:[#allocation9 + $0x160] sm:$0xff] }
 0x44c   : > { %8278 = vmatmul.mubr.f32.gmra.mrb[28].mxu1 %v12000_v31  ;;  %v4460_v31 = vld [vmem:[#allocation9 + $0x1a8] sm:$0xff] }
 0x44d   : > { %8280 = vmatprep.mubr.f32.mxu1 %v12005_v43  ;;  %v4188_v43 = vld [vmem:[#allocation9 + $0x130] sm:$0xff] }
 0x44e   : > { %v9287_v32 = vpack.c.bf16 %v4189_v61, %v4188_v43  ;;  %v4195_v43 = vld [vmem:[#allocation9 + $0x168] sm:$0xff]  ;;  %v4196_v61 = vld [vmem:[#allocation9 + $0x170] sm:$0xff] }
 0x450   : > { %8281 = vmatmul.mubr.f32.gmra.mrb[30].mxu1 %v12009_v1  ;;  %v4192_v1 = vld [vmem:[#allocation9 + $0x150] sm:$0xff] }
 0x451   : > { %8315 = vmatprep.mubr.f32.mxu1 %v11742_v14 }
 0x454   : > { %8316 = vmatmul.mubr.f32.vlgmr.msra.gmra.mrb[0].mxu1 %v11748_v60 }
 0x455   : > { %8318 = vmatprep.mubr.f32.mxu1 %v11744_v7  ;;  %9278 = vmatpush3.bf16.msra.mxu1 %v11881_v51  ;;  %v9291_v51 = vpack.c.bf16 %v4191_v30, %v4190_v19  ;;  %v4197_v19 = vld [vmem:[#allocation9 + $0x178] sm:$0xff]  ;;  %v4455_v30 = vld [vmem:[#allocation9 + $0x180] sm:$0xff] }
 0x456   : > { %9280 = vmatprep.subr.bf16.mxu1 %v9279_v0 }
 0x458   : > { %8319 = vmatmul.mubr.f32.gmra.mrb[2].mxu1 %v11746_v39 }
 0x459   : > { %8321 = vmatprep.mubr.f32.mxu1 %v11759_v29  ;;  %9282 = vmatpush3.bf16.msra.mxu1 %v9279_v0  ;;  %v9295_v0 = vpack.c.bf16 %v4193_v18, %v4192_v1  ;;  %v4456_v1 = vld [vmem:[#allocation9 + $0x188] sm:$0xff]  ;;  %v4070_v18 = vrot.slane %v11742_v14, 2 }
 0x45a   : > { %9284 = vmatprep.subr.bf16.mxu1 %v9283_v42 }
 0x45c   : > { %8322 = vmatmul.mubr.f32.gmra.mrb[4].mxu1 %v11761_v10 }
 0x45d   : > { %8324 = vmatprep.mubr.f32.mxu1 %v11775_v54  ;;  %9286 = vmatpush3.bf16.msra.mxu1 %v9283_v42  ;;  %v9299_v42 = vpack.c.bf16 %v4195_v43, %v4194_v59  ;;  %v4073_v59 = vrot.slane %v11751_v6, 2  ;;  %v4457_v43 = vld [vmem:[#allocation9 + $0x190] sm:$0xff] }
 0x45e   : > { %9288 = vmatprep.subr.bf16.mxu1 %v9287_v32 }
 0x460   : > { %8325 = vmatmul.mubr.f32.gmra.mrb[6].mxu1 %v11777_v50 }
 0x461   : > { %8327 = vmatprep.mubr.f32.mxu1 %v11792_v58  ;;  %9290 = vmatpush3.bf16.msra.mxu1 %v9287_v32  ;;  %v9303_v32 = vpack.c.bf16 %v4197_v19, %v4196_v61  ;;  %v4075_v19 = vrot.slane %v11744_v7, 2 }
 0x462   : > { %9292 = vmatprep.subr.bf16.mxu1 %v9291_v51 }
 0x464   : > { %8328 = vmatmul.mubr.f32.gmra.mrb[8].mxu1 %v11794_v38 }
 0x465   : > { %8330 = vmatprep.mubr.f32.mxu1 %v11809_v28  ;;  %9294 = vmatpush3.bf16.msra.mxu1 %v9291_v51  ;;  %v9307_v51 = vpack.c.bf16 %v4456_v1, %v4455_v30  ;;  %v4459_v1 = vld [vmem:[#allocation9 + $0x1a0] sm:$0xff] }
 0x466   : > { %9296 = vmatprep.subr.bf16.mxu1 %v9295_v0 }
 0x468   : > { %8331 = vmatmul.mubr.f32.gmra.mrb[10].mxu1 %v11811_v3 }
 0x469   : > { %8333 = vmatprep.mubr.f32.mxu1 %v11826_v12  ;;  %9298 = vmatpush3.bf16.msra.mxu1 %v9295_v0  ;;  %v4071_v0 = vrot.slane %v11748_v60, 2  ;;  %v4078_v60 = vrot.slane %v11757_v52, 2  ;;  %v4083_v52 = vrot.slane %v11771_v37, 2  ;;  %v4088_v37 = vrot.slane %v11789_v48, 2 }
 0x46a   : > { %9300 = vmatprep.subr.bf16.mxu1 %v9299_v42  ;;  %v4093_v48 = vrot.slane %v11806_v27, 2  ;;  %v4098_v27 = vrot.slane %v11823_v8, 2  ;;  %v4103_v8 = vrot.slane %v11840_v9, 2  ;;  %v4108_v9 = vrot.slane %v11857_v45, 2 }
 0x46b   : > { %v4072_v61 = vsel %vm994_vm1, %v4070_v18, %v4071_v0  ;;  %v4074_v14 = vsel %vm994_vm1, %v4071_v0, %v4073_v59  ;;  %v4081_v18 = vrot.slane %v11761_v10, 2  ;;  %v4461_v0 = vld [vmem:[#allocation9 + $0x1b0] sm:$0xff]  ;;  %v4462_v59 = vld [vmem:[#allocation9 + $0x1b8] sm:$0xff]  ;;  %v4113_v45 = vrot.slane %v11874_v62, 2 }
 0x46c   : > { %8334 = vmatmul.mubr.f32.gmra.mrb[12].mxu1 %v11828_v33 }
 0x46d   : > { %8336 = vmatprep.mubr.f32.mxu1 %v11843_v56  ;;  %9302 = vmatpush3.bf16.msra.mxu1 %v9299_v42  ;;  %v4458_v42 = vld [vmem:[#allocation9 + $0x198] sm:$0xff] }
 0x46e   : > { %9304 = vmatprep.subr.bf16.mxu1 %v9303_v32  ;;  %v9311_v30 = vpack.c.bf16 %v4458_v42, %v4457_v43  ;;  %v12065_v42 = vsel %vm994_vm1, %v4080_v2, %v4081_v18 }
 0x470   : > { %8337 = vmatmul.mubr.f32.gmra.mrb[14].mxu1 %v11845_v15 }
 0x471   : > { %8339 = vmatprep.mubr.f32.mxu1 %v11860_v25  ;;  %9306 = vmatpush3.bf16.msra.mxu1 %v9303_v32  ;;  %v4076_v32 = vrot.slane %v11746_v39, 2 }
 0x472   : > { %9308 = vmatprep.subr.bf16.mxu1 %v9307_v51 }
 0x473   : > { %v12054_v6 = vsel %vm994_vm1, %v4075_v19, %v4076_v32  ;;  %v12060_v43 = vsel %vm994_vm1, %v4076_v32, %v4078_v60  ;;  %v4085_v19 = vrot.slane %v11775_v54, 2  ;;  %v4463_v32 = vld [vmem:[#allocation9 + $0x1c0] sm:$0xff]  ;;  %v4464_v60 = vld [vmem:[#allocation9 + $0x1c8] sm:$0xff] }
 0x474   : > { %8340 = vmatmul.mubr.f32.gmra.mrb[16].mxu1 %v11862_v47  ;;  %13165 = vst [vmem:[#allocation49_spill] sm:$0xff] %v12060_v43 }
 0x475   : > { %8342 = vmatprep.mubr.f32.mxu1 %v11877_v35 }
 0x478   : > { %8343 = vmatmul.mubr.f32.gmra.mrb[18].mxu1 %v11879_v17 }
 0x479   : > { %8345 = vmatprep.mubr.f32.mxu1 %v11896_v44 }
 0x47c   : > { %8346 = vmatmul.mubr.f32.gmra.mrb[20].mxu1 %v11898_v11 }
 0x47d   : > { %8348 = vmatprep.mubr.f32.mxu1 %v11914_v13 }
 0x480   : > { %8349 = vmatmul.mubr.f32.gmra.mrb[22].mxu1 %v11916_v49 }
 0x481   : > { %8351 = vmatprep.mubr.f32.mxu1 %v11931_v46 }
 0x484   : > { %8352 = vmatmul.mubr.f32.gmra.mrb[24].mxu1 %v11933_v5 }
 0x485   : > { %8354 = vmatprep.mubr.f32.mxu1 %v11948_v63 }
 0x488   : > { %8355 = vmatmul.mubr.f32.gmra.mrb[26].mxu1 %v11950_v24 }
 0x489   : > { %8357 = vmatprep.mubr.f32.mxu1 %v11965_v57 }
 0x48c   : > { %8358 = vmatmul.mubr.f32.gmra.mrb[28].mxu1 %v11967_v34 }
 0x48d   : > { %8360 = vmatprep.mubr.f32.mxu1 %v11982_v41 }
 0x490   : > { %8361 = vmatmul.mubr.f32.gmra.mrb[30].mxu1 %v11984_v16 }
 0x491   : > { %8395 = vmatprep.mubr.f32.mxu1 %v4072_v61  ;;  %v9315_v61 = vpack.c.bf16 %v4460_v31, %v4459_v1  ;;  %v9319_v31 = vpack.c.bf16 %v4462_v59, %v4461_v0  ;;  %v4090_v1 = vrot.slane %v11792_v58, 2  ;;  %v4466_v0 = vld [vmem:[#allocation9 + $0x1d8] sm:$0xff] }
 0x494   : > { %8396 = vmatmul.mubr.f32.vlgmr.msra.gmra.mrb[0].mxu1 %v4074_v14  ;;  %v4086_v14 = vrot.slane %v11777_v50, 2 }
 0x495   : > { %8398 = vmatprep.mubr.f32.mxu1 %v12054_v6  ;;  %9310 = vmatpush3.bf16.msra.mxu1 %v9307_v51  ;;  %v12071_v51 = vsel %vm994_vm1, %v4081_v18, %v4083_v52  ;;  %v4465_v52 = vld [vmem:[#allocation9 + $0x1d0] sm:$0xff] }
 0x496   : > { %9312 = vmatprep.subr.bf16.mxu1 %v9311_v30  ;;  %13166 = vst [vmem:[#allocation50_spill] sm:$0xff] %v12071_v51  ;;  %v12076_v2 = vsel %vm994_vm1, %v4085_v19, %v4086_v14  ;;  %v12082_v18 = vsel %vm994_vm1, %v4086_v14, %v4088_v37  ;;  %v4095_v19 = vrot.slane %v11809_v28, 2  ;;  %v4467_v37 = vld [vmem:[#allocation9 + $0x1e0] sm:$0xff] }
 0x497   : > { %13167 = vst [vmem:[#allocation44_spill] sm:$0xff] %v12076_v2  ;;  %13168 = vst [vmem:[#allocation17_spill] sm:$0xff] %v12082_v18 }
 0x498   : > { %8399 = vmatmul.mubr.f32.gmra.mrb[2].mxu1 %v12060_v43  ;;  %v4091_v43 = vrot.slane %v11794_v38, 2 }
 0x499   : > { %8401 = vmatprep.mubr.f32.mxu1 %v12065_v42  ;;  %9314 = vmatpush3.bf16.msra.mxu1 %v9311_v30  ;;  %v9323_v30 = vpack.c.bf16 %v4464_v60, %v4463_v32  ;;  %v4468_v32 = vld [vmem:[#allocation9 + $0x1e8] sm:$0xff] }
 0x49a   : > { %9316 = vmatprep.subr.bf16.mxu1 %v9315_v61  ;;  %v12087_v59 = vsel %vm994_vm1, %v4090_v1, %v4091_v43  ;;  %v12093_v14 = vsel %vm994_vm1, %v4091_v43, %v4093_v48  ;;  %v4100_v1 = vrot.slane %v11826_v12, 2  ;;  %v4469_v48 = vld [vmem:[#allocation9 + $0x1f0] sm:$0xff] }
 0x49b   : > { %13169 = vst [vmem:[#allocation46_spill] sm:$0xff] %v12087_v59  ;;  %13170 = vst [vmem:[#allocation51_spill] sm:$0xff] %v12093_v14 }
 0x49c   : > { %8402 = vmatmul.mubr.f32.gmra.mrb[4].mxu1 %v12071_v51  ;;  %v4096_v51 = vrot.slane %v11811_v3, 2 }
 0x49d   : > { %8404 = vmatprep.mubr.f32.mxu1 %v12076_v2  ;;  %9318 = vmatpush3.bf16.msra.mxu1 %v9315_v61  ;;  %v9327_v61 = vpack.c.bf16 %v4466_v0, %v4465_v52  ;;  %v4470_v52 = vld [vmem:[#allocation9 + $0x1f8] sm:$0xff] }
 0x49e   : > { %9320 = vmatprep.subr.bf16.mxu1 %v9319_v31  ;;  %v12098_v60 = vsel %vm994_vm1, %v4095_v19, %v4096_v51  ;;  %v12104_v43 = vsel %vm994_vm1, %v4096_v51, %v4098_v27  ;;  %v4105_v19 = vrot.slane %v11843_v56, 2  ;;  %v4738_v27 = vld [vmem:[#allocation9 + $0x200] sm:$0xff] }
 0x49f   : > { %13171 = vst [vmem:[#allocation52_spill] sm:$0xff] %v12104_v43 }
 0x4a0   : > { %8405 = vmatmul.mubr.f32.gmra.mrb[6].mxu1 %v12082_v18  ;;  %v4101_v18 = vrot.slane %v11828_v33, 2 }
 0x4a1   : > { %8407 = vmatprep.mubr.f32.mxu1 %v12087_v59  ;;  %9322 = vmatpush3.bf16.msra.mxu1 %v9319_v31  ;;  %v9331_v31 = vpack.c.bf16 %v4468_v32, %v4467_v37  ;;  %v4739_v37 = vld [vmem:[#allocation9 + $0x208] sm:$0xff] }
 0x4a2   : > { %9324 = vmatprep.subr.bf16.mxu1 %v9323_v30  ;;  %v12109_v0 = vsel %vm994_vm1, %v4100_v1, %v4101_v18  ;;  %v12115_v51 = vsel %vm994_vm1, %v4101_v18, %v4103_v8  ;;  %v4110_v1 = vrot.slane %v11860_v25, 2 }
 0x4a4   : > { %8408 = vmatmul.mubr.f32.gmra.mrb[8].mxu1 %v12093_v14  ;;  %v4106_v14 = vrot.slane %v11845_v15, 2 }
 0x4a5   : > { %8410 = vmatprep.mubr.f32.mxu1 %v12098_v60  ;;  %9326 = vmatpush3.bf16.msra.mxu1 %v9323_v30  ;;  %v9335_v30 = vpack.c.bf16 %v4470_v52, %v4469_v48  ;;  %v4115_v48 = vrot.slane %v11877_v35, 2  ;;  %v4116_v52 = vrot.slane %v11879_v17, 2 }
 0x4a6   : > { %9328 = vmatprep.subr.bf16.mxu1 %v9327_v61  ;;  %v12120_v32 = vsel %vm994_vm1, %v4105_v19, %v4106_v14  ;;  %v12128_v18 = vsel %vm994_vm1, %v4106_v14, %v4108_v9  ;;  %v4118_v14 = vrot.slane %v11893_v53, 2  ;;  %v4120_v19 = vrot.slane %v11896_v44, 2 }
 0x4a7   : > { %v12145_v62 = vsel %vm994_vm1, %v4115_v48, %v4116_v52  ;;  %v4121_v9 = vrot.slane %v11898_v11, 2  ;;  %v4130_v48 = vrot.slane %v11931_v46, 2 }
 0x4a8   : > { %8411 = vmatmul.mubr.f32.gmra.mrb[10].mxu1 %v12104_v43  ;;  %v4111_v43 = vrot.slane %v11862_v47, 2 }
 0x4a9   : > { %8413 = vmatprep.mubr.f32.mxu1 %v12109_v0  ;;  %9330 = vmatpush3.bf16.msra.mxu1 %v9327_v61  ;;  %v12125_v61 = vpack.c.bf16 %v4739_v37, %v4738_v27  ;;  %v4123_v27 = vrot.slane %v11911_v55, 2  ;;  %v12156_v53 = vsel %vm994_vm1, %v4120_v19, %v4121_v9  ;;  %v4126_v37 = vrot.slane %v11916_v49, 2 }
 0x4aa   : > { %9332 = vmatprep.subr.bf16.mxu1 %v9331_v31  ;;  %v12133_v8 = vsel %vm994_vm1, %v4110_v1, %v4111_v43  ;;  %v4133_v19 = vrot.slane %v11945_v26, 2 }
 0x4ab   : > { %v12162_v1 = vsel %vm994_vm1, %v4121_v9, %v4123_v27  ;;  %v4135_v9 = vrot.slane %v11948_v63, 2  ;;  %v4136_v27 = vrot.slane %v11950_v24, 2 }
 0x4ac   : > { %8414 = vmatmul.mubr.f32.gmra.mrb[12].mxu1 %v12115_v51 }
 0x4ad   : > { %8416 = vmatprep.mubr.f32.mxu1 %v12120_v32  ;;  %9334 = vmatpush3.bf16.msra.mxu1 %v9331_v31  ;;  %v12140_v31 = vsel %vm994_vm1, %v4111_v43, %v4113_v45  ;;  %v4125_v43 = vrot.slane %v11914_v13, 2  ;;  %v4128_v45 = vrot.slane %v11928_v23, 2  ;;  %v12189_v26 = vsel %vm994_vm1, %v4135_v9, %v4136_v27 }
 0x4ae   : > { %9336 = vmatprep.subr.bf16.mxu1 %v9335_v30  ;;  %13175 = vst [vmem:[#allocation56_spill] sm:$0xff] %v12189_v26 }
 0x4af   : > { %v12167_v55 = vsel %vm994_vm1, %v4125_v43, %v4126_v37 }
 0x4b0   : > { %8417 = vmatmul.mubr.f32.gmra.mrb[14].mxu1 %v12128_v18  ;;  %13172 = vst [vmem:[#allocation53_spill] sm:$0xff] %v12167_v55 }
 0x4b1   : > { %8419 = vmatprep.mubr.f32.mxu1 %v12133_v8  ;;  %9338 = vmatpush3.bf16.msra.mxu1 %v9335_v30  ;;  %v12151_v30 = vsel %vm994_vm1, %v4116_v52, %v4118_v14  ;;  %v4131_v52 = vrot.slane %v11933_v5, 2  ;;  %v12173_v14 = vsel %vm994_vm1, %v4126_v37, %v4128_v45  ;;  %v4140_v37 = vrot.slane %v11965_v57, 2 }
 0x4b2   : > { %9340 = vmatprep.subr.bf16.mxu1 %v12125_v61  ;;  %v4141_v45 = vrot.slane %v11967_v34, 2 }
 0x4b3   : > { %v12178_v23 = vsel %vm994_vm1, %v4130_v48, %v4131_v52  ;;  %v12184_v43 = vsel %vm994_vm1, %v4131_v52, %v4133_v19  ;;  %v4145_v52 = vrot.slane %v11982_v41, 2  ;;  %v4146_v19 = vrot.slane %v11984_v16, 2 }
 0x4b4   : > { %8420 = vmatmul.mubr.f32.gmra.mrb[16].mxu1 %v12140_v31  ;;  %13173 = vst [vmem:[#allocation54_spill] sm:$0xff] %v12178_v23  ;;  %13174 = vst [vmem:[#allocation55_spill] sm:$0xff] %v12184_v43 }
 0x4b5   : > { %8422 = vmatprep.mubr.f32.mxu1 %v12145_v62 }
 0x4b8   : > { %8423 = vmatmul.mubr.f32.gmra.mrb[18].mxu1 %v12151_v30 }
 0x4b9   : > { %8425 = vmatprep.mubr.f32.mxu1 %v12156_v53 }
 0x4bc   : > { %8426 = vmatmul.mubr.f32.gmra.mrb[20].mxu1 %v12162_v1 }
 0x4bd   : > { %8428 = vmatprep.mubr.f32.mxu1 %v12167_v55  ;;  %v4138_v55 = vrot.slane %v11962_v22, 2  ;;  %v12200_v22 = vsel %vm994_vm1, %v4140_v37, %v4141_v45  ;;  %v4741_v37 = vld [vmem:[#allocation9 + $0x218] sm:$0xff] }
 0x4be   : > { %13177 = vst [vmem:[#allocation18_spill] sm:$0xff] %v12200_v22 }
 0x4bf   : > { %v12195_v48 = vsel %vm994_vm1, %v4136_v27, %v4138_v55  ;;  %v4740_v27 = vld [vmem:[#allocation9 + $0x210] sm:$0xff] }
 0x4c0   : > { %8429 = vmatmul.mubr.f32.gmra.mrb[22].mxu1 %v12173_v14  ;;  %13176 = vst [vmem:[#allocation57_spill] sm:$0xff] %v12195_v48 }
 0x4c1   : > { %8431 = vmatprep.mubr.f32.mxu1 %v12178_v23  ;;  %v4143_v23 = vrot.slane %v11979_v4, 2  ;;  %v12211_v4 = vsel %vm994_vm1, %v4145_v52, %v4146_v19  ;;  %v4744_v52 = vld [vmem:[#allocation9 + $0x230] sm:$0xff] }
 0x4c2   : > { %13179 = vst [vmem:[#allocation58_spill] sm:$0xff] %v12211_v4 }
 0x4c3   : > { %v12206_v9 = vsel %vm994_vm1, %v4141_v45, %v4143_v23  ;;  %v9343_v23 = vpack.c.bf16 %v4741_v37, %v4740_v27  ;;  %v4742_v45 = vld [vmem:[#allocation9 + $0x220] sm:$0xff]  ;;  %v4747_v27 = vld [vmem:[#allocation9 + $0x248] sm:$0xff]  ;;  %v4753_v37 = vld [vmem:[#allocation9 + $0x278] sm:$0xff] }
 0x4c4   : > { %8432 = vmatmul.mubr.f32.gmra.mrb[24].mxu1 %v12184_v43  ;;  %13178 = vst [vmem:[#allocation19_spill] sm:$0xff] %v12206_v9 }
 0x4c5   : > { %8434 = vmatprep.mubr.f32.mxu1 %v12189_v26  ;;  %v4148_v26 = vrot.slane %v11996_v20, 2 }
 0x4c7   : > { %v12215_v55 = vsel %vm994_vm1, %v4146_v19, %v4148_v26  ;;  %v4745_v26 = vld [vmem:[#allocation9 + $0x238] sm:$0xff]  ;;  %v4746_v19 = vld [vmem:[#allocation9 + $0x240] sm:$0xff] }
 0x4c8   : > { %8435 = vmatmul.mubr.f32.gmra.mrb[26].mxu1 %v12195_v48  ;;  %13180 = vst [vmem:[#allocation59_spill] sm:$0xff] %v12215_v55 }
 0x4c9   : > { %8437 = vmatprep.mubr.f32.mxu1 %v12200_v22  ;;  %v4743_v22 = vld [vmem:[#allocation9 + $0x228] sm:$0xff] }
 0x4ca   : > { %v9347_v20 = vpack.c.bf16 %v4743_v22, %v4742_v45  ;;  %v4751_v22 = vld [vmem:[#allocation9 + $0x268] sm:$0xff] }
 0x4cc   : > { %8438 = vmatmul.mubr.f32.gmra.mrb[28].mxu1 %v12206_v9 }
 0x4cd   : > { %8440 = vmatprep.mubr.f32.mxu1 %v12211_v4 }
 0x4d0   : > { %8441 = vmatmul.mubr.f32.gmra.mrb[30].mxu1 %v12215_v55 }
 0x4d1   : > { %8475 = vmatprep.mubr.f32.mxu1 %v11744_v7  ;;  %v9351_v7 = vpack.c.bf16 %v4745_v26, %v4744_v52  ;;  %v5031_v52 = vld [vmem:[#allocation9 + $0x2e8] sm:$0xff] }
 0x4d2   : > { %v13187_v26 = vld [vmem:[#allocation26_spill] sm:$0xff] }
 0x4d4   : > { %8476 = vmatmul.mubr.f32.vlgmr.msra.gmra.mrb[0].mxu1 %v11746_v39  ;;  %v9355_v39 = vpack.c.bf16 %v4747_v27, %v4746_v19  ;;  %v5032_v27 = vld [vmem:[#allocation9 + $0x2f0] sm:$0xff] }
 0x4d5   : > { %8478 = vmatprep.mubr.f32.mxu1 %v11759_v29  ;;  %9342 = vmatpush3.bf16.msra.mxu1 %v12125_v61  ;;  %v4748_v29 = vld [vmem:[#allocation9 + $0x250] sm:$0xff]  ;;  %v4749_v61 = vld [vmem:[#allocation9 + $0x258] sm:$0xff] }
 0x4d6   : > { %9344 = vmatprep.subr.bf16.mxu1 %v9343_v23 }
 0x4d8   : > { %8479 = vmatmul.mubr.f32.gmra.mrb[2].mxu1 %v11761_v10  ;;  %v9359_v10 = vpack.c.bf16 %v4749_v61, %v4748_v29  ;;  %v13189_v29 = vld [vmem:[#allocation28_spill] sm:$0xff]  ;;  %v13190_v61 = vld [vmem:[#allocation29_spill] sm:$0xff] }
 0x4d9   : > { %8481 = vmatprep.mubr.f32.mxu1 %v11775_v54  ;;  %9346 = vmatpush3.bf16.msra.mxu1 %v9343_v23  ;;  %v4750_v54 = vld [vmem:[#allocation9 + $0x260] sm:$0xff]  ;;  %v5019_v23 = vld [vmem:[#allocation9 + $0x288] sm:$0xff] }
 0x4da   : > { %9348 = vmatprep.subr.bf16.mxu1 %v9347_v20 }
 0x4dc   : > { %8482 = vmatmul.mubr.f32.gmra.mrb[4].mxu1 %v11777_v50  ;;  %v9363_v50 = vpack.c.bf16 %v4751_v22, %v4750_v54  ;;  %v5291_v54 = vld [vmem:[#allocation9 + $0x300] sm:$0xff]  ;;  %v5292_v22 = vld [vmem:[#allocation9 + $0x308] sm:$0xff] }
 0x4dd   : > { %8484 = vmatprep.mubr.f32.mxu1 %v11792_v58  ;;  %9350 = vmatpush3.bf16.msra.mxu1 %v9347_v20  ;;  %v4752_v58 = vld [vmem:[#allocation9 + $0x270] sm:$0xff]  ;;  %v5030_v20 = vld [vmem:[#allocation9 + $0x2e0] sm:$0xff] }
 0x4de   : > { %9352 = vmatprep.subr.bf16.mxu1 %v9351_v7  ;;  %v9395_v19 = vpack.c.bf16 %v5031_v52, %v5030_v20 }
 0x4e0   : > { %8485 = vmatmul.mubr.f32.gmra.mrb[6].mxu1 %v11794_v38  ;;  %v9367_v38 = vpack.c.bf16 %v4753_v37, %v4752_v58  ;;  %v13192_v58 = vld [vmem:[#allocation31_spill] sm:$0xff]  ;;  %v9403_v37 = vpack.c.bf16 %v5292_v22, %v5291_v54  ;;  %v5296_v54 = vld [vmem:[#allocation9 + $0x328] sm:$0xff] }
 0x4e1   : > { %8487 = vmatprep.mubr.f32.mxu1 %v11809_v28  ;;  %9354 = vmatpush3.bf16.msra.mxu1 %v9351_v7  ;;  %v5018_v28 = vld [vmem:[#allocation9 + $0x280] sm:$0xff]  ;;  %v13188_v7 = vld [vmem:[#allocation27_spill] sm:$0xff] }
 0x4e2   : > { %9356 = vmatprep.subr.bf16.mxu1 %v9355_v39  ;;  %v13209_v22 = vld [vmem:[#allocation49_spill] sm:$0xff] }
 0x4e4   : > { %8488 = vmatmul.mubr.f32.gmra.mrb[8].mxu1 %v11811_v3  ;;  %v9371_v3 = vpack.c.bf16 %v5019_v23, %v5018_v28  ;;  %v13194_v28 = vld [vmem:[#allocation33_spill] sm:$0xff]  ;;  %v13195_v23 = vld [vmem:[#allocation34_spill] sm:$0xff] }
 0x4e5   : > { %8490 = vmatprep.mubr.f32.mxu1 %v11826_v12  ;;  %9358 = vmatpush3.bf16.msra.mxu1 %v9355_v39  ;;  %v12249_v12 = vld [vmem:[#allocation2 + $0x180] sm:$0xff]  ;;  %v5033_v39 = vld [vmem:[#allocation9 + $0x2f8] sm:$0xff] }
 0x4e6   : > { %9360 = vmatprep.subr.bf16.mxu1 %v9359_v10 }
 0x4e8   : > { %8491 = vmatmul.mubr.f32.gmra.mrb[10].mxu1 %v11828_v33  ;;  %v12252_v33 = vld [vmem:[#allocation2 + $0x188] sm:$0xff] }
 0x4e9   : > { %8493 = vmatprep.mubr.f32.mxu1 %v11843_v56  ;;  %9362 = vmatpush3.bf16.msra.mxu1 %v9359_v10  ;;  %v5020_v56 = vld [vmem:[#allocation9 + $0x290] sm:$0xff]  ;;  %v9399_v10 = vpack.c.bf16 %v5033_v39, %v5032_v27  ;;  %v5294_v27 = vld [vmem:[#allocation9 + $0x318] sm:$0xff] }
 0x4ea   : > { %9364 = vmatprep.subr.bf16.mxu1 %v9363_v50 }
 0x4ec   : > { %8494 = vmatmul.mubr.f32.gmra.mrb[12].mxu1 %v11845_v15  ;;  %v5021_v15 = vld [vmem:[#allocation9 + $0x298] sm:$0xff] }
 0x4ed   : > { %8496 = vmatprep.mubr.f32.mxu1 %v11860_v25  ;;  %9366 = vmatpush3.bf16.msra.mxu1 %v9363_v50  ;;  %v9375_v25 = vpack.c.bf16 %v5021_v15, %v5020_v56  ;;  %v13191_v50 = vld [vmem:[#allocation30_spill] sm:$0xff]  ;;  %v13197_v56 = vld [vmem:[#allocation36_spill] sm:$0xff]  ;;  %v13198_v15 = vld [vmem:[#allocation37_spill] sm:$0xff] }
 0x4ee   : > { %9368 = vmatprep.subr.bf16.mxu1 %v9367_v38 }
 0x4f0   : > { %8497 = vmatmul.mubr.f32.gmra.mrb[14].mxu1 %v11862_v47  ;;  %v5022_v47 = vld [vmem:[#allocation9 + $0x2a0] sm:$0xff] }
 0x4f1   : > { %8499 = vmatprep.mubr.f32.mxu1 %v11877_v35  ;;  %9370 = vmatpush3.bf16.msra.mxu1 %v9367_v38  ;;  %v5023_v35 = vld [vmem:[#allocation9 + $0x2a8] sm:$0xff]  ;;  %v13193_v38 = vld [vmem:[#allocation32_spill] sm:$0xff] }
 0x4f2   : > { %9372 = vmatprep.subr.bf16.mxu1 %v9371_v3 }
 0x4f4   : > { %8500 = vmatmul.mubr.f32.gmra.mrb[16].mxu1 %v11879_v17  ;;  %v5025_v17 = vld [vmem:[#allocation9 + $0x2b8] sm:$0xff] }
 0x4f5   : > { %8502 = vmatprep.mubr.f32.mxu1 %v11896_v44  ;;  %v13182_v44 = vld [vmem:[#allocation21_spill] sm:$0xff] }
 0x4f8   : > { %8503 = vmatmul.mubr.f32.gmra.mrb[18].mxu1 %v11898_v11 }
 0x4f9   : > { %8505 = vmatprep.mubr.f32.mxu1 %v11914_v13  ;;  %v13183_v13 = vld [vmem:[#allocation22_spill] sm:$0xff] }
 0x4fc   : > { %8506 = vmatmul.mubr.f32.gmra.mrb[20].mxu1 %v11916_v49  ;;  %v13184_v49 = vld [vmem:[#allocation23_spill] sm:$0xff] }
 0x4fd   : > { %8508 = vmatprep.mubr.f32.mxu1 %v11931_v46  ;;  %v5029_v46 = vld [vmem:[#allocation9 + $0x2d8] sm:$0xff] }
 0x500   : > { %8509 = vmatmul.mubr.f32.gmra.mrb[22].mxu1 %v11933_v5  ;;  %v5027_v5 = vld [vmem:[#allocation9 + $0x2c8] sm:$0xff] }
 0x501   : > { %8511 = vmatprep.mubr.f32.mxu1 %v11948_v63  ;;  %v5028_v63 = vld [vmem:[#allocation9 + $0x2d0] sm:$0xff] }
 0x502   : > { %v9391_v45 = vpack.c.bf16 %v5029_v46, %v5028_v63  ;;  %v13206_v63 = vld [vmem:[#allocation47_spill] sm:$0xff] }
 0x504   : > { %8512 = vmatmul.mubr.f32.gmra.mrb[24].mxu1 %v11950_v24  ;;  %v13181_v24 = vld [vmem:[#allocation20_spill] sm:$0xff] }
 0x505   : > { %8514 = vmatprep.mubr.f32.mxu1 %v11965_v57  ;;  %v13185_v57 = vld [vmem:[#allocation24_spill] sm:$0xff] }
 0x508   : > { %8515 = vmatmul.mubr.f32.gmra.mrb[26].mxu1 %v11967_v34  ;;  %v5024_v34 = vld [vmem:[#allocation9 + $0x2b0] sm:$0xff] }
 0x509   : > { %8517 = vmatprep.mubr.f32.mxu1 %v11982_v41  ;;  %v9383_v11 = vpack.c.bf16 %v5025_v17, %v5024_v34  ;;  %v13186_v41 = vld [vmem:[#allocation25_spill] sm:$0xff]  ;;  %v13203_v34 = vld [vmem:[#allocation42_spill] sm:$0xff]  ;;  %v13204_v17 = vld [vmem:[#allocation43_spill] sm:$0xff] }
 0x50c   : > { %8518 = vmatmul.mubr.f32.gmra.mrb[28].mxu1 %v11984_v16  ;;  %v9379_v16 = vpack.c.bf16 %v5023_v35, %v5022_v47  ;;  %v13200_v47 = vld [vmem:[#allocation39_spill] sm:$0xff]  ;;  %v13201_v35 = vld [vmem:[#allocation40_spill] sm:$0xff] }
 0x50d   : > { %8520 = vmatprep.mubr.f32.mxu1 %v12249_v12 }
 0x510   : > { %8521 = vmatmul.mubr.f32.gmra.mrb[30].mxu1 %v12252_v33 }
 0x511   : > { %8555 = vmatprep.mubr.f32.mxu1 %v11767_v36  ;;  %v5026_v36 = vld [vmem:[#allocation9 + $0x2c0] sm:$0xff] }
 0x514   : > { %8556 = vmatmul.mubr.f32.vlgmr.msra.gmra.mrb[0].mxu1 %v11780_v40  ;;  %v9387_v40 = vpack.c.bf16 %v5027_v5, %v5026_v36  ;;  %v4731_v36 = vrot.slane %v12249_v12, 1  ;;  %v4732_v5 = vrot.slane %v12252_v33, 1 }
 0x515   : > { %8558 = vmatprep.mubr.f32.mxu1 %v11785_v21  ;;  %9374 = vmatpush3.bf16.msra.mxu1 %v9371_v3  ;;  %v13196_v3 = vld [vmem:[#allocation35_spill] sm:$0xff] }
 0x516   : > { %9376 = vmatprep.subr.bf16.mxu1 %v9375_v25  ;;  %v12291_v20 = vsel %vm415_vm0, %v4731_v36, %v4732_v5 }
 0x517   : > { %13208 = vst [vmem:[#allocation20_spill] sm:$0xff] %v12291_v20 }
 0x518   : > { %8559 = vmatmul.mubr.f32.gmra.mrb[2].mxu1 %v13181_v24 }
 0x519   : > { %8561 = vmatprep.mubr.f32.mxu1 %v13182_v44  ;;  %9378 = vmatpush3.bf16.msra.mxu1 %v9375_v25  ;;  %v13199_v25 = vld [vmem:[#allocation38_spill] sm:$0xff] }
 0x51a   : > { %9380 = vmatprep.subr.bf16.mxu1 %v9379_v16 }
 0x51c   : > { %8562 = vmatmul.mubr.f32.gmra.mrb[4].mxu1 %v13183_v13 }
 0x51d   : > { %8564 = vmatprep.mubr.f32.mxu1 %v13184_v49  ;;  %9382 = vmatpush3.bf16.msra.mxu1 %v9379_v16  ;;  %v13202_v16 = vld [vmem:[#allocation41_spill] sm:$0xff] }
 0x51e   : > { %9384 = vmatprep.subr.bf16.mxu1 %v9383_v11 }
 0x520   : > { %8565 = vmatmul.mubr.f32.gmra.mrb[6].mxu1 %v13185_v57 }
 0x521   : > { %8567 = vmatprep.mubr.f32.mxu1 %v13186_v41  ;;  %9386 = vmatpush3.bf16.msra.mxu1 %v9383_v11  ;;  %v13205_v11 = vld [vmem:[#allocation45_spill] sm:$0xff] }
 0x522   : > { %9388 = vmatprep.subr.bf16.mxu1 %v9387_v40 }
 0x524   : > { %8568 = vmatmul.mubr.f32.gmra.mrb[8].mxu1 %v13187_v26 }
 0x525   : > { %8570 = vmatprep.mubr.f32.mxu1 %v13188_v7  ;;  %9390 = vmatpush3.bf16.msra.mxu1 %v9387_v40  ;;  %v12285_v40 = vld [vmem:[#allocation2 + $0x190] sm:$0x3] }
 0x526   : > { %9392 = vmatprep.subr.bf16.mxu1 %v9391_v45  ;;  %v4734_v46 = vrot.slane %v12285_v40, 1 }
 0x528   : > { %8571 = vmatmul.mubr.f32.gmra.mrb[10].mxu1 %v13189_v29  ;;  %v12295_v52 = vsel %vm415_vm0, %v4732_v5, %v4734_v46  ;;  %v13210_v5 = vld [vmem:[#allocation50_spill] sm:$0xff] }
 0x529   : > { %8573 = vmatprep.mubr.f32.mxu1 %v13190_v61  ;;  %9394 = vmatpush3.bf16.msra.mxu1 %v9391_v45  ;;  %v13207_v45 = vld [vmem:[#allocation48_spill] sm:$0xff] }
 0x52a   : > { %9396 = vmatprep.subr.bf16.mxu1 %v9395_v19 }
 0x52c   : > { %8574 = vmatmul.mubr.f32.gmra.mrb[12].mxu1 %v13191_v50 }
 0x52d   : > { %8576 = vmatprep.mubr.f32.mxu1 %v13192_v58  ;;  %9398 = vmatpush3.bf16.msra.mxu1 %v9395_v19  ;;  %v5293_v19 = vld [vmem:[#allocation9 + $0x310] sm:$0xff] }
 0x52e   : > { %9400 = vmatprep.subr.bf16.mxu1 %v9399_v10  ;;  %v9407_v39 = vpack.c.bf16 %v5294_v27, %v5293_v19  ;;  %v5300_v19 = vld [vmem:[#allocation9 + $0x348] sm:$0xff] }
 0x52f   : > { %v13211_v27 = vld [vmem:[#allocation17_spill] sm:$0xff] }
 0x530   : > { %8577 = vmatmul.mubr.f32.gmra.mrb[14].mxu1 %v13193_v38 }
 0x531   : > { %8579 = vmatprep.mubr.f32.mxu1 %v13194_v28  ;;  %9402 = vmatpush3.bf16.msra.mxu1 %v9399_v10  ;;  %v5295_v10 = vld [vmem:[#allocation9 + $0x320] sm:$0xff] }
 0x532   : > { %9404 = vmatprep.subr.bf16.mxu1 %v9403_v37  ;;  %v9411_v36 = vpack.c.bf16 %v5296_v54, %v5295_v10  ;;  %v5302_v10 = vld [vmem:[#allocation9 + $0x358] sm:$0xff] }
 0x533   : > { %v13212_v54 = vld [vmem:[#allocation51_spill] sm:$0xff] }
 0x534   : > { %8580 = vmatmul.mubr.f32.gmra.mrb[16].mxu1 %v13195_v23 }
 0x535   : > { %8582 = vmatprep.mubr.f32.mxu1 %v13196_v3 }
 0x538   : > { %8583 = vmatmul.mubr.f32.gmra.mrb[18].mxu1 %v13197_v56 }
 0x539   : > { %8585 = vmatprep.mubr.f32.mxu1 %v13198_v15 }
 0x53c   : > { %8586 = vmatmul.mubr.f32.gmra.mrb[20].mxu1 %v13199_v25 }
 0x53d   : > { %8588 = vmatprep.mubr.f32.mxu1 %v13200_v47 }
 0x540   : > { %8589 = vmatmul.mubr.f32.gmra.mrb[22].mxu1 %v13201_v35 }
 0x541   : > { %8591 = vmatprep.mubr.f32.mxu1 %v13202_v16 }
 0x544   : > { %8592 = vmatmul.mubr.f32.gmra.mrb[24].mxu1 %v13203_v34 }
 0x545   : > { %8594 = vmatprep.mubr.f32.mxu1 %v13204_v17 }
 0x548   : > { %8595 = vmatmul.mubr.f32.gmra.mrb[26].mxu1 %v13205_v11 }
 0x549   : > { %8597 = vmatprep.mubr.f32.mxu1 %v13206_v63 }
 0x54c   : > { %8598 = vmatmul.mubr.f32.gmra.mrb[28].mxu1 %v13207_v45  ;;  %v5298_v45 = vld [vmem:[#allocation9 + $0x338] sm:$0xff] }
 0x54d   : > { %8600 = vmatprep.mubr.f32.mxu1 %v12291_v20  ;;  %v5297_v20 = vld [vmem:[#allocation9 + $0x330] sm:$0xff] }
 0x54e   : > { %v9415_v46 = vpack.c.bf16 %v5298_v45, %v5297_v20  ;;  %v5304_v45 = vld [vmem:[#allocation9 + $0x368] sm:$0xff]  ;;  %v13213_v20 = vld [vmem:[#allocation52_spill] sm:$0xff] }
 0x550   : > { %8601 = vmatmul.mubr.f32.gmra.mrb[30].mxu1 %v12295_v52 }
 0x551   : > { %8635 = vmatprep.mubr.f32.mxu1 %v12054_v6  ;;  %v5299_v6 = vld [vmem:[#allocation9 + $0x340] sm:$0xff] }
 0x554   : > { %8636 = vmatmul.mubr.f32.vlgmr.msra.gmra.mrb[0].mxu1 %v13209_v22  ;;  %v5301_v22 = vld [vmem:[#allocation9 + $0x350] sm:$0xff] }
 0x555   : > { %8638 = vmatprep.mubr.f32.mxu1 %v12065_v42  ;;  %9406 = vmatpush3.bf16.msra.mxu1 %v9403_v37  ;;  %v9419_v37 = vpack.c.bf16 %v5300_v19, %v5299_v6  ;;  %v5306_v6 = vld [vmem:[#allocation9 + $0x378] sm:$0xff]  ;;  %v5574_v19 = vld [vmem:[#allocation9 + $0x380] sm:$0xff] }
 0x556   : > { %9408 = vmatprep.subr.bf16.mxu1 %v9407_v39 }
 0x558   : > { %8639 = vmatmul.mubr.f32.gmra.mrb[2].mxu1 %v13210_v5 }
 0x559   : > { %8641 = vmatprep.mubr.f32.mxu1 %v12076_v2  ;;  %9410 = vmatpush3.bf16.msra.mxu1 %v9407_v39  ;;  %v9423_v39 = vpack.c.bf16 %v5302_v10, %v5301_v22  ;;  %v5303_v2 = vld [vmem:[#allocation9 + $0x360] sm:$0xff]  ;;  %v5575_v22 = vld [vmem:[#allocation9 + $0x388] sm:$0xff] }
 0x55a   : > { %9412 = vmatprep.subr.bf16.mxu1 %v9411_v36  ;;  %v13216_v10 = vld [vmem:[#allocation56_spill] sm:$0xff] }
 0x55c   : > { %8642 = vmatmul.mubr.f32.gmra.mrb[4].mxu1 %v13211_v27 }
 0x55d   : > { %8644 = vmatprep.mubr.f32.mxu1 %v12087_v59  ;;  %9414 = vmatpush3.bf16.msra.mxu1 %v9411_v36  ;;  %v9427_v36 = vpack.c.bf16 %v5304_v45, %v5303_v2  ;;  %v5305_v59 = vld [vmem:[#allocation9 + $0x370] sm:$0xff]  ;;  %v13214_v2 = vld [vmem:[#allocation53_spill] sm:$0xff]  ;;  %v5011_v45 = vrot.slane %v12249_v12, 2 }
 0x55e   : > { %9416 = vmatprep.subr.bf16.mxu1 %v9415_v46 }
 0x560   : > { %8645 = vmatmul.mubr.f32.gmra.mrb[6].mxu1 %v13212_v54 }
 0x561   : > { %8647 = vmatprep.mubr.f32.mxu1 %v12098_v60  ;;  %9418 = vmatpush3.bf16.msra.mxu1 %v9415_v46  ;;  %v9431_v46 = vpack.c.bf16 %v5306_v6, %v5305_v59  ;;  %v13215_v59 = vld [vmem:[#allocation54_spill] sm:$0xff]  ;;  %v5014_v6 = vrot.slane %v12285_v40, 2 }
 0x562   : > { %9420 = vmatprep.subr.bf16.mxu1 %v9419_v37  ;;  %v10138_v40 = vld [vmem:[#allocation2 + $0x38] sm:$0xff] }
 0x564   : > { %8648 = vmatmul.mubr.f32.gmra.mrb[8].mxu1 %v13213_v20 }
 0x565   : > { %8650 = vmatprep.mubr.f32.mxu1 %v12109_v0  ;;  %9422 = vmatpush3.bf16.msra.mxu1 %v9419_v37  ;;  %v9435_v37 = vpack.c.bf16 %v5575_v22, %v5574_v19  ;;  %v5576_v22 = vld [vmem:[#allocation9 + $0x390] sm:$0xff] }
 0x566   : > { %9424 = vmatprep.subr.bf16.mxu1 %v9423_v39 }
 0x568   : > { %8651 = vmatmul.mubr.f32.gmra.mrb[10].mxu1 %v12115_v51 }
 0x569   : > { %8653 = vmatprep.mubr.f32.mxu1 %v12120_v32  ;;  %9426 = vmatpush3.bf16.msra.mxu1 %v9423_v39  ;;  %v13217_v39 = vld [vmem:[#allocation18_spill] sm:$0xff] }
 0x56a   : > { %9428 = vmatprep.subr.bf16.mxu1 %v9427_v36 }
 0x56c   : > { %8654 = vmatmul.mubr.f32.gmra.mrb[12].mxu1 %v12128_v18 }
 0x56d   : > { %8656 = vmatprep.mubr.f32.mxu1 %v12133_v8  ;;  %9430 = vmatpush3.bf16.msra.mxu1 %v9427_v36  ;;  %v5012_v36 = vrot.slane %v12252_v33, 2 }
 0x56e   : > { %9432 = vmatprep.subr.bf16.mxu1 %v9431_v46 }
 0x56f   : > { %v12336_v19 = vsel %vm994_vm1, %v5012_v36, %v5014_v6  ;;  %v10141_v6 = vld [vmem:[#allocation2 + $0x60] sm:$0xff] }
 0x570   : > { %8657 = vmatmul.mubr.f32.gmra.mrb[14].mxu1 %v12140_v31  ;;  %13219 = vst [vmem:[#allocation22_spill] sm:$0xff] %v12336_v19 }
 0x571   : > { %8659 = vmatprep.mubr.f32.mxu1 %v12145_v62  ;;  %9434 = vmatpush3.bf16.msra.mxu1 %v9431_v46  ;;  %v12332_v46 = vsel %vm994_vm1, %v5011_v45, %v5012_v36  ;;  %v10140_v36 = vld [vmem:[#allocation2 + $0x50] sm:$0xff] }
 0x572   : > { %9436 = vmatprep.subr.bf16.mxu1 %v9435_v37  ;;  %13218 = vst [vmem:[#allocation21_spill] sm:$0xff] %v12332_v46 }
 0x574   : > { %8660 = vmatmul.mubr.f32.gmra.mrb[16].mxu1 %v12151_v30 }
 0x575   : > { %8662 = vmatprep.mubr.f32.mxu1 %v12156_v53 }
 0x578   : > { %8663 = vmatmul.mubr.f32.gmra.mrb[18].mxu1 %v12162_v1 }
 0x579   : > { %8665 = vmatprep.mubr.f32.mxu1 %v13214_v2 }
 0x57c   : > { %8666 = vmatmul.mubr.f32.gmra.mrb[20].mxu1 %v12173_v14 }
 0x57d   : > { %8668 = vmatprep.mubr.f32.mxu1 %v13215_v59  ;;  %v10143_v59 = vld [vmem:[#allocation2 + $0x78] sm:$0xff] }
 0x580   : > { %8669 = vmatmul.mubr.f32.gmra.mrb[22].mxu1 %v12184_v43  ;;  %v5581_v43 = vld [vmem:[#allocation9 + $0x3b8] sm:$0xff] }
 0x581   : > { %8671 = vmatprep.mubr.f32.mxu1 %v13216_v10  ;;  %v5579_v10 = vld [vmem:[#allocation9 + $0x3a8] sm:$0xff] }
 0x584   : > { %8672 = vmatmul.mubr.f32.gmra.mrb[24].mxu1 %v12195_v48 }
 0x585   : > { %8674 = vmatprep.mubr.f32.mxu1 %v13217_v39  ;;  %v10137_v39 = vld [vmem:[#allocation2 + $0x30] sm:$0xff] }
 0x588   : > { %8675 = vmatmul.mubr.f32.gmra.mrb[26].mxu1 %v12206_v9  ;;  %v5577_v9 = vld [vmem:[#allocation9 + $0x398] sm:$0xff] }
 0x589   : > { %8677 = vmatprep.mubr.f32.mxu1 %v12211_v4  ;;  %v9439_v48 = vpack.c.bf16 %v5577_v9, %v5576_v22  ;;  %v5578_v4 = vld [vmem:[#allocation9 + $0x3a0] sm:$0xff]  ;;  %v5583_v9 = vld [vmem:[#allocation9 + $0x3c8] sm:$0xff]  ;;  %v10142_v22 = vld [vmem:[#allocation2 + $0x68] sm:$0xff] }
 0x58a   : > { %v9443_v45 = vpack.c.bf16 %v5579_v10, %v5578_v4  ;;  %v5585_v4 = vld [vmem:[#allocation9 + $0x3d8] sm:$0xff]  ;;  %v10144_v10 = vld [vmem:[#allocation2 + $0x80] sm:$0xff] }
 0x58c   : > { %8678 = vmatmul.mubr.f32.gmra.mrb[28].mxu1 %v12215_v55  ;;  %v10139_v55 = vld [vmem:[#allocation2 + $0x48] sm:$0xff] }
 0x58d   : > { %8680 = vmatprep.mubr.f32.mxu1 %v12332_v46  ;;  %v5580_v46 = vld [vmem:[#allocation9 + $0x3b0] sm:$0xff] }
 0x590   : > { %8681 = vmatmul.mubr.f32.gmra.mrb[30].mxu1 %v12336_v19  ;;  %v9447_v19 = vpack.c.bf16 %v5581_v43, %v5580_v46  ;;  %v5587_v43 = vld [vmem:[#allocation9 + $0x3e8] sm:$0xff] }
 0x591   : > { %8715 = vmatprep.mubr.f32.mxu1 %v10137_v39  ;;  %v5582_v39 = vld [vmem:[#allocation9 + $0x3c0] sm:$0xff] }
 0x592   : > { %v10146_v46 = vld [vmem:[#allocation2 + $0x98] sm:$0xff] }
 0x594   : > { %8716 = vmatmul.mubr.f32.vlgmr.msra.gmra.mrb[0].mxu1 %v10138_v40  ;;  %v10145_v40 = vld [vmem:[#allocation2 + $0x90] sm:$0xff] }
 0x595   : > { %8718 = vmatprep.mubr.f32.mxu1 %v10139_v55  ;;  %9438 = vmatpush3.bf16.msra.mxu1 %v9435_v37  ;;  %v9451_v55 = vpack.c.bf16 %v5583_v9, %v5582_v39  ;;  %v5584_v37 = vld [vmem:[#allocation9 + $0x3d0] sm:$0xff]  ;;  %v5589_v39 = vld [vmem:[#allocation9 + $0x3f8] sm:$0xff] }
 0x596   : > { %9440 = vmatprep.subr.bf16.mxu1 %v9439_v48  ;;  %v10148_v9 = vld [vmem:[#allocation2 + $0xb0] sm:$0xff] }
 0x598   : > { %8719 = vmatmul.mubr.f32.gmra.mrb[2].mxu1 %v10140_v36  ;;  %v5586_v36 = vld [vmem:[#allocation9 + $0x3e0] sm:$0xff] }
 0x599   : > { %8721 = vmatprep.mubr.f32.mxu1 %v10141_v6  ;;  %9442 = vmatpush3.bf16.msra.mxu1 %v9439_v48  ;;  %v9455_v48 = vpack.c.bf16 %v5585_v4, %v5584_v37  ;;  %v10147_v6 = vld [vmem:[#allocation2 + $0xa8] sm:$0xff]  ;;  %v5855_v37 = vld [vmem:[#allocation9 + $0x408] sm:$0xff] }
 0x59a   : > { %9444 = vmatprep.subr.bf16.mxu1 %v9443_v45  ;;  %v10150_v4 = vld [vmem:[#allocation2 + $0xc8] sm:$0xff] }
 0x59c   : > { %8722 = vmatmul.mubr.f32.gmra.mrb[4].mxu1 %v10142_v22  ;;  %v10149_v22 = vld [vmem:[#allocation2 + $0xc0] sm:$0xff] }
 0x59d   : > { %8724 = vmatprep.mubr.f32.mxu1 %v10143_v59  ;;  %9446 = vmatpush3.bf16.msra.mxu1 %v9443_v45  ;;  %v9459_v59 = vpack.c.bf16 %v5587_v43, %v5586_v36  ;;  %v5588_v45 = vld [vmem:[#allocation9 + $0x3f0] sm:$0xff]  ;;  %v10153_v36 = vld [vmem:[#allocation2 + $0xf0] sm:$0xff]  ;;  %v10154_v43 = vld [vmem:[#allocation2 + $0xf8] sm:$0xff] }
 0x59e   : > { %9448 = vmatprep.subr.bf16.mxu1 %v9447_v19 }
 0x5a0   : > { %8725 = vmatmul.mubr.f32.gmra.mrb[6].mxu1 %v10144_v10  ;;  %v5854_v10 = vld [vmem:[#allocation9 + $0x400] sm:$0xff] }
 0x5a1   : > { %8727 = vmatprep.mubr.f32.mxu1 %v10145_v40  ;;  %9450 = vmatpush3.bf16.msra.mxu1 %v9447_v19  ;;  %v9463_v19 = vpack.c.bf16 %v5589_v39, %v5588_v45  ;;  %v10151_v40 = vld [vmem:[#allocation2 + $0xd8] sm:$0xff]  ;;  %v10157_v45 = vld [vmem:[#allocation2 + $0x120] sm:$0xff]  ;;  %v10158_v39 = vld [vmem:[#allocation2 + $0x128] sm:$0xff] }
 0x5a2   : > { %9452 = vmatprep.subr.bf16.mxu1 %v9451_v55 }
 0x5a4   : > { %8728 = vmatmul.mubr.f32.gmra.mrb[8].mxu1 %v10146_v46  ;;  %v10152_v46 = vld [vmem:[#allocation2 + $0xe0] sm:$0xff] }
 0x5a5   : > { %8730 = vmatprep.mubr.f32.mxu1 %v10147_v6  ;;  %9454 = vmatpush3.bf16.msra.mxu1 %v9451_v55  ;;  %v9467_v55 = vpack.c.bf16 %v5855_v37, %v5854_v10  ;;  %v10156_v6 = vld [vmem:[#allocation2 + $0x110] sm:$0xff]  ;;  %v10162_v10 = vld [vmem:[#allocation2 + $0x158] sm:$0xff] }
 0x5a6   : > { %9456 = vmatprep.subr.bf16.mxu1 %v9455_v48  ;;  %v10164_v37 = vld [vmem:[#allocation2 + $0x170] sm:$0xff] }
 0x5a8   : > { %8731 = vmatmul.mubr.f32.gmra.mrb[10].mxu1 %v10148_v9  ;;  %v10159_v9 = vld [vmem:[#allocation2 + $0x138] sm:$0xff] }
 0x5a9   : > { %8733 = vmatprep.mubr.f32.mxu1 %v10149_v22  ;;  %9458 = vmatpush3.bf16.msra.mxu1 %v9455_v48  ;;  %v10155_v48 = vld [vmem:[#allocation2 + $0x108] sm:$0xff]  ;;  %v10161_v22 = vld [vmem:[#allocation2 + $0x150] sm:$0xff] }
 0x5aa   : > { %9460 = vmatprep.subr.bf16.mxu1 %v9459_v59 }
 0x5ac   : > { %8734 = vmatmul.mubr.f32.gmra.mrb[12].mxu1 %v10150_v4  ;;  %v12341_v4 = vld [vmem:[#allocation2 + $0x198] sm:$0xff] }
 0x5ad   : > { %8736 = vmatprep.mubr.f32.mxu1 %v10151_v40  ;;  %9462 = vmatpush3.bf16.msra.mxu1 %v9459_v59  ;;  %v10160_v59 = vld [vmem:[#allocation2 + $0x140] sm:$0xff] }
 0x5ae   : > { %9464 = vmatprep.subr.bf16.mxu1 %v9463_v19  ;;  %v12344_v40 = vld [vmem:[#allocation2 + $0x1a0] sm:$0xff] }
 0x5b0   : > { %8737 = vmatmul.mubr.f32.gmra.mrb[14].mxu1 %v10152_v46  ;;  %v5856_v46 = vld [vmem:[#allocation9 + $0x410] sm:$0xff] }
 0x5b1   : > { %8739 = vmatprep.mubr.f32.mxu1 %v10153_v36  ;;  %9466 = vmatpush3.bf16.msra.mxu1 %v9463_v19  ;;  %v10163_v19 = vld [vmem:[#allocation2 + $0x168] sm:$0xff] }
 0x5b2   : > { %9468 = vmatprep.subr.bf16.mxu1 %v9467_v55  ;;  %v5857_v36 = vld [vmem:[#allocation9 + $0x418] sm:$0xff] }
 0x5b4   : > { %8740 = vmatmul.mubr.f32.gmra.mrb[16].mxu1 %v10154_v43  ;;  %v9471_v43 = vpack.c.bf16 %v5857_v36, %v5856_v46 }
 0x5b5   : > { %8742 = vmatprep.mubr.f32.mxu1 %v10155_v48  ;;  %v5858_v48 = vld [vmem:[#allocation9 + $0x420] sm:$0xff] }
 0x5b8   : > { %8743 = vmatmul.mubr.f32.gmra.mrb[18].mxu1 %v10156_v6  ;;  %v5859_v6 = vld [vmem:[#allocation9 + $0x428] sm:$0xff] }
 0x5b9   : > { %8745 = vmatprep.mubr.f32.mxu1 %v10157_v45  ;;  %v5861_v45 = vld [vmem:[#allocation9 + $0x438] sm:$0xff] }
 0x5bc   : > { %8746 = vmatmul.mubr.f32.gmra.mrb[20].mxu1 %v10158_v39 }
 0x5bd   : > { %8748 = vmatprep.mubr.f32.mxu1 %v10159_v9  ;;  %v5863_v9 = vld [vmem:[#allocation9 + $0x448] sm:$0xff] }
 0x5c0   : > { %8749 = vmatmul.mubr.f32.gmra.mrb[22].mxu1 %v10160_v59  ;;  %v5867_v59 = vld [vmem:[#allocation9 + $0x468] sm:$0xff] }
 0x5c1   : > { %8751 = vmatprep.mubr.f32.mxu1 %v10161_v22  ;;  %v5869_v22 = vld [vmem:[#allocation9 + $0x478] sm:$0xff] }
 0x5c4   : > { %8752 = vmatmul.mubr.f32.gmra.mrb[24].mxu1 %v10162_v10 }
 0x5c5   : > { %8754 = vmatprep.mubr.f32.mxu1 %v10163_v19 }
 0x5c8   : > { %8755 = vmatmul.mubr.f32.gmra.mrb[26].mxu1 %v10164_v37 }
 0x5c9   : > { %8757 = vmatprep.mubr.f32.mxu1 %v12249_v12  ;;  %v9475_v12 = vpack.c.bf16 %v5859_v6, %v5858_v48 }
 0x5cc   : > { %8758 = vmatmul.mubr.f32.gmra.mrb[28].mxu1 %v12252_v33  ;;  %v5860_v33 = vld [vmem:[#allocation9 + $0x430] sm:$0xff] }
 0x5cd   : > { %8760 = vmatprep.mubr.f32.mxu1 %v12341_v4  ;;  %v9479_v39 = vpack.c.bf16 %v5861_v45, %v5860_v33 }
 0x5d0   : > { %8761 = vmatmul.mubr.f32.gmra.mrb[30].mxu1 %v12344_v40 }
 0x5d1   : > { %8795 = vmatprep.mubr.f32.mxu1 %v11785_v21  ;;  %v5862_v21 = vld [vmem:[#allocation9 + $0x440] sm:$0xff] }
 0x5d4   : > { %8796 = vmatmul.mubr.f32.vlgmr.msra.gmra.mrb[0].mxu1 %v13181_v24  ;;  %v9483_v24 = vpack.c.bf16 %v5863_v9, %v5862_v21 }
 0x5d5   : > { %8798 = vmatprep.mubr.f32.mxu1 %v13182_v44  ;;  %9470 = vmatpush3.bf16.msra.mxu1 %v9467_v55  ;;  %v5864_v44 = vld [vmem:[#allocation9 + $0x450] sm:$0xff]  ;;  %v5865_v55 = vld [vmem:[#allocation9 + $0x458] sm:$0xff] }
 0x5d6   : > { %9472 = vmatprep.subr.bf16.mxu1 %v9471_v43 }
 0x5d8   : > { %8799 = vmatmul.mubr.f32.gmra.mrb[2].mxu1 %v13183_v13  ;;  %v9487_v13 = vpack.c.bf16 %v5865_v55, %v5864_v44 }
 0x5d9   : > { %8801 = vmatprep.mubr.f32.mxu1 %v13184_v49  ;;  %9474 = vmatpush3.bf16.msra.mxu1 %v9471_v43  ;;  %v5866_v49 = vld [vmem:[#allocation9 + $0x460] sm:$0xff] }
 0x5da   : > { %9476 = vmatprep.subr.bf16.mxu1 %v9475_v12 }
 0x5dc   : > { %8802 = vmatmul.mubr.f32.gmra.mrb[4].mxu1 %v13185_v57  ;;  %v9491_v57 = vpack.c.bf16 %v5867_v59, %v5866_v49 }
 0x5dd   : > { %8804 = vmatprep.mubr.f32.mxu1 %v13186_v41  ;;  %9478 = vmatpush3.bf16.msra.mxu1 %v9475_v12  ;;  %v5868_v41 = vld [vmem:[#allocation9 + $0x470] sm:$0xff] }
 0x5de   : > { %9480 = vmatprep.subr.bf16.mxu1 %v9479_v39 }
 0x5e0   : > { %8805 = vmatmul.mubr.f32.gmra.mrb[6].mxu1 %v13187_v26  ;;  %v9495_v26 = vpack.c.bf16 %v5869_v22, %v5868_v41 }
 0x5e1   : > { %8807 = vmatprep.mubr.f32.mxu1 %v13188_v7  ;;  %9482 = vmatpush3.bf16.msra.mxu1 %v9479_v39  ;;  %v5567_v7 = vrot.slane %v12341_v4, 1 }
 0x5e2   : > { %9484 = vmatprep.subr.bf16.mxu1 %v9483_v24 }
 0x5e4   : > { %8808 = vmatmul.mubr.f32.gmra.mrb[8].mxu1 %v13189_v29  ;;  %v5568_v29 = vrot.slane %v12344_v40, 1 }
 0x5e5   : > { %8810 = vmatprep.mubr.f32.mxu1 %v13190_v61  ;;  %9486 = vmatpush3.bf16.msra.mxu1 %v9483_v24  ;;  %v13220_v61 = vld [vmem:[#allocation48_spill] sm:$0xff] }
 0x5e6   : > { %9488 = vmatprep.subr.bf16.mxu1 %v9487_v13 }
 0x5e8   : > { %8811 = vmatmul.mubr.f32.gmra.mrb[10].mxu1 %v13191_v50  ;;  %v3427_v50 = vld [vmem:[#allocation2 + $0x1a8] sm:$0x3] }
 0x5e9   : > { %8813 = vmatprep.mubr.f32.mxu1 %v13192_v58  ;;  %9490 = vmatpush3.bf16.msra.mxu1 %v9487_v13  ;;  %v13221_v58 = vld [vmem:[#allocation20_spill] sm:$0xff] }
 0x5ea   : > { %9492 = vmatprep.subr.bf16.mxu1 %v9491_v57 }
 0x5ec   : > { %8814 = vmatmul.mubr.f32.gmra.mrb[12].mxu1 %v13193_v38  ;;  %v5570_v38 = vrot.slane %v3427_v50, 1 }
 0x5ed   : > { %8816 = vmatprep.mubr.f32.mxu1 %v13194_v28  ;;  %9494 = vmatpush3.bf16.msra.mxu1 %v9491_v57  ;;  %v5569_v28 = vsel %vm415_vm0, %v5567_v7, %v5568_v29 }
 0x5ee   : > { %9496 = vmatprep.subr.bf16.mxu1 %v9495_v26 }
 0x5f0   : > { %8817 = vmatmul.mubr.f32.gmra.mrb[14].mxu1 %v13195_v23  ;;  %v5571_v23 = vsel %vm415_vm0, %v5568_v29, %v5570_v38 }
 0x5f1   : > { %8819 = vmatprep.mubr.f32.mxu1 %v13196_v3  ;;  %9498 = vmatpush3.bf16.msra.mxu1 %v9495_v26  ;;  %v13222_v3 = vld [vmem:[#allocation44_spill] sm:$0xff] }
 0x5f4   : > { %8820 = vmatmul.mubr.f32.gmra.mrb[16].mxu1 %v13197_v56  ;;  %v13223_v56 = vld [vmem:[#allocation46_spill] sm:$0xff] }
 0x5f5   : > { %8822 = vmatprep.mubr.f32.mxu1 %v13198_v15 }
 0x5f8   : > { %8823 = vmatmul.mubr.f32.gmra.mrb[18].mxu1 %v13199_v25 }
 0x5f9   : > { %8825 = vmatprep.mubr.f32.mxu1 %v13200_v47  ;;  %v12415_v47 = vld [vmem:[#allocation11] ss:$0 sm:$0xff] }
 0x5fc   : > { %8826 = vmatmul.mubr.f32.gmra.mrb[20].mxu1 %v13201_v35 }
 0x5fd   : > { %8828 = vmatprep.mubr.f32.mxu1 %v13202_v16 }
 0x600   : > { %8829 = vmatmul.mubr.f32.gmra.mrb[22].mxu1 %v13203_v34 }
 0x601   : > { %8831 = vmatprep.mubr.f32.mxu1 %v13204_v17 }
 0x604   : > { %8832 = vmatmul.mubr.f32.gmra.mrb[24].mxu1 %v13205_v11 }
 0x605   : > { %8834 = vmatprep.mubr.f32.mxu1 %v13206_v63 }
 0x608   : > { %8835 = vmatmul.mubr.f32.gmra.mrb[26].mxu1 %v13220_v61 }
 0x609   : > { %8837 = vmatprep.mubr.f32.mxu1 %v13221_v58 }
 0x60c   : > { %8838 = vmatmul.mubr.f32.gmra.mrb[28].mxu1 %v12295_v52 }
 0x60d   : > { %8840 = vmatprep.mubr.f32.mxu1 %v5569_v28 }
 0x610   : > { %8841 = vmatmul.mubr.f32.gmra.mrb[30].mxu1 %v5571_v23 }
 0x611   : > { %8875 = vmatprep.mubr.f32.mxu1 %v12065_v42  ;;  %v13224_v42 = vld [vmem:[#allocation54_spill] sm:$0xff] }
 0x614   : > { %8876 = vmatmul.mubr.f32.vlgmr.msra.gmra.mrb[0].mxu1 %v13210_v5 }
 0x615   : > { %8878 = vmatprep.mubr.f32.mxu1 %v13222_v3 }
 0x618   : > { %8879 = vmatmul.mubr.f32.gmra.mrb[2].mxu1 %v13211_v27 }
 0x619   : > { %8881 = vmatprep.mubr.f32.mxu1 %v13223_v56 }
 0x61c   : > { %8882 = vmatmul.mubr.f32.gmra.mrb[4].mxu1 %v13212_v54 }
 0x61d   : > { %8884 = vmatprep.mubr.f32.mxu1 %v12098_v60  ;;  %v13225_v60 = vld [vmem:[#allocation55_spill] sm:$0xff] }
 0x620   : > { %8885 = vmatmul.mubr.f32.gmra.mrb[6].mxu1 %v13213_v20 }
 0x621   : > { %8887 = vmatprep.mubr.f32.mxu1 %v12109_v0  ;;  %v13226_v0 = vld [vmem:[#allocation56_spill] sm:$0xff] }
 0x624   : > { %8888 = vmatmul.mubr.f32.gmra.mrb[8].mxu1 %v12115_v51  ;;  %v13227_v51 = vld [vmem:[#allocation57_spill] sm:$0xff] }
 0x625   : > { %8890 = vmatprep.mubr.f32.mxu1 %v12120_v32  ;;  %v13228_v32 = vld [vmem:[#allocation18_spill] sm:$0xff] }
 0x628   : > { %8891 = vmatmul.mubr.f32.gmra.mrb[10].mxu1 %v12128_v18  ;;  %v13229_v18 = vld [vmem:[#allocation19_spill] sm:$0xff] }
 0x629   : > { %8893 = vmatprep.mubr.f32.mxu1 %v12133_v8  ;;  %v13230_v8 = vld [vmem:[#allocation58_spill] sm:$0xff] }
 0x62c   : > { %8894 = vmatmul.mubr.f32.gmra.mrb[12].mxu1 %v12140_v31  ;;  %v5847_v31 = vrot.slane %v12341_v4, 2 }
 0x62d   : > { %8896 = vmatprep.mubr.f32.mxu1 %v12145_v62  ;;  %v5848_v62 = vrot.slane %v12344_v40, 2 }
 0x62f   : > { %v5849_v15 = vsel %vm994_vm1, %v5847_v31, %v5848_v62 }
 0x630   : > { %8897 = vmatmul.mubr.f32.gmra.mrb[14].mxu1 %v12151_v30  ;;  %v13231_v30 = vld [vmem:[#allocation59_spill] sm:$0xff] }
 0x631   : > { %8899 = vmatprep.mubr.f32.mxu1 %v12156_v53  ;;  %v13232_v53 = vld [vmem:[#allocation21_spill] sm:$0xff] }
 0x634   : > { %8900 = vmatmul.mubr.f32.gmra.mrb[16].mxu1 %v12162_v1  ;;  %v5850_v1 = vrot.slane %v3427_v50, 2 }
 0x635   : > { %8902 = vmatprep.mubr.f32.mxu1 %v13214_v2 }
 0x636   : > { %v5851_v25 = vsel %vm994_vm1, %v5848_v62, %v5850_v1 }
 0x638   : > { %8903 = vmatmul.mubr.f32.gmra.mrb[18].mxu1 %v12173_v14  ;;  %v13233_v14 = vld [vmem:[#allocation22_spill] sm:$0xff] }
 0x639   : > { %8905 = vmatprep.mubr.f32.mxu1 %v13224_v42 }
 0x63c   : > { %8906 = vmatmul.mubr.f32.gmra.mrb[20].mxu1 %v13225_v60 }
 0x63d   : > { %8908 = vmatprep.mubr.f32.mxu1 %v13226_v0 }
 0x640   : > { %8909 = vmatmul.mubr.f32.gmra.mrb[22].mxu1 %v13227_v51 }
 0x641   : > { %8911 = vmatprep.mubr.f32.mxu1 %v13228_v32 }
 0x644   : > { %8912 = vmatmul.mubr.f32.gmra.mrb[24].mxu1 %v13229_v18 }
 0x645   : > { %8914 = vmatprep.mubr.f32.mxu1 %v13230_v8 }
 0x648   : > { %8915 = vmatmul.mubr.f32.gmra.mrb[26].mxu1 %v13231_v30 }
 0x649   : > { %8917 = vmatprep.mubr.f32.mxu1 %v13232_v53 }
 0x64c   : > { %8918 = vmatmul.mubr.f32.gmra.mrb[28].mxu1 %v13233_v14 }
 0x64d   : > { %8920 = vmatprep.mubr.f32.mxu1 %v5849_v15 }
 0x650   : > { %8921 = vmatmul.mubr.f32.gmra.mrb[30].mxu1 %v5851_v25 }
 0x6e7   : > { %v8877_v35 = vpop.f32.mrb[0].mxu1 }
 0x6e8   : > { %v12418_v16 = vadd.f32 %v8877_v35, %v12415_v47  ;;  %v5936_v34 = vpop.f32.mrb[1].mxu1 }
 0x6e9   : > { %v12421_v17 = vadd.f32 %v12415_v47, %v5936_v34 }
 0x6ea   : > { %v6204_v11 = vmul.f32 %v12418_v16, %v12418_v16 }
 0x6eb   : > { %v6203_v63 = vmul.f32 %v12421_v17, %v12421_v17  ;;  %v8880_v52 = vpop.f32.mrb[2].mxu1  ;;  %v6166_v27 = vadd.f32 %v12418_v16, %v12421_v17 }
 0x6ec   : > { %v5946_v5 = vpop.f32.mrb[3].mxu1  ;;  %v12430_v54 = vadd.f32 %v8880_v52, %v12415_v47 }
 0x6ed   : > { %v12433_v20 = vadd.f32 %v12415_v47, %v5946_v5  ;;  %v6235_v2 = vadd.f32 %v6204_v11, %v6203_v63 }
 0x6ee   : > { %v6206_v46 = vmul.f32 %v12430_v54, %v12430_v54 }
 0x6ef   : > { %v6167_v10 = vadd.f32 %v6166_v27, %v12433_v20  ;;  %v6205_v19 = vmul.f32 %v12433_v20, %v12433_v20  ;;  %v8883_v37 = vpop.f32.mrb[4].mxu1 }
 0x6f0   : > { %v12439_v4 = vadd.f32 %v8883_v37, %v12415_v47  ;;  %v5956_v40 = vpop.f32.mrb[5].mxu1 }
 0x6f1   : > { %v6236_v36 = vadd.f32 %v6235_v2, %v6205_v19  ;;  %v12444_v43 = vadd.f32 %v12415_v47, %v5956_v40  ;;  %v6168_v48 = vadd.f32 %v6167_v10, %v12430_v54 }
 0x6f2   : > { %v6208_v39 = vmul.f32 %v12439_v4, %v12439_v4 }
 0x6f3   : > { %v6169_v6 = vadd.f32 %v6168_v48, %v12444_v43  ;;  %v6207_v12 = vmul.f32 %v12444_v43, %v12444_v43  ;;  %v6237_v33 = vadd.f32 %v6236_v36, %v6206_v46  ;;  %v8886_v45 = vpop.f32.mrb[6].mxu1 }
 0x6f4   : > { %v5966_v21 = vpop.f32.mrb[7].mxu1  ;;  %v12453_v24 = vadd.f32 %v8886_v45, %v12415_v47 }
 0x6f5   : > { %v6238_v9 = vadd.f32 %v6237_v33, %v6207_v12  ;;  %v12456_v44 = vadd.f32 %v12415_v47, %v5966_v21  ;;  %v6170_v55 = vadd.f32 %v6169_v6, %v12439_v4 }
 0x6f6   : > { %v6210_v26 = vmul.f32 %v12453_v24, %v12453_v24 }
 0x6f7   : > { %v6171_v13 = vadd.f32 %v6170_v55, %v12456_v44  ;;  %v6209_v49 = vmul.f32 %v12456_v44, %v12456_v44  ;;  %v6239_v59 = vadd.f32 %v6238_v9, %v6208_v39  ;;  %v8889_v57 = vpop.f32.mrb[8].mxu1 }
 0x6f8   : > { %v12463_v41 = vadd.f32 %v8889_v57, %v12415_v47  ;;  %v5976_v22 = vpop.f32.mrb[9].mxu1 }
 0x6f9   : > { %v6240_v7 = vadd.f32 %v6239_v59, %v6209_v49  ;;  %v12468_v29 = vadd.f32 %v12415_v47, %v5976_v22  ;;  %v6172_v61 = vadd.f32 %v6171_v13, %v12453_v24 }
 0x6fa   : > { %v6212_v23 = vmul.f32 %v12463_v41, %v12463_v41 }
 0x6fb   : > { %v6173_v50 = vadd.f32 %v6172_v61, %v12468_v29  ;;  %v6211_v58 = vmul.f32 %v12468_v29, %v12468_v29  ;;  %v6241_v38 = vadd.f32 %v6240_v7, %v6210_v26  ;;  %v8892_v28 = vpop.f32.mrb[10].mxu1 }
 0x6fc   : > { %v5986_v3 = vpop.f32.mrb[11].mxu1  ;;  %v12477_v42 = vadd.f32 %v8892_v28, %v12415_v47 }
 0x6fd   : > { %v6242_v56 = vadd.f32 %v6241_v38, %v6211_v58  ;;  %v12480_v60 = vadd.f32 %v12415_v47, %v5986_v3  ;;  %v6174_v0 = vadd.f32 %v6173_v50, %v12463_v41 }
 0x6fe   : > { %v6214_v30 = vmul.f32 %v12477_v42, %v12477_v42 }
 0x6ff   : > { %v6175_v51 = vadd.f32 %v6174_v0, %v12480_v60  ;;  %v6213_v32 = vmul.f32 %v12480_v60, %v12480_v60  ;;  %v6243_v18 = vadd.f32 %v6242_v56, %v6212_v23  ;;  %v8895_v8 = vpop.f32.mrb[12].mxu1 }
 0x700   : > { %v12487_v31 = vadd.f32 %v8895_v8, %v12415_v47  ;;  %v5996_v62 = vpop.f32.mrb[13].mxu1 }
 0x701   : > { %v6244_v53 = vadd.f32 %v6243_v18, %v6213_v32  ;;  %v12492_v1 = vadd.f32 %v12415_v47, %v5996_v62  ;;  %v6176_v14 = vadd.f32 %v6175_v51, %v12477_v42 }
 0x702   : > { %v6216_v11 = vmul.f32 %v12487_v31, %v12487_v31 }
 0x703   : > { %v6177_v15 = vadd.f32 %v6176_v14, %v12492_v1  ;;  %v6215_v25 = vmul.f32 %v12492_v1, %v12492_v1  ;;  %v6245_v35 = vadd.f32 %v6244_v53, %v6214_v30  ;;  %v8898_v34 = vpop.f32.mrb[14].mxu1 }
 0x704   : > { %v6006_v63 = vpop.f32.mrb[15].mxu1  ;;  %v12501_v5 = vadd.f32 %v8898_v34, %v12415_v47 }
 0x705   : > { %v6246_v52 = vadd.f32 %v6245_v35, %v6215_v25  ;;  %v12504_v27 = vadd.f32 %v12415_v47, %v6006_v63  ;;  %v6178_v2 = vadd.f32 %v6177_v15, %v12487_v31 }
 0x706   : > { %v6218_v48 = vmul.f32 %v12501_v5, %v12501_v5 }
 0x707   : > { %v6179_v10 = vadd.f32 %v6178_v2, %v12504_v27  ;;  %v6217_v19 = vmul.f32 %v12504_v27, %v12504_v27  ;;  %v6247_v37 = vadd.f32 %v6246_v52, %v6216_v11  ;;  %v8901_v40 = vpop.f32.mrb[16].mxu1 }
 0x708   : > { %v12511_v46 = vadd.f32 %v8901_v40, %v12415_v47  ;;  %v6016_v36 = vpop.f32.mrb[17].mxu1 }
 0x709   : > { %v6248_v6 = vadd.f32 %v6247_v37, %v6217_v19  ;;  %v12516_v12 = vadd.f32 %v12415_v47, %v6016_v36  ;;  %v6180_v33 = vadd.f32 %v6179_v10, %v12501_v5 }
 0x70a   : > { %v6220_v55 = vmul.f32 %v12511_v46, %v12511_v46 }
 0x70b   : > { %v6181_v45 = vadd.f32 %v6180_v33, %v12516_v12  ;;  %v6219_v39 = vmul.f32 %v12516_v12, %v12516_v12  ;;  %v6249_v21 = vadd.f32 %v6248_v6, %v6218_v48  ;;  %v8904_v9 = vpop.f32.mrb[18].mxu1 }
 0x70c   : > { %v6026_v13 = vpop.f32.mrb[19].mxu1  ;;  %v12525_v59 = vadd.f32 %v8904_v9, %v12415_v47 }
 0x70d   : > { %v6250_v49 = vadd.f32 %v6249_v21, %v6219_v39  ;;  %v12528_v57 = vadd.f32 %v12415_v47, %v6026_v13  ;;  %v6182_v22 = vadd.f32 %v6181_v45, %v12511_v46 }
 0x70e   : > { %v6222_v28 = vmul.f32 %v12525_v59, %v12525_v59 }
 0x70f   : > { %v6183_v26 = vadd.f32 %v6182_v22, %v12528_v57  ;;  %v6221_v7 = vmul.f32 %v12528_v57, %v12528_v57  ;;  %v6251_v61 = vadd.f32 %v6250_v49, %v6220_v55  ;;  %v8907_v50 = vpop.f32.mrb[20].mxu1 }
 0x710   : > { %v12535_v58 = vadd.f32 %v8907_v50, %v12415_v47  ;;  %v6036_v38 = vpop.f32.mrb[21].mxu1 }
 0x711   : > { %v6252_v23 = vadd.f32 %v6251_v61, %v6221_v7  ;;  %v12540_v3 = vadd.f32 %v12415_v47, %v6036_v38  ;;  %v6184_v56 = vadd.f32 %v6183_v26, %v12525_v59 }
 0x712   : > { %v6224_v8 = vmul.f32 %v12535_v58, %v12535_v58 }
 0x713   : > { %v6185_v0 = vadd.f32 %v6184_v56, %v12540_v3  ;;  %v6223_v51 = vmul.f32 %v12540_v3, %v12540_v3  ;;  %v6253_v32 = vadd.f32 %v6252_v23, %v6222_v28  ;;  %v8910_v18 = vpop.f32.mrb[22].mxu1 }
 0x714   : > { %v6046_v62 = vpop.f32.mrb[23].mxu1  ;;  %v12549_v53 = vadd.f32 %v8910_v18, %v12415_v47 }
 0x715   : > { %v6254_v30 = vadd.f32 %v6253_v32, %v6223_v51  ;;  %v12552_v14 = vadd.f32 %v12415_v47, %v6046_v62  ;;  %v6186_v15 = vadd.f32 %v6185_v0, %v12535_v58 }
 0x716   : > { %v6226_v2 = vmul.f32 %v12549_v53, %v12549_v53 }
 0x717   : > { %v6187_v25 = vadd.f32 %v6186_v15, %v12552_v14  ;;  %v6225_v35 = vmul.f32 %v12552_v14, %v12552_v14  ;;  %v6255_v34 = vadd.f32 %v6254_v30, %v6224_v8  ;;  %v8913_v11 = vpop.f32.mrb[24].mxu1 }
 0x718   : > { %v12559_v63 = vadd.f32 %v8913_v11, %v12415_v47  ;;  %v6056_v52 = vpop.f32.mrb[25].mxu1 }
 0x719   : > { %v6256_v10 = vadd.f32 %v6255_v34, %v6225_v35  ;;  %v12564_v19 = vadd.f32 %v12415_v47, %v6056_v52  ;;  %v6188_v37 = vadd.f32 %v6187_v25, %v12549_v53 }
 0x71a   : > { %v6228_v33 = vmul.f32 %v12559_v63, %v12559_v63 }
 0x71b   : > { %v6189_v40 = vadd.f32 %v6188_v37, %v12564_v19  ;;  %v6227_v36 = vmul.f32 %v12564_v19, %v12564_v19  ;;  %v6257_v48 = vadd.f32 %v6256_v10, %v6226_v2  ;;  %v8916_v6 = vpop.f32.mrb[26].mxu1 }
 0x71c   : > { %v6066_v45 = vpop.f32.mrb[27].mxu1  ;;  %v12573_v21 = vadd.f32 %v8916_v6, %v12415_v47 }
 0x71d   : > { %v6258_v39 = vadd.f32 %v6257_v48, %v6227_v36  ;;  %v12576_v9 = vadd.f32 %v12415_v47, %v6066_v45  ;;  %v6190_v55 = vadd.f32 %v6189_v40, %v12559_v63 }
 0x71e   : > { %v6230_v50 = vmul.f32 %v12573_v21, %v12573_v21 }
 0x71f   : > { %v6191_v13 = vadd.f32 %v6190_v55, %v12576_v9  ;;  %v6229_v49 = vmul.f32 %v12576_v9, %v12576_v9  ;;  %v6259_v22 = vadd.f32 %v6258_v39, %v6228_v33  ;;  %v8919_v26 = vpop.f32.mrb[28].mxu1 }
 0x720   : > { %v12583_v7 = vadd.f32 %v8919_v26, %v12415_v47  ;;  %v6076_v61 = vpop.f32.mrb[29].mxu1 }
 0x721   : > { %v6260_v38 = vadd.f32 %v6259_v22, %v6229_v49  ;;  %v12588_v28 = vadd.f32 %v12415_v47, %v6076_v61  ;;  %v6192_v23 = vadd.f32 %v6191_v13, %v12573_v21 }
 0x722   : > { %v6232_v18 = vmul.f32 %v12583_v7, %v12583_v7 }
 0x723   : > { %v6193_v56 = vadd.f32 %v6192_v23, %v12588_v28  ;;  %v6231_v0 = vmul.f32 %v12588_v28, %v12588_v28  ;;  %v6261_v51 = vadd.f32 %v6260_v38, %v6230_v50  ;;  %v8922_v32 = vpop.f32.mrb[30].mxu1 }
 0x724   : > { %v6086_v8 = vpop.f32.mrb[31].mxu1  ;;  %v12597_v30 = vadd.f32 %v8922_v32, %v12415_v47 }
 0x725   : > { %v6262_v62 = vadd.f32 %v6261_v51, %v6231_v0  ;;  %v12600_v15 = vadd.f32 %v12415_v47, %v6086_v8  ;;  %v6194_v25 = vadd.f32 %v6193_v56, %v12583_v7 }
 0x726   : > { %v6234_v52 = vmul.f32 %v12597_v30, %v12597_v30 }
 0x727   : > { %v6195_v35 = vadd.f32 %v6194_v25, %v12600_v15  ;;  %v6233_v34 = vmul.f32 %v12600_v15, %v12600_v15  ;;  %v6263_v11 = vadd.f32 %v6262_v62, %v6232_v18 }
 0x729   : > { %v6196_v2 = vadd.f32 %v6195_v35, %v12597_v30  ;;  %v6264_v10 = vadd.f32 %v6263_v11, %v6233_v34 }
 0x72b   : > { %v6197_v37 = vrot.slane %v6196_v2, 4  ;;  %v6265_v40 = vadd.f32 %v6264_v10, %v6234_v52  ;;  %v6611_v10 = vld [vmem:[%s10647_s16 + $0x181] sm:$0xff] }
 0x72d   : > { %v6198_v36 = vadd.f32 %v6197_v37, %v6196_v2  ;;  %v6266_v48 = vrot.slane %v6265_v40, 4 }
 0x72f   : > { %v6199_v47 = vrot.slane %v6198_v36, 2  ;;  %v6267_v6 = vadd.f32 %v6266_v48, %v6265_v40 }
 0x731   : > { %v6200_v33 = vadd.f32 %v6199_v47, %v6198_v36  ;;  %v6268_v45 = vrot.slane %v6267_v6, 2 }
 0x733   : > { %v6201_v39 = vrot.slane %v6200_v33, 1  ;;  %v6269_v55 = vadd.f32 %v6268_v45, %v6267_v6  ;;  %v6582_v45 = vld [vmem:[%s10647_s16 + $0x21] sm:$0xff] }
 0x735   : > { %v6202_v13 = vadd.f32 %v6201_v39, %v6200_v33  ;;  %v6270_v49 = vrot.slane %v6269_v55, 1 }
 0x737   : > { %v6271_v22 = vadd.f32 %v6270_v49, %v6269_v55  ;;  %v12609_v26 = vmul.f32 0.00390625, %v6202_v13 }
 0x739   : > { %v6273_v61 = vmul.f32 0.00390625, %v6271_v22  ;;  %v6274_v50 = vmul.f32 %v12609_v26, %v12609_v26  ;;  %v6307_v38 = vsub.f32 %v12600_v15, %v12609_v26  ;;  %v6287_v56 = vsub.f32 %v12480_v60, %v12609_v26  ;;  %v6584_v22 = vld [vmem:[%s10647_s16 + $0x39] sm:$0xff] }
 0x73a   : > { %v6288_v0 = vsub.f32 %v12477_v42, %v12609_v26  ;;  %v6289_v32 = vsub.f32 %v12492_v1, %v12609_v26  ;;  %v6290_v18 = vsub.f32 %v12487_v31, %v12609_v26  ;;  %v6291_v8 = vsub.f32 %v12504_v27, %v12609_v26 }
 0x73b   : > { %v6275_v23 = vsub.f32 %v6273_v61, %v6274_v50  ;;  %v6292_v62 = vsub.f32 %v12501_v5, %v12609_v26  ;;  %v6293_v15 = vsub.f32 %v12516_v12, %v12609_v26  ;;  %v6294_v60 = vsub.f32 %v12511_v46, %v12609_v26  ;;  %v6583_v61 = vld [vmem:[%s10647_s16 + $0x31] sm:$0xff] }
 0x73c   : > { %v6295_v42 = vsub.f32 %v12528_v57, %v12609_v26  ;;  %v6296_v31 = vsub.f32 %v12525_v59, %v12609_v26  ;;  %v6297_v1 = vsub.f32 %v12540_v3, %v12609_v26  ;;  %v6298_v5 = vsub.f32 %v12535_v58, %v12609_v26  ;;  %v6586_v50 = vld [vmem:[%s10647_s16 + $0x51] sm:$0xff] }
 0x73d   : > { %v6276_v51 = vmax.f32 %v6275_v23, 0.0  ;;  %v6299_v27 = vsub.f32 %v12552_v14, %v12609_v26  ;;  %v6300_v46 = vsub.f32 %v12549_v53, %v12609_v26  ;;  %v6301_v12 = vsub.f32 %v12564_v19, %v12609_v26 }
 0x73e   : > { %v6302_v57 = vsub.f32 %v12559_v63, %v12609_v26  ;;  %v6303_v59 = vsub.f32 %v12576_v9, %v12609_v26  ;;  %v6304_v58 = vsub.f32 %v12573_v21, %v12609_v26  ;;  %v6305_v3 = vsub.f32 %v12588_v28, %v12609_v26  ;;  %v6598_v9 = vld [vmem:[%s10647_s16 + $0xe1] sm:$0xff] }
 0x73f   : > { %v6309_v25 = vadd.f32 1e-05, %v6276_v51  ;;  %v6306_v53 = vsub.f32 %v12583_v7, %v12609_v26  ;;  %v6308_v14 = vsub.f32 %v12597_v30, %v12609_v26  ;;  %v6277_v19 = vsub.f32 %v12421_v17, %v12609_v26  ;;  %v6602_v7 = vld [vmem:[%s10647_s16 + $0x111] sm:$0xff]  ;;  %v6603_v30 = vld [vmem:[%s10647_s16 + $0x121] sm:$0xff] }
 0x740   : > { %v6278_v63 = vsub.f32 %v12418_v16, %v12609_v26  ;;  %v6279_v35 = vsub.f32 %v12433_v20, %v12609_v26  ;;  %v6280_v34 = vsub.f32 %v12430_v54, %v12609_v26  ;;  %v6281_v11 = vsub.f32 %v12444_v43, %v12609_v26 }
 0x741   : > { %10107 = vrsqrt.f32 %v6309_v25  ;;  %v6282_v52 = vsub.f32 %v12439_v4, %v12609_v26  ;;  %v6283_v17 = vsub.f32 %v12456_v44, %v12609_v26  ;;  %v6284_v16 = vsub.f32 %v12453_v24, %v12609_v26  ;;  %v6590_v25 = vld [vmem:[%s10647_s16 + $0x81] sm:$0xff] }
 0x742   : > { %v6285_v20 = vsub.f32 %v12468_v29, %v12609_v26  ;;  %v6286_v54 = vsub.f32 %v12463_v41, %v12609_v26  ;;  %v6581_v41 = vld [vmem:[%s10647_s16 + $0x19] sm:$0xff]  ;;  %v6606_v26 = vld [vmem:[%s10647_s16 + $0x141] sm:$0xff] }
 0x74b   : > { %v10108_v2 = vpop.eup %10107 }
 0x74c   : > { %v6341_v43 = vmul.f32 %v10108_v2, %v6307_v38  ;;  %v6311_v37 = vmul.f32 %v10108_v2, %v6277_v19  ;;  %v6312_v40 = vmul.f32 %v10108_v2, %v6278_v63  ;;  %v6313_v4 = vmul.f32 %v10108_v2, %v6279_v35  ;;  %v6585_v38 = vld [vmem:[%s10647_s16 + $0x49] sm:$0xff]  ;;  %v6589_v19 = vld [vmem:[%s10647_s16 + $0x79] sm:$0xff] }
 0x74d   : > { %v6314_v36 = vmul.f32 %v10108_v2, %v6280_v34  ;;  %v6315_v44 = vmul.f32 %v10108_v2, %v6281_v11  ;;  %v6316_v48 = vmul.f32 %v10108_v2, %v6282_v52  ;;  %v6317_v24 = vmul.f32 %v10108_v2, %v6283_v17 }
 0x74e   : > { %v6406_v47 = vadd.f32 %v6611_v10, %v6341_v43  ;;  %v6318_v6 = vmul.f32 %v10108_v2, %v6284_v16  ;;  %v6319_v33 = vmul.f32 %v10108_v2, %v6285_v20  ;;  %v6320_v29 = vmul.f32 %v10108_v2, %v6286_v54  ;;  %v6599_v16 = vld [vmem:[%s10647_s16 + $0xf1] sm:$0xff] }
 0x74f   : > { %v6321_v39 = vmul.f32 %v10108_v2, %v6287_v56  ;;  %v6322_v55 = vmul.f32 %v10108_v2, %v6288_v0  ;;  %v6323_v13 = vmul.f32 %v10108_v2, %v6289_v32  ;;  %v6324_v49 = vmul.f32 %v10108_v2, %v6290_v18  ;;  %v6588_v32 = vld [vmem:[%s10647_s16 + $0x69] sm:$0xff]  ;;  %v6587_v18 = vld [vmem:[%s10647_s16 + $0x61] sm:$0xff] }
 0x750   : > { %6438 = vst [vmem:[%s12687_s26 + $0xf0] sm:$0xff] %v6406_v47  ;;  %v6325_v23 = vmul.f32 %v10108_v2, %v6291_v8  ;;  %v12690_v51 = vmul.f32 %v10108_v2, %v6292_v62  ;;  %v12692_v56 = vmul.f32 %v10108_v2, %v6293_v15  ;;  %v12694_v0 = vmul.f32 %v10108_v2, %v6294_v60  ;;  %v6592_v62 = vld [vmem:[%s10647_s16 + $0x99] sm:$0xff]  ;;  %v6591_v15 = vld [vmem:[%s10647_s16 + $0x91] sm:$0xff] }
 0x751   : > { %v6329_v63 = vmul.f32 %v10108_v2, %v6295_v42  ;;  %v12700_v35 = vmul.f32 %v10108_v2, %v6296_v31  ;;  %v12702_v34 = vmul.f32 %v10108_v2, %v6297_v1  ;;  %v12704_v8 = vmul.f32 %v10108_v2, %v6298_v5  ;;  %v6594_v60 = vld [vmem:[%s10647_s16 + $0xb1] sm:$0xff]  ;;  %v6593_v42 = vld [vmem:[%s10647_s16 + $0xa9] sm:$0xff]  ;;  %v6595_v1 = vld [vmem:[%s10647_s16 + $0xc1] sm:$0xff] }
 0x752   : > { %v6333_v11 = vmul.f32 %v10108_v2, %v6299_v27  ;;  %v12709_v52 = vmul.f32 %v10108_v2, %v6300_v46  ;;  %v12711_v10 = vmul.f32 %v10108_v2, %v6301_v12  ;;  %v12713_v17 = vmul.f32 %v10108_v2, %v6302_v57  ;;  %v6596_v31 = vld [vmem:[%s10647_s16 + $0xc9] sm:$0xff]  ;;  %v6597_v57 = vld [vmem:[%s10647_s16 + $0xd9] sm:$0xff] }
 0x753   : > { %v12721_v5 = vmul.f32 %v10108_v2, %v6303_v59  ;;  %v12726_v27 = vmul.f32 %v10108_v2, %v6304_v58  ;;  %v12731_v46 = vmul.f32 %v10108_v2, %v6305_v3  ;;  %v12736_v12 = vmul.f32 %v10108_v2, %v6306_v53  ;;  %v6600_v59 = vld [vmem:[%s10647_s16 + $0xf9] sm:$0xff]  ;;  %v6601_v53 = vld [vmem:[%s10647_s16 + $0x109] sm:$0xff] }
 0x754   : > { %v12744_v21 = vmul.f32 %v10108_v2, %v6308_v14  ;;  %v6376_v58 = vadd.f32 %v6581_v41, %v6311_v37  ;;  %v6377_v28 = vadd.f32 %v6582_v45, %v6312_v40  ;;  %v6378_v3 = vadd.f32 %v6583_v61, %v6313_v4  ;;  %v6605_v4 = vld [vmem:[%s10647_s16 + $0x139] sm:$0xff]  ;;  %v6609_v45 = vld [vmem:[%s10647_s16 + $0x169] sm:$0xff] }
 0x755   : > { %13234 = vst [vmem:[#allocation23_spill] sm:$0xff] %v12736_v12  ;;  %v6379_v20 = vadd.f32 %v6584_v22, %v6314_v36  ;;  %v6380_v54 = vadd.f32 %v6585_v38, %v6315_v44  ;;  %v6381_v43 = vadd.f32 %v6586_v50, %v6316_v48  ;;  %v6382_v47 = vadd.f32 %v6587_v18, %v6317_v24  ;;  %v6604_v12 = vld [vmem:[%s10647_s16 + $0x129] sm:$0xff]  ;;  %v6608_v36 = vld [vmem:[%s10647_s16 + $0x159] sm:$0xff]  ;;  %v6607_v44 = vld [vmem:[%s10647_s16 + $0x151] sm:$0xff] }
 0x756   : > { %v6383_v14 = vadd.f32 %v6588_v32, %v6318_v6  ;;  %v6384_v2 = vadd.f32 %v6589_v19, %v6319_v33  ;;  %v6385_v37 = vadd.f32 %v6590_v25, %v6320_v29  ;;  %v6386_v40 = vadd.f32 %v6591_v15, %v6321_v39  ;;  %6408 = vst [vmem:[%s12687_s26] sm:$0xff] %v6376_v58  ;;  %v6610_v29 = vld [vmem:[%s10647_s16 + $0x171] sm:$0xff]  ;;  %v6612_v41 = vld [vmem:[%s10647_s16 + $0x189] sm:$0xff] }
 0x757   : > { %6409 = vst [vmem:[%s12687_s26 + $0x8] sm:$0xff] %v6377_v28  ;;  %6410 = vst [vmem:[%s12687_s26 + $0x10] sm:$0xff] %v6378_v3  ;;  %v6387_v48 = vadd.f32 %v6592_v62, %v6322_v55  ;;  %v6388_v24 = vadd.f32 %v6593_v42, %v6323_v13  ;;  %v6389_v6 = vadd.f32 %v6594_v60, %v6324_v49 }
 0x758   : > { %v6390_v33 = vadd.f32 %v6595_v1, %v6325_v23  ;;  %6411 = vst [vmem:[%s12687_s26 + $0x18] sm:$0xff] %v6379_v20  ;;  %6412 = vst [vmem:[%s12687_s26 + $0x20] sm:$0xff] %v6380_v54  ;;  %v6391_v39 = vadd.f32 %v6596_v31, %v12690_v51  ;;  %v6392_v55 = vadd.f32 %v6597_v57, %v12692_v56 }
 0x759   : > { %6413 = vst [vmem:[%s12687_s26 + $0x28] sm:$0xff] %v6381_v43  ;;  %6414 = vst [vmem:[%s12687_s26 + $0x30] sm:$0xff] %v6382_v47  ;;  %v6393_v13 = vadd.f32 %v6598_v9, %v12694_v0  ;;  %v6394_v49 = vadd.f32 %v6599_v16, %v6329_v63  ;;  %v6395_v22 = vadd.f32 %v6600_v59, %v12700_v35 }
 0x75a   : > { %6415 = vst [vmem:[%s12687_s26 + $0x38] sm:$0xff] %v6383_v14  ;;  %6416 = vst [vmem:[%s12687_s26 + $0x40] sm:$0xff] %v6384_v2  ;;  %v6396_v61 = vadd.f32 %v6601_v53, %v12702_v34  ;;  %v6397_v50 = vadd.f32 %v6602_v7, %v12704_v8  ;;  %v6398_v38 = vadd.f32 %v6603_v30, %v6333_v11 }
 0x75b   : > { %6417 = vst [vmem:[%s12687_s26 + $0x48] sm:$0xff] %v6385_v37  ;;  %6418 = vst [vmem:[%s12687_s26 + $0x50] sm:$0xff] %v6386_v40  ;;  %v6399_v23 = vadd.f32 %v6604_v12, %v12709_v52  ;;  %v6400_v51 = vadd.f32 %v6605_v4, %v12711_v10  ;;  %v6401_v56 = vadd.f32 %v6606_v26, %v12713_v17 }
 0x75c   : > { %6419 = vst [vmem:[%s12687_s26 + $0x58] sm:$0xff] %v6387_v48  ;;  %6420 = vst [vmem:[%s12687_s26 + $0x60] sm:$0xff] %v6388_v24  ;;  %v6402_v0 = vadd.f32 %v6607_v44, %v12721_v5  ;;  %v6403_v32 = vadd.f32 %v6608_v36, %v12726_v27  ;;  %v6404_v18 = vadd.f32 %v6609_v45, %v12731_v46  ;;  %v13235_v25 = vld [vmem:[#allocation23_spill] sm:$0xff] }
 0x75d   : > { %6421 = vst [vmem:[%s12687_s26 + $0x68] sm:$0xff] %v6389_v6  ;;  %6422 = vst [vmem:[%s12687_s26 + $0x70] sm:$0xff] %v6390_v33  ;;  %v6405_v19 = vadd.f32 %v6610_v29, %v13235_v25  ;;  %v6407_v63 = vadd.f32 %v6612_v41, %v12744_v21 }
 0x75e   : > { %6423 = vst [vmem:[%s12687_s26 + $0x78] sm:$0xff] %v6391_v39  ;;  %6424 = vst [vmem:[%s12687_s26 + $0x80] sm:$0xff] %v6392_v55 }
 0x75f   : > { %6425 = vst [vmem:[%s12687_s26 + $0x88] sm:$0xff] %v6393_v13  ;;  %6426 = vst [vmem:[%s12687_s26 + $0x90] sm:$0xff] %v6394_v49 }
 0x760   : > { %6427 = vst [vmem:[%s12687_s26 + $0x98] sm:$0xff] %v6395_v22  ;;  %6428 = vst [vmem:[%s12687_s26 + $0xa0] sm:$0xff] %v6396_v61 }
 0x761   : > { %6429 = vst [vmem:[%s12687_s26 + $0xa8] sm:$0xff] %v6397_v50  ;;  %6430 = vst [vmem:[%s12687_s26 + $0xb0] sm:$0xff] %v6398_v38 }
 0x762   : > { %6431 = vst [vmem:[%s12687_s26 + $0xb8] sm:$0xff] %v6399_v23  ;;  %6432 = vst [vmem:[%s12687_s26 + $0xc0] sm:$0xff] %v6400_v51 }
 0x763   : > { %6433 = vst [vmem:[%s12687_s26 + $0xc8] sm:$0xff] %v6401_v56  ;;  %6434 = vst [vmem:[%s12687_s26 + $0xd0] sm:$0xff] %v6402_v0 }
 0x764   : > { %6435 = vst [vmem:[%s12687_s26 + $0xd8] sm:$0xff] %v6403_v32  ;;  %6436 = vst [vmem:[%s12687_s26 + $0xe0] sm:$0xff] %v6404_v18 }
 0x765   : > { %6437 = vst [vmem:[%s12687_s26 + $0xe8] sm:$0xff] %v6405_v19  ;;  %6439 = vst [vmem:[%s12687_s26 + $0xf8] sm:$0xff] %v6407_v63 }
 0x766   : > { %10320 = shalt.err (!%p10317_p13)
}
 0x767   : > { %s10321_s30 = scalar_lea.hbm %s12794_s17, 4096  ;;  %s10325_s16 = scalar_lea.hbm %s12863_s5, 8192 }
 0x768   : > { %p10322_p9 = scmp.ne.s32.totalorder %s12794_s17, %s10321_s30  ;;  %p10326_p6 = scmp.lt.u32.totalorder %s12794_s17, %s12863_s5 }
 0x769   : > { %p10327_p4 = scmp.lt.u32.totalorder %s10325_s16, %s10321_s30  ;;  %p10329_p3 = scmp.lt.u32.totalorder %s10321_s30, %s12794_s17 }
 0x76a   : > { %p10323_p0 = pnand %p10322_p9, %p10588_p10 }
 0x76b   : > { %p10328_p8 = por %p10327_p4, %p10326_p6 }
 0x76c   : > { %p10324_p11 = pneg %p10323_p0 }
 0x76d   : > { %p10330_p5 = por %p10329_p3, %p10328_p8 }
 0x76f   : > { %p10331_p7 = pnand %p10330_p5, %p10324_p11 }
 0x771   : > { %10334 = shalt.err (!%p10331_p7)
}
 0x772   : > { %s10391_s27 = smov 128   ;;  %s10392_s8 = smov 8  }
 0x773   : > { %10032 = dma.vmem_to_hbm [thread:$0]  (%p10588_p10), %s12798_s13, 4096, %s12794_s17, %s6441_s22, %s10391_s27, %s10391_s27, %s10392_s8  }
 0x774 PF: > { %s6469_s28 = sand.u32 1, %s10369_s18   ;;  %p13236_p12 = scmp.ne.s32.totalorder %s13031_s25, 0 }
 0x775   : > { %p13237_p1 = scmp.ge.s32.totalorder %s10381_s21, 2  ;;  %s6470_s11 = scalar_lea.sflag [#allocation5], %s6469_s28 }
 0x777   : > { %p10052_p2 = pnand %p13237_p1, %p13236_p12 }
 0x779   : > { %10364 = dma.done.wait (!%p10052_p2), %s6470_s11, 4096  }
 0x77a   : > { %10366 = vsyncadd (!%p10052_p2), %s6470_s11, 4294963200  ;;  %p20_p13 = scmp.ge.s32.totalorder %s10578_s14, 4   ;;  %s13238_s18 = smov %s10373_s19 }
 0x77b   : > { %s13239_s19 = smov %s10377_s20  ;;  %s13240_s20 = smov %s10594_s10 }
 0x77c   : > { %s13241_s21 = smov %s10578_s14  ;;  %22 = sbr.rel (!%p20_p13) target bundleno = 7 (0x7), region = 104 }
 0x783   :  { %6475 = vsyncpa [#allocation4], 1 }
 0x784   :  { %6477 = vsyncpa [#allocation4 + $0x1], 1 }
 0x785   :  { %6478 = vsyncpa [#allocation7], 1 }
 0x786   :  { %6479 = vsyncpa [#allocation10], 1 }
 0x787   :  { %6480 = vsyncpa [#allocation5], 1 }
 0x788   :  { %6482 = vsyncpa [#allocation5 + $0x1], 1 }

</bundles_post_ra>
